<compile_context>
chip_gen: v7x
topology: tpu7x:2x2x1
jax: 0.10.0
libtpu: 0.0.40
codegen_flags: <defaults>
</compile_context>

<pallas_src>
import jax
import jax.numpy as jnp
from jax import lax
from jax.experimental import pallas as pl
from jax.experimental.pallas import tpu as pltpu

EPS = 1e-5          # BatchNorm eps
NEG_SLOPE = 0.1     # LeakyReLU slope


def _leaky_relu(t):
    return jnp.where(t > 0, t, NEG_SLOPE * t)


def _make_kernel(H, W, C, pool):
    """Builds the per-batch-element kernel (all sizes static / closed over)."""
    OH, OW = (H // pool, W // pool) if pool > 1 else (H, W)

    def kernel(x_ref, w1_ref, w2_ref, w3_ref,
               s1_ref, b1_ref, s2_ref, b2_ref, s3_ref, b3_ref,
               out_ref, pad_ref):
        # x_ref  : (1, H, W, C) f32        one NHWC image
        # w*_ref : (9*C, C)    bf16        im2col weights ((ky,kx,ci) x co)
        # s*/b*  : (1, C)      f32         folded BatchNorm scale / bias
        # out_ref: (1, OH, OW*C) f32       lane-dense output block
        # pad_ref: VMEM (H+2, W+2, C) bf16 zero-haloed activation scratch

        # Re-zero only the halo strips each step (interior is fully overwritten
        # by every conv stage; border is never written).  Re-doing it per step
        # keeps it correct when the grid is sharded across TensorCores.
        zrow = jnp.zeros((1, W + 2, C), jnp.bfloat16)
        zcol = jnp.zeros((H + 2, 1, C), jnp.bfloat16)
        pad_ref[0:1, :, :] = zrow
        pad_ref[H + 1:H + 2, :, :] = zrow
        pad_ref[:, 0:1, :] = zcol
        pad_ref[:, W + 1:W + 2, :] = zcol

        def conv_bn(act_hwc_bf16, w_ref, s_ref, b_ref):
            # im2col-in-K: store the activation into the haloed scratch, read
            # the 9 shifted views (vertical shift is a free leading-dim offset,
            # horizontal shift is a small sublane offset), concatenate on the
            # contraction axis and do a single MXU matmul with f32 accumulation.
            pad_ref[1:H + 1, 1:W + 1, :] = act_hwc_bf16
            taps = [pad_ref[ky:ky + H, kx:kx + W, :]
                    for ky in range(3) for kx in range(3)]
            lhs = jnp.concatenate(taps, axis=-1).reshape(H * W, 9 * C)
            z = jnp.dot(lhs, w_ref[...],
                        preferred_element_type=jnp.float32)      # (H*W, C) f32
            # folded BatchNorm: y * s + (b - m*s)
            return z * s_ref[...] + b_ref[...]

        x = x_ref[0]                                              # (H, W, C) f32

        a = _leaky_relu(conv_bn(x.astype(jnp.bfloat16), w1_ref, s1_ref, b1_ref))
        a = _leaky_relu(conv_bn(a.astype(jnp.bfloat16).reshape(H, W, C),
                                w2_ref, s2_ref, b2_ref))
        a = conv_bn(a.astype(jnp.bfloat16).reshape(H, W, C),
                    w3_ref, s3_ref, b3_ref)

        # residual add (identity downsample) + final LeakyReLU (all f32)
        y = _leaky_relu(a + x.reshape(H * W, C))                  # (H*W, C)
        y = y.reshape(H, W, C)

        if pool > 1:
            # fused MaxPool2d(pool).
            # H-direction: aligned column slices of a free leading-dim reshape.
            t = y.reshape(OH, pool * W, C)
            m = t[:, 0:W, :]
            for p in range(1, pool):
                m = jnp.maximum(m, t[:, p * W:(p + 1) * W, :])    # (OH, W, C)
            # W-direction: group adjacent pixels and slice-and-max (no
            # middle-axis reduction).
            m = m.reshape(OH, OW, pool, C)
            y = m[:, :, 0, :]
            for p in range(1, pool):
                y = jnp.maximum(y, m[:, :, p, :])                 # (OH, OW, C)

        # lane-dense store: last dim OW*C is a multiple of 128 -> unmasked vst
        out_ref[0] = y.reshape(OH, OW * C)

    return kernel, OH, OW


def basic_block_forward_nhwc(x_nhwc, params, *, stride=2, max_pool=True):
    """BasicBlock.forward (eval mode) on NHWC activations.

    Matches the PyTorch module with stride-1 convs, downsample=None (identity
    residual, inplanes == planes), LeakyReLU(0.1), optional fused
    MaxPool2d(stride); drop_rate=0 / eval -> DropBlock & dropout are identity.
    """
    N, H, W, C = x_nhwc.shape
    pool = stride if (max_pool and stride > 1) else 1
    assert H % pool == 0 and W % pool == 0
    for k in ("w1", "w2", "w3"):
        assert params[k].shape == (C, C, 3, 3), (
            "kernel implements downsample=None (inplanes == planes, stride-1 convs)")

    x = x_nhwc.astype(jnp.float32)

    # PyTorch OIHW (co, ci, ky, kx) -> im2col ((ky,kx,ci), co) = (9C, C), bf16
    def prep_w(w):
        return jnp.transpose(w, (2, 3, 1, 0)).reshape(9 * C, C).astype(jnp.bfloat16)

    w1, w2, w3 = prep_w(params["w1"]), prep_w(params["w2"]), prep_w(params["w3"])

    def fold_bn(g, b, m, v):
        s = g / jnp.sqrt(v + EPS)
        return (s.reshape(1, C).astype(jnp.float32),
                (b - m * s).reshape(1, C).astype(jnp.float32))

    s1, b1 = fold_bn(params["g1"], params["b1"], params["m1"], params["v1"])
    s2, b2 = fold_bn(params["g2"], params["b2"], params["m2"], params["v2"])
    s3, b3 = fold_bn(params["g3"], params["b3"], params["m3"], params["v3"])

    kernel, OH, OW = _make_kernel(H, W, C, pool)

    w_spec = pl.BlockSpec((9 * C, C), lambda n: (0, 0))
    v_spec = pl.BlockSpec((1, C), lambda n: (0, 0))

    flops = 2 * N * 3 * (H * W) * (9 * C) * C
    bytes_accessed = (N * H * W * C * 4 + 3 * 9 * C * C * 2 + 6 * C * 4
                      + N * OH * OW * C * 4)

    out = pl.pallas_call(
        kernel,
        out_shape=jax.ShapeDtypeStruct((N, OH, OW * C), jnp.float32),
        grid_spec=pltpu.PrefetchScalarGridSpec(
            num_scalar_prefetch=0,
            grid=(N,),
            in_specs=[
                pl.BlockSpec((1, H, W, C), lambda n: (n, 0, 0, 0)),
                w_spec, w_spec, w_spec,
                v_spec, v_spec, v_spec, v_spec, v_spec, v_spec,
            ],
            out_specs=pl.BlockSpec((1, OH, OW * C), lambda n: (n, 0, 0)),
            scratch_shapes=[pltpu.VMEM((H + 2, W + 2, C), jnp.bfloat16)],
        ),
        compiler_params=pltpu.CompilerParams(
            dimension_semantics=("parallel",)),
        cost_estimate=pl.CostEstimate(flops=flops, transcendentals=0,
                                      bytes_accessed=bytes_accessed),
    )(x, w1, w2, w3, s1, b1, s2, b2, s3, b3)

    return out.reshape(N, OH, OW, C)


def basic_block_forward(x_nchw, params, *, stride=2, max_pool=True):
    # Thin NCHW adapter for the PyTorch-layout demo.  In a real network keep
    # activations NHWC end-to-end and call basic_block_forward_nhwc directly —
    # these two transposes are a full HBM roundtrip of the activation.
    x = jnp.transpose(x_nchw, (0, 2, 3, 1))
    out = basic_block_forward_nhwc(x, params, stride=stride, max_pool=max_pool)
    return jnp.transpose(out, (0, 3, 1, 2))


# ----------------------------- pure-JAX reference ---------------------------
def reference_forward(x, params, *, stride=2, max_pool=True):
    def conv(t, w):
        return lax.conv_general_dilated(
            t, w, window_strides=(1, 1), padding=((1, 1), (1, 1)),
            dimension_numbers=("NCHW", "OIHW", "NCHW"))

    def bn(t, g, b, m, v):
        s = (g / jnp.sqrt(v + EPS))[None, :, None, None]
        return (t - m[None, :, None, None]) * s + b[None, :, None, None]

    lrelu = lambda t: jnp.where(t > 0, t, NEG_SLOPE * t)

    out = lrelu(bn(conv(x, params["w1"]), params["g1"], params["b1"], params["m1"], params["v1"]))
    out = lrelu(bn(conv(out, params["w2"]), params["g2"], params["b2"], params["m2"], params["v2"]))
    out = bn(conv(out, params["w3"]), params["g3"], params["b3"], params["m3"], params["v3"])
    out = lrelu(out + x)
    if max_pool and stride > 1:
        out = lax.reduce_window(out, -jnp.inf, lax.max,
                                (1, 1, stride, stride), (1, 1, stride, stride), "VALID")
    return out


# ------------------------------------ main -----------------------------------
if __name__ == "__main__":
    N, C, H, W = 2, 32, 16, 16      # inplanes == planes == 32 (downsample=None)
    STRIDE = 2                      # maxpool kernel/stride

    key = jax.random.PRNGKey(0)
    keys = jax.random.split(key, 16)

    def bn_params(k0, k1, k2, k3):
        return (jax.random.uniform(k0, (C,), jnp.float32, 0.5, 1.5),   # gamma
                0.1 * jax.random.normal(k1, (C,), jnp.float32),        # beta
                0.1 * jax.random.normal(k2, (C,), jnp.float32),        # running_mean
                jax.random.uniform(k3, (C,), jnp.float32, 0.5, 1.5))   # running_var

    g1, b1, m1, v1 = bn_params(*keys[3:7])
    g2, b2, m2, v2 = bn_params(*keys[7:11])
    g3, b3, m3, v3 = bn_params(*keys[11:15])

    params = dict(
        w1=0.1 * jax.random.normal(keys[0], (C, C, 3, 3), jnp.float32),
        w2=0.1 * jax.random.normal(keys[1], (C, C, 3, 3), jnp.float32),
        w3=0.1 * jax.random.normal(keys[2], (C, C, 3, 3), jnp.float32),
        g1=g1, b1=b1, m1=m1, v1=v1,
        g2=g2, b2=b2, m2=m2, v2=v2,
        g3=g3, b3=b3, m3=m3, v3=v3,
    )

    x = jax.random.normal(keys[15], (N, C, H, W), jnp.float32)

    out = basic_block_forward(x, params, stride=STRIDE, max_pool=True)
    out = jax.block_until_ready(out)

    ref = jax.block_until_ready(reference_forward(x, params, stride=STRIDE, max_pool=True))

    assert out.shape == (N, C, H // STRIDE, W // STRIDE), out.shape
    # bf16 matmul operands, f32 accumulation everywhere else (no bf16
    # intermediate roundtrip anymore) -> tighter tolerance than v2.
    rel = jnp.linalg.norm(out - ref) / jnp.linalg.norm(ref)
    max_abs = jnp.max(jnp.abs(out - ref))
    assert float(rel) < 3e-2, (float(rel), float(max_abs))
    assert float(max_abs) < 0.5, float(max_abs)

    print("KERNEL_OK")
</pallas_src>

<mosaic_0001>
module attributes {stable_mosaic.version = 11 : i64} {
  func.func @kernel(%arg0: i32, %arg1: memref<1x16x16x32xf32, #tpu.memory_space<vmem>>, %arg2: memref<288x32xbf16, #tpu.memory_space<vmem>>, %arg3: memref<288x32xbf16, #tpu.memory_space<vmem>>, %arg4: memref<288x32xbf16, #tpu.memory_space<vmem>>, %arg5: memref<1x32xf32, #tpu.memory_space<vmem>>, %arg6: memref<1x32xf32, #tpu.memory_space<vmem>>, %arg7: memref<1x32xf32, #tpu.memory_space<vmem>>, %arg8: memref<1x32xf32, #tpu.memory_space<vmem>>, %arg9: memref<1x32xf32, #tpu.memory_space<vmem>>, %arg10: memref<1x32xf32, #tpu.memory_space<vmem>>, %arg11: memref<1x8x256xf32, #tpu.memory_space<vmem>>, %arg12: memref<18x18x32xbf16, #tpu.memory_space<vmem>>) attributes {dimension_semantics = [#tpu.dimension_semantics<parallel>], iteration_bounds = array<i64: 2>, scalar_prefetch = 0 : i64, scratch_operands = 1 : i64, tpu.core_type = #tpu.core_type<tc>, window_params = [{transform_indices = @transform_0, window_bounds = array<i64: 1, 16, 16, 32>}, {pipeline_mode = #tpu.pipeline_mode<synchronous>, transform_indices = @transform_1, window_bounds = array<i64: 288, 32>}, {pipeline_mode = #tpu.pipeline_mode<synchronous>, transform_indices = @transform_2, window_bounds = array<i64: 288, 32>}, {pipeline_mode = #tpu.pipeline_mode<synchronous>, transform_indices = @transform_3, window_bounds = array<i64: 288, 32>}, {pipeline_mode = #tpu.pipeline_mode<synchronous>, transform_indices = @transform_4, window_bounds = array<i64: 1, 32>}, {pipeline_mode = #tpu.pipeline_mode<synchronous>, transform_indices = @transform_5, window_bounds = array<i64: 1, 32>}, {pipeline_mode = #tpu.pipeline_mode<synchronous>, transform_indices = @transform_6, window_bounds = array<i64: 1, 32>}, {pipeline_mode = #tpu.pipeline_mode<synchronous>, transform_indices = @transform_7, window_bounds = array<i64: 1, 32>}, {pipeline_mode = #tpu.pipeline_mode<synchronous>, transform_indices = @transform_8, window_bounds = array<i64: 1, 32>}, {pipeline_mode = #tpu.pipeline_mode<synchronous>, transform_indices = @transform_9, window_bounds = array<i64: 1, 32>}, {transform_indices = @transform_10, window_bounds = array<i64: 1, 8, 256>}]} {
    %cst = arith.constant 0.000000e+00 : bf16
    %0 = vector.broadcast %cst : bf16 to vector<1x18x32xbf16>
    %cst_0 = arith.constant 0.000000e+00 : bf16
    %1 = vector.broadcast %cst_0 : bf16 to vector<18x1x32xbf16>
    %c0 = arith.constant 0 : index
    %c0_1 = arith.constant 0 : index
    %c0_2 = arith.constant 0 : index
    %2 = vector.load %arg12[%c0, %c0_1, %c0_2] : memref<18x18x32xbf16, #tpu.memory_space<vmem>>, vector<1x18x32xbf16>
    tpu.vector_store %arg12[%c0, %c0_1, %c0_2], %0 {strides = array<i32>} : memref<18x18x32xbf16, #tpu.memory_space<vmem>>, vector<1x18x32xbf16>,
    %c17 = arith.constant 17 : index
    %c0_3 = arith.constant 0 : index
    %c0_4 = arith.constant 0 : index
    %3 = vector.load %arg12[%c17, %c0_3, %c0_4] : memref<18x18x32xbf16, #tpu.memory_space<vmem>>, vector<1x18x32xbf16>
    tpu.vector_store %arg12[%c17, %c0_3, %c0_4], %0 {strides = array<i32>} : memref<18x18x32xbf16, #tpu.memory_space<vmem>>, vector<1x18x32xbf16>,
    %c0_5 = arith.constant 0 : index
    %c0_6 = arith.constant 0 : index
    %c0_7 = arith.constant 0 : index
    %4 = vector.load %arg12[%c0_5, %c0_6, %c0_7] : memref<18x18x32xbf16, #tpu.memory_space<vmem>>, vector<18x1x32xbf16>
    tpu.vector_store %arg12[%c0_5, %c0_6, %c0_7], %1 {strides = array<i32>} : memref<18x18x32xbf16, #tpu.memory_space<vmem>>, vector<18x1x32xbf16>,
    %c0_8 = arith.constant 0 : index
    %c17_9 = arith.constant 17 : index
    %c0_10 = arith.constant 0 : index
    %5 = vector.load %arg12[%c0_8, %c17_9, %c0_10] : memref<18x18x32xbf16, #tpu.memory_space<vmem>>, vector<18x1x32xbf16>
    tpu.vector_store %arg12[%c0_8, %c17_9, %c0_10], %1 {strides = array<i32>} : memref<18x18x32xbf16, #tpu.memory_space<vmem>>, vector<18x1x32xbf16>,
    %c0_11 = arith.constant 0 : index
    %c0_12 = arith.constant 0 : index
    %c0_13 = arith.constant 0 : index
    %c0_14 = arith.constant 0 : index
    %6 = vector.load %arg1[%c0_11, %c0_12, %c0_13, %c0_14] : memref<1x16x16x32xf32, #tpu.memory_space<vmem>>, vector<1x16x16x32xf32>
    %7 = vector.shape_cast %6 : vector<1x16x16x32xf32> to vector<16x16x32xf32>
    %8 = arith.truncf %7 : vector<16x16x32xf32> to vector<16x16x32xbf16>
    %c1 = arith.constant 1 : index
    %c1_15 = arith.constant 1 : index
    %c0_16 = arith.constant 0 : index
    %9 = vector.load %arg12[%c1, %c1_15, %c0_16] : memref<18x18x32xbf16, #tpu.memory_space<vmem>>, vector<16x16x32xbf16>
    tpu.vector_store %arg12[%c1, %c1_15, %c0_16], %8 {strides = array<i32>} : memref<18x18x32xbf16, #tpu.memory_space<vmem>>, vector<16x16x32xbf16>,
    %c0_17 = arith.constant 0 : index
    %c0_18 = arith.constant 0 : index
    %c0_19 = arith.constant 0 : index
    %10 = vector.load %arg12[%c0_17, %c0_18, %c0_19] : memref<18x18x32xbf16, #tpu.memory_space<vmem>>, vector<16x16x32xbf16>
    %c0_20 = arith.constant 0 : index
    %c1_21 = arith.constant 1 : index
    %c0_22 = arith.constant 0 : index
    %11 = vector.load %arg12[%c0_20, %c1_21, %c0_22] : memref<18x18x32xbf16, #tpu.memory_space<vmem>>, vector<16x16x32xbf16>
    %c0_23 = arith.constant 0 : index
    %c2 = arith.constant 2 : index
    %c0_24 = arith.constant 0 : index
    %12 = vector.load %arg12[%c0_23, %c2, %c0_24] : memref<18x18x32xbf16, #tpu.memory_space<vmem>>, vector<16x16x32xbf16>
    %c1_25 = arith.constant 1 : index
    %c0_26 = arith.constant 0 : index
    %c0_27 = arith.constant 0 : index
    %13 = vector.load %arg12[%c1_25, %c0_26, %c0_27] : memref<18x18x32xbf16, #tpu.memory_space<vmem>>, vector<16x16x32xbf16>
    %c1_28 = arith.constant 1 : index
    %c1_29 = arith.constant 1 : index
    %c0_30 = arith.constant 0 : index
    %14 = vector.load %arg12[%c1_28, %c1_29, %c0_30] : memref<18x18x32xbf16, #tpu.memory_space<vmem>>, vector<16x16x32xbf16>
    %c1_31 = arith.constant 1 : index
    %c2_32 = arith.constant 2 : index
    %c0_33 = arith.constant 0 : index
    %15 = vector.load %arg12[%c1_31, %c2_32, %c0_33] : memref<18x18x32xbf16, #tpu.memory_space<vmem>>, vector<16x16x32xbf16>
    %c2_34 = arith.constant 2 : index
    %c0_35 = arith.constant 0 : index
    %c0_36 = arith.constant 0 : index
    %16 = vector.load %arg12[%c2_34, %c0_35, %c0_36] : memref<18x18x32xbf16, #tpu.memory_space<vmem>>, vector<16x16x32xbf16>
    %c2_37 = arith.constant 2 : index
    %c1_38 = arith.constant 1 : index
    %c0_39 = arith.constant 0 : index
    %17 = vector.load %arg12[%c2_37, %c1_38, %c0_39] : memref<18x18x32xbf16, #tpu.memory_space<vmem>>, vector<16x16x32xbf16>
    %c2_40 = arith.constant 2 : index
    %c2_41 = arith.constant 2 : index
    %c0_42 = arith.constant 0 : index
    %18 = vector.load %arg12[%c2_40, %c2_41, %c0_42] : memref<18x18x32xbf16, #tpu.memory_space<vmem>>, vector<16x16x32xbf16>
    %19 = tpu.concatenate %10, %11, %12, %13, %14, %15, %16, %17, %18 in 2 : vector<16x16x32xbf16>, vector<16x16x32xbf16>, vector<16x16x32xbf16>, vector<16x16x32xbf16>, vector<16x16x32xbf16>, vector<16x16x32xbf16>, vector<16x16x32xbf16>, vector<16x16x32xbf16>, vector<16x16x32xbf16> -> vector<16x16x288xbf16>
    %20 = vector.shape_cast %19 : vector<16x16x288xbf16> to vector<256x288xbf16>
    %c0_43 = arith.constant 0 : index
    %c0_44 = arith.constant 0 : index
    %21 = vector.load %arg2[%c0_43, %c0_44] : memref<288x32xbf16, #tpu.memory_space<vmem>>, vector<288x32xbf16>
    %cst_45 = arith.constant dense<0.000000e+00> : vector<256x32xf32>
    %22 = tpu.matmul %20, %21, %cst_45 {dimension_numbers = #tpu.dot_dimension_numbers<[1], [0], [0], [1], [0, 0, 1, 1], [], []>} : vector<256x288xbf16>, vector<288x32xbf16>, vector<256x32xf32> -> vector<256x32xf32>
    %c0_46 = arith.constant 0 : index
    %c0_47 = arith.constant 0 : index
    %23 = vector.load %arg5[%c0_46, %c0_47] : memref<1x32xf32, #tpu.memory_space<vmem>>, vector<1x32xf32>
    %24 = vector.broadcast %23 : vector<1x32xf32> to vector<256x32xf32>
    %25 = arith.mulf %22, %24 : vector<256x32xf32>
    %c0_48 = arith.constant 0 : index
    %c0_49 = arith.constant 0 : index
    %26 = vector.load %arg6[%c0_48, %c0_49] : memref<1x32xf32, #tpu.memory_space<vmem>>, vector<1x32xf32>
    %27 = vector.broadcast %26 : vector<1x32xf32> to vector<256x32xf32>
    %28 = arith.addf %25, %27 : vector<256x32xf32>
    %cst_50 = arith.constant 0.000000e+00 : f32
    %29 = vector.broadcast %cst_50 : f32 to vector<256x32xf32>
    %30 = arith.cmpf ogt, %28, %29 : vector<256x32xf32>
    %cst_51 = arith.constant 1.000000e-01 : f32
    %31 = vector.broadcast %cst_51 : f32 to vector<256x32xf32>
    %32 = arith.mulf %31, %28 : vector<256x32xf32>
    %33 = arith.select %30, %28, %32 : vector<256x32xi1>, vector<256x32xf32>
    %34 = arith.truncf %33 : vector<256x32xf32> to vector<256x32xbf16>
    %35 = vector.shape_cast %34 : vector<256x32xbf16> to vector<16x16x32xbf16>
    %c1_52 = arith.constant 1 : index
    %c1_53 = arith.constant 1 : index
    %c0_54 = arith.constant 0 : index
    %36 = vector.load %arg12[%c1_52, %c1_53, %c0_54] : memref<18x18x32xbf16, #tpu.memory_space<vmem>>, vector<16x16x32xbf16>
    tpu.vector_store %arg12[%c1_52, %c1_53, %c0_54], %35 {strides = array<i32>} : memref<18x18x32xbf16, #tpu.memory_space<vmem>>, vector<16x16x32xbf16>,
    %c0_55 = arith.constant 0 : index
    %c0_56 = arith.constant 0 : index
    %c0_57 = arith.constant 0 : index
    %37 = vector.load %arg12[%c0_55, %c0_56, %c0_57] : memref<18x18x32xbf16, #tpu.memory_space<vmem>>, vector<16x16x32xbf16>
    %c0_58 = arith.constant 0 : index
    %c1_59 = arith.constant 1 : index
    %c0_60 = arith.constant 0 : index
    %38 = vector.load %arg12[%c0_58, %c1_59, %c0_60] : memref<18x18x32xbf16, #tpu.memory_space<vmem>>, vector<16x16x32xbf16>
    %c0_61 = arith.constant 0 : index
    %c2_62 = arith.constant 2 : index
    %c0_63 = arith.constant 0 : index
    %39 = vector.load %arg12[%c0_61, %c2_62, %c0_63] : memref<18x18x32xbf16, #tpu.memory_space<vmem>>, vector<16x16x32xbf16>
    %c1_64 = arith.constant 1 : index
    %c0_65 = arith.constant 0 : index
    %c0_66 = arith.constant 0 : index
    %40 = vector.load %arg12[%c1_64, %c0_65, %c0_66] : memref<18x18x32xbf16, #tpu.memory_space<vmem>>, vector<16x16x32xbf16>
    %c1_67 = arith.constant 1 : index
    %c1_68 = arith.constant 1 : index
    %c0_69 = arith.constant 0 : index
    %41 = vector.load %arg12[%c1_67, %c1_68, %c0_69] : memref<18x18x32xbf16, #tpu.memory_space<vmem>>, vector<16x16x32xbf16>
    %c1_70 = arith.constant 1 : index
    %c2_71 = arith.constant 2 : index
    %c0_72 = arith.constant 0 : index
    %42 = vector.load %arg12[%c1_70, %c2_71, %c0_72] : memref<18x18x32xbf16, #tpu.memory_space<vmem>>, vector<16x16x32xbf16>
    %c2_73 = arith.constant 2 : index
    %c0_74 = arith.constant 0 : index
    %c0_75 = arith.constant 0 : index
    %43 = vector.load %arg12[%c2_73, %c0_74, %c0_75] : memref<18x18x32xbf16, #tpu.memory_space<vmem>>, vector<16x16x32xbf16>
    %c2_76 = arith.constant 2 : index
    %c1_77 = arith.constant 1 : index
    %c0_78 = arith.constant 0 : index
    %44 = vector.load %arg12[%c2_76, %c1_77, %c0_78] : memref<18x18x32xbf16, #tpu.memory_space<vmem>>, vector<16x16x32xbf16>
    %c2_79 = arith.constant 2 : index
    %c2_80 = arith.constant 2 : index
    %c0_81 = arith.constant 0 : index
    %45 = vector.load %arg12[%c2_79, %c2_80, %c0_81] : memref<18x18x32xbf16, #tpu.memory_space<vmem>>, vector<16x16x32xbf16>
    %46 = tpu.concatenate %37, %38, %39, %40, %41, %42, %43, %44, %45 in 2 : vector<16x16x32xbf16>, vector<16x16x32xbf16>, vector<16x16x32xbf16>, vector<16x16x32xbf16>, vector<16x16x32xbf16>, vector<16x16x32xbf16>, vector<16x16x32xbf16>, vector<16x16x32xbf16>, vector<16x16x32xbf16> -> vector<16x16x288xbf16>
    %47 = vector.shape_cast %46 : vector<16x16x288xbf16> to vector<256x288xbf16>
    %c0_82 = arith.constant 0 : index
    %c0_83 = arith.constant 0 : index
    %48 = vector.load %arg3[%c0_82, %c0_83] : memref<288x32xbf16, #tpu.memory_space<vmem>>, vector<288x32xbf16>
    %cst_84 = arith.constant dense<0.000000e+00> : vector<256x32xf32>
    %49 = tpu.matmul %47, %48, %cst_84 {dimension_numbers = #tpu.dot_dimension_numbers<[1], [0], [0], [1], [0, 0, 1, 1], [], []>} : vector<256x288xbf16>, vector<288x32xbf16>, vector<256x32xf32> -> vector<256x32xf32>
    %c0_85 = arith.constant 0 : index
    %c0_86 = arith.constant 0 : index
    %50 = vector.load %arg7[%c0_85, %c0_86] : memref<1x32xf32, #tpu.memory_space<vmem>>, vector<1x32xf32>
    %51 = vector.broadcast %50 : vector<1x32xf32> to vector<256x32xf32>
    %52 = arith.mulf %49, %51 : vector<256x32xf32>
    %c0_87 = arith.constant 0 : index
    %c0_88 = arith.constant 0 : index
    %53 = vector.load %arg8[%c0_87, %c0_88] : memref<1x32xf32, #tpu.memory_space<vmem>>, vector<1x32xf32>
    %54 = vector.broadcast %53 : vector<1x32xf32> to vector<256x32xf32>
    %55 = arith.addf %52, %54 : vector<256x32xf32>
    %cst_89 = arith.constant 0.000000e+00 : f32
    %56 = vector.broadcast %cst_89 : f32 to vector<256x32xf32>
    %57 = arith.cmpf ogt, %55, %56 : vector<256x32xf32>
    %cst_90 = arith.constant 1.000000e-01 : f32
    %58 = vector.broadcast %cst_90 : f32 to vector<256x32xf32>
    %59 = arith.mulf %58, %55 : vector<256x32xf32>
    %60 = arith.select %57, %55, %59 : vector<256x32xi1>, vector<256x32xf32>
    %61 = arith.truncf %60 : vector<256x32xf32> to vector<256x32xbf16>
    %62 = vector.shape_cast %61 : vector<256x32xbf16> to vector<16x16x32xbf16>
    %c1_91 = arith.constant 1 : index
    %c1_92 = arith.constant 1 : index
    %c0_93 = arith.constant 0 : index
    %63 = vector.load %arg12[%c1_91, %c1_92, %c0_93] : memref<18x18x32xbf16, #tpu.memory_space<vmem>>, vector<16x16x32xbf16>
    tpu.vector_store %arg12[%c1_91, %c1_92, %c0_93], %62 {strides = array<i32>} : memref<18x18x32xbf16, #tpu.memory_space<vmem>>, vector<16x16x32xbf16>,
    %c0_94 = arith.constant 0 : index
    %c0_95 = arith.constant 0 : index
    %c0_96 = arith.constant 0 : index
    %64 = vector.load %arg12[%c0_94, %c0_95, %c0_96] : memref<18x18x32xbf16, #tpu.memory_space<vmem>>, vector<16x16x32xbf16>
    %c0_97 = arith.constant 0 : index
    %c1_98 = arith.constant 1 : index
    %c0_99 = arith.constant 0 : index
    %65 = vector.load %arg12[%c0_97, %c1_98, %c0_99] : memref<18x18x32xbf16, #tpu.memory_space<vmem>>, vector<16x16x32xbf16>
    %c0_100 = arith.constant 0 : index
    %c2_101 = arith.constant 2 : index
    %c0_102 = arith.constant 0 : index
    %66 = vector.load %arg12[%c0_100, %c2_101, %c0_102] : memref<18x18x32xbf16, #tpu.memory_space<vmem>>, vector<16x16x32xbf16>
    %c1_103 = arith.constant 1 : index
    %c0_104 = arith.constant 0 : index
    %c0_105 = arith.constant 0 : index
    %67 = vector.load %arg12[%c1_103, %c0_104, %c0_105] : memref<18x18x32xbf16, #tpu.memory_space<vmem>>, vector<16x16x32xbf16>
    %c1_106 = arith.constant 1 : index
    %c1_107 = arith.constant 1 : index
    %c0_108 = arith.constant 0 : index
    %68 = vector.load %arg12[%c1_106, %c1_107, %c0_108] : memref<18x18x32xbf16, #tpu.memory_space<vmem>>, vector<16x16x32xbf16>
    %c1_109 = arith.constant 1 : index
    %c2_110 = arith.constant 2 : index
    %c0_111 = arith.constant 0 : index
    %69 = vector.load %arg12[%c1_109, %c2_110, %c0_111] : memref<18x18x32xbf16, #tpu.memory_space<vmem>>, vector<16x16x32xbf16>
    %c2_112 = arith.constant 2 : index
    %c0_113 = arith.constant 0 : index
    %c0_114 = arith.constant 0 : index
    %70 = vector.load %arg12[%c2_112, %c0_113, %c0_114] : memref<18x18x32xbf16, #tpu.memory_space<vmem>>, vector<16x16x32xbf16>
    %c2_115 = arith.constant 2 : index
    %c1_116 = arith.constant 1 : index
    %c0_117 = arith.constant 0 : index
    %71 = vector.load %arg12[%c2_115, %c1_116, %c0_117] : memref<18x18x32xbf16, #tpu.memory_space<vmem>>, vector<16x16x32xbf16>
    %c2_118 = arith.constant 2 : index
    %c2_119 = arith.constant 2 : index
    %c0_120 = arith.constant 0 : index
    %72 = vector.load %arg12[%c2_118, %c2_119, %c0_120] : memref<18x18x32xbf16, #tpu.memory_space<vmem>>, vector<16x16x32xbf16>
    %73 = tpu.concatenate %64, %65, %66, %67, %68, %69, %70, %71, %72 in 2 : vector<16x16x32xbf16>, vector<16x16x32xbf16>, vector<16x16x32xbf16>, vector<16x16x32xbf16>, vector<16x16x32xbf16>, vector<16x16x32xbf16>, vector<16x16x32xbf16>, vector<16x16x32xbf16>, vector<16x16x32xbf16> -> vector<16x16x288xbf16>
    %74 = vector.shape_cast %73 : vector<16x16x288xbf16> to vector<256x288xbf16>
    %c0_121 = arith.constant 0 : index
    %c0_122 = arith.constant 0 : index
    %75 = vector.load %arg4[%c0_121, %c0_122] : memref<288x32xbf16, #tpu.memory_space<vmem>>, vector<288x32xbf16>
    %cst_123 = arith.constant dense<0.000000e+00> : vector<256x32xf32>
    %76 = tpu.matmul %74, %75, %cst_123 {dimension_numbers = #tpu.dot_dimension_numbers<[1], [0], [0], [1], [0, 0, 1, 1], [], []>} : vector<256x288xbf16>, vector<288x32xbf16>, vector<256x32xf32> -> vector<256x32xf32>
    %c0_124 = arith.constant 0 : index
    %c0_125 = arith.constant 0 : index
    %77 = vector.load %arg9[%c0_124, %c0_125] : memref<1x32xf32, #tpu.memory_space<vmem>>, vector<1x32xf32>
    %78 = vector.broadcast %77 : vector<1x32xf32> to vector<256x32xf32>
    %79 = arith.mulf %76, %78 : vector<256x32xf32>
    %c0_126 = arith.constant 0 : index
    %c0_127 = arith.constant 0 : index
    %80 = vector.load %arg10[%c0_126, %c0_127] : memref<1x32xf32, #tpu.memory_space<vmem>>, vector<1x32xf32>
    %81 = vector.broadcast %80 : vector<1x32xf32> to vector<256x32xf32>
    %82 = arith.addf %79, %81 : vector<256x32xf32>
    %83 = vector.shape_cast %7 : vector<16x16x32xf32> to vector<256x32xf32>
    %84 = arith.addf %82, %83 : vector<256x32xf32>
    %cst_128 = arith.constant 0.000000e+00 : f32
    %85 = vector.broadcast %cst_128 : f32 to vector<256x32xf32>
    %86 = arith.cmpf ogt, %84, %85 : vector<256x32xf32>
    %cst_129 = arith.constant 1.000000e-01 : f32
    %87 = vector.broadcast %cst_129 : f32 to vector<256x32xf32>
    %88 = arith.mulf %87, %84 : vector<256x32xf32>
    %89 = arith.select %86, %84, %88 : vector<256x32xi1>, vector<256x32xf32>
    %90 = vector.shape_cast %89 : vector<256x32xf32> to vector<16x16x32xf32>
    %91 = vector.shape_cast %90 : vector<16x16x32xf32> to vector<8x32x32xf32>
    %92 = vector.extract_strided_slice %91 {offsets = [0, 0, 0], sizes = [8, 16, 32], strides = [1, 1, 1]} : vector<8x32x32xf32> to vector<8x16x32xf32>
    %93 = vector.extract_strided_slice %91 {offsets = [0, 16, 0], sizes = [8, 16, 32], strides = [1, 1, 1]} : vector<8x32x32xf32> to vector<8x16x32xf32>
    %94 = arith.maximumf %92, %93 : vector<8x16x32xf32>
    %95 = vector.shape_cast %94 : vector<8x16x32xf32> to vector<8x8x2x32xf32>
    %96 = vector.extract_strided_slice %95 {offsets = [0, 0, 0, 0], sizes = [8, 8, 1, 32], strides = [1, 1, 1, 1]} : vector<8x8x2x32xf32> to vector<8x8x1x32xf32>
    %97 = vector.shape_cast %96 : vector<8x8x1x32xf32> to vector<8x8x32xf32>
    %98 = vector.extract_strided_slice %95 {offsets = [0, 0, 1, 0], sizes = [8, 8, 1, 32], strides = [1, 1, 1, 1]} : vector<8x8x2x32xf32> to vector<8x8x1x32xf32>
    %99 = vector.shape_cast %98 : vector<8x8x1x32xf32> to vector<8x8x32xf32>
    %100 = arith.maximumf %97, %99 : vector<8x8x32xf32>
    %101 = vector.shape_cast %100 : vector<8x8x32xf32> to vector<8x256xf32>
    %c0_130 = arith.constant 0 : index
    %c0_131 = arith.constant 0 : index
    %c0_132 = arith.constant 0 : index
    %102 = vector.load %arg11[%c0_130, %c0_131, %c0_132] : memref<1x8x256xf32, #tpu.memory_space<vmem>>, vector<1x8x256xf32>
    %103 = vector.shape_cast %102 : vector<1x8x256xf32> to vector<8x256xf32>
    %104 = vector.shape_cast %101 : vector<8x256xf32> to vector<1x8x256xf32>
    tpu.vector_store %arg11[%c0_130, %c0_131, %c0_132], %104 {strides = array<i32>} : memref<1x8x256xf32, #tpu.memory_space<vmem>>, vector<1x8x256xf32>,
    return
  }
  func.func @transform_0(%arg0: i32) -> (i32, i32, i32, i32) {
    %c0_i32 = arith.constant 0 : i32
    %c0_i32_0 = arith.constant 0 : i32
    %c0_i32_1 = arith.constant 0 : i32
    %c0_i32_2 = arith.constant 0 : i32
    return %arg0, %c0_i32, %c0_i32_0, %c0_i32_1 : i32, i32, i32, i32
  }
  func.func @transform_1(%arg0: i32) -> (i32, i32) {
    %c0_i32 = arith.constant 0 : i32
    %c0_i32_0 = arith.constant 0 : i32
    %c0_i32_1 = arith.constant 0 : i32
    return %c0_i32, %c0_i32_0 : i32, i32
  }
  func.func @transform_2(%arg0: i32) -> (i32, i32) {
    %c0_i32 = arith.constant 0 : i32
    %c0_i32_0 = arith.constant 0 : i32
    %c0_i32_1 = arith.constant 0 : i32
    return %c0_i32, %c0_i32_0 : i32, i32
  }
  func.func @transform_3(%arg0: i32) -> (i32, i32) {
    %c0_i32 = arith.constant 0 : i32
    %c0_i32_0 = arith.constant 0 : i32
    %c0_i32_1 = arith.constant 0 : i32
    return %c0_i32, %c0_i32_0 : i32, i32
  }
  func.func @transform_4(%arg0: i32) -> (i32, i32) {
    %c0_i32 = arith.constant 0 : i32
    %c0_i32_0 = arith.constant 0 : i32
    %c0_i32_1 = arith.constant 0 : i32
    return %c0_i32, %c0_i32_0 : i32, i32
  }
  func.func @transform_5(%arg0: i32) -> (i32, i32) {
    %c0_i32 = arith.constant 0 : i32
    %c0_i32_0 = arith.constant 0 : i32
    %c0_i32_1 = arith.constant 0 : i32
    return %c0_i32, %c0_i32_0 : i32, i32
  }
  func.func @transform_6(%arg0: i32) -> (i32, i32) {
    %c0_i32 = arith.constant 0 : i32
    %c0_i32_0 = arith.constant 0 : i32
    %c0_i32_1 = arith.constant 0 : i32
    return %c0_i32, %c0_i32_0 : i32, i32
  }
  func.func @transform_7(%arg0: i32) -> (i32, i32) {
    %c0_i32 = arith.constant 0 : i32
    %c0_i32_0 = arith.constant 0 : i32
    %c0_i32_1 = arith.constant 0 : i32
    return %c0_i32, %c0_i32_0 : i32, i32
  }
  func.func @transform_8(%arg0: i32) -> (i32, i32) {
    %c0_i32 = arith.constant 0 : i32
    %c0_i32_0 = arith.constant 0 : i32
    %c0_i32_1 = arith.constant 0 : i32
    return %c0_i32, %c0_i32_0 : i32, i32
  }
  func.func @transform_9(%arg0: i32) -> (i32, i32) {
    %c0_i32 = arith.constant 0 : i32
    %c0_i32_0 = arith.constant 0 : i32
    %c0_i32_1 = arith.constant 0 : i32
    return %c0_i32, %c0_i32_0 : i32, i32
  }
  func.func @transform_10(%arg0: i32) -> (i32, i32, i32) {
    %c0_i32 = arith.constant 0 : i32
    %c0_i32_0 = arith.constant 0 : i32
    %c0_i32_1 = arith.constant 0 : i32
    return %arg0, %c0_i32, %c0_i32_0 : i32, i32, i32
  }
}

</mosaic_0001>

<bundles_post_ra>
// kernel: tpu_custom_call.1
= control target key start
LH: loop header
LB: loop body
LE: loop exit
PB: predicated region body
PF: predicated region fallthrough
CT: control target
= control target key end

     0   :  { %15 = vsyncpa [#allocation4], 0  ;;  %s17714_s0 = inlined_call_operand.vmem [shape: f32[2,16,16,32], index: 0, kind: input, shape index: {}]   ;;  %s17715_s1 = inlined_call_operand.vmem [shape: bf16[288,32], index: 1, kind: input, shape index: {}]   ;;  %s17716_s2 = inlined_call_operand.vmem [shape: bf16[288,32], index: 2, kind: input, shape index: {}]   ;;  %s17717_s3 = inlined_call_operand.vmem [shape: bf16[288,32], index: 3, kind: input, shape index: {}]   ;;  %s17718_s4 = inlined_call_operand.vmem [shape: f32[1,32], index: 4, kind: input, shape index: {}]   ;;  %s17719_s5 = inlined_call_operand.vmem [shape: f32[1,32], index: 5, kind: input, shape index: {}]   ;;  %s17720_s6 = inlined_call_operand.vmem [shape: f32[1,32], index: 6, kind: input, shape index: {}]   ;;  %s17721_s7 = inlined_call_operand.vmem [shape: f32[1,32], index: 7, kind: input, shape index: {}]   ;;  %s17722_s8 = inlined_call_operand.vmem [shape: f32[1,32], index: 8, kind: input, shape index: {}]   ;;  %s17723_s9 = inlined_call_operand.vmem [shape: f32[1,32], index: 9, kind: input, shape index: {}]   ;;  %s17724_s10 = inlined_call_operand.hbm [shape: f32[2,8,256], index: 10, kind: output, shape index: {}]  }
   0x1   :  { %17 = vsyncpa [#allocation4 + $0x1], 0  ;;  %s13217_s13 = smov 0   ;;  %s13219_s14 = smov 0  }
   0x2   :  { %s13221_s15 = smov 0   ;;  %s13223_s16 = smov 0  }
   0x3 LB: > { %s13238_s17 = sadd.s32 4294967295, %s13153_s16   ;;  %s11182_s18 = sadd.s32 4294967294, %s13153_s16   ;;  %s13153_s16 = sphi %s13223_s16, %s17898_s16   ;;  %s13149_s15 = sphi %s13221_s15, %s17897_s15   ;;  %s13145_s14 = sphi %s13219_s14, %s17896_s14   ;;  %s13141_s13 = sphi %s13217_s13, %s17895_s13  }
   0x4   : > { %s13242_s19 = sadd.s32 1, %s13153_s16   ;;  %s245_s20 = sadd.s32 1, %s13149_s15 }
   0x5   : > { %s242_s21 = ssub.s32 %s13153_s16, %s13242_s19  ;;  %p255_p0 = scmp.ne.s32.totalorder %s13149_s15, %s13145_s14 }
   0x6   : > { %p243_p1 = scmp.eq.s32.totalorder %s242_s21, 0  ;;  %p256_p2 = scmp.eq.s32.totalorder %s13238_s17, 1 }
   0x7   : > { %p261_p3 = scmp.ne.s32.totalorder %s13145_s14, %s13141_s13  ;;  %p262_p4 = scmp.eq.s32.totalorder %s11182_s18, 1 }
   0x8   : > { %s13253_s22 = scalar_select %p243_p1, %s13149_s15, %s245_s20  }
   0x9   : > { %p13255_p5 = por %p256_p2, %p255_p0  ;;  %p13259_p6 = por %p262_p4, %p261_p3 }
   0xa   : > { %p11185_p7 = scmp.ge.s32.totalorder %s13153_s16, 1  ;;  %p315_p8 = scmp.lt.s32.totalorder %s13153_s16, 3 }
   0xc   : > { %p316_p9 = pnand %p11185_p7, %p315_p8 }
   0xe   : > { %319 = sbr.rel (%p316_p9) target bundleno = 1789 (0x6fd), region = 60 }
  0x15   : > { %vm359_vm0 = vcmask 257024   ;;  %vm362_vm1 = vcmask 253952   ;;  %vm369_vm2 = vsmask.f32 256  ;;  %v13155_v0 = vmov 0   ;;  %p353_p10 = scmp.lt.s32.totalorder %s13238_s17, 1 }
  0x16   : > { %360 = vst.msk [vmem:[#allocation2] sm:$0xf] %vm359_vm0, %v13155_v0  ;;  %361 = vst.msk [vmem:[#allocation2 + $0x4] sm:$0xf] %vm359_vm0, %v13155_v0  ;;  %v17785_v1 = vmov 0  ;;  %vm1640_vm7 = vcmask 1046528  }
  0x17   : > { %363 = vst.msk [vmem:[#allocation2 + $0x8] sm:$0x1] %vm362_vm1, %v13155_v0  ;;  %vm13270_vm3 = vmand %vm362_vm1, %vm369_vm2  ;;  %v380_v2 = vld [vmem:[#allocation2 + $0x24] sm:$0x1]  ;;  %vm425_vm4 = vsmask.f32 7938 }
  0x18   : > { %v17786_v1 = vsel %vm13270_vm3, 4294967295, %v17785_v1  ;;  %365 = vst.msk [vmem:[#allocation2 + $0xcc] sm:$0xf] %vm359_vm0, %v13155_v0  ;;  %366 = vst.msk [vmem:[#allocation2 + $0xd0] sm:$0xf] %vm359_vm0, %v13155_v0  ;;  %v381_v3 = vsel %vm13270_vm3, 0, %v380_v2 }
  0x19   : > { %17787 = vst [vmem:[#allocation6_spill] sm:$0xff] %v17786_v1  ;;  %367 = vst.msk [vmem:[#allocation2 + $0xd4] sm:$0x1] %vm362_vm1, %v13155_v0  ;;  %v377_v4 = vld [vmem:[#allocation2 + $0x18] sm:$0x1]  ;;  %s354_s25 = scalar_select %p353_p10, %s13238_s17, 1 }
  0x1a   : > { %382 = vst [vmem:[#allocation2 + $0x24] sm:$0x1] %v381_v3  ;;  %v378_v5 = vsel %vm13270_vm3, 0, %v377_v4  ;;  %v383_v6 = vld [vmem:[#allocation2 + $0x30] sm:$0x1]  ;;  %vm13289_vm6 = vmand %vm362_vm1, %vm425_vm4  ;;  %v17790_v42 = vmov 0 }
  0x1b   : > { %v374_v7 = vld [vmem:[#allocation2 + $0xc] sm:$0x1]  ;;  %vm609_vm5 = vsmask.f32 4368  ;;  %379 = vst [vmem:[#allocation2 + $0x18] sm:$0x1] %v378_v5  ;;  %vm13321_vm8 = vmand %vm359_vm0, %vm425_vm4 }
  0x1c   : > { %v384_v8 = vsel %vm13270_vm3, 0, %v383_v6  ;;  %v375_v9 = vsel %vm13270_vm3, 0, %v374_v7  ;;  %s11902_s26 = sshll.u32 %s354_s25, 8  ;;  %v430_v11 = vld [vmem:[#allocation2 + $0x14] sm:$0x1]  ;;  %v17791_v42 = vsel %vm13321_vm8, 4294967295, %v17790_v42  ;;  %vm13329_vm9 = vmor %vm369_vm2, %vm609_vm5 }
  0x1d   : > { %385 = vst [vmem:[#allocation2 + $0x30] sm:$0x1] %v384_v8  ;;  %376 = vst [vmem:[#allocation2 + $0xc] sm:$0x1] %v375_v9  ;;  %v433_v12 = vld [vmem:[#allocation2 + $0x20] sm:$0x1]  ;;  %s13296_s29 = scalar_lea.vmem %s17714_s0, %s11902_s26 }
  0x1e   : > { %v431_v13 = vsel %vm13289_vm6, 0, %v430_v11  ;;  %v434_v14 = vsel %vm13289_vm6, 0, %v433_v12  ;;  %v436_v15 = vld [vmem:[#allocation2 + $0x2c] sm:$0x1]  ;;  %v439_v16 = vld [vmem:[#allocation2 + $0x38] sm:$0x1] }
  0x1f   : > { %v485_v17 = vld [vmem:[%s13296_s29 + $0x20] sm:$0xff]  ;;  %v486_v18 = vld [vmem:[%s13296_s29 + $0x28] sm:$0xff]  ;;  %v483_v19 = vld [vmem:[%s13296_s29 + $0x10] sm:$0xff]  ;;  %432 = vst [vmem:[#allocation2 + $0x14] sm:$0x1] %v431_v13  ;;  %v437_v20 = vsel %vm13289_vm6, 0, %v436_v15 }
  0x20   : > { %435 = vst [vmem:[#allocation2 + $0x20] sm:$0x1] %v434_v14  ;;  %v440_v21 = vsel %vm13289_vm6, 0, %v439_v16  ;;  %v427_v22 = vld [vmem:[#allocation2 + $0x8] sm:$0x1]  ;;  %v11907_v25 = vpack.c.bf16 %v485_v17, %v485_v17  ;;  %v11908_v26 = vpack.c.bf16 %v486_v18, %v486_v18  ;;  %v11905_v27 = vpack.c.bf16 %v483_v19, %v483_v19  ;;  %v484_v31 = vld [vmem:[%s13296_s29 + $0x18] sm:$0xff] }
  0x21   : > { %v13309_v23 = vld [vmem:[#allocation2 + $0x4] sm:$0xf]  ;;  %v1094_v24 = vld [vmem:[#allocation2] sm:$0xe]  ;;  %438 = vst [vmem:[#allocation2 + $0x2c] sm:$0x1] %v437_v20  ;;  %v11906_v39 = vpack.c.bf16 %v484_v31, %v484_v31 }
  0x22   : > { %441 = vst [vmem:[#allocation2 + $0x38] sm:$0x1] %v440_v21  ;;  %v428_v28 = vsel %vm13289_vm6, 0, %v427_v22  ;;  %v11253_v29 = vcombine.low %v1094_v24, %v13309_v23  ;;  %v371_v30 = vld [vmem:[#allocation2] sm:$0x1]  ;;  %v487_v32 = vld [vmem:[%s13296_s29 + $0x30] sm:$0xff] }
  0x23   : > { %429 = vst [vmem:[#allocation2 + $0x8] sm:$0x1] %v428_v28  ;;  %v372_v33 = vsel %vm13270_vm3, 0, %v371_v30  ;;  %v646_v34 = vshrl.u32 %v11907_v25, 16  ;;  %v649_v35 = vshll.u32 %v11907_v25, 16  ;;  %v654_v36 = vshrl.u32 %v11908_v26, 16 }
  0x24   : > { %v1641_v37 = vrot.slane %v11253_v29, 1  ;;  %373 = vst [vmem:[#allocation2] sm:$0x1] %v372_v33  ;;  %v657_v38 = vshll.u32 %v11908_v26, 16  ;;  %v629_v40 = vshrl.u32 %v11905_v27, 16  ;;  %v488_v41 = vld [vmem:[%s13296_s29 + $0x38] sm:$0xff]  ;;  %v11909_v46 = vpack.c.bf16 %v487_v32, %v487_v32 }
  0x25   : > { %17792 = vst [vmem:[#allocation7_spill] sm:$0xff] %v17791_v42  ;;  %v648_v43 = vrot.slane %v646_v34, 7  ;;  %v13325_v44 = vrot.slane %v654_v36, 7  ;;  %v632_v45 = vshll.u32 %v11905_v27, 16  ;;  %v17793_v47 = vmov 0  ;;  %v481_v58 = vld [vmem:[%s13296_s29] sm:$0xff] }
  0x26   : > { %v17794_v47 = vsel %vm13329_vm9, 4294967295, %v17793_v47  ;;  %v948_v48 = vld [vmem:[#allocation2 + $0x24] sm:$0xf]  ;;  %v631_v49 = vrot.slane %v629_v40, 7  ;;  %v637_v50 = vshrl.u32 %v11906_v39, 16  ;;  %v640_v51 = vshll.u32 %v11906_v39, 16 }
  0x27   : > { %17795 = vst [vmem:[#allocation8_spill] sm:$0xff] %v17794_v47  ;;  %v11910_v52 = vpack.c.bf16 %v488_v41, %v488_v41  ;;  %v651_v53 = vor.u32 %v649_v35, %v648_v43  ;;  %v652_v54 = vrot.slane %v648_v43, 4  ;;  %v659_v55 = vor.u32 %v657_v38, %v13325_v44  ;;  %v941_v57 = vld [vmem:[#allocation2 + $0x18] sm:$0xf]  ;;  %v482_v63 = vld [vmem:[%s13296_s29 + $0x8] sm:$0xff]  ;;  %s13156_s30 = smov 64  }
  0x28   : > { %v661_v56 = vrot.slane %v13325_v44, 4  ;;  %v634_v59 = vor.u32 %v632_v45, %v631_v49  ;;  %v635_v60 = vrot.slane %v631_v49, 4  ;;  %v639_v61 = vrot.slane %v637_v50, 7  ;;  %v955_v19 = vld [vmem:[#allocation2 + $0x30] sm:$0xf]  ;;  %s13157_s11 = smov 32  }
  0x29   : > { %v663_v62 = vshrl.u32 %v11909_v46, 16  ;;  %v660_v0 = vsel %vm13329_vm9, %v652_v54, %v659_v55  ;;  %v949_v2 = vsel %vm13321_vm8, %v651_v53, %v948_v48  ;;  %v666_v3 = vshll.u32 %v11909_v46, 16  ;;  %v945_v26 = vld [vmem:[#allocation2 + $0x20] sm:$0x1]  ;;  %v952_v27 = vld [vmem:[#allocation2 + $0x2c] sm:$0x1] }
  0x2a   : > { %v671_v4 = vshrl.u32 %v11910_v52, 16  ;;  %v13341_v5 = vld [vmem:[#allocation2 + $0x8] ss:$0 sps:$4 sm:$0x11]   ;;  %950 = vst [vmem:[#allocation2 + $0x24] sm:$0xf] %v949_v2  ;;  %v642_v6 = vor.u32 %v640_v51, %v639_v61  ;;  %v942_v8 = vsel %vm13321_vm8, %v634_v59, %v941_v57  ;;  %v11903_v9 = vpack.c.bf16 %v481_v58, %v481_v58 }
  0x2b   : > { %951 = vst.msk [vmem:[#allocation2 + $0x28] sm:$0xf] %vm359_vm0, %v660_v0  ;;  %v644_v7 = vrot.slane %v639_v61, 4  ;;  %v1046_v11 = vld [vmem:[#allocation2] sm:$0xf]  ;;  %v665_v12 = vrot.slane %v663_v62, 7  ;;  %v11904_v15 = vpack.c.bf16 %v482_v63, %v482_v63  ;;  %v953_v45 = vsel %vm13270_vm3, %v661_v56, %v952_v27 }
  0x2c   : > { %943 = vst [vmem:[#allocation2 + $0x18] sm:$0xf] %v942_v8  ;;  %v673_v13 = vrot.slane %v671_v4, 7  ;;  %v674_v14 = vshll.u32 %v11910_v52, 16  ;;  %v1642_v16 = vrot.slane %v13341_v5, 1  ;;  %v13348_v17 = vcombine.low %v1046_v11, %v13309_v23  ;;  %s13158_s12 = smov 96  }
  0x2d   : > { %v643_v18 = vsel %vm13329_vm9, %v635_v60, %v642_v6  ;;  %v612_v20 = vshrl.u32 %v11903_v9, 16  ;;  %v668_v21 = vor.u32 %v666_v3, %v665_v12  ;;  %v669_v22 = vrot.slane %v665_v12, 4  ;;  %v959_v23 = vld [vmem:[#allocation2 + $0x38] sm:$0x1]  ;;  %v934_v38 = vld [vmem:[#allocation2 + $0xc] sm:$0xf] }
  0x2e   : > { %944 = vst.msk [vmem:[#allocation2 + $0x1c] sm:$0xf] %vm359_vm0, %v643_v18  ;;  %v676_v24 = vor.u32 %v674_v14, %v673_v13  ;;  %v678_v25 = vrot.slane %v673_v13, 4  ;;  %v1643_v28 = vsel %vm1640_vm7, %v1641_v37, %v1642_v16  ;;  %v615_v30 = vshll.u32 %v11903_v9, 16  ;;  %v938_v43 = vld [vmem:[#allocation2 + $0x14] sm:$0x1] }
  0x2f   : > { %v614_v29 = vrot.slane %v612_v20, 7  ;;  %v620_v31 = vshrl.u32 %v11904_v15, 16  ;;  %1689 = vrot.lane.b32.xlu1 %v1643_v28, %s13156_s30  ;;  %v956_v33 = vsel %vm13321_vm8, %v668_v21, %v955_v19  ;;  %v623_v34 = vshll.u32 %v11904_v15, 16  ;;  %954 = vst [vmem:[#allocation2 + $0x2c] sm:$0x1] %v953_v45  ;;  %s11999_s26 = sshll.u32 %s13238_s17, 8 }
  0x30   : > { %v677_v32 = vsel %vm13329_vm9, %v669_v22, %v676_v24  ;;  %957 = vst [vmem:[#allocation2 + $0x30] sm:$0xf] %v956_v33  ;;  %v1371_v39 = vshll.u32 %v13348_v17, 16  ;;  %v946_v44 = vsel %vm13270_vm3, %v644_v7, %v945_v26  ;;  %v960_v46 = vsel %vm13270_vm3, %v678_v25, %v959_v23  ;;  %s17671_s28 = scalar_lea.hbm %s17724_s10, %s11999_s26  ;;  %s13161_s20 = smov [#allocation3]  }
  0x31   : > { %958 = vst.msk [vmem:[#allocation2 + $0x34] sm:$0xf] %vm359_vm0, %v677_v32  ;;  %v617_v35 = vor.u32 %v615_v30, %v614_v29  ;;  %v618_v36 = vrot.slane %v614_v29, 4  ;;  %v622_v37 = vrot.slane %v620_v31, 7  ;;  %v1177_v40 = vld [vmem:[#allocation2 + $0x24] sm:$0xf] }
  0x32   : > { %v1178_v41 = vld [vmem:[#allocation2 + $0x28] sm:$0xf]  ;;  %947 = vst [vmem:[#allocation2 + $0x20] sm:$0x1] %v946_v44  ;;  %961 = vst [vmem:[#allocation2 + $0x38] sm:$0x1] %v960_v46 }
  0x33   : > { %v13367_v48 = vcombine.low %v1177_v40, %v1178_v41  ;;  %v1175_v49 = vld [vmem:[#allocation2 + $0x18] sm:$0xf]  ;;  %v625_v50 = vor.u32 %v623_v34, %v622_v37  ;;  %v627_v51 = vrot.slane %v622_v37, 4  ;;  %v935_v52 = vsel %vm13321_vm8, %v617_v35, %v934_v38  ;;  %v1160_v3 = vld [vmem:[#allocation2 + $0x24] sm:$0xe]  ;;  %s13095_s21 = sshll.u32 %s13161_s20, 4  ;;  %s13096_s21 = int_to_ptr.vmem [resolvable:$false] %s13095_s21 }
  0x34   : > { %v1369_v53 = vshrl.u32 %v13348_v17, 16  ;;  %v1373_v54 = vrot.slane %v1371_v39, 1  ;;  %v1376_v55 = vshll.u32 %v13341_v5, 16  ;;  %936 = vst [vmem:[#allocation2 + $0xc] sm:$0xf] %v935_v52  ;;  %vm2681_vm11 = vcmask 261120  }
  0x35   : > { %2283 = vrot.lane.b32.xlu0 %v13367_v48, %s13156_s30  ;;  %v1176_v56 = vld [vmem:[#allocation2 + $0x1c] sm:$0xf]  ;;  %v626_v57 = vsel %vm13329_vm9, %v618_v36, %v625_v50  ;;  %v939_v58 = vsel %vm13270_vm3, %v627_v51, %v938_v43  ;;  %v1159_v0 = vld [vmem:[#allocation2 + $0x18] sm:$0xe]  ;;  %vm1367_vm10 = vsmask.f32 7424 }
  0x36   : > { %v13379_v59 = vcombine.low %v1175_v49, %v1176_v56  ;;  %937 = vst.msk [vmem:[#allocation2 + $0x10] sm:$0xf] %vm359_vm0, %v626_v57  ;;  %940 = vst [vmem:[#allocation2 + $0x14] sm:$0x1] %v939_v58  ;;  %v1378_v60 = vrot.slane %v1376_v55, 1  ;;  %v1374_v63 = vor.u32 %v1373_v54, %v1369_v53  ;;  %v2376_v9 = vshll.u32 %v13367_v48, 16 }
  0x37   : > { %v1179_v61 = vld [vmem:[#allocation2 + $0x30] sm:$0xf]  ;;  %v1112_v4 = vld [vmem:[#allocation2 + $0x18] sm:$0xf]  ;;  %v1113_v5 = vld [vmem:[#allocation2 + $0x1c] sm:$0xf] }
  0x38   : > { %2281 = vrot.lane.b32.xlu1 %v13379_v59, %s13156_s30  ;;  %v1180_v62 = vld [vmem:[#allocation2 + $0x34] sm:$0xf]  ;;  %v1115_v6 = vld [vmem:[#allocation2 + $0x28] sm:$0xf]  ;;  %v11302_v8 = vcombine.low %v1159_v0, %v1113_v5  ;;  %v1379_v12 = vsel %vm1367_vm10, %v1374_v63, %v1378_v60  ;;  %v1051_v15 = vld [vmem:[#allocation2 + $0x1c] sm:$0xf]  ;;  %v13395_v26 = vcombine.low %v1112_v4, %v1113_v5 }
  0x39   : > { %v13384_v2 = vcombine.low %v1179_v61, %v1180_v62  ;;  %v12557_v7 = vld [vmem:[#allocation2 + $0x20] ss:$0 sps:$4 sm:$0x11]   ;;  %v11303_v14 = vcombine.low %v1160_v3, %v1115_v6  ;;  %v1096_v16 = vld [vmem:[#allocation2 + $0x18] sm:$0xe]  ;;  %v2374_v18 = vshrl.u32 %v13367_v48, 16 }
  0x3a   : > { %v2364_v21 = vshll.u32 %v13379_v59, 16  ;;  %v1114_v27 = vld [vmem:[#allocation2 + $0x24] sm:$0xf]  ;;  %v2124_v28 = vrot.slane %v11302_v8, 1  ;;  %v1050_v31 = vld [vmem:[#allocation2 + $0x18] sm:$0xf]  ;;  %v11255_v37 = vcombine.low %v1096_v16, %v1051_v15 }
  0x3b   : > { %2285 = vrot.lane.b32.xlu0 %v13384_v2, %s13156_s30  ;;  %v1110_v11 = vld [vmem:[#allocation2 + $0xc] sm:$0xf]  ;;  %v2125_v33 = vrot.slane %v12557_v7, 1  ;;  %v2127_v34 = vrot.slane %v11303_v14, 1  ;;  %v2362_v38 = vshrl.u32 %v13379_v59, 16  ;;  %v13406_v51 = vcombine.low %v1114_v27, %v1115_v6  ;;  %v12615_v14 = vld [vmem:[%s17715_s1 + $0x40] sm:$0xff]  }
  0x3c   : > { %v1158_v13 = vld [vmem:[#allocation2 + $0xc] sm:$0xe]  ;;  %v12561_v36 = vld [vmem:[#allocation2 + $0x2c] ss:$0 sps:$4 sm:$0x11]   ;;  %v2366_v41 = vrot.slane %v2364_v21, 1  ;;  %v13409_v55 = vcombine.low %v1050_v31, %v1051_v15  ;;  %12000 = vmatprep.subr.bf16.mxu0 %v12615_v14 }
  0x3d   : > { %v1111_v19 = vld [vmem:[#allocation2 + $0x10] sm:$0xf]  ;;  %v12555_v24 = vld [vmem:[#allocation2 + $0x14] ss:$0 sps:$4 sm:$0x11]   ;;  %v2126_v52 = vsel %vm1640_vm7, %v2124_v28, %v2125_v33  ;;  %v2128_v53 = vrot.slane %v12561_v36, 1 }
  0x3e   : > { %v1049_v20 = vld [vmem:[#allocation2 + $0x10] sm:$0xf]  ;;  %v13392_v22 = vcombine.low %v1110_v11, %v1111_v19  ;;  %v11301_v25 = vcombine.low %v1158_v13, %v1111_v19  ;;  %v1095_v29 = vld [vmem:[#allocation2 + $0xc] sm:$0xe]  ;;  %v2122_v32 = vrot.slane %v12555_v24, 1  ;;  %v2388_v56 = vshll.u32 %v13384_v2, 16 }
  0x3f   : > { %1560 = vrot.lane.b32.xlu0 %v1379_v12, %s13157_s11  ;;  %v12559_v30 = vld [vmem:[#allocation2 + $0x14] ss:$0 sps:$4 sm:$0x11]   ;;  %v11254_v35 = vcombine.low %v1095_v29, %v1049_v20  ;;  %v12562_v40 = vld [vmem:[#allocation2 + $0x20] ss:$0 sps:$4 sm:$0x11]   ;;  %v2367_v60 = vor.u32 %v2366_v41, %v2362_v38  ;;  %v2129_v11 = vsel %vm1640_vm7, %v2127_v34, %v2128_v53 }
  0x40   : > { %1801 = vrot.lane.b32.xlu1 %v13392_v22, %s13158_s12  ;;  %v2121_v23 = vrot.slane %v11301_v25, 1  ;;  %v1048_v43 = vld [vmem:[#allocation2 + $0xc] sm:$0xf]  ;;  %v1645_v45 = vrot.slane %v12559_v30, 1  ;;  %v1388_v50 = vshll.u32 %v12559_v30, 16  ;;  %v1647_v57 = vrot.slane %v11255_v37, 1 }
  0x41   : > { %v1644_v44 = vrot.slane %v11254_v35, 1  ;;  %v12564_v46 = vld [vmem:[#allocation2 + $0x20] ss:$0 sps:$4 sm:$0x11]   ;;  %v13402_v49 = vcombine.low %v1048_v43, %v1049_v20  ;;  %v1648_v58 = vrot.slane %v12562_v40, 1  ;;  %v2378_v63 = vrot.slane %v2376_v9, 1 }
  0x42   : > { %v2123_v39 = vsel %vm1640_vm7, %v2121_v23, %v2122_v32  ;;  %v12566_v54 = vld [vmem:[#allocation2 + $0x2c] ss:$0 sps:$4 sm:$0x11]   ;;  %v2369_v59 = vshll.u32 %v12564_v46, 16  ;;  %v1052_v3 = vld [vmem:[#allocation2 + $0x24] sm:$0xf] }
  0x43   : > { %2169 = vrot.lane.b32.xlu0 %v2123_v39, %s13157_s11  ;;  %v1381_v61 = vshrl.u32 %v13402_v49, 16  ;;  %v1383_v62 = vshll.u32 %v13402_v49, 16  ;;  %v12568_v0 = vld [vmem:[#allocation2 + $0x38] ss:$0 sps:$4 sm:$0x11]   ;;  %v1646_v4 = vsel %vm1640_vm7, %v1644_v44, %v1645_v45  ;;  %v1390_v6 = vrot.slane %v1388_v50, 1 }
  0x44   : > { %1803 = vrot.lane.b32.xlu1 %v13395_v26, %s13158_s12  ;;  %v2371_v5 = vrot.slane %v2369_v59, 1  ;;  %v2381_v7 = vshll.u32 %v12566_v54, 16  ;;  %v13416_v8 = vld [vmem:[#allocation2 + $0x28] sm:$0xf]  ;;  %v1393_v9 = vshrl.u32 %v13409_v55, 16  ;;  %v1395_v13 = vshll.u32 %v13409_v55, 16 }
  0x45   : > { %v1385_v12 = vrot.slane %v1383_v62, 1  ;;  %v1400_v16 = vshll.u32 %v12562_v40, 16  ;;  %v2386_v19 = vshrl.u32 %v13384_v2, 16  ;;  %v2390_v20 = vrot.slane %v2388_v56, 1  ;;  %v489_v21 = vld [vmem:[%s13296_s29 + $0x40] sm:$0xff]  ;;  %v490_v24 = vld [vmem:[%s13296_s29 + $0x48] sm:$0xff] }
  0x46   : > { %v2383_v15 = vrot.slane %v2381_v7, 1  ;;  %v2379_v27 = vor.u32 %v2378_v63, %v2374_v18  ;;  %v13431_v28 = vld [vmem:[#allocation2 + $0x2c] ss:$0 sps:$4 sm:$0x11]   ;;  %v13433_v29 = vld [vmem:[#allocation2 + $0x34] sm:$0xf]  ;;  %v13440_v23 = vcombine.low %v1052_v3, %v13416_v8  ;;  %v2372_v48 = vsel %vm1367_vm10, %v2367_v60, %v2371_v5 }
  0x47   : > { %2171 = vrot.lane.b32.xlu0 %v2126_v52, %s13157_s11  ;;  %v1386_v25 = vor.u32 %v1385_v12, %v1381_v61  ;;  %v12617_v30 = vld [vmem:[%s17715_s1] sm:$0xff]   ;;  %v1397_v31 = vrot.slane %v1395_v13, 1  ;;  %v2393_v2 = vshll.u32 %v12568_v0, 16  ;;  %v1161_v32 = vld [vmem:[#allocation2 + $0x30] sm:$0xe]  ;;  %v11911_v33 = vpack.c.bf16 %v489_v21, %v489_v21  ;;  %v494_v63 = vld [vmem:[%s13296_s29 + $0x68] sm:$0xff] }
  0x48   : > { %1805 = vrot.lane.b32.xlu1 %v13406_v51, %s13158_s12  ;;  %v386_v18 = vld [vmem:[#allocation2 + $0x3c] sm:$0x1]  ;;  %v11912_v34 = vpack.c.bf16 %v490_v24, %v490_v24  ;;  %12001 = vmatpush3.bf16.msra.mxu0 %v12617_v30  ;;  %v1649_v35 = vsel %vm1640_vm7, %v1647_v57, %v1648_v58  ;;  %v1402_v36 = vrot.slane %v1400_v16, 1  ;;  %v1407_v37 = vshll.u32 %v13440_v23, 16  ;;  %v1097_v45 = vld [vmem:[#allocation2 + $0x24] sm:$0xe] }
  0x49   : > { %v12571_v38 = vld [vmem:[#allocation2 + $0x38] ss:$0 sps:$4 sm:$0x11]   ;;  %v11304_v39 = vcombine.low %v1161_v32, %v13433_v29  ;;  %v1391_v40 = vsel %vm1367_vm10, %v1386_v25, %v1390_v6  ;;  %v2384_v41 = vsel %vm1367_vm10, %v2379_v27, %v2383_v15  ;;  %v2391_v43 = vor.u32 %v2390_v20, %v2386_v19  ;;  %v442_v46 = vld [vmem:[#allocation2 + $0x44] sm:$0x1]  ;;  %v491_v50 = vld [vmem:[%s13296_s29 + $0x50] sm:$0xff] }
  0x4a   : > { %v1412_v44 = vshll.u32 %v13431_v28, 16  ;;  %v1398_v52 = vor.u32 %v1397_v31, %v1393_v9  ;;  %v2395_v53 = vrot.slane %v2393_v2, 1  ;;  %v1405_v54 = vshrl.u32 %v13440_v23, 16  ;;  %v492_v57 = vld [vmem:[%s13296_s29 + $0x58] sm:$0xff]  ;;  %v493_v62 = vld [vmem:[%s13296_s29 + $0x60] sm:$0xff]  ;;  %v12619_v7 = vld [vmem:[%s17715_s1 + $0x48] sm:$0xff]  }
  0x4b   : > { %2173 = vrot.lane.b32.xlu0 %v2129_v11, %s13157_s11  ;;  %v387_v56 = vsel %vm13270_vm3, 0, %v386_v18  ;;  %v1409_v58 = vrot.slane %v1407_v37, 1  ;;  %v680_v59 = vshrl.u32 %v11911_v33, 16  ;;  %v683_v60 = vshll.u32 %v11911_v33, 16  ;;  %v1054_v6 = vld [vmem:[#allocation2 + $0x30] sm:$0xf]  ;;  %12002 = vmatprep.subr.bf16.mxu0 %v12619_v7 }
  0x4c   : > { %1691 = vrot.lane.b32.xlu1 %v1646_v4, %s13156_s30  ;;  %388 = vst [vmem:[#allocation2 + $0x3c] sm:$0x1] %v387_v56  ;;  %v688_v61 = vshrl.u32 %v11912_v34, 16  ;;  %v2130_v0 = vrot.slane %v11304_v39, 1  ;;  %v2131_v3 = vrot.slane %v12571_v38, 1  ;;  %v11256_v4 = vcombine.low %v1097_v45, %v13416_v8  ;;  %v12620_v8 = vld [vmem:[%s17715_s1 + $0x8] sm:$0xff]  }
  0x4d   : > { %v691_v5 = vshll.u32 %v11912_v34, 16  ;;  %v682_v11 = vrot.slane %v680_v59, 7  ;;  %v443_v9 = vsel %vm13289_vm6, 0, %v442_v46  ;;  %v13467_v13 = vld [vmem:[#allocation2 + $0x34] sm:$0xf]  ;;  %v13469_v14 = vpack.c.bf16 %v491_v50, %v491_v50  ;;  %12003 = vmatpush3.bf16.msra.mxu0 %v12620_v8 }
  0x4e   : > { %v13463_v12 = vrot.slane %v688_v61, 7  ;;  %v2396_v15 = vsel %vm1367_vm10, %v2391_v43, %v2395_v53  ;;  %v1414_v16 = vrot.slane %v1412_v44, 1  ;;  %444 = vst [vmem:[#allocation2 + $0x44] sm:$0x1] %v443_v9  ;;  %v389_v19 = vld [vmem:[#allocation2 + $0x48] sm:$0x1]  ;;  %v13476_v20 = vpack.c.bf16 %v492_v57, %v492_v57 }
  0x4f   : > { %2553 = vrot.lane.b32.xlu0 %v2372_v48, %s13158_s12  ;;  %v13478_v21 = vpack.c.bf16 %v493_v62, %v493_v62  ;;  %v12622_v24 = vld [vmem:[%s17715_s1 + $0x50] sm:$0xff]   ;;  %v1410_v25 = vor.u32 %v1409_v58, %v1405_v54  ;;  %v685_v27 = vor.u32 %v683_v60, %v682_v11  ;;  %v686_v30 = vrot.slane %v682_v11, 4  ;;  %v13489_v34 = vld [vmem:[#allocation2 + $0x38] ss:$0 sps:$4 sm:$0x11]  }
  0x50   : > { %1693 = vrot.lane.b32.xlu1 %v1649_v35, %s13156_s30  ;;  %v693_v31 = vor.u32 %v691_v5, %v13463_v12  ;;  %v445_v2 = vld [vmem:[#allocation2 + $0x50] sm:$0x1]  ;;  %v392_v32 = vld [vmem:[#allocation2 + $0x54] sm:$0x1]  ;;  %v1403_v48 = vsel %vm1367_vm10, %v1398_v52, %v1402_v36  ;;  %v1650_v18 = vrot.slane %v11256_v4, 1  ;;  %v13487_v33 = vcombine.low %v1054_v6, %v13467_v13  ;;  %12004 = vmatprep.subr.bf16.mxu0 %v12622_v24  ;;  %v12628_v61 = vld [vmem:[%s17715_s1 + $0x58] sm:$0xff]  }
  0x51   : > { %v13491_v35 = vpack.c.bf16 %v494_v63, %v494_v63  ;;  %v2132_v37 = vsel %vm1640_vm7, %v2130_v0, %v2131_v3  ;;  %v1651_v38 = vrot.slane %v13431_v28, 1  ;;  %v695_v36 = vrot.slane %v13463_v12, 4  ;;  %v448_v53 = vld [vmem:[#allocation2 + $0x5c] sm:$0x1]  ;;  %v395_v54 = vld [vmem:[#allocation2 + $0x60] sm:$0x1] }
  0x52   : > { %v694_v39 = vsel %vm13329_vm9, %v686_v30, %v693_v31  ;;  %v697_v43 = vshrl.u32 %v13469_v14, 16  ;;  %v700_v44 = vshll.u32 %v13469_v14, 16  ;;  %v705_v28 = vshrl.u32 %v13476_v20, 16  ;;  %v12625_v56 = vld [vmem:[%s17715_s1 + $0x10] sm:$0xff]   ;;  %v12630_v5 = vld [vmem:[%s17715_s1 + $0x18] sm:$0xff]  }
  0x53   : > { %2555 = vrot.lane.b32.xlu0 %v2384_v41, %s13158_s12  ;;  %v962_v41 = vld [vmem:[#allocation2 + $0x3c] sm:$0xf]  ;;  %965 = vst.msk [vmem:[#allocation2 + $0x40] sm:$0xf] %vm359_vm0, %v694_v39  ;;  %v1415_v45 = vsel %vm1367_vm10, %v1410_v25, %v1414_v16  ;;  %v708_v50 = vshll.u32 %v13476_v20, 16  ;;  %v446_v52 = vsel %vm13289_vm6, 0, %v445_v2  ;;  %v1652_v62 = vsel %vm1640_vm7, %v1650_v18, %v1651_v38  ;;  %12005 = vmatpush3.bf16.msra.mxu0 %v12625_v56 }
  0x54   : > { %1562 = vrot.lane.b32.xlu1 %v1391_v40, %s13157_s11  ;;  %v390_v40 = vsel %vm13270_vm3, 0, %v389_v19  ;;  %v963_v46 = vsel %vm13321_vm8, %v685_v27, %v962_v41  ;;  %v1419_v57 = vshll.u32 %v13487_v33, 16  ;;  %v699_v58 = vrot.slane %v697_v43, 7  ;;  %447 = vst [vmem:[#allocation2 + $0x50] sm:$0x1] %v446_v52  ;;  %12006 = vmatprep.subr.bf16.mxu0 %v12628_v61  ;;  %v495_v52 = vld [vmem:[%s13296_s29 + $0x70] sm:$0xff] }
  0x55   : > { %391 = vst [vmem:[#allocation2 + $0x48] sm:$0x1] %v390_v40  ;;  %964 = vst [vmem:[#allocation2 + $0x3c] sm:$0xf] %v963_v46  ;;  %v707_v59 = vrot.slane %v705_v28, 7  ;;  %v393_v60 = vsel %vm13270_vm3, 0, %v392_v32 }
  0x56   : > { %v966_v63 = vld [vmem:[#allocation2 + $0x44] sm:$0x1]  ;;  %v1424_v0 = vshll.u32 %v13489_v34, 16  ;;  %394 = vst [vmem:[#allocation2 + $0x54] sm:$0x1] %v393_v60  ;;  %v714_v3 = vshrl.u32 %v13478_v21, 16  ;;  %v702_v11 = vor.u32 %v700_v44, %v699_v58 }
  0x57   : > { %2557 = vrot.lane.b32.xlu0 %v2396_v15, %s13158_s12  ;;  %v722_v4 = vshrl.u32 %v13491_v35, 16  ;;  %v1116_v6 = vld [vmem:[#allocation2 + $0x30] sm:$0xf]  ;;  %v967_v7 = vsel %vm13270_vm3, %v695_v36, %v966_v63  ;;  %v703_v12 = vrot.slane %v699_v58, 4  ;;  %v717_v9 = vshll.u32 %v13478_v21, 16  ;;  %12007 = vmatpush3.bf16.msra.mxu0 %v12630_v5 }
  0x58   : > { %1564 = vrot.lane.b32.xlu1 %v1403_v48, %s13157_s11  ;;  %968 = vst [vmem:[#allocation2 + $0x44] sm:$0x1] %v967_v7  ;;  %v1417_v14 = vshrl.u32 %v13487_v33, 16  ;;  %v1098_v8 = vld [vmem:[#allocation2 + $0x30] sm:$0xe]  ;;  %v710_v15 = vor.u32 %v708_v50, %v707_v59  ;;  %v716_v16 = vrot.slane %v714_v3, 7  ;;  %v13553_v40 = vcombine.low %v1116_v6, %v13433_v29 }
  0x59   : > { %v13534_v19 = vrot.slane %v722_v4, 7  ;;  %v1421_v20 = vrot.slane %v1419_v57, 1  ;;  %v725_v24 = vshll.u32 %v13491_v35, 16  ;;  %v449_v25 = vsel %vm13289_vm6, 0, %v448_v53 }
  0x5a   : > { %v396_v21 = vsel %vm13270_vm3, 0, %v395_v54  ;;  %v1182_v27 = vld [vmem:[#allocation2 + $0x40] sm:$0xf]  ;;  %v711_v30 = vsel %vm13329_vm9, %v703_v12, %v710_v15  ;;  %v712_v31 = vrot.slane %v707_v59, 4  ;;  %450 = vst [vmem:[#allocation2 + $0x5c] sm:$0x1] %v449_v25  ;;  %v719_v35 = vor.u32 %v717_v9, %v716_v16 }
  0x5b   : > { %2175 = vrot.lane.b32.xlu0 %v2132_v37, %s13157_s11  ;;  %397 = vst [vmem:[#allocation2 + $0x60] sm:$0x1] %v396_v21  ;;  %v13543_v32 = vld [vmem:[#allocation2 + $0x40] sm:$0xf]  ;;  %972 = vst.msk [vmem:[#allocation2 + $0x4c] sm:$0xf] %vm359_vm0, %v711_v30  ;;  %v727_v38 = vor.u32 %v725_v24, %v13534_v19  ;;  %v1422_v44 = vor.u32 %v1421_v20, %v1417_v14  ;;  %v11257_v28 = vcombine.low %v1098_v8, %v13467_v13 }
  0x5c   : > { %1566 = vrot.lane.b32.xlu1 %v1415_v45, %s13157_s11  ;;  %v969_v2 = vld [vmem:[#allocation2 + $0x48] sm:$0xf]  ;;  %v13548_v18 = vld [vmem:[#allocation2 + $0x40] sm:$0xf]  ;;  %v720_v37 = vrot.slane %v716_v16, 4  ;;  %v1426_v36 = vrot.slane %v1424_v0, 1 }
  0x5d   : > { %v970_v48 = vsel %vm13321_vm8, %v702_v11, %v969_v2  ;;  %v1181_v39 = vld [vmem:[#allocation2 + $0x3c] sm:$0xf]  ;;  %v973_v45 = vld [vmem:[#allocation2 + $0x50] sm:$0x1]  ;;  %v1654_v54 = vrot.slane %v13489_v34, 1  ;;  %v12632_v13 = vld [vmem:[%s17715_s1 + $0x60] sm:$0xff]  }
  0x5e   : > { %v1162_v41 = vld [vmem:[#allocation2 + $0x3c] sm:$0xe]  ;;  %971 = vst [vmem:[#allocation2 + $0x48] sm:$0xf] %v970_v48  ;;  %v11320_v43 = vcombine.low %v1181_v39, %v1182_v27  ;;  %v728_v50 = vsel %vm13329_vm9, %v720_v37, %v727_v38  ;;  %v974_v29 = vsel %vm13270_vm3, %v712_v31, %v973_v45  ;;  %v976_v57 = vld [vmem:[#allocation2 + $0x54] sm:$0xf]  ;;  %12008 = vmatprep.subr.bf16.mxu0 %v12632_v13 }
  0x5f   : > { %v1056_v46 = vld [vmem:[#allocation2 + $0x3c] sm:$0xf]  ;;  %v11305_v53 = vcombine.low %v1162_v41, %v13543_v32  ;;  %979 = vst.msk [vmem:[#allocation2 + $0x58] sm:$0xf] %vm359_vm0, %v728_v50  ;;  %975 = vst [vmem:[#allocation2 + $0x50] sm:$0x1] %v974_v29  ;;  %v977_v34 = vsel %vm13321_vm8, %v719_v35, %v976_v57  ;;  %v1427_v3 = vsel %vm1367_vm10, %v1422_v44, %v1426_v36 }
  0x60   : > { %1695 = vrot.lane.b32.xlu1 %v1652_v62, %s13156_s30  ;;  %v13564_v56 = vcombine.low %v1056_v46, %v13548_v18  ;;  %v2400_v58 = vshll.u32 %v11320_v43, 16  ;;  %2287 = vrot.lane.b32.xlu0 %v11320_v43, %s13156_s30  ;;  %v12575_v59 = vld [vmem:[#allocation2 + $0x44] ss:$0 sps:$4 sm:$0x11]   ;;  %v2398_v60 = vshrl.u32 %v11320_v43, 16  ;;  %v13575_v62 = vpack.c.bf16 %v495_v52, %v495_v52  ;;  %v496_v35 = vld [vmem:[%s13296_s29 + $0x78] sm:$0xff] }
  0x61   : > { %v12578_v61 = vld [vmem:[#allocation2 + $0x44] ss:$0 sps:$4 sm:$0x11]   ;;  %978 = vst [vmem:[#allocation2 + $0x54] sm:$0xf] %v977_v34  ;;  %v2405_v0 = vshll.u32 %v12575_v59, 16 }
  0x62   : > { %v2402_v63 = vrot.slane %v2400_v58, 1  ;;  %v1653_v4 = vrot.slane %v11257_v28, 1  ;;  %v2133_v5 = vrot.slane %v11305_v53, 1  ;;  %v2134_v6 = vrot.slane %v12578_v61, 1  ;;  %v1184_v7 = vld [vmem:[#allocation2 + $0x4c] sm:$0xf] }
  0x63   : > { %v1431_v11 = vshll.u32 %v13564_v56, 16  ;;  %v2407_v9 = vrot.slane %v2405_v0, 1  ;;  %v13579_v8 = vld [vmem:[#allocation2 + $0x44] ss:$0 sps:$4 sm:$0x11]   ;;  %v1429_v20 = vshrl.u32 %v13564_v56, 16 }
  0x64   : > { %1807 = vrot.lane.b32.xlu1 %v13553_v40, %s13158_s12  ;;  %v2403_v12 = vor.u32 %v2402_v63, %v2398_v60  ;;  %v1118_v16 = vld [vmem:[#allocation2 + $0x3c] sm:$0xf]  ;;  %v731_v25 = vshrl.u32 %v13575_v62, 16  ;;  %v1655_v27 = vsel %vm1640_vm7, %v1653_v4, %v1654_v54  ;;  %v1436_v31 = vshll.u32 %v13579_v8, 16  ;;  %v13587_v2 = vld [vmem:[#allocation2 + $0x4c] sm:$0xf] }
  0x65   : > { %v1183_v14 = vld [vmem:[#allocation2 + $0x48] sm:$0xf]  ;;  %v1099_v24 = vld [vmem:[#allocation2 + $0x3c] sm:$0xe]  ;;  %v1433_v30 = vrot.slane %v1431_v11, 1  ;;  %v2135_v39 = vsel %vm1640_vm7, %v2133_v5, %v2134_v6  ;;  %v13593_v36 = vcombine.low %v1118_v16, %v13543_v32  ;;  %v729_v43 = vrot.slane %v13534_v19, 4 }
  0x66   : > { %v11321_v15 = vcombine.low %v1183_v14, %v1184_v7  ;;  %v2408_v21 = vsel %vm1367_vm10, %v2403_v12, %v2407_v9  ;;  %v1163_v48 = vld [vmem:[#allocation2 + $0x48] sm:$0xe]  ;;  %v12582_v38 = vld [vmem:[#allocation2 + $0x50] ss:$0 sps:$4 sm:$0x11]   ;;  %v11258_v50 = vcombine.low %v1099_v24, %v13548_v18  ;;  %v13600_v52 = vrot.slane %v731_v25, 7 }
  0x67   : > { %2559 = vrot.lane.b32.xlu0 %v2408_v21, %s13158_s12  ;;  %v1186_v44 = vld [vmem:[#allocation2 + $0x58] sm:$0xf]  ;;  %v2417_v45 = vshll.u32 %v12582_v38, 16  ;;  %v13597_v46 = vld [vmem:[#allocation2 + $0x50] ss:$0 sps:$4 sm:$0x11]   ;;  %v1434_v53 = vor.u32 %v1433_v30, %v1429_v20  ;;  %v11306_v29 = vcombine.low %v1163_v48, %v13587_v2  ;;  %v11918_v60 = vpack.c.bf16 %v496_v35, %v496_v35 }
  0x68   : > { %1568 = vrot.lane.b32.xlu1 %v1427_v3, %s13157_s11  ;;  %v2412_v37 = vshll.u32 %v11321_v15, 16  ;;  %v2410_v41 = vshrl.u32 %v11321_v15, 16  ;;  %v1438_v54 = vrot.slane %v1436_v31, 1  ;;  %v1185_v32 = vld [vmem:[#allocation2 + $0x54] sm:$0xf]  ;;  %v734_v13 = vshll.u32 %v13575_v62, 16 }
  0x69   : > { %v980_v57 = vld [vmem:[#allocation2 + $0x5c] sm:$0x1]  ;;  %v1894_v19 = vshrl.u32 %v13395_v26, 16  ;;  %v1896_v58 = vshll.u32 %v13395_v26, 16  ;;  %v13607_v59 = vcombine.low %v1185_v32, %v1186_v44  ;;  %v1058_v34 = vld [vmem:[#allocation2 + $0x48] sm:$0xf] }
  0x6a   : > { %v2414_v28 = vrot.slane %v2412_v37, 1  ;;  %v13609_v18 = vld [vmem:[#allocation2 + $0x4c] sm:$0xf]  ;;  %v2419_v63 = vrot.slane %v2417_v45, 1  ;;  %v981_v0 = vsel %vm13270_vm3, %v729_v43, %v980_v57  ;;  %v1906_v3 = vshrl.u32 %v13406_v51, 16  ;;  %v497_v24 = vld [vmem:[%s13296_s29 + $0x80] sm:$0xff] }
  0x6b   : > { %2177 = vrot.lane.b32.xlu0 %v2135_v39, %s13157_s11  ;;  %v13614_v62 = vcombine.low %v1058_v34, %v13609_v18  ;;  %v1656_v4 = vrot.slane %v11258_v50, 1  ;;  %v1657_v5 = vrot.slane %v13579_v8, 1  ;;  %982 = vst [vmem:[#allocation2 + $0x5c] sm:$0x1] %v981_v0  ;;  %v736_v7 = vor.u32 %v734_v13, %v13600_v52  ;;  %v451_v11 = vld [vmem:[#allocation2 + $0x68] sm:$0x1] }
  0x6c   : > { %1697 = vrot.lane.b32.xlu1 %v1655_v27, %s13156_s30  ;;  %v2415_v61 = vor.u32 %v2414_v28, %v2410_v41  ;;  %v13620_v6 = vld [vmem:[#allocation2 + $0x50] ss:$0 sps:$4 sm:$0x11]   ;;  %v1908_v12 = vshll.u32 %v13406_v51, 16  ;;  %v1439_v9 = vsel %vm1367_vm10, %v1434_v53, %v1438_v54  ;;  %v2136_v14 = vrot.slane %v11306_v29, 1  ;;  %v12633_v8 = vld [vmem:[%s17715_s1 + $0x20] sm:$0xff]  }
  0x6d   : > { %v1443_v16 = vshll.u32 %v13614_v62, 16  ;;  %v398_v20 = vld [vmem:[#allocation2 + $0x6c] sm:$0x1]  ;;  %v2137_v25 = vrot.slane %v13597_v46, 1  ;;  %v2424_v21 = vshll.u32 %v13607_v59, 16  ;;  %v2422_v27 = vshrl.u32 %v13607_v59, 16  ;;  %12009 = vmatpush3.bf16.msra.mxu0 %v12633_v8 }
  0x6e   : > { %v983_v30 = vld [vmem:[#allocation2 + $0x60] sm:$0xf]  ;;  %v498_v31 = vld [vmem:[%s13296_s29 + $0x88] sm:$0xff]  ;;  %v2420_v35 = vsel %vm1367_vm10, %v2415_v61, %v2419_v63  ;;  %v1441_v38 = vshrl.u32 %v13614_v62, 16  ;;  %v13640_v39 = vld [vmem:[#allocation2 + $0x58] sm:$0xf]  ;;  %v1658_v44 = vsel %vm1640_vm7, %v1656_v4, %v1657_v5 }
  0x6f   : > { %2289 = vrot.lane.b32.xlu0 %v11321_v15, %s13156_s30  ;;  %v12635_v48 = vld [vmem:[%s17715_s1 + $0x68] sm:$0xff]   ;;  %v1164_v15 = vld [vmem:[#allocation2 + $0x54] sm:$0xe]  ;;  %v739_v43 = vshrl.u32 %v11918_v60, 16  ;;  %v1448_v28 = vshll.u32 %v13620_v6, 16  ;;  %v742_v45 = vshll.u32 %v11918_v60, 16  ;;  %v984_v46 = vsel %vm13321_vm8, %v736_v7, %v983_v30 }
  0x70   : > { %1809 = vrot.lane.b32.xlu1 %v13593_v36, %s13158_s12  ;;  %v1120_v37 = vld [vmem:[#allocation2 + $0x48] sm:$0xf]  ;;  %v1060_v50 = vld [vmem:[#allocation2 + $0x54] sm:$0xf]  ;;  %v13647_v53 = vld [vmem:[#allocation2 + $0x58] sm:$0xf]  ;;  %12010 = vmatprep.subr.bf16.mxu0 %v12635_v48  ;;  %v11919_v60 = vpack.c.bf16 %v497_v24, %v497_v24  ;;  %v11920_v5 = vpack.c.bf16 %v498_v31, %v498_v31 }
  0x71   : > { %v1100_v41 = vld [vmem:[#allocation2 + $0x48] sm:$0xe]  ;;  %v1445_v54 = vrot.slane %v1443_v16, 1  ;;  %v737_v29 = vrot.slane %v13600_v52, 4  ;;  %v741_v32 = vrot.slane %v739_v43, 7  ;;  %v452_v57 = vsel %vm13289_vm6, 0, %v451_v11 }
  0x72   : > { %985 = vst [vmem:[#allocation2 + $0x60] sm:$0xf] %v984_v46  ;;  %453 = vst [vmem:[#allocation2 + $0x68] sm:$0x1] %v452_v57  ;;  %v13654_v13 = vcombine.low %v1060_v50, %v13647_v53  ;;  %v399_v34 = vsel %vm13270_vm3, 0, %v398_v20  ;;  %v12638_v61 = vld [vmem:[%s17715_s1 + $0x28] sm:$0xff]   ;;  %v2138_v52 = vsel %vm1640_vm7, %v2136_v14, %v2137_v25  ;;  %v13668_v11 = vcombine.low %v1120_v37, %v13587_v2 }
  0x73   : > { %2561 = vrot.lane.b32.xlu0 %v2420_v35, %s13158_s12  ;;  %v12589_v63 = vld [vmem:[#allocation2 + $0x5c] ss:$0 sps:$4 sm:$0x11]   ;;  %v2426_v0 = vrot.slane %v2424_v21, 1  ;;  %v744_v4 = vor.u32 %v742_v45, %v741_v32  ;;  %400 = vst [vmem:[#allocation2 + $0x6c] sm:$0x1] %v399_v34  ;;  %v11259_v16 = vcombine.low %v1100_v41, %v13609_v18  ;;  %12011 = vmatpush3.bf16.msra.mxu0 %v12638_v61 }
  0x74   : > { %1570 = vrot.lane.b32.xlu1 %v1439_v9, %s13157_s11  ;;  %17796 = vst [vmem:[#allocation9_spill] sm:$0xff] %v13654_v13  ;;  %v13664_v7 = vrot.slane %v1896_v58, 1  ;;  %v11307_v9 = vcombine.low %v1164_v15, %v13640_v39  ;;  %v2429_v14 = vshll.u32 %v12589_v63, 16  ;;  %v1446_v20 = vor.u32 %v1445_v54, %v1441_v38  ;;  %v499_v25 = vld [vmem:[%s13296_s29 + $0x90] sm:$0xff]  ;;  %v401_v15 = vld [vmem:[#allocation2 + $0x78] sm:$0x1] }
  0x75   : > { %v1450_v24 = vrot.slane %v1448_v28, 1  ;;  %v745_v8 = vsel %vm13329_vm9, %v737_v29, %v744_v4  ;;  %v12641_v58 = vld [vmem:[%s17715_s1 + $0x70] sm:$0xff]   ;;  %v13678_v21 = vrot.slane %v1908_v12, 1  ;;  %v12592_v2 = vld [vmem:[#allocation2 + $0x5c] ss:$0 sps:$4 sm:$0x11]   ;;  %v2427_v31 = vor.u32 %v2426_v0, %v2422_v27 }
  0x76   : > { %v746_v30 = vrot.slane %v741_v32, 4  ;;  %986 = vst.msk [vmem:[#allocation2 + $0x64] sm:$0xf] %vm359_vm0, %v745_v8  ;;  %v1455_v18 = vshll.u32 %v13654_v13, 16  ;;  %v2431_v48 = vrot.slane %v2429_v14, 1  ;;  %v748_v35 = vshrl.u32 %v11919_v60, 16  ;;  %12012 = vmatprep.subr.bf16.mxu0 %v12641_v58 }
  0x77   : > { %2179 = vrot.lane.b32.xlu0 %v2138_v52, %s13157_s11  ;;  %v751_v37 = vshll.u32 %v11919_v60, 16  ;;  %v454_v38 = vld [vmem:[#allocation2 + $0x74] sm:$0x1]  ;;  %v500_v41 = vld [vmem:[%s13296_s29 + $0x98] sm:$0xff]  ;;  %v2139_v12 = vrot.slane %v11307_v9, 1  ;;  %v1659_v43 = vrot.slane %v11259_v16, 1  ;;  %v13689_v45 = vpack.c.bf16 %v499_v25, %v499_v25 }
  0x78   : > { %1699 = vrot.lane.b32.xlu1 %v1658_v44, %s13156_s30  ;;  %v1660_v44 = vrot.slane %v13620_v6, 1  ;;  %v13687_v28 = vld [vmem:[#allocation2 + $0x5c] ss:$0 sps:$4 sm:$0x11]   ;;  %v1451_v27 = vsel %vm1367_vm10, %v1446_v20, %v1450_v24  ;;  %v1122_v46 = vld [vmem:[#allocation2 + $0x54] sm:$0xf]  ;;  %v2432_v63 = vsel %vm1367_vm10, %v2427_v31, %v2431_v48  ;;  %v13707_v24 = vpack.c.bf16 %v500_v41, %v500_v41 }
  0x79   : > { %v987_v50 = vld [vmem:[#allocation2 + $0x68] sm:$0x1]  ;;  %v1453_v54 = vshrl.u32 %v13654_v13, 16  ;;  %v750_v29 = vrot.slane %v748_v35, 7  ;;  %v756_v32 = vshrl.u32 %v11920_v5, 16  ;;  %v12643_v57 = vld [vmem:[%s17715_s1 + $0x30] sm:$0xff]   ;;  %v13715_v31 = vcombine.low %v1122_v46, %v13640_v39 }
  0x7a   : > { %v2140_v6 = vrot.slane %v12592_v2, 1  ;;  %v988_v34 = vsel %vm13270_vm3, %v746_v30, %v987_v50  ;;  %v1457_v60 = vrot.slane %v1455_v18, 1  ;;  %v759_v61 = vshll.u32 %v11920_v5, 16  ;;  %v990_v52 = vld [vmem:[#allocation2 + $0x6c] sm:$0xf]  ;;  %12013 = vmatpush3.bf16.msra.mxu0 %v12643_v57  ;;  %v12645_v39 = vld [vmem:[%s17715_s1 + $0x78] sm:$0xff]  }
  0x7b   : > { %2291 = vrot.lane.b32.xlu0 %v13607_v59, %s13156_s30  ;;  %v1187_v0 = vld [vmem:[#allocation2 + $0x60] sm:$0xf]  ;;  %989 = vst [vmem:[#allocation2 + $0x68] sm:$0x1] %v988_v34  ;;  %v1101_v4 = vld [vmem:[#allocation2 + $0x54] sm:$0xe]  ;;  %v753_v9 = vor.u32 %v751_v37, %v750_v29  ;;  %v1661_v8 = vsel %vm1640_vm7, %v1659_v43, %v1660_v44  ;;  %12014 = vmatprep.subr.bf16.mxu0 %v12645_v39 }
  0x7c   : > { %1811 = vrot.lane.b32.xlu1 %v13668_v11, %s13158_s12  ;;  %v754_v16 = vrot.slane %v750_v29, 4  ;;  %v758_v14 = vrot.slane %v756_v32, 7  ;;  %v1460_v59 = vshll.u32 %v13687_v28, 16  ;;  %v455_v20 = vsel %vm13289_vm6, 0, %v454_v38  ;;  %v1165_v48 = vld [vmem:[#allocation2 + $0x60] sm:$0xe] }
  0x7d   : > { %v402_v5 = vsel %vm13270_vm3, 0, %v401_v15  ;;  %v1188_v25 = vld [vmem:[#allocation2 + $0x64] sm:$0xf]  ;;  %v991_v2 = vsel %vm13321_vm8, %v753_v9, %v990_v52  ;;  %456 = vst [vmem:[#allocation2 + $0x74] sm:$0x1] %v455_v20  ;;  %v765_v30 = vshrl.u32 %v13689_v45, 16  ;;  %v2141_v38 = vsel %vm1640_vm7, %v2139_v12, %v2140_v6 }
  0x7e   : > { %v761_v58 = vor.u32 %v759_v61, %v758_v14  ;;  %403 = vst [vmem:[#allocation2 + $0x78] sm:$0x1] %v402_v5  ;;  %v11323_v18 = vcombine.low %v1187_v0, %v1188_v25  ;;  %992 = vst [vmem:[#allocation2 + $0x6c] sm:$0xf] %v991_v2  ;;  %v1062_v35 = vld [vmem:[#allocation2 + $0x60] sm:$0xf]  ;;  %v1458_v15 = vor.u32 %v1457_v60, %v1453_v54 }
  0x7f   : > { %2563 = vrot.lane.b32.xlu0 %v2432_v63, %s13158_s12  ;;  %v13717_v37 = vld [vmem:[#allocation2 + $0x64] sm:$0xf]  ;;  %v11260_v43 = vcombine.low %v1101_v4, %v13647_v53  ;;  %v1462_v50 = vrot.slane %v1460_v59, 1  ;;  %v763_v29 = vrot.slane %v758_v14, 4  ;;  %v13733_v54 = vrot.slane %v765_v30, 7  ;;  %v12646_v2 = vld [vmem:[%s17715_s1 + $0x38] sm:$0xff]  }
  0x80   : > { %1572 = vrot.lane.b32.xlu1 %v1451_v27, %s13157_s11  ;;  %v13720_v41 = vld [vmem:[#allocation2 + $0x64] sm:$0xf]  ;;  %v762_v44 = vsel %vm13329_vm9, %v754_v16, %v761_v58  ;;  %v2436_v27 = vshll.u32 %v11323_v18, 16  ;;  %v2434_v46 = vshrl.u32 %v11323_v18, 16  ;;  %v13731_v12 = vcombine.low %v1062_v35, %v13717_v37  ;;  %v1102_v34 = vld [vmem:[#allocation2 + $0x60] sm:$0xe]  ;;  %12015 = vmatpush3.bf16.msra.mxu0 %v12646_v2 }
  0x81   : > { %993 = vst.msk [vmem:[#allocation2 + $0x70] sm:$0xf] %vm359_vm0, %v762_v44  ;;  %v768_v53 = vshll.u32 %v13689_v45, 16  ;;  %v773_v32 = vshrl.u32 %v13707_v24, 16  ;;  %v11308_v61 = vcombine.low %v1165_v48, %v13720_v41  ;;  %v1662_v52 = vrot.slane %v11260_v43, 1 }
  0x82   : > { %17797 = vst [vmem:[#allocation10_spill] sm:$0xff] %v13731_v12  ;;  %v12596_v57 = vld [vmem:[#allocation2 + $0x68] ss:$0 sps:$4 sm:$0x11]   ;;  %v2438_v6 = vrot.slane %v2436_v27, 1  ;;  %v1663_v4 = vrot.slane %v13687_v28, 1  ;;  %v1463_v9 = vsel %vm1367_vm10, %v1458_v15, %v1462_v50  ;;  %v11261_v15 = vcombine.low %v1102_v34, %v13717_v37 }
  0x83   : > { %2181 = vrot.lane.b32.xlu0 %v2141_v38, %s13157_s11  ;;  %v12599_v60 = vld [vmem:[#allocation2 + $0x68] ss:$0 sps:$4 sm:$0x11]   ;;  %v2441_v0 = vshll.u32 %v12596_v57, 16  ;;  %v1467_v20 = vshll.u32 %v13731_v12, 16  ;;  %v770_v5 = vor.u32 %v768_v53, %v13733_v54  ;;  %v13751_v28 = vrot.slane %v773_v32, 7 }
  0x84   : > { %1701 = vrot.lane.b32.xlu1 %v1661_v8, %s13156_s30  ;;  %v2439_v63 = vor.u32 %v2438_v6, %v2434_v46  ;;  %v994_v45 = vld [vmem:[#allocation2 + $0x74] sm:$0x1]  ;;  %v13745_v59 = vld [vmem:[#allocation2 + $0x68] ss:$0 sps:$4 sm:$0x11]   ;;  %v1884_v8 = vshll.u32 %v13392_v22, 16 }
  0x85   : > { %v1189_v16 = vld [vmem:[#allocation2 + $0x6c] sm:$0xf]  ;;  %v995_v14 = vsel %vm13270_vm3, %v763_v29, %v994_v45  ;;  %v2443_v25 = vrot.slane %v2441_v0, 1  ;;  %v457_v58 = vld [vmem:[#allocation2 + $0x80] sm:$0x1]  ;;  %v2142_v30 = vrot.slane %v11308_v61, 1  ;;  %v1664_v29 = vsel %vm1640_vm7, %v1662_v52, %v1663_v4 }
  0x86   : > { %996 = vst [vmem:[#allocation2 + $0x74] sm:$0x1] %v995_v14  ;;  %v2143_v48 = vrot.slane %v12599_v60, 1  ;;  %v1465_v38 = vshrl.u32 %v13731_v12, 16  ;;  %v404_v43 = vld [vmem:[#allocation2 + $0x84] sm:$0x1] }
  0x87   : > { %2293 = vrot.lane.b32.xlu0 %v11323_v18, %s13156_s30  ;;  %v2444_v44 = vsel %vm1367_vm10, %v2439_v63, %v2443_v25  ;;  %v1124_v39 = vld [vmem:[#allocation2 + $0x60] sm:$0xf]  ;;  %v771_v27 = vrot.slane %v13733_v54, 4  ;;  %v776_v46 = vshll.u32 %v13707_v24, 16  ;;  %v997_v50 = vld [vmem:[#allocation2 + $0x78] sm:$0xf] }
  0x88   : > { %1813 = vrot.lane.b32.xlu1 %v13715_v31, %s13158_s12  ;;  %v1190_v35 = vld [vmem:[#allocation2 + $0x70] sm:$0xf]  ;;  %v1469_v53 = vrot.slane %v1467_v20, 1  ;;  %v1472_v32 = vshll.u32 %v13745_v59, 16  ;;  %v1166_v57 = vld [vmem:[#allocation2 + $0x6c] sm:$0xe]  ;;  %v998_v6 = vsel %vm13321_vm8, %v770_v5, %v997_v50  ;;  %v2144_v52 = vsel %vm1640_vm7, %v2142_v30, %v2143_v48 }
  0x89   : > { %v11324_v18 = vcombine.low %v1189_v16, %v1190_v35  ;;  %v13764_v37 = vld [vmem:[#allocation2 + $0x70] sm:$0xf]  ;;  %v778_v54 = vor.u32 %v776_v46, %v13751_v28  ;;  %999 = vst [vmem:[#allocation2 + $0x78] sm:$0xf] %v998_v6  ;;  %v1064_v24 = vld [vmem:[#allocation2 + $0x6c] sm:$0xf]  ;;  %v13775_v63 = vcombine.low %v1124_v39, %v13720_v41 }
  0x8a   : > { %v13770_v60 = vld [vmem:[#allocation2 + $0x70] sm:$0xf]  ;;  %v501_v61 = vld [vmem:[%s13296_s29 + $0xa0] sm:$0xff]  ;;  %v458_v4 = vsel %vm13289_vm6, 0, %v457_v58  ;;  %v405_v14 = vsel %vm13270_vm3, 0, %v404_v43  ;;  %v502_v20 = vld [vmem:[%s13296_s29 + $0xa8] sm:$0xff]  ;;  %v1470_v25 = vor.u32 %v1469_v53, %v1465_v38  ;;  %v11309_v30 = vcombine.low %v1166_v57, %v13764_v37 }
  0x8b   : > { %2565 = vrot.lane.b32.xlu0 %v2444_v44, %s13158_s12  ;;  %v2448_v34 = vshll.u32 %v11324_v18, 16  ;;  %v2446_v0 = vshrl.u32 %v11324_v18, 16  ;;  %v779_v16 = vsel %vm13329_vm9, %v771_v27, %v778_v54  ;;  %459 = vst [vmem:[#allocation2 + $0x80] sm:$0x1] %v458_v4  ;;  %v1474_v41 = vrot.slane %v1472_v32, 1  ;;  %v13811_v4 = vld [vmem:[%s17715_s1 + $0x80] sm:$0xff]  }
  0x8c   : > { %1574 = vrot.lane.b32.xlu1 %v1463_v9, %s13157_s11  ;;  %v1665_v9 = vrot.slane %v11261_v15, 1  ;;  %1000 = vst.msk [vmem:[#allocation2 + $0x7c] sm:$0xf] %vm359_vm0, %v779_v16  ;;  %v13787_v2 = vcombine.low %v1064_v24, %v13770_v60  ;;  %406 = vst [vmem:[#allocation2 + $0x84] sm:$0x1] %v405_v14  ;;  %v1666_v48 = vrot.slane %v13745_v59, 1  ;;  %v11923_v38 = vpack.c.bf16 %v501_v61, %v501_v61 }
  0x8d   : > { %v2450_v45 = vrot.slane %v2448_v34, 1  ;;  %v12603_v5 = vld [vmem:[#allocation2 + $0x74] ss:$0 sps:$4 sm:$0x11]   ;;  %v1882_v35 = vshrl.u32 %v13392_v22, 16  ;;  %v780_v39 = vrot.slane %v13751_v28, 4  ;;  %v11924_v46 = vpack.c.bf16 %v502_v20, %v502_v20  ;;  %12498 = vmatprep.subr.bf16.mxu1 %v13811_v4  ;;  %12390 = vmatprep.subr.bf16.mxu0 %v13811_v4 }
  0x8e   : > { %17798 = vst [vmem:[#allocation11_spill] sm:$0xff] %v13787_v2  ;;  %v12606_v58 = vld [vmem:[#allocation2 + $0x74] ss:$0 sps:$4 sm:$0x11]   ;;  %v2453_v43 = vshll.u32 %v12603_v5, 16  ;;  %v13800_v50 = vrot.slane %v1884_v8, 1  ;;  %v1475_v59 = vsel %vm1367_vm10, %v1470_v25, %v1474_v41  ;;  %v1667_v6 = vsel %vm1640_vm7, %v1665_v9, %v1666_v48  ;;  %12500 = vmatpush3.bf16.msra.mxu1 %v13811_v4 }
  0x8f   : > { %2183 = vrot.lane.b32.xlu0 %v2144_v52, %s13157_s11  ;;  %v2451_v15 = vor.u32 %v2450_v45, %v2446_v0  ;;  %v1103_v44 = vld [vmem:[#allocation2 + $0x6c] sm:$0xe]  ;;  %v13796_v27 = vld [vmem:[#allocation2 + $0x74] ss:$0 sps:$4 sm:$0x11]   ;;  %v1479_v53 = vshll.u32 %v13787_v2, 16 }
  0x90   : > { %1703 = vrot.lane.b32.xlu1 %v1664_v29, %s13156_s30  ;;  %v2455_v29 = vrot.slane %v2453_v43, 1  ;;  %v2145_v32 = vrot.slane %v11309_v30, 1  ;;  %v2146_v57 = vrot.slane %v12606_v58, 1  ;;  %v1191_v34 = vld [vmem:[#allocation2 + $0x78] sm:$0xf]  ;;  %v11262_v8 = vcombine.low %v1103_v44, %v13770_v60  ;;  %v13821_v60 = vld [vmem:[%s17715_s1 + $0x88] sm:$0xff]  }
  0x91   : > { %v460_v28 = vld [vmem:[#allocation2 + $0x8c] sm:$0x1]  ;;  %v782_v52 = vshrl.u32 %v11923_v38, 16  ;;  %v785_v0 = vshll.u32 %v11923_v38, 16  ;;  %v1477_v9 = vshrl.u32 %v13787_v2, 16  ;;  %v1484_v16 = vshll.u32 %v13796_v27, 16  ;;  %12499 = vmatprep.subr.bf16.mxu1 %v13821_v60 }
  0x92   : > { %v2456_v54 = vsel %vm1367_vm10, %v2451_v15, %v2455_v29  ;;  %v1126_v24 = vld [vmem:[#allocation2 + $0x6c] sm:$0xf]  ;;  %v1001_v61 = vld [vmem:[#allocation2 + $0x80] sm:$0x1]  ;;  %v790_v14 = vshrl.u32 %v11924_v46, 16  ;;  %v1481_v5 = vrot.slane %v1479_v53, 1  ;;  %v2147_v48 = vsel %vm1640_vm7, %v2145_v32, %v2146_v57  ;;  %12501 = vmatpush3.bf16.msra.mxu1 %v13821_v60 }
  0x93   : > { %2295 = vrot.lane.b32.xlu0 %v11324_v18, %s13156_s30  ;;  %v1192_v18 = vld [vmem:[#allocation2 + $0x7c] sm:$0xf]  ;;  %v1002_v45 = vsel %vm13270_vm3, %v780_v39, %v1001_v61  ;;  %v784_v25 = vrot.slane %v782_v52, 7  ;;  %v793_v41 = vshll.u32 %v11924_v46, 16  ;;  %v1004_v58 = vld [vmem:[#allocation2 + $0x84] sm:$0xf]  ;;  %v13837_v32 = vcombine.low %v1126_v24, %v13764_v37 }
  0x94   : > { %1815 = vrot.lane.b32.xlu1 %v13775_v63, %s13158_s12  ;;  %v11325_v20 = vcombine.low %v1191_v34, %v1192_v18  ;;  %1003 = vst [vmem:[#allocation2 + $0x80] sm:$0x1] %v1002_v45  ;;  %v407_v30 = vld [vmem:[#allocation2 + $0x90] sm:$0x1]  ;;  %v1167_v15 = vld [vmem:[#allocation2 + $0x78] sm:$0xe] }
  0x95   : > { %v792_v43 = vrot.slane %v790_v14, 7  ;;  %v461_v44 = vsel %vm13289_vm6, 0, %v460_v28  ;;  %v1066_v38 = vld [vmem:[#allocation2 + $0x78] sm:$0xf]  ;;  %v13829_v39 = vld [vmem:[#allocation2 + $0x7c] sm:$0xf]  ;;  %v787_v53 = vor.u32 %v785_v0, %v784_v25 }
  0x96   : > { %v2460_v46 = vshll.u32 %v11325_v20, 16  ;;  %v1668_v29 = vrot.slane %v11262_v8, 1  ;;  %462 = vst [vmem:[#allocation2 + $0x8c] sm:$0x1] %v461_v44  ;;  %v503_v34 = vld [vmem:[%s13296_s29 + $0xb0] sm:$0xff]  ;;  %v1486_v57 = vrot.slane %v1484_v16, 1  ;;  %v1482_v8 = vor.u32 %v1481_v5, %v1477_v9 }
  0x97   : > { %2567 = vrot.lane.b32.xlu0 %v2456_v54, %s13158_s12  ;;  %v13839_v28 = vld [vmem:[#allocation2 + $0x7c] sm:$0xf]  ;;  %v788_v54 = vrot.slane %v784_v25, 4  ;;  %v795_v61 = vor.u32 %v793_v41, %v792_v43  ;;  %v2458_v52 = vshrl.u32 %v11325_v20, 16  ;;  %v13844_v0 = vcombine.low %v1066_v38, %v13829_v39 }
  0x98   : > { %1576 = vrot.lane.b32.xlu1 %v1475_v59, %s13157_s11  ;;  %v1669_v59 = vrot.slane %v13796_v27, 1  ;;  %v1005_v27 = vsel %vm13321_vm8, %v787_v53, %v1004_v58  ;;  %v504_v18 = vld [vmem:[%s13296_s29 + $0xb8] sm:$0xff]  ;;  %v408_v24 = vsel %vm13270_vm3, 0, %v407_v30  ;;  %v11925_v45 = vpack.c.bf16 %v503_v34, %v503_v34 }
  0x99   : > { %17799 = vst [vmem:[#allocation12_spill] sm:$0xff] %v13844_v0  ;;  %v796_v37 = vsel %vm13329_vm9, %v788_v54, %v795_v61  ;;  %1006 = vst [vmem:[#allocation2 + $0x84] sm:$0xf] %v1005_v27  ;;  %v1920_v16 = vshll.u32 %v13553_v40, 16  ;;  %v11310_v14 = vcombine.low %v1167_v15, %v13839_v28  ;;  %v797_v5 = vrot.slane %v792_v43, 4 }
  0x9a   : > { %1007 = vst.msk [vmem:[#allocation2 + $0x88] sm:$0xf] %vm359_vm0, %v796_v37  ;;  %409 = vst [vmem:[#allocation2 + $0x90] sm:$0x1] %v408_v24  ;;  %v1932_v25 = vshll.u32 %v13593_v36, 16  ;;  %v11926_v30 = vpack.c.bf16 %v504_v18, %v504_v18  ;;  %v1491_v38 = vshll.u32 %v13844_v0, 16 }
  0x9b   : > { %2185 = vrot.lane.b32.xlu0 %v2147_v48, %s13157_s11  ;;  %v12610_v41 = vld [vmem:[#allocation2 + $0x80] ss:$0 sps:$4 sm:$0x11]   ;;  %v1104_v58 = vld [vmem:[#allocation2 + $0x78] sm:$0xe]  ;;  %v1487_v48 = vsel %vm1367_vm10, %v1482_v8, %v1486_v57  ;;  %v799_v34 = vshrl.u32 %v11925_v45, 16 }
  0x9c   : > { %1705 = vrot.lane.b32.xlu1 %v1667_v6, %s13156_s30  ;;  %v2462_v6 = vrot.slane %v2460_v46, 1  ;;  %v12613_v44 = vld [vmem:[#allocation2 + $0x80] ss:$0 sps:$4 sm:$0x11]   ;;  %v2465_v43 = vshll.u32 %v12610_v41, 16  ;;  %v1670_v46 = vsel %vm1640_vm7, %v1668_v29, %v1669_v59  ;;  %v2148_v54 = vrot.slane %v11310_v14, 1 }
  0x9d   : > { %v1008_v53 = vld [vmem:[#allocation2 + $0x8c] sm:$0x1]  ;;  %v2149_v61 = vrot.slane %v12613_v44, 1  ;;  %v1128_v27 = vld [vmem:[#allocation2 + $0x78] sm:$0xf]  ;;  %v802_v57 = vshll.u32 %v11925_v45, 16  ;;  %v11263_v41 = vcombine.low %v1104_v58, %v13829_v39 }
  0x9e   : > { %v2463_v15 = vor.u32 %v2462_v6, %v2458_v52  ;;  %v1009_v37 = vsel %vm13270_vm3, %v797_v5, %v1008_v53  ;;  %v13866_v18 = vld [vmem:[#allocation2 + $0x80] ss:$0 sps:$4 sm:$0x11]   ;;  %v2467_v8 = vrot.slane %v2465_v43, 1  ;;  %v807_v52 = vshrl.u32 %v11926_v30, 16 }
  0x9f   : > { %2297 = vrot.lane.b32.xlu0 %v11325_v20, %s13156_s30  ;;  %1010 = vst [vmem:[#allocation2 + $0x8c] sm:$0x1] %v1009_v37  ;;  %v801_v20 = vrot.slane %v799_v34, 7  ;;  %v810_v6 = vshll.u32 %v11926_v30, 16  ;;  %v1489_v29 = vshrl.u32 %v13844_v0, 16  ;;  %v1493_v59 = vrot.slane %v1491_v38, 1 }
  0xa0   : > { %1817 = vrot.lane.b32.xlu1 %v13837_v32, %s13158_s12  ;;  %v1193_v24 = vld [vmem:[#allocation2 + $0x84] sm:$0xf]  ;;  %v1496_v14 = vshll.u32 %v13866_v18, 16  ;;  %v2468_v5 = vsel %vm1367_vm10, %v2463_v15, %v2467_v8  ;;  %v13877_v34 = vrot.slane %v1920_v16, 1  ;;  %v13880_v37 = vrot.slane %v1932_v25, 1 }
  0xa1   : > { %v13873_v44 = vpop.permute.xlu1 %1689  ;;  %v1194_v45 = vld [vmem:[#allocation2 + $0x88] sm:$0xf]  ;;  %v804_v43 = vor.u32 %v802_v57, %v801_v20  ;;  %v805_v53 = vrot.slane %v801_v20, 4  ;;  %v1011_v39 = vld [vmem:[#allocation2 + $0x90] sm:$0xf]  ;;  %v2150_v58 = vsel %vm1640_vm7, %v2148_v54, %v2149_v61  ;;  %v13888_v15 = vcombine.low %v1128_v27, %v13839_v28  ;;  %v505_v27 = vld [vmem:[%s13296_s29 + $0xc0] sm:$0xff] }
  0xa2   : > { %v11326_v38 = vcombine.low %v1193_v24, %v1194_v45  ;;  %v1168_v16 = vld [vmem:[#allocation2 + $0x84] sm:$0xe]  ;;  %v13893_v20 = vld [vmem:[#allocation2 + $0x88] sm:$0xf]  ;;  %v1498_v45 = vrot.slane %v1496_v14, 1  ;;  %vm2714_vm12 = vcmask 523264  }
  0xa3   : > { %2569 = vrot.lane.b32.xlu0 %v2468_v5, %s13158_s12  ;;  %17800 = vst [vmem:[#allocation13_spill] sm:$0xff] %v13888_v15  ;;  %v1012_v25 = vsel %vm13321_vm8, %v804_v43, %v1011_v39  ;;  %v1068_v8 = vld [vmem:[#allocation2 + $0x84] sm:$0xf]  ;;  %v1494_v5 = vor.u32 %v1493_v59, %v1489_v29  ;;  %v1131_v54 = vld [vmem:[#allocation2 + $0x88] sm:$0xf]  ;;  %vm2747_vm13 = vcmask 785408  }
  0xa4   : > { %1578 = vrot.lane.b32.xlu1 %v1487_v48, %s13157_s11  ;;  %v13875_v48 = vrot.slane %v807_v52, 7  ;;  %v2472_v52 = vshll.u32 %v11326_v38, 16  ;;  %v2470_v24 = vshrl.u32 %v11326_v38, 16  ;;  %1013 = vst [vmem:[#allocation2 + $0x90] sm:$0xf] %v1012_v25  ;;  %v13901_v39 = vcombine.low %v1068_v8, %v13893_v20  ;;  %v506_v8 = vld [vmem:[%s13296_s29 + $0xc8] sm:$0xff] }
  0xa5   : > { %v463_v61 = vld [vmem:[#allocation2 + $0x98] sm:$0x1]  ;;  %v11311_v14 = vcombine.low %v1168_v16, %v1131_v54  ;;  %v13925_v16 = vor.u32 %v13664_v7, %v1894_v19 }
  0xa6   : > { %v812_v57 = vor.u32 %v810_v6, %v13875_v48  ;;  %v12621_v6 = vld [vmem:[#allocation2 + $0x8c] ss:$0 sps:$4 sm:$0x11]   ;;  %v2474_v43 = vrot.slane %v2472_v52, 1  ;;  %17801 = vst [vmem:[#allocation14_spill] sm:$0xff] %v13901_v39  ;;  %v464_v52 = vsel %vm13289_vm6, 0, %v463_v61 }
  0xa7   : > { %v13883_v9 = vpop.permute.xlu0 %2283  ;;  %2187 = vrot.lane.b32.xlu0 %v2150_v58, %s13157_s11  ;;  %v12626_v59 = vld [vmem:[#allocation2 + $0x8c] ss:$0 sps:$4 sm:$0x11]   ;;  %v1499_v58 = vsel %vm1367_vm10, %v1494_v5, %v1498_v45  ;;  %465 = vst [vmem:[#allocation2 + $0x98] sm:$0x1] %v464_v52  ;;  %v2151_v26 = vrot.slane %v11311_v14, 1 }
  0xa8   : > { %1707 = vrot.lane.b32.xlu1 %v1670_v46, %s13156_s30  ;;  %v1671_v46 = vrot.slane %v11263_v41, 1  ;;  %v813_v28 = vsel %vm13329_vm9, %v805_v53, %v812_v57  ;;  %v1672_v41 = vrot.slane %v13866_v18, 1  ;;  %v2475_v53 = vor.u32 %v2474_v43, %v2470_v24  ;;  %v13919_v30 = vld [vmem:[#allocation2 + $0x8c] ss:$0 sps:$4 sm:$0x11]  }
  0xa9   : > { %1014 = vst.msk [vmem:[#allocation2 + $0x94] sm:$0xf] %vm359_vm0, %v813_v28  ;;  %v2477_v57 = vshll.u32 %v12621_v6, 16  ;;  %v13917_v28 = vor.u32 %v13800_v50, %v1882_v35  ;;  %v1503_v18 = vshll.u32 %v13901_v39, 16  ;;  %v410_v24 = vld [vmem:[#allocation2 + $0x9c] sm:$0x1]  ;;  %v13931_v35 = vor.u32 %v13678_v21, %v1906_v3 }
  0xaa   : > { %v13905_v29 = vpop.permute.xlu1 %2281  ;;  %v1130_v45 = vld [vmem:[#allocation2 + $0x84] sm:$0xf]  ;;  %v12988_v61 = vld [vmem:[#allocation2 + $0x14] ss:$0 sps:$4 sm:$0x11]   ;;  %v11927_v50 = vpack.c.bf16 %v505_v27, %v505_v27  ;;  %v2152_v6 = vrot.slane %v12626_v59, 1  ;;  %v1673_v19 = vsel %vm1640_vm7, %v1671_v46, %v1672_v41 }
  0xab   : > { %2299 = vrot.lane.b32.xlu0 %v11326_v38, %s13156_s30  ;;  %v2479_v5 = vrot.slane %v2477_v57, 1  ;;  %v1889_v22 = vshll.u32 %v12988_v61, 16  ;;  %v1195_v7 = vld [vmem:[#allocation2 + $0x90] sm:$0xf]  ;;  %v1105_v43 = vld [vmem:[#allocation2 + $0x84] sm:$0xe]  ;;  %v11928_v38 = vpack.c.bf16 %v506_v8, %v506_v8 }
  0xac   : > { %1819 = vrot.lane.b32.xlu1 %v13888_v15, %s13158_s12  ;;  %v1501_v61 = vshrl.u32 %v13901_v39, 16  ;;  %v1505_v0 = vrot.slane %v1503_v18, 1  ;;  %v1508_v51 = vshll.u32 %v13919_v30, 16  ;;  %v507_v3 = vld [vmem:[%s13296_s29 + $0xd0] sm:$0xff]  ;;  %v814_v27 = vrot.slane %v13875_v48, 4 }
  0xad   : > { %v13909_v25 = vpop.permute.xlu0 %2285  ;;  %v2480_v57 = vsel %vm1367_vm10, %v2475_v53, %v2479_v5  ;;  %v12989_v46 = vld [vmem:[#allocation2 + $0x20] ss:$0 sps:$4 sm:$0x11]   ;;  %v411_v41 = vsel %vm13270_vm3, 0, %v410_v24  ;;  %v1891_v8 = vrot.slane %v1889_v22, 1  ;;  %v11264_v5 = vcombine.low %v1105_v43, %v13893_v20 }
  0xae   : > { %v1901_v14 = vshll.u32 %v12989_v46, 16  ;;  %v1169_v18 = vld [vmem:[#allocation2 + $0x90] sm:$0xe]  ;;  %412 = vst [vmem:[#allocation2 + $0x9c] sm:$0x1] %v411_v41  ;;  %v2153_v48 = vsel %vm1640_vm7, %v2151_v26, %v2152_v6  ;;  %v816_v2 = vshrl.u32 %v11927_v50, 16  ;;  %v1506_v15 = vor.u32 %v1505_v0, %v1501_v61 }
  0xaf   : > { %2571 = vrot.lane.b32.xlu0 %v2480_v57, %s13158_s12  ;;  %v12990_v39 = vld [vmem:[#allocation2 + $0x2c] ss:$0 sps:$4 sm:$0x11]   ;;  %v819_v57 = vshll.u32 %v11927_v50, 16  ;;  %v466_v22 = vld [vmem:[#allocation2 + $0xa4] sm:$0x1]  ;;  %v13957_v13 = vpack.c.bf16 %v507_v3, %v507_v3 }
  0xb0   : > { %1580 = vrot.lane.b32.xlu1 %v1499_v58, %s13157_s11  ;;  %v13942_v59 = vld [vmem:[#allocation2 + $0x94] sm:$0xf]  ;;  %v13950_v58 = vcombine.low %v1130_v45, %v1131_v54  ;;  %v1913_v24 = vshll.u32 %v12990_v39, 16  ;;  %v1510_v54 = vrot.slane %v1508_v51, 1  ;;  %v824_v45 = vshrl.u32 %v11928_v38, 16 }
  0xb1   : > { %v1561_v52 = vpop.permute.xlu0 %1560  ;;  %v13948_v53 = vcombine.low %v1195_v7, %v13942_v59  ;;  %v13955_v46 = vld [vmem:[#allocation2 + $0x94] sm:$0xf]  ;;  %v1015_v7 = vld [vmem:[#allocation2 + $0x98] sm:$0x1]  ;;  %v818_v43 = vrot.slane %v816_v2, 7  ;;  %v1674_v39 = vrot.slane %v11264_v5, 1  ;;  %v1892_v5 = vsel %vm1367_vm10, %v13917_v28, %v1891_v8 }
  0xb2   : > { %v13939_v21 = vpop.permute.xlu1 %1801  ;;  %v1016_v6 = vsel %vm13270_vm3, %v814_v27, %v1015_v7  ;;  %v1675_v0 = vrot.slane %v13919_v30, 1  ;;  %v826_v50 = vrot.slane %v824_v45, 7  ;;  %v827_v61 = vshll.u32 %v11928_v38, 16  ;;  %v13971_v2 = vld [vmem:[#allocation2 + $0x94] sm:$0xf] }
  0xb3   : > { %v2484_v26 = vshll.u32 %v13948_v53, 16  ;;  %2189 = vrot.lane.b32.xlu0 %v2153_v48, %s13157_s11  ;;  %1017 = vst [vmem:[#allocation2 + $0x98] sm:$0x1] %v1016_v6  ;;  %v11312_v51 = vcombine.low %v1169_v18, %v13955_v46  ;;  %v821_v3 = vor.u32 %v819_v57, %v818_v43  ;;  %v822_v41 = vrot.slane %v818_v43, 4  ;;  %v413_v45 = vld [vmem:[#allocation2 + $0xa8] sm:$0x1] }
  0xb4   : > { %1709 = vrot.lane.b32.xlu1 %v1673_v19, %s13156_s30  ;;  %v1903_v19 = vrot.slane %v1901_v14, 1  ;;  %v467_v27 = vsel %vm13289_vm6, 0, %v466_v22  ;;  %v1070_v14 = vld [vmem:[#allocation2 + $0x90] sm:$0xf]  ;;  %v1511_v30 = vsel %vm1367_vm10, %v1506_v15, %v1510_v54  ;;  %v1915_v38 = vrot.slane %v1913_v24, 1 }
  0xb5   : > { %v2170_v12 = vpop.permute.xlu0 %2169  ;;  %v829_v7 = vor.u32 %v827_v61, %v826_v50  ;;  %468 = vst [vmem:[#allocation2 + $0xa4] sm:$0x1] %v467_v27  ;;  %v2683_v18 = vsel %vm2681_vm11, %v13348_v17, %v1561_v52  ;;  %v2482_v22 = vshrl.u32 %v13948_v53, 16  ;;  %v2486_v6 = vrot.slane %v2484_v26, 1  ;;  %v1018_v28 = vld [vmem:[#allocation2 + $0x9c] sm:$0xf] }
  0xb6   : > { %v13959_v20 = vpop.permute.xlu1 %1803  ;;  %v1904_v43 = vsel %vm1367_vm10, %v13925_v16, %v1903_v19  ;;  %v1019_v8 = vsel %vm13321_vm8, %v821_v3, %v1018_v28  ;;  %v13990_v17 = vcombine.low %v1070_v14, %v13971_v2  ;;  %v508_v52 = vld [vmem:[%s13296_s29 + $0xd8] sm:$0xff]  ;;  %v2798_v24 = vsel %vm2681_vm11, %v1892_v5, %v2170_v12  ;;  %v1132_v26 = vld [vmem:[#allocation2 + $0x90] sm:$0xf] }
  0xb7   : > { %2301 = vrot.lane.b32.xlu0 %v13948_v53, %s13156_s30  ;;  %v830_v15 = vsel %vm13329_vm9, %v822_v41, %v829_v7  ;;  %v13995_v16 = vrot.slane %v11312_v51, 1  ;;  %v1676_v54 = vsel %vm1640_vm7, %v1674_v39, %v1675_v0  ;;  %v831_v53 = vrot.slane %v826_v50, 4  ;;  %1020 = vst [vmem:[#allocation2 + $0x9c] sm:$0xf] %v1019_v8  ;;  %v1106_v3 = vld [vmem:[#allocation2 + $0x90] sm:$0xe] }
  0xb8   : > { %1821 = vrot.lane.b32.xlu1 %v13950_v58, %s13158_s12  ;;  %1021 = vst.msk [vmem:[#allocation2 + $0xa0] sm:$0xf] %vm359_vm0, %v830_v15  ;;  %v1515_v61 = vshll.u32 %v13990_v17, 16  ;;  %v414_v12 = vsel %vm13270_vm3, 0, %v413_v45  ;;  %v833_v41 = vshrl.u32 %v13957_v13, 16  ;;  %v2716_v39 = vsel %vm2714_vm12, %v2683_v18, %v13873_v44 }
  0xb9   : > { %v2172_v48 = vpop.permute.xlu0 %2171  ;;  %v1513_v0 = vshrl.u32 %v13990_v17, 16  ;;  %415 = vst [vmem:[#allocation2 + $0xa8] sm:$0x1] %v414_v12  ;;  %v11930_v50 = vpack.c.bf16 %v508_v52, %v508_v52  ;;  %v2487_v14 = vor.u32 %v2486_v6, %v2482_v22  ;;  %v14015_v7 = vcombine.low %v1132_v26, %v13955_v46 }
  0xba   : > { %v13978_v57 = vpop.permute.xlu1 %1805  ;;  %v14005_v51 = vld [vmem:[#allocation2 + $0x98] ss:$0 sps:$4 sm:$0x11]   ;;  %v1517_v45 = vrot.slane %v1515_v61, 1  ;;  %v2801_v15 = vsel %vm2681_vm11, %v1904_v43, %v2172_v48  ;;  %v2845_v18 = vsel %vm2714_vm12, %v2798_v24, %v13905_v29  ;;  %v835_v8 = vrot.slane %v833_v41, 7 }
  0xbb   : > { %v12639_v5 = vld [vmem:[#allocation2 + $0x98] ss:$0 sps:$4 sm:$0x11]   ;;  %v2489_v28 = vshll.u32 %v14005_v51, 16  ;;  %v836_v52 = vshll.u32 %v13957_v13, 16  ;;  %v841_v24 = vshrl.u32 %v11930_v50, 16 }
  0xbc   : > { %1582 = vrot.lane.b32.xlu1 %v1511_v30, %s13157_s11  ;;  %v1916_v30 = vsel %vm1367_vm10, %v13931_v35, %v1915_v38  ;;  %v1022_v44 = vld [vmem:[#allocation2 + $0xa4] sm:$0x1]  ;;  %v2749_v35 = vsel %vm2747_vm13, %v2716_v39, %v13939_v21  ;;  %v12649_v46 = vld [vmem:[#allocation2 + $0x98] ss:$0 sps:$4 sm:$0x11]   ;;  %v11265_v38 = vcombine.low %v1106_v3, %v13971_v2  ;;  %v2155_v43 = vrot.slane %v12639_v5, 1 }
  0xbd   : > { %v13999_v19 = vpop.permute.xlu0 %2173  ;;  %v1023_v6 = vsel %vm13270_vm3, %v831_v53, %v1022_v44  ;;  %v2491_v48 = vrot.slane %v2489_v28, 1  ;;  %v1518_v53 = vor.u32 %v1517_v45, %v1513_v0  ;;  %v1520_v12 = vshll.u32 %v12649_v46, 16 }
  0xbe   : > { %v14007_v27 = vpop.permute.xlu1 %1691  ;;  %1024 = vst [vmem:[#allocation2 + $0xa4] sm:$0x1] %v1023_v6  ;;  %v1197_v26 = vld [vmem:[#allocation2 + $0x9c] sm:$0xf]  ;;  %v838_v21 = vor.u32 %v836_v52, %v835_v8  ;;  %v839_v41 = vrot.slane %v835_v8, 4  ;;  %v14039_v3 = vrot.slane %v841_v24, 7  ;;  %v2847_v0 = vsel %vm2714_vm12, %v2801_v15, %v13883_v9 }
  0xbf   : > { %v14031_v61 = vld [vmem:[#allocation2 + $0xa0] sm:$0xf]  ;;  %v2492_v2 = vsel %vm1367_vm10, %v2487_v14, %v2491_v48  ;;  %v844_v39 = vshll.u32 %v11930_v50, 16  ;;  %v1522_v5 = vrot.slane %v1520_v12, 1  ;;  %v1677_v45 = vrot.slane %v11265_v38, 1 }
  0xc0   : > { %1711 = vrot.lane.b32.xlu1 %v1676_v54, %s13156_s30  ;;  %v14035_v13 = vcombine.low %v1197_v26, %v14031_v61  ;;  %2573 = vrot.lane.b32.xlu0 %v2492_v2, %s13158_s12  ;;  %v1678_v44 = vrot.slane %v12649_v46, 1  ;;  %v1025_v14 = vld [vmem:[#allocation2 + $0xa8] sm:$0xf]  ;;  %v1073_v52 = vld [vmem:[#allocation2 + $0xa0] sm:$0xf]  ;;  %v2804_v9 = vsel %vm2681_vm11, %v1916_v30, %v13999_v19 }
  0xc1   : > { %v2554_v22 = vpop.permute.xlu0 %2553  ;;  %v846_v6 = vor.u32 %v844_v39, %v14039_v3  ;;  %v1523_v15 = vsel %vm1367_vm10, %v1518_v53, %v1522_v5  ;;  %v1135_v46 = vld [vmem:[#allocation2 + $0xa0] sm:$0xf]  ;;  %v1170_v38 = vld [vmem:[#allocation2 + $0x9c] sm:$0xe]  ;;  %v469_v48 = vld [vmem:[#allocation2 + $0xb0] sm:$0x1] }
  0xc2   : > { %v14028_v54 = vpop.permute.xlu1 %1693  ;;  %v2877_v29 = vsel %vm2747_vm13, %v2845_v18, %v2554_v22  ;;  %v2156_v18 = vsel %vm1640_vm7, %v13995_v16, %v2155_v43  ;;  %v2496_v8 = vshll.u32 %v14035_v13, 16  ;;  %v2494_v16 = vshrl.u32 %v14035_v13, 16  ;;  %v509_v43 = vld [vmem:[%s13296_s29 + $0xe0] sm:$0xff]  ;;  %v1134_v30 = vld [vmem:[#allocation2 + $0x9c] sm:$0xf] }
  0xc3   : > { %3148 = vmatprep.mubr.bf16.mxu0 %v2877_v29  ;;  %v1944_v29 = vshll.u32 %v13668_v11, 16  ;;  %v847_v19 = vsel %vm13329_vm9, %v839_v41, %v846_v6  ;;  %v1107_v26 = vld [vmem:[#allocation2 + $0x9c] sm:$0xe]  ;;  %v1679_v12 = vsel %vm1640_vm7, %v1677_v45, %v1678_v44  ;;  %v510_v41 = vld [vmem:[%s13296_s29 + $0xe8] sm:$0xff]  ;;  %v2849_v45 = vsel %vm2714_vm12, %v2804_v9, %v13909_v25 }
  0xc4   : > { %1823 = vrot.lane.b32.xlu1 %v14015_v7, %s13158_s12  ;;  %3149 = vmatmul.mubr.bf16.vlgmr.msra.gmra.mrb[0].mxu0 %v2749_v35  ;;  %v1072_v35 = vld [vmem:[#allocation2 + $0x9c] sm:$0xf]  ;;  %v2498_v24 = vrot.slane %v2496_v8, 1  ;;  %1028 = vst.msk [vmem:[#allocation2 + $0xac] sm:$0xf] %vm359_vm0, %v847_v19  ;;  %v14077_v44 = vpack.c.bf16 %v509_v43, %v509_v43  ;;  %v14088_v9 = vpack.c.bf16 %v510_v41, %v510_v41  ;;  %v848_v43 = vrot.slane %v14039_v3, 4 }
  0xc5   : > { %v2556_v28 = vpop.permute.xlu0 %2555  ;;  %12391 = vmatpush3.bf16.msra.mxu0 %v13811_v4  ;;  %2191 = vrot.lane.b32.xlu0 %v2156_v18, %s13157_s11  ;;  %v14065_v53 = vld [vmem:[#allocation2 + $0xa4] ss:$0 sps:$4 sm:$0x11]   ;;  %v14071_v5 = vcombine.low %v1072_v35, %v1073_v52  ;;  %v470_v35 = vsel %vm13289_vm6, 0, %v469_v48 }
  0xc6   : > { %v1563_v22 = vpop.permute.xlu1 %1562  ;;  %v2880_v50 = vsel %vm2747_vm13, %v2847_v0, %v2556_v28  ;;  %12392 = vmatprep.subr.bf16.mxu0 %v13821_v60  ;;  %v12650_v28 = vld [vmem:[#allocation2 + $0xa4] ss:$0 sps:$4 sm:$0x11]   ;;  %v11313_v0 = vcombine.low %v1170_v38, %v1135_v46  ;;  %v2499_v8 = vor.u32 %v2498_v24, %v2494_v16  ;;  %471 = vst [vmem:[#allocation2 + $0xb0] sm:$0x1] %v470_v35 }
  0xc7   : > { %v2685_v4 = vsel %vm2681_vm11, %v13402_v49, %v1563_v22  ;;  %3156 = vmatprep.mubr.bf16.mxu0 %v2880_v50  ;;  %v1026_v49 = vsel %vm13321_vm8, %v838_v21, %v1025_v14  ;;  %v12991_v14 = vld [vmem:[#allocation2 + $0x38] ss:$0 sps:$4 sm:$0x11]   ;;  %v2501_v22 = vshll.u32 %v14065_v53, 16  ;;  %v11266_v50 = vcombine.low %v1107_v26, %v1073_v52 }
  0xc8   : > { %1584 = vrot.lane.b32.xlu1 %v1523_v15, %s13157_s11  ;;  %1027 = vst [vmem:[#allocation2 + $0xa8] sm:$0xf] %v1026_v49  ;;  %v2718_v39 = vsel %vm2714_vm12, %v2685_v4, %v14007_v27  ;;  %v1925_v18 = vshll.u32 %v12991_v14, 16  ;;  %v12656_v25 = vld [vmem:[#allocation2 + $0xa4] ss:$0 sps:$4 sm:$0x11]  }
  0xc9   : > { %v2558_v2 = vpop.permute.xlu0 %2557  ;;  %12393 = vmatpush3.bf16.msra.mxu0 %v13821_v60  ;;  %v2752_v27 = vsel %vm2747_vm13, %v2718_v39, %v13959_v20  ;;  %v14083_v60 = vcombine.low %v1134_v30, %v1135_v46  ;;  %2303 = vrot.lane.b32.xlu0 %v14035_v13, %s13156_s30  ;;  %v2503_v4 = vrot.slane %v2501_v22, 1  ;;  %v1525_v52 = vshrl.u32 %v14071_v5, 16  ;;  %v416_v15 = vld [vmem:[#allocation2 + $0xb4] sm:$0x1] }
  0xca   : > { %v1565_v21 = vpop.permute.xlu1 %1564  ;;  %v2883_v6 = vsel %vm2747_vm13, %v2849_v45, %v2558_v2  ;;  %v1527_v16 = vshll.u32 %v14071_v5, 16  ;;  %v2157_v46 = vrot.slane %v11313_v0, 1  ;;  %v2158_v38 = vrot.slane %v12650_v28, 1 }
  0xcb   : > { %v2687_v20 = vsel %vm2681_vm11, %v13409_v55, %v1565_v21  ;;  %v1532_v24 = vshll.u32 %v12656_v25, 16  ;;  %v2504_v19 = vsel %vm1367_vm10, %v2499_v8, %v2503_v4  ;;  %v1927_v13 = vrot.slane %v1925_v18, 1  ;;  %v14098_v26 = vld [vmem:[#allocation2 + $0xac] sm:$0xf]  ;;  %v512_v4 = vld [vmem:[%s13296_s29 + $0xf8] sm:$0xff] }
  0xcc   : > { %1713 = vrot.lane.b32.xlu1 %v1679_v12, %s13156_s30  ;;  %3157 = vmatmul.mubr.bf16.gmra.mrb[4].mxu0 %v2752_v27  ;;  %v1529_v49 = vrot.slane %v1527_v16, 1  ;;  %v1680_v30 = vrot.slane %v11266_v50, 1  ;;  %v17802_v12 = vshrl.u32 %v13553_v40, 16  ;;  %v2720_v3 = vsel %vm2714_vm12, %v2687_v20, %v14028_v54  ;;  %v472_v27 = vld [vmem:[#allocation2 + $0xbc] sm:$0x1] }
  0xcd   : > { %3164 = vmatprep.mubr.bf16.mxu0 %v2883_v6  ;;  %v2176_v39 = vpop.permute.xlu0 %2175  ;;  %v1534_v41 = vrot.slane %v1532_v24, 1  ;;  %v417_v21 = vsel %vm13270_vm3, 0, %v416_v15  ;;  %2575 = vrot.lane.b32.xlu0 %v2504_v19, %s13158_s12  ;;  %v1681_v14 = vrot.slane %v12656_v25, 1  ;;  %v850_v40 = vshrl.u32 %v14077_v44, 16  ;;  %v1227_v20 = vld [vmem:[#allocation2 + $0x48] sm:$0xe] }
  0xce   : > { %v1567_v48 = vpop.permute.xlu1 %1566  ;;  %v1923_v2 = vor.u32 %v13877_v34, %v17802_v12  ;;  %v1530_v0 = vor.u32 %v1529_v49, %v1525_v52  ;;  %418 = vst [vmem:[#allocation2 + $0xb4] sm:$0x1] %v417_v21  ;;  %v511_v34 = vld [vmem:[%s13296_s29 + $0xf0] sm:$0xff]  ;;  %v2159_v18 = vsel %vm1640_vm7, %v2157_v46, %v2158_v38  ;;  %v853_v54 = vshll.u32 %v14077_v44, 16  ;;  %v419_v46 = vld [vmem:[#allocation2 + $0xc0] sm:$0x1] }
  0xcf   : > { %v1199_v55 = vld [vmem:[#allocation2 + $0xa8] sm:$0xf]  ;;  %v858_v8 = vshrl.u32 %v14088_v9, 16  ;;  %v861_v22 = vshll.u32 %v14088_v9, 16  ;;  %v1942_v50 = vshrl.u32 %v13668_v11, 16  ;;  %v14122_v6 = vrot.slane %v1944_v29, 1 }
  0xd0   : > { %1825 = vrot.lane.b32.xlu1 %v14083_v60, %s13158_s12  ;;  %v14111_v28 = vcombine.low %v1199_v55, %v14098_v26  ;;  %v1535_v35 = vsel %vm1367_vm10, %v1530_v0, %v1534_v41  ;;  %v2755_v25 = vsel %vm2747_vm13, %v2720_v3, %v13978_v57  ;;  %v1928_v44 = vsel %vm1367_vm10, %v1923_v2, %v1927_v13  ;;  %v1029_v52 = vld [vmem:[#allocation2 + $0xb0] sm:$0x1]  ;;  %v1136_v15 = vld [vmem:[#allocation2 + $0xa8] sm:$0xf]  ;;  %v14141_v49 = vld [vmem:[#allocation2 + $0xac] sm:$0xf] }
  0xd1   : > { %v852_v9 = vrot.slane %v850_v40, 7  ;;  %v14130_v16 = vrot.slane %v858_v8, 7  ;;  %v14132_v29 = vpack.c.bf16 %v511_v34, %v511_v34  ;;  %2193 = vrot.lane.b32.xlu0 %v2159_v18, %s13157_s11  ;;  %v1030_v57 = vsel %vm13270_vm3, %v848_v43, %v1029_v52  ;;  %v1074_v13 = vld [vmem:[#allocation2 + $0xa8] sm:$0xf]  ;;  %v12993_v34 = vld [vmem:[#allocation2 + $0x4c] sm:$0xf] }
  0xd2   : > { %v1696_v45 = vpop.permute.xlu1 %1695  ;;  %v2508_v38 = vshll.u32 %v14111_v28, 16  ;;  %v1682_v24 = vsel %vm1640_vm7, %v1680_v30, %v1681_v14  ;;  %v473_v19 = vsel %vm13289_vm6, 0, %v472_v27  ;;  %v2689_v55 = vsel %vm2681_vm11, %v13440_v23, %v1567_v48  ;;  %1031 = vst [vmem:[#allocation2 + $0xb0] sm:$0x1] %v1030_v57  ;;  %v2288_v12 = vpop.permute.xlu0 %2287  ;;  %v14147_v30 = vld [vmem:[#allocation2 + $0xac] sm:$0xf] }
  0xd3   : > { %v855_v41 = vor.u32 %v853_v54, %v852_v9  ;;  %v856_v3 = vrot.slane %v852_v9, 4  ;;  %v863_v21 = vor.u32 %v861_v22, %v14130_v16  ;;  %474 = vst [vmem:[#allocation2 + $0xbc] sm:$0x1] %v473_v19  ;;  %v2807_v43 = vsel %vm2681_vm11, %v1928_v44, %v2176_v39  ;;  %v12992_v0 = vld [vmem:[#allocation2 + $0x44] ss:$0 sps:$4 sm:$0x11]  }
  0xd4   : > { %1586 = vrot.lane.b32.xlu1 %v1535_v35, %s13157_s11  ;;  %3165 = vmatmul.mubr.bf16.gmra.mrb[8].mxu0 %v2755_v25  ;;  %v1937_v14 = vshll.u32 %v12992_v0, 16  ;;  %v11934_v40 = vpack.c.bf16 %v512_v4, %v512_v4  ;;  %v11353_v18 = vcombine.low %v1227_v20, %v12993_v34  ;;  %v2506_v8 = vshrl.u32 %v14111_v28, 16  ;;  %v1171_v23 = vld [vmem:[#allocation2 + $0xa8] sm:$0xe] }
  0xd5   : > { %v864_v48 = vsel %vm13329_vm9, %v856_v3, %v863_v21  ;;  %v1032_v54 = vld [vmem:[#allocation2 + $0xb4] sm:$0xf]  ;;  %v14154_v22 = vcombine.low %v1136_v15, %v14147_v30  ;;  %v14157_v39 = vcombine.low %v1074_v13, %v14141_v49  ;;  %2305 = vrot.lane.b32.xlu0 %v14111_v28, %s13156_s30  ;;  %v2722_v27 = vsel %vm2714_vm12, %v2689_v55, %v1696_v45  ;;  %v1108_v9 = vld [vmem:[#allocation2 + $0xa8] sm:$0xe] }
  0xd6   : > { %v1808_v2 = vpop.permute.xlu1 %1807  ;;  %v2510_v35 = vrot.slane %v2508_v38, 1  ;;  %v1033_v25 = vsel %vm13321_vm8, %v855_v41, %v1032_v54  ;;  %1035 = vst.msk [vmem:[#allocation2 + $0xb8] sm:$0xf] %vm359_vm0, %v864_v48  ;;  %v420_v4 = vsel %vm13270_vm3, 0, %v419_v46  ;;  %v2851_v20 = vsel %vm2714_vm12, %v2807_v43, %v2288_v12 }
  0xd7   : > { %v865_v52 = vrot.slane %v14130_v16, 4  ;;  %1034 = vst [vmem:[#allocation2 + $0xb4] sm:$0xf] %v1033_v25  ;;  %v1539_v28 = vshll.u32 %v14157_v39, 16  ;;  %421 = vst [vmem:[#allocation2 + $0xc0] sm:$0x1] %v420_v4  ;;  %v11314_v3 = vcombine.low %v1171_v23, %v14147_v30  ;;  %v2758_v48 = vsel %vm2747_vm13, %v2722_v27, %v1808_v2 }
  0xd8   : > { %1715 = vrot.lane.b32.xlu1 %v1682_v24, %s13156_s30  ;;  %v867_v45 = vshrl.u32 %v14132_v29, 16  ;;  %v1537_v15 = vshrl.u32 %v14157_v39, 16  ;;  %v870_v38 = vshll.u32 %v14132_v29, 16  ;;  %v875_v57 = vshrl.u32 %v11934_v40, 16  ;;  %v1228_v29 = vld [vmem:[#allocation2 + $0x54] sm:$0xe] }
  0xd9   : > { %v878_v24 = vshll.u32 %v11934_v40, 16  ;;  %v2560_v46 = vpop.permute.xlu0 %2559  ;;  %v1541_v19 = vrot.slane %v1539_v28, 1  ;;  %v2645_v16 = vrot.slane %v11353_v18, 1  ;;  %v12994_v55 = vld [vmem:[#allocation2 + $0x50] ss:$0 sps:$4 sm:$0x11]   ;;  %v2511_v0 = vor.u32 %v2510_v35, %v2506_v8 }
  0xda   : > { %v14168_v44 = vpop.permute.xlu1 %1568  ;;  %v869_v13 = vrot.slane %v867_v45, 7  ;;  %v2646_v12 = vrot.slane %v12994_v55, 1  ;;  %v14177_v41 = vld [vmem:[#allocation2 + $0xb0] ss:$0 sps:$4 sm:$0x11]   ;;  %v2886_v21 = vsel %vm2747_vm13, %v2851_v20, %v2560_v46  ;;  %v14181_v43 = vrot.slane %v875_v57, 7 }
  0xdb   : > { %v14183_v40 = vld [vmem:[#allocation2 + $0xb0] ss:$0 sps:$4 sm:$0x11]   ;;  %3172 = vmatprep.mubr.bf16.mxu0 %v2886_v21  ;;  %v2513_v25 = vshll.u32 %v14177_v41, 16  ;;  %v1036_v4 = vld [vmem:[#allocation2 + $0xbc] sm:$0x1]  ;;  %v11267_v30 = vcombine.low %v1108_v9, %v14141_v49 }
  0xdc   : > { %1827 = vrot.lane.b32.xlu1 %v14154_v22, %s13158_s12  ;;  %v873_v54 = vrot.slane %v869_v13, 4  ;;  %v2647_v18 = vsel %vm1640_vm7, %v2645_v16, %v2646_v12  ;;  %3173 = vmatmul.mubr.bf16.gmra.mrb[12].mxu0 %v2758_v48  ;;  %v872_v23 = vor.u32 %v870_v38, %v869_v13  ;;  %v880_v20 = vor.u32 %v878_v24, %v14181_v43  ;;  %v12663_v57 = vld [vmem:[#allocation2 + $0xb0] ss:$0 sps:$4 sm:$0x11]  }
  0xdd   : > { %12402 = vmatprep.mubr.msk.bf16.mxu1 %vm2681_vm11, %v2647_v18  ;;  %v14191_v8 = vld [vmem:[#allocation2 + $0xb8] sm:$0xf]  ;;  %v17803_v35 = vshrl.u32 %v13593_v36, 16  ;;  %v1939_v27 = vrot.slane %v1937_v14, 1  ;;  %v2178_v28 = vpop.permute.xlu0 %2177  ;;  %v1037_v45 = vsel %vm13270_vm3, %v865_v52, %v1036_v4  ;;  %v2515_v46 = vrot.slane %v2513_v25, 1 }
  0xde   : > { %v1698_v34 = vpop.permute.xlu1 %1697  ;;  %v2160_v16 = vrot.slane %v11314_v3, 1  ;;  %v2161_v49 = vrot.slane %v14183_v40, 1  ;;  %v1201_v9 = vld [vmem:[#allocation2 + $0xb4] sm:$0xf]  ;;  %1038 = vst [vmem:[#allocation2 + $0xbc] sm:$0x1] %v1037_v45  ;;  %v881_v38 = vsel %vm13329_vm9, %v873_v54, %v880_v20  ;;  %v1542_v36 = vor.u32 %v1541_v19, %v1537_v15 }
  0xdf   : > { %v1935_v2 = vor.u32 %v13880_v37, %v17803_v35  ;;  %v14202_v24 = vcombine.low %v1201_v9, %v14191_v8  ;;  %v1544_v37 = vshll.u32 %v12663_v57, 16  ;;  %v1039_v13 = vld [vmem:[#allocation2 + $0xc0] sm:$0xf]  ;;  %1042 = vst.msk [vmem:[#allocation2 + $0xc4] sm:$0xf] %vm359_vm0, %v881_v38  ;;  %v2516_v12 = vsel %vm1367_vm10, %v2511_v0, %v2515_v46 }
  0xe0   : > { %v12995_v52 = vld [vmem:[#allocation2 + $0x58] sm:$0xf]  ;;  %v1683_v3 = vrot.slane %v11267_v30, 1  ;;  %v1684_v21 = vrot.slane %v12663_v57, 1  ;;  %v1040_v48 = vsel %vm13321_vm8, %v872_v23, %v1039_v13  ;;  %v475_v18 = vld [vmem:[#allocation2 + $0xc8] sm:$0x1]  ;;  %2577 = vrot.lane.b32.xlu0 %v2516_v12, %s13158_s12  ;;  %v2691_v15 = vsel %vm2681_vm11, %v13487_v33, %v14168_v44 }
  0xe1   : > { %v11354_v55 = vcombine.low %v1228_v29, %v12995_v52  ;;  %v2520_v19 = vshll.u32 %v14202_v24, 16  ;;  %v1940_v54 = vsel %vm1367_vm10, %v1935_v2, %v1939_v27  ;;  %v1546_v25 = vrot.slane %v1544_v37, 1  ;;  %v2290_v29 = vpop.permute.xlu0 %2289  ;;  %v1139_v4 = vld [vmem:[#allocation2 + $0xb8] sm:$0xf]  ;;  %v1172_v0 = vld [vmem:[#allocation2 + $0xb4] sm:$0xe] }
  0xe2   : > { %v1810_v14 = vpop.permute.xlu1 %1809  ;;  %1041 = vst [vmem:[#allocation2 + $0xc0] sm:$0xf] %v1040_v48  ;;  %v1076_v30 = vld [vmem:[#allocation2 + $0xb4] sm:$0xf]  ;;  %v2162_v20 = vsel %vm1640_vm7, %v2160_v16, %v2161_v49  ;;  %v2518_v23 = vshrl.u32 %v14202_v24, 16  ;;  %v2810_v37 = vsel %vm2681_vm11, %v1940_v54, %v2178_v28  ;;  %v2724_v13 = vsel %vm2714_vm12, %v2691_v15, %v1698_v34 }
  0xe3   : > { %v12996_v35 = vld [vmem:[#allocation2 + $0x50] ss:$0 sps:$4 sm:$0x11]   ;;  %v14216_v57 = vld [vmem:[#allocation2 + $0xb8] sm:$0xf]  ;;  %v2522_v46 = vrot.slane %v2520_v19, 1  ;;  %v1547_v33 = vsel %vm1367_vm10, %v1542_v36, %v1546_v25  ;;  %v1685_v16 = vsel %vm1640_vm7, %v1683_v3, %v1684_v21  ;;  %v2853_v36 = vsel %vm2714_vm12, %v2810_v37, %v2290_v29 }
  0xe4   : > { %v1949_v45 = vshll.u32 %v12996_v35, 16  ;;  %v1138_v9 = vld [vmem:[#allocation2 + $0xb4] sm:$0xf]  ;;  %v2648_v2 = vrot.slane %v11354_v55, 1  ;;  %1588 = vrot.lane.b32.xlu1 %v1547_v33, %s13157_s11  ;;  %2195 = vrot.lane.b32.xlu0 %v2162_v20, %s13157_s11  ;;  %v476_v48 = vsel %vm13289_vm6, 0, %v475_v18  ;;  %v14231_v28 = vcombine.low %v1076_v30, %v14216_v57 }
  0xe5   : > { %v12997_v27 = vld [vmem:[#allocation2 + $0x5c] ss:$0 sps:$4 sm:$0x11]   ;;  %v1109_v49 = vld [vmem:[#allocation2 + $0xb4] sm:$0xe]  ;;  %v2562_v12 = vpop.permute.xlu0 %2561  ;;  %v11315_v15 = vcombine.low %v1172_v0, %v1139_v4  ;;  %v1954_v21 = vshrl.u32 %v13715_v31, 16  ;;  %v2523_v19 = vor.u32 %v2522_v46, %v2518_v23  ;;  %v2761_v18 = vsel %vm2747_vm13, %v2724_v13, %v1810_v14 }
  0xe6   : > { %v1571_v44 = vpop.permute.xlu1 %1570  ;;  %v2649_v38 = vrot.slane %v12997_v27, 1  ;;  %v14224_v52 = vld [vmem:[#allocation2 + $0xbc] ss:$0 sps:$4 sm:$0x11]   ;;  %v2889_v3 = vsel %vm2747_vm13, %v2853_v36, %v2562_v12  ;;  %477 = vst [vmem:[#allocation2 + $0xc8] sm:$0x1] %v476_v48  ;;  %v14243_v0 = vcombine.low %v1138_v9, %v1139_v4  ;;  %v1947_v20 = vor.u32 %v14122_v6, %v1942_v50 }
  0xe7   : > { %v14233_v34 = vld [vmem:[#allocation2 + $0xbc] ss:$0 sps:$4 sm:$0x11]   ;;  %v2525_v54 = vshll.u32 %v14224_v52, 16  ;;  %v14239_v25 = vld [vmem:[#allocation2 + $0xc4] sm:$0xf]  ;;  %3180 = vmatprep.mubr.bf16.mxu0 %v2889_v3  ;;  %v11268_v4 = vcombine.low %v1109_v49, %v14216_v57  ;;  %v2693_v57 = vsel %vm2681_vm11, %v13564_v56, %v1571_v44 }
  0xe8   : > { %v2650_v55 = vsel %vm1640_vm7, %v2648_v2, %v2649_v38  ;;  %1717 = vrot.lane.b32.xlu1 %v1685_v16, %s13156_s30  ;;  %3181 = vmatmul.mubr.bf16.gmra.mrb[16].mxu0 %v2761_v18  ;;  %v1951_v35 = vrot.slane %v1949_v45, 1  ;;  %v12672_v23 = vld [vmem:[#allocation2 + $0xbc] ss:$0 sps:$4 sm:$0x11]   ;;  %v422_v46 = vld [vmem:[#allocation2 + $0xcc] sm:$0x1] }
  0xe9   : > { %12403 = vmatmul.mubr.msk.bf16.vlgmr.msra.gmra.mrb[0].mxu1 %vm2681_vm11, %v2650_v55  ;;  %v1203_v30 = vld [vmem:[#allocation2 + $0xc0] sm:$0xf]  ;;  %2307 = vrot.lane.b32.xlu0 %v14202_v24, %s13156_s30  ;;  %v2527_v33 = vrot.slane %v2525_v54, 1  ;;  %v2180_v2 = vpop.permute.xlu0 %2179  ;;  %v1549_v14 = vshrl.u32 %v14231_v28, 16  ;;  %v1551_v27 = vshll.u32 %v14231_v28, 16  ;;  %v2163_v38 = vrot.slane %v11315_v15, 1 }
  0xea   : > { %v1700_v29 = vpop.permute.xlu1 %1699  ;;  %v1229_v9 = vld [vmem:[#allocation2 + $0x60] sm:$0xe]  ;;  %v2164_v11 = vrot.slane %v14233_v34, 1  ;;  %v882_v50 = vrot.slane %v14181_v43, 4  ;;  %v1556_v6 = vshll.u32 %v12672_v23, 16  ;;  %v1956_v45 = vshll.u32 %v13715_v31, 16 }
  0xeb   : > { %v2528_v37 = vsel %vm1367_vm10, %v2523_v19, %v2527_v33  ;;  %v14258_v24 = vcombine.low %v1203_v30, %v14239_v25  ;;  %v1553_v13 = vrot.slane %v1551_v27, 1  ;;  %v478_v36 = vld [vmem:[#allocation2 + $0xd4] sm:$0x1]  ;;  %v1230_v12 = vld [vmem:[#allocation2 + $0x6c] sm:$0xe]  ;;  %v1952_v43 = vsel %vm1367_vm10, %v1947_v20, %v1951_v35 }
  0xec   : > { %1829 = vrot.lane.b32.xlu1 %v14243_v0, %s13158_s12  ;;  %v1558_v49 = vrot.slane %v1556_v6, 1  ;;  %v12998_v55 = vld [vmem:[#allocation2 + $0x64] sm:$0xf]  ;;  %v1231_v15 = vld [vmem:[#allocation2 + $0x78] sm:$0xe]  ;;  %v1686_v18 = vrot.slane %v11268_v4, 1  ;;  %v2165_v56 = vsel %vm1640_vm7, %v2163_v38, %v2164_v11 }
  0xed   : > { %v11355_v48 = vcombine.low %v1229_v9, %v12998_v55  ;;  %2579 = vrot.lane.b32.xlu0 %v2528_v37, %s13158_s12  ;;  %v1043_v3 = vld [vmem:[#allocation2 + $0xc8] sm:$0x1]  ;;  %v1554_v19 = vor.u32 %v1553_v13, %v1549_v14  ;;  %v2292_v54 = vpop.permute.xlu0 %2291  ;;  %v1687_v30 = vrot.slane %v12672_v23, 1  ;;  %v423_v33 = vsel %vm13270_vm3, 0, %v422_v46  ;;  %v12999_v20 = vld [vmem:[#allocation2 + $0x70] sm:$0xf] }
  0xee   : > { %v1812_v16 = vpop.permute.xlu1 %1811  ;;  %v1044_v44 = vsel %vm13270_vm3, %v882_v50, %v1043_v3  ;;  %424 = vst [vmem:[#allocation2 + $0xcc] sm:$0x1] %v423_v33  ;;  %v11356_v35 = vcombine.low %v1230_v12, %v12999_v20  ;;  %v1232_v27 = vld [vmem:[#allocation2 + $0x84] sm:$0xe]  ;;  %v1958_v9 = vrot.slane %v1956_v45, 1  ;;  %v2532_v6 = vshll.u32 %v14258_v24, 16 }
  0xef   : > { %v2813_v14 = vsel %vm2681_vm11, %v1952_v43, %v2180_v2  ;;  %1045 = vst [vmem:[#allocation2 + $0xc8] sm:$0x1] %v1044_v44  ;;  %v1559_v23 = vsel %vm1367_vm10, %v1554_v19, %v1558_v49  ;;  %v2726_v46 = vsel %vm2714_vm12, %v2693_v57, %v1700_v29  ;;  %v1141_v11 = vld [vmem:[#allocation2 + $0xc4] sm:$0xf]  ;;  %v1140_v50 = vld [vmem:[#allocation2 + $0xc0] sm:$0xf]  ;;  %v1688_v2 = vsel %vm1640_vm7, %v1686_v18, %v1687_v30 }
  0xf0   : > { %1590 = vrot.lane.b32.xlu1 %v1559_v23, %s13157_s11  ;;  %v2855_v38 = vsel %vm2714_vm12, %v2813_v14, %v2292_v54  ;;  %v479_v45 = vsel %vm13289_vm6, 0, %v478_v36  ;;  %v13000_v37 = vld [vmem:[#allocation2 + $0x7c] sm:$0xf]  ;;  %v14283_v43 = vld [vmem:[#allocation2 + $0xd0] sm:$0xf]  ;;  %v2651_v57 = vrot.slane %v11355_v48, 1  ;;  %v2764_v20 = vsel %vm2747_vm13, %v2726_v46, %v1812_v16 }
  0xf1   : > { %v11357_v13 = vcombine.low %v1231_v15, %v13000_v37  ;;  %2197 = vrot.lane.b32.xlu0 %v2165_v56, %s13157_s11  ;;  %v2564_v12 = vpop.permute.xlu0 %2563  ;;  %v13001_v49 = vld [vmem:[#allocation2 + $0x5c] ss:$0 sps:$4 sm:$0x11]   ;;  %480 = vst [vmem:[#allocation2 + $0xd4] sm:$0x1] %v479_v45  ;;  %v2654_v36 = vrot.slane %v11356_v35, 1  ;;  %v14290_v23 = vcombine.low %v1140_v50, %v1141_v11  ;;  %v1959_v46 = vor.u32 %v1958_v9, %v1954_v21 }
  0xf2   : > { %v14274_v4 = vpop.permute.xlu1 %1572  ;;  %v1961_v29 = vshll.u32 %v13001_v49, 16  ;;  %v13002_v55 = vld [vmem:[#allocation2 + $0x68] ss:$0 sps:$4 sm:$0x11]   ;;  %v1233_v19 = vld [vmem:[#allocation2 + $0x90] sm:$0xe]  ;;  %v2892_v10 = vsel %vm2747_vm13, %v2855_v38, %v2564_v12 }
  0xf3   : > { %v2652_v3 = vrot.slane %v13002_v55, 1  ;;  %v1173_v54 = vld [vmem:[#allocation2 + $0xc0] sm:$0xe]  ;;  %v13003_v33 = vld [vmem:[#allocation2 + $0x74] ss:$0 sps:$4 sm:$0x11]   ;;  %3188 = vmatprep.mubr.bf16.mxu0 %v2892_v10 }
  0xf4   : > { %v2655_v15 = vrot.slane %v13003_v33, 1  ;;  %v13004_v44 = vld [vmem:[#allocation2 + $0x88] sm:$0xf]  ;;  %v2530_v18 = vshrl.u32 %v14258_v24, 16  ;;  %v2534_v30 = vrot.slane %v2532_v6, 1  ;;  %1719 = vrot.lane.b32.xlu1 %v1688_v2, %s13156_s30  ;;  %3189 = vmatmul.mubr.bf16.gmra.mrb[20].mxu0 %v2764_v20  ;;  %v2657_v38 = vrot.slane %v11357_v13, 1 }
  0xf5   : > { %v11358_v56 = vcombine.low %v1232_v27, %v13004_v44  ;;  %v2653_v48 = vsel %vm1640_vm7, %v2651_v57, %v2652_v3  ;;  %v13005_v45 = vld [vmem:[#allocation2 + $0x80] ss:$0 sps:$4 sm:$0x11]   ;;  %v1968_v27 = vshll.u32 %v13775_v63, 16  ;;  %2309 = vrot.lane.b32.xlu0 %v14258_v24, %s13156_s30  ;;  %v11316_v6 = vcombine.low %v1173_v54, %v1141_v11  ;;  %v1205_v16 = vld [vmem:[#allocation2 + $0xcc] sm:$0xf]  ;;  %v2182_v2 = vpop.permute.xlu0 %2181 }
  0xf6   : > { %v1702_v14 = vpop.permute.xlu1 %1701  ;;  %v2656_v35 = vsel %vm1640_vm7, %v2654_v36, %v2655_v15  ;;  %v2658_v37 = vrot.slane %v13005_v45, 1  ;;  %v1963_v12 = vrot.slane %v1961_v29, 1  ;;  %12406 = vmatprep.mubr.msk.bf16.mxu1 %vm2681_vm11, %v2653_v48  ;;  %v14299_v50 = vld [vmem:[#allocation2 + $0xc8] ss:$0 sps:$4 sm:$0x11]   ;;  %v14302_v13 = vcombine.low %v1205_v16, %v14283_v43 }
  0xf7   : > { %12407 = vmatmul.mubr.msk.bf16.gmra.mrb[4].mxu1 %vm2681_vm11, %v2656_v35  ;;  %v2660_v57 = vrot.slane %v11358_v56, 1  ;;  %v11359_v24 = vcombine.low %v1233_v19, %v13942_v59  ;;  %v14307_v11 = vld [vmem:[#allocation2 + $0xc8] ss:$0 sps:$4 sm:$0x11]   ;;  %v1966_v29 = vshrl.u32 %v13775_v63, 16  ;;  %v2535_v55 = vor.u32 %v2534_v30, %v2530_v18 }
  0xf8   : > { %v2659_v49 = vsel %vm1640_vm7, %v2657_v38, %v2658_v37  ;;  %v13006_v21 = vld [vmem:[#allocation2 + $0x8c] ss:$0 sps:$4 sm:$0x11]   ;;  %v2537_v3 = vshll.u32 %v14299_v50, 16  ;;  %1831 = vrot.lane.b32.xlu1 %v14290_v23, %s13158_s12  ;;  %v1234_v54 = vld [vmem:[#allocation2 + $0x9c] sm:$0xe]  ;;  %v2695_v59 = vsel %vm2681_vm11, %v13614_v62, %v14274_v4  ;;  %v1964_v19 = vsel %vm1367_vm10, %v1959_v46, %v1963_v12 }
  0xf9   : > { %12410 = vmatprep.mubr.msk.bf16.mxu1 %vm2681_vm11, %v2659_v49  ;;  %v2661_v9 = vrot.slane %v13006_v21, 1  ;;  %v2166_v10 = vrot.slane %v11316_v6, 1  ;;  %v14318_v36 = vld [vmem:[#allocation2 + $0xd4] ss:$0 sps:$4 sm:$0x11]   ;;  %v2294_v33 = vpop.permute.xlu0 %2293  ;;  %v2167_v63 = vrot.slane %v14307_v11, 1  ;;  %v11360_v62 = vcombine.low %v1234_v54, %v14031_v61 }
  0xfa   : > { %v1814_v31 = vpop.permute.xlu1 %1813  ;;  %v1235_v15 = vld [vmem:[#allocation2 + $0xa8] sm:$0xe]  ;;  %v2539_v44 = vrot.slane %v2537_v3, 1  ;;  %v2544_v56 = vshll.u32 %v14302_v13, 16  ;;  %v2663_v18 = vrot.slane %v11359_v24, 1  ;;  %v1970_v30 = vrot.slane %v1968_v27, 1 }
  0xfb   : > { %v2662_v48 = vsel %vm1640_vm7, %v2660_v57, %v2661_v9  ;;  %v2664_v35 = vrot.slane %v14005_v51, 1  ;;  %v2816_v38 = vsel %vm2681_vm11, %v1964_v19, %v2182_v2  ;;  %v2728_v45 = vsel %vm2714_vm12, %v2695_v59, %v1702_v14  ;;  %v13007_v46 = vld [vmem:[#allocation2 + $0x68] ss:$0 sps:$4 sm:$0x11]  }
  0xfc   : > { %v2540_v4 = vsel %vm1367_vm10, %v2535_v55, %v2539_v44  ;;  %v11361_v37 = vcombine.low %v1235_v15, %v14098_v26  ;;  %v2542_v6 = vshrl.u32 %v14302_v13, 16  ;;  %v2857_v27 = vsel %vm2714_vm12, %v2816_v38, %v2294_v33  ;;  %v1236_v26 = vld [vmem:[#allocation2 + $0xb4] sm:$0xe]  ;;  %v1237_v55 = vld [vmem:[#allocation2 + $0xc0] sm:$0xe] }
  0xfd   : > { %2581 = vrot.lane.b32.xlu0 %v2540_v4, %s13158_s12  ;;  %v2566_v16 = vpop.permute.xlu0 %2565  ;;  %v1973_v12 = vshll.u32 %v13007_v46, 16  ;;  %v2665_v51 = vsel %vm1640_vm7, %v2663_v18, %v2664_v35  ;;  %v2168_v61 = vsel %vm1640_vm7, %v2166_v10, %v2167_v63  ;;  %v2546_v49 = vrot.slane %v2544_v56, 1  ;;  %v1238_v10 = vld [vmem:[#allocation2 + $0xcc] sm:$0xe] }
  0xfe   : > { %v1575_v20 = vpop.permute.xlu1 %1574  ;;  %v2549_v2 = vshll.u32 %v14318_v36, 16  ;;  %v2895_v14 = vsel %vm2747_vm13, %v2857_v27, %v2566_v16  ;;  %v2767_v57 = vsel %vm2747_vm13, %v2728_v45, %v1814_v31  ;;  %v2666_v21 = vrot.slane %v11360_v62, 1  ;;  %v13008_v45 = vld [vmem:[#allocation2 + $0x74] ss:$0 sps:$4 sm:$0x11]  }
  0xff   : > { %12411 = vmatmul.mubr.msk.bf16.gmra.mrb[8].mxu1 %vm2681_vm11, %v2662_v48  ;;  %3196 = vmatprep.mubr.bf16.mxu0 %v2895_v14  ;;  %v2667_v9 = vrot.slane %v14065_v53, 1  ;;  %v2669_v3 = vrot.slane %v11361_v37, 1  ;;  %v2670_v54 = vrot.slane %v14177_v41, 1  ;;  %v1971_v59 = vor.u32 %v1970_v30, %v1966_v29  ;;  %v17804_v29 = vld [vmem:[#allocation9_spill] sm:$0xff] }
 0x100   : > { %12414 = vmatprep.mubr.msk.bf16.mxu1 %vm2681_vm11, %v2665_v51  ;;  %3197 = vmatmul.mubr.bf16.gmra.mrb[24].mxu0 %v2767_v57  ;;  %v1975_v19 = vrot.slane %v1973_v12, 1  ;;  %v1980_v15 = vshll.u32 %v13837_v32, 16  ;;  %v2547_v31 = vor.u32 %v2546_v49, %v2542_v6  ;;  %v2551_v44 = vrot.slane %v2549_v2, 1  ;;  %v17805_v16 = vld [vmem:[#allocation13_spill] sm:$0xff] }
 0x101   : > { %2199 = vrot.lane.b32.xlu0 %v2168_v61, %s13157_s11  ;;  %v2184_v33 = vpop.permute.xlu0 %2183  ;;  %v2668_v56 = vsel %vm1640_vm7, %v2666_v21, %v2667_v9  ;;  %v11362_v53 = vcombine.low %v1236_v26, %v14191_v8  ;;  %v11363_v18 = vcombine.low %v1237_v55, %v14239_v25  ;;  %v2671_v48 = vsel %vm1640_vm7, %v2669_v3, %v2670_v54  ;;  %v17806_v3 = vld [vmem:[#allocation10_spill] sm:$0xff] }
 0x102   : > { %v1704_v24 = vpop.permute.xlu1 %1703  ;;  %v11364_v41 = vcombine.low %v1238_v10, %v14283_v43  ;;  %v2697_v30 = vsel %vm2681_vm11, %v17804_v29, %v1575_v20  ;;  %v1976_v35 = vsel %vm1367_vm10, %v1971_v59, %v1975_v19  ;;  %v1978_v4 = vshrl.u32 %v13837_v32, 16 }
 0x103   : > { %v1982_v38 = vrot.slane %v1980_v15, 1  ;;  %v2552_v8 = vsel %vm1367_vm10, %v2547_v31, %v2551_v44  ;;  %v1985_v25 = vshll.u32 %v13008_v45, 16  ;;  %v2672_v43 = vrot.slane %v11362_v53, 1 }
 0x104   : > { %v2675_v6 = vrot.slane %v11363_v18, 1  ;;  %v2676_v20 = vrot.slane %v14299_v50, 1  ;;  %v2819_v27 = vsel %vm2681_vm11, %v1976_v35, %v2184_v33  ;;  %v2730_v32 = vsel %vm2714_vm12, %v2697_v30, %v1704_v24 }
 0x105   : > { %2311 = vrot.lane.b32.xlu0 %v14302_v13, %s13156_s30  ;;  %v2296_v62 = vpop.permute.xlu0 %2295  ;;  %v2673_v13 = vrot.slane %v14224_v52, 1  ;;  %v1992_v46 = vshll.u32 %v17805_v16, 16  ;;  %v2678_v12 = vrot.slane %v11364_v41, 1  ;;  %v1987_v2 = vrot.slane %v1985_v25, 1 }
 0x106   : > { %v1816_v63 = vpop.permute.xlu1 %1815  ;;  %v2859_v51 = vsel %vm2714_vm12, %v2819_v27, %v2296_v62  ;;  %v2679_v52 = vrot.slane %v14318_v36, 1  ;;  %v2677_v57 = vsel %vm1640_vm7, %v2675_v6, %v2676_v20  ;;  %v1983_v21 = vor.u32 %v1982_v38, %v1978_v4  ;;  %v17807_v4 = vld [vmem:[#allocation11_spill] sm:$0xff] }
 0x107   : > { %12415 = vmatmul.mubr.msk.bf16.gmra.mrb[12].mxu1 %vm2681_vm11, %v2668_v56  ;;  %v2770_v50 = vsel %vm2747_vm13, %v2730_v32, %v1816_v63  ;;  %v2674_v26 = vsel %vm1640_vm7, %v2672_v43, %v2673_v13  ;;  %v1990_v15 = vshrl.u32 %v17805_v16, 16  ;;  %v1994_v31 = vrot.slane %v1992_v46, 1  ;;  %v13009_v56 = vld [vmem:[#allocation2 + $0x80] ss:$0 sps:$4 sm:$0x11]  }
 0x108   : > { %12418 = vmatprep.mubr.msk.bf16.mxu1 %vm2681_vm11, %v2671_v48  ;;  %v1988_v54 = vsel %vm1367_vm10, %v1983_v21, %v1987_v2  ;;  %v2680_v59 = vsel %vm1640_vm7, %v2678_v12, %v2679_v52  ;;  %v1997_v53 = vshll.u32 %v13009_v56, 16  ;;  %v2004_v32 = vshll.u32 %v13950_v58, 16  ;;  %v17808_v21 = vld [vmem:[#allocation12_spill] sm:$0xff] }
 0x109   : > { %2583 = vrot.lane.b32.xlu0 %v2552_v8, %s13158_s12  ;;  %v2568_v61 = vpop.permute.xlu0 %2567  ;;  %v1995_v29 = vor.u32 %v1994_v31, %v1990_v15  ;;  %v2002_v12 = vshrl.u32 %v13950_v58, 16 }
 0x10a   : > { %v1577_v37 = vpop.permute.xlu1 %1576  ;;  %v2898_v49 = vsel %vm2747_vm13, %v2859_v51, %v2568_v61  ;;  %v1999_v30 = vrot.slane %v1997_v53, 1  ;;  %v2006_v51 = vrot.slane %v2004_v32, 1  ;;  %v13010_v61 = vld [vmem:[#allocation2 + $0x8c] ss:$0 sps:$4 sm:$0x11]  }
 0x10b   : > { %3204 = vmatprep.mubr.bf16.mxu0 %v2898_v49  ;;  %v2699_v36 = vsel %vm2681_vm11, %v17806_v3, %v1577_v37  ;;  %v2009_v49 = vshll.u32 %v13010_v61, 16 }
 0x10c   : > { %3205 = vmatmul.mubr.bf16.gmra.mrb[28].mxu0 %v2770_v50  ;;  %v2000_v8 = vsel %vm1367_vm10, %v1995_v29, %v1999_v30  ;;  %v2007_v50 = vor.u32 %v2006_v51, %v2002_v12  ;;  %v2040_v51 = vshll.u32 %v14154_v22, 16 }
 0x10d   : > { %v2186_v24 = vpop.permute.xlu0 %2185 }
 0x10e   : > { %v1706_v14 = vpop.permute.xlu1 %1705  ;;  %v2822_v19 = vsel %vm2681_vm11, %v1988_v54, %v2186_v24  ;;  %v2016_v24 = vshll.u32 %v14015_v7, 16  ;;  %v2014_v54 = vshrl.u32 %v14015_v7, 16 }
 0x10f   : > { %12419 = vmatmul.mubr.msk.bf16.gmra.mrb[16].mxu1 %vm2681_vm11, %v2674_v26  ;;  %v2732_v33 = vsel %vm2714_vm12, %v2699_v36, %v1706_v14  ;;  %v2011_v14 = vrot.slane %v2009_v49, 1 }
 0x110   : > { %12422 = vmatprep.mubr.msk.bf16.mxu1 %vm2681_vm11, %v2677_v57 }
 0x111   : > { %v2298_v55 = vpop.permute.xlu0 %2297 }
 0x112   : > { %v1818_v9 = vpop.permute.xlu1 %1817  ;;  %v2861_v44 = vsel %vm2714_vm12, %v2822_v19, %v2298_v55  ;;  %v2012_v55 = vsel %vm1367_vm10, %v2007_v50, %v2011_v14  ;;  %v2038_v50 = vshrl.u32 %v14154_v22, 16  ;;  %v2042_v14 = vrot.slane %v2040_v51, 1 }
 0x113   : > { %v2773_v41 = vsel %vm2747_vm13, %v2732_v33, %v1818_v9  ;;  %v13011_v33 = vld [vmem:[#allocation2 + $0x98] ss:$0 sps:$4 sm:$0x11]  }
 0x114   : > { %v2021_v15 = vshll.u32 %v13011_v33, 16 }
 0x115   : > { %v2570_v63 = vpop.permute.xlu0 %2569 }
 0x116   : > { %v1579_v10 = vpop.permute.xlu1 %1578  ;;  %v2901_v18 = vsel %vm2747_vm13, %v2861_v44, %v2570_v63  ;;  %v2023_v56 = vrot.slane %v2021_v15, 1 }
 0x117   : > { %12423 = vmatmul.mubr.msk.bf16.gmra.mrb[20].mxu1 %vm2681_vm11, %v2680_v59  ;;  %3212 = vmatprep.mubr.bf16.mxu0 %v2901_v18  ;;  %v2701_v38 = vsel %vm2681_vm11, %v17807_v4, %v1579_v10  ;;  %v2018_v10 = vrot.slane %v2016_v24, 1  ;;  %v2045_v24 = vshll.u32 %v14183_v40, 16 }
 0x118   : > { %3213 = vmatmul.mubr.bf16.gmra.mrb[32].mxu0 %v2773_v41 }
 0x119   : > { %v2188_v35 = vpop.permute.xlu0 %2187  ;;  %v2019_v63 = vor.u32 %v2018_v10, %v2014_v54 }
 0x11a   : > { %v1708_v48 = vpop.permute.xlu1 %1707  ;;  %v2825_v37 = vsel %vm2681_vm11, %v2000_v8, %v2188_v35 }
 0x11b   : > { %v2734_v43 = vsel %vm2714_vm12, %v2701_v38, %v1708_v48  ;;  %v17809_v48 = vld [vmem:[#allocation14_spill] sm:$0xff]  ;;  %v2024_v7 = vsel %vm1367_vm10, %v2019_v63, %v2023_v56  ;;  %v12682_v56 = vld [vmem:[#allocation2 + $0x8] ss:$0 sps:$4 sm:$0x11]  }
 0x11d   : > { %v2300_v45 = vpop.permute.xlu0 %2299 }
 0x11e   : > { %v1820_v62 = vpop.permute.xlu1 %1819  ;;  %v2863_v13 = vsel %vm2714_vm12, %v2825_v37, %v2300_v45 }
 0x11f   : > { %v2776_v16 = vsel %vm2747_vm13, %v2734_v43, %v1820_v62  ;;  %v2026_v43 = vshrl.u32 %v14083_v60, 16 }
 0x121   : > { %v2572_v6 = vpop.permute.xlu0 %2571 }
 0x122   : > { %v1581_v25 = vpop.permute.xlu1 %1580  ;;  %v2904_v20 = vsel %vm2747_vm13, %v2863_v13, %v2572_v6  ;;  %v13012_v6 = vld [vmem:[#allocation2 + $0xa4] ss:$0 sps:$4 sm:$0x11]  }
 0x123   : > { %3220 = vmatprep.mubr.bf16.mxu0 %v2904_v20  ;;  %v2703_v9 = vsel %vm2681_vm11, %v17808_v21, %v1581_v25  ;;  %v2028_v25 = vshll.u32 %v14083_v60, 16  ;;  %v2033_v20 = vshll.u32 %v13012_v6, 16 }
 0x124   : > { %3221 = vmatmul.mubr.bf16.gmra.mrb[36].mxu0 %v2776_v16 }
 0x125   : > { %v2190_v2 = vpop.permute.xlu0 %2189  ;;  %v2030_v13 = vrot.slane %v2028_v25, 1 }
 0x126   : > { %v1710_v27 = vpop.permute.xlu1 %1709  ;;  %v2828_v3 = vsel %vm2681_vm11, %v2012_v55, %v2190_v2  ;;  %v2043_v55 = vor.u32 %v2042_v14, %v2038_v50  ;;  %v2069_v50 = vshll.u32 %v14307_v11, 16  ;;  %v1224_v11 = vld [vmem:[#allocation2 + $0x24] sm:$0xe] }
 0x127   : > { %v2736_v58 = vsel %vm2714_vm12, %v2703_v9, %v1710_v27  ;;  %v2031_v16 = vor.u32 %v2030_v13, %v2026_v43 }
 0x129   : > { %v2302_v26 = vpop.permute.xlu0 %2301 }
 0x12a   : > { %v1822_v46 = vpop.permute.xlu1 %1821  ;;  %v2865_v59 = vsel %vm2714_vm12, %v2828_v3, %v2302_v26  ;;  %v2047_v3 = vrot.slane %v2045_v24, 1  ;;  %v2071_v24 = vrot.slane %v2069_v50, 1 }
 0x12b   : > { %v2779_v44 = vsel %vm2747_vm13, %v2736_v58, %v1822_v46  ;;  %v2035_v46 = vrot.slane %v2033_v20, 1 }
 0x12c   : > { %v2048_v22 = vsel %vm1367_vm10, %v2043_v55, %v2047_v3 }
 0x12d   : > { %v2036_v49 = vsel %vm1367_vm10, %v2031_v16, %v2035_v46  ;;  %v2064_v16 = vshll.u32 %v14290_v23, 16 }
 0x12e   : > { %v1583_v52 = vpop.permute.xlu1 %1582 }
 0x12f   : > { %v2705_v41 = vsel %vm2681_vm11, %v17809_v48, %v1583_v52 }
 0x132   : > { %v1712_v57 = vpop.permute.xlu1 %1711  ;;  %v2574_v19 = vpop.permute.xlu0 %2573 }
 0x133   : > { %v2907_v31 = vsel %vm2747_vm13, %v2865_v59, %v2574_v19  ;;  %v2738_v62 = vsel %vm2714_vm12, %v2705_v41, %v1712_v57  ;;  %v4139_v59 = vld [vmem:[#allocation2] sm:$0xf]  ;;  %v4140_v19 = vld [vmem:[#allocation2 + $0x4] sm:$0xf]  ;;  %v4467_v41 = vshll.u32 %v12682_v56, 16 }
 0x134   : > { %3228 = vmatprep.mubr.bf16.mxu0 %v2907_v31  ;;  %v14428_v15 = vcombine.low %v4139_v59, %v4140_v19  ;;  %v2052_v31 = vshll.u32 %v14243_v0, 16 }
 0x135   : > { %3229 = vmatmul.mubr.bf16.gmra.mrb[40].mxu0 %v2779_v44 }
 0x136   : > { %v1824_v36 = vpop.permute.xlu1 %1823 }
 0x137   : > { %v2192_v53 = vpop.permute.xlu0 %2191  ;;  %v2782_v45 = vsel %vm2747_vm13, %v2738_v62, %v1824_v36  ;;  %v2057_v62 = vshll.u32 %v14233_v34, 16 }
 0x138   : > { %v2831_v35 = vsel %vm2681_vm11, %v2024_v7, %v2192_v53  ;;  %v4460_v53 = vshrl.u32 %v14428_v15, 16 }
 0x139   : > { %v2059_v13 = vrot.slane %v2057_v62, 1  ;;  %v1226_v62 = vld [vmem:[#allocation2 + $0x3c] sm:$0xe] }
 0x13a   : > { %v1585_v18 = vpop.permute.xlu1 %1584 }
 0x13b   : > { %v2304_v29 = vpop.permute.xlu0 %2303  ;;  %v2707_v61 = vsel %vm2681_vm11, %v13990_v17, %v1585_v18  ;;  %v4462_v18 = vshll.u32 %v14428_v15, 16 }
 0x13c   : > { %v2867_v4 = vsel %vm2714_vm12, %v2831_v35, %v2304_v29  ;;  %v2054_v35 = vrot.slane %v2052_v31, 1 }
 0x13d   : > { %v4464_v29 = vrot.slane %v4462_v18, 1 }
 0x13e   : > { %v1714_v30 = vpop.permute.xlu1 %1713 }
 0x13f   : > { %v2576_v38 = vpop.permute.xlu0 %2575  ;;  %v2740_v60 = vsel %vm2714_vm12, %v2707_v61, %v1714_v30  ;;  %v2050_v30 = vshrl.u32 %v14243_v0, 16 }
 0x140   : > { %v2910_v8 = vsel %vm2747_vm13, %v2867_v4, %v2576_v38  ;;  %v4469_v38 = vrot.slane %v4467_v41, 1  ;;  %v13017_v41 = vld [vmem:[#allocation2 + $0x2c] ss:$0 sps:$4 sm:$0x11]  }
 0x141   : > { %3236 = vmatprep.mubr.bf16.mxu0 %v2910_v8  ;;  %v4465_v8 = vor.u32 %v4464_v29, %v4460_v53  ;;  %v2055_v43 = vor.u32 %v2054_v35, %v2050_v30  ;;  %v13018_v30 = vld [vmem:[#allocation2 + $0x38] ss:$0 sps:$4 sm:$0x11]  }
 0x142   : > { %3237 = vmatmul.mubr.bf16.gmra.mrb[44].mxu0 %v2782_v45  ;;  %v1826_v37 = vpop.permute.xlu1 %1825  ;;  %v4187_v45 = vld [vmem:[#allocation2] sm:$0xe]  ;;  %v2640_v35 = vrot.slane %v13018_v30, 1 }
 0x143   : > { %v2194_v27 = vpop.permute.xlu0 %2193  ;;  %v2785_v17 = vsel %vm2747_vm13, %v2740_v60, %v1826_v37  ;;  %v4470_v25 = vsel %vm1367_vm10, %v4465_v8, %v4469_v38  ;;  %v11465_v37 = vcombine.low %v4187_v45, %v4140_v19  ;;  %v2060_v46 = vsel %vm1367_vm10, %v2055_v43, %v2059_v13  ;;  %v13019_v38 = vld [vmem:[#allocation2 + $0x40] sm:$0xf] }
 0x144   : > { %v2834_v52 = vsel %vm2681_vm11, %v2036_v49, %v2194_v27  ;;  %4651 = vrot.lane.b32.xlu1 %v4470_v25, %s13157_s11  ;;  %v4732_v27 = vrot.slane %v12682_v56, 1  ;;  %v2062_v49 = vshrl.u32 %v14290_v23, 16  ;;  %v11352_v8 = vcombine.low %v1226_v62, %v13019_v38 }
 0x145   : > { %v4731_v20 = vrot.slane %v11465_v37, 1  ;;  %v13020_v37 = vld [vmem:[#allocation2 + $0x44] ss:$0 sps:$4 sm:$0x11]  }
 0x146   : > { %v1587_v32 = vpop.permute.xlu1 %1586  ;;  %v2642_v25 = vrot.slane %v11352_v8, 1  ;;  %v2643_v43 = vrot.slane %v13020_v37, 1 }
 0x147   : > { %v2306_v12 = vpop.permute.xlu0 %2305  ;;  %v2709_v36 = vsel %vm2681_vm11, %v14071_v5, %v1587_v32  ;;  %v4733_v0 = vsel %vm1640_vm7, %v4731_v20, %v4732_v27 }
 0x148   : > { %v2869_v26 = vsel %vm2714_vm12, %v2834_v52, %v2306_v12  ;;  %4779 = vrot.lane.b32.xlu1 %v4733_v0, %s13156_s30  ;;  %v2644_v13 = vsel %vm1640_vm7, %v2642_v25, %v2643_v43 }
 0x14a   : > { %v1716_v2 = vpop.permute.xlu1 %1715 }
 0x14b   : > { %v2742_v33 = vsel %vm2714_vm12, %v2709_v36, %v1716_v2  ;;  %v2066_v2 = vrot.slane %v2064_v16, 1 }
 0x14e   : > { %v1828_v9 = vpop.permute.xlu1 %1827 }
 0x14f   : > { %v2788_v48 = vsel %vm2747_vm13, %v2742_v33, %v1828_v9  ;;  %v13013_v9 = vld [vmem:[#allocation2 + $0x1c] sm:$0xf]  ;;  %v13015_v33 = vld [vmem:[#allocation2 + $0x28] sm:$0xf] }
 0x150   : > { %v11350_v31 = vcombine.low %v1224_v11, %v13015_v33  ;;  %v14493_v33 = vld [vmem:[%s17719_s5] ss:$0 sm:$0xff] }
 0x152   : > { %v2578_v57 = vpop.permute.xlu0 %2577 }
 0x153   : > { %v2913_v21 = vsel %vm2747_vm13, %v2869_v26, %v2578_v57  ;;  %v1223_v26 = vld [vmem:[#allocation2 + $0x18] sm:$0xe]  ;;  %v2067_v57 = vor.u32 %v2066_v2, %v2062_v49 }
 0x154   : > { %3244 = vmatprep.mubr.bf16.mxu0 %v2913_v21  ;;  %v11349_v55 = vcombine.low %v1223_v26, %v13013_v9 }
 0x155   : > { %3245 = vmatmul.mubr.bf16.gmra.mrb[48].mxu0 %v2785_v17  ;;  %v2072_v3 = vsel %vm1367_vm10, %v2067_v57, %v2071_v24 }
 0x156   : > { %v2196_v58 = vpop.permute.xlu0 %2195  ;;  %v1589_v10 = vpop.permute.xlu1 %1588  ;;  %v2633_v36 = vrot.slane %v11349_v55, 1 }
 0x157   : > { %v2837_v40 = vsel %vm2681_vm11, %v2048_v22, %v2196_v58  ;;  %v2711_v34 = vsel %vm2681_vm11, %v14157_v39, %v1589_v10  ;;  %v13014_v22 = vld [vmem:[#allocation2 + $0x20] ss:$0 sps:$4 sm:$0x11]   ;;  %v1225_v10 = vld [vmem:[#allocation2 + $0x30] sm:$0xe] }
 0x15a   : > { %v1718_v7 = vpop.permute.xlu1 %1717 }
 0x15b   : > { %v2308_v54 = vpop.permute.xlu0 %2307  ;;  %v2744_v51 = vsel %vm2714_vm12, %v2711_v34, %v1718_v7  ;;  %v2637_v7 = vrot.slane %v13017_v41, 1 }
 0x15c   : > { %v2871_v44 = vsel %vm2714_vm12, %v2837_v40, %v2308_v54  ;;  %v2634_v54 = vrot.slane %v13014_v22, 1 }
 0x15e   : > { %v1830_v6 = vpop.permute.xlu1 %1829  ;;  %v2635_v56 = vsel %vm1640_vm7, %v2633_v36, %v2634_v54 }
 0x15f   : > { %v2580_v63 = vpop.permute.xlu0 %2579  ;;  %v2791_v39 = vsel %vm2747_vm13, %v2744_v51, %v1830_v6 }
 0x160   : > { %v2916_v5 = vsel %vm2747_vm13, %v2871_v44, %v2580_v63 }
 0x161   : > { %3252 = vmatprep.mubr.bf16.mxu0 %v2916_v5  ;;  %v13016_v5 = vld [vmem:[#allocation2 + $0x34] sm:$0xf] }
 0x162   : > { %3253 = vmatmul.mubr.bf16.gmra.mrb[52].mxu0 %v2788_v48  ;;  %v1591_v61 = vpop.permute.xlu1 %1590  ;;  %v11351_v53 = vcombine.low %v1225_v10, %v13016_v5  ;;  %v2636_v48 = vrot.slane %v11350_v31, 1 }
 0x163   : > { %v2198_v4 = vpop.permute.xlu0 %2197  ;;  %v2713_v23 = vsel %vm2681_vm11, %v14231_v28, %v1591_v61 }
 0x164   : > { %v2840_v12 = vsel %vm2681_vm11, %v2060_v46, %v2198_v4  ;;  %v2639_v29 = vrot.slane %v11351_v53, 1  ;;  %v2638_v4 = vsel %vm1640_vm7, %v2636_v48, %v2637_v7 }
 0x166   : > { %v1720_v17 = vpop.permute.xlu1 %1719  ;;  %v2641_v45 = vsel %vm1640_vm7, %v2639_v29, %v2640_v35 }
 0x167   : > { %v2310_v32 = vpop.permute.xlu0 %2309  ;;  %v2746_v19 = vsel %vm2714_vm12, %v2713_v23, %v1720_v17 }
 0x168   : > { %v2873_v52 = vsel %vm2714_vm12, %v2840_v12, %v2310_v32 }
 0x16a   : > { %v1832_v40 = vpop.permute.xlu1 %1831 }
 0x16b   : > { %v2794_v18 = vsel %vm2747_vm13, %v2746_v19, %v1832_v40 }
 0x16f   : > { %v2582_v60 = vpop.permute.xlu0 %2581 }
 0x170   : > { %v2919_v14 = vsel %vm2747_vm13, %v2873_v52, %v2582_v60 }
 0x171   : > { %3260 = vmatprep.mubr.bf16.mxu0 %v2919_v14 }
 0x172   : > { %3261 = vmatmul.mubr.bf16.gmra.mrb[56].mxu0 %v2791_v39 }
 0x173   : > { %v2200_v21 = vpop.permute.xlu0 %2199 }
 0x174   : > { %v2843_v59 = vsel %vm2681_vm11, %v2072_v3, %v2200_v21 }
 0x177   : > { %v2312_v58 = vpop.permute.xlu0 %2311 }
 0x178   : > { %v2875_v44 = vsel %vm2714_vm12, %v2843_v59, %v2312_v58  ;;  %v14488_v59 = vld [vmem:[%s17718_s4] ss:$0 sm:$0xff] }
 0x17b   : > { %v2584_v63 = vpop.permute.xlu0 %2583 }
 0x17c   : > { %v2922_v28 = vsel %vm2747_vm13, %v2875_v44, %v2584_v63 }
 0x17d   : > { %3268 = vmatprep.mubr.bf16.mxu0 %v2922_v28 }
 0x17e   : > { %3269 = vmatmul.mubr.bf16.gmra.mrb[60].mxu0 %v2794_v18 }
 0x17f   : > { %12394 = vmatprep.mubr.msk.bf16.mxu0 %vm2681_vm11, %v2635_v56 }
 0x186   : > { %12395 = vmatmul.mubr.msk.bf16.vlgmr.msra.gmra.mrb[64].mxu0 %vm2681_vm11, %v2638_v4 }
 0x187   : > { %12398 = vmatprep.mubr.msk.bf16.mxu0 %vm2681_vm11, %v2641_v45 }
 0x18e   : > { %12399 = vmatmul.mubr.msk.bf16.gmra.mrb[68].mxu0 %vm2681_vm11, %v2644_v13 }
 0x197   : > { %v12016_v6 = vpop.f32.mrb[0].mxu0 }
 0x198   : > { %v12017_v20 = vpop.f32.mrb[1].mxu0 }
 0x199   : > { %v14469_v27 = vadd.f32 %v12017_v20, %v12016_v6  ;;  %v12019_v32 = vpop.f32.mrb[2].mxu0 }
 0x19a   : > { %v12020_v0 = vpop.f32.mrb[3].mxu0 }
 0x19b   : > { %v14471_v16 = vadd.f32 %v12020_v0, %v12019_v32  ;;  %v4055_v0 = vld [vmem:[#allocation2 + $0x3c] sm:$0xf] }
 0x19f   : > { %v12022_v34 = vpop.f32.mrb[4].mxu0 }
 0x1a0   : > { %v12023_v46 = vpop.f32.mrb[5].mxu0 }
 0x1a1   : > { %v14473_v12 = vadd.f32 %v12023_v46, %v12022_v34  ;;  %v12025_v51 = vpop.f32.mrb[6].mxu0 }
 0x1a2   : > { %v12026_v61 = vpop.f32.mrb[7].mxu0 }
 0x1a3   : > { %v14475_v49 = vadd.f32 %v12026_v61, %v12025_v51 }
 0x1a7   : > { %v12028_v2 = vpop.f32.mrb[8].mxu0 }
 0x1a8   : > { %v12029_v52 = vpop.f32.mrb[9].mxu0 }
 0x1a9   : > { %v14477_v60 = vadd.f32 %v12029_v52, %v12028_v2  ;;  %v12031_v50 = vpop.f32.mrb[10].mxu0  ;;  %v4059_v52 = vld [vmem:[#allocation2 + $0x44] sm:$0x1] }
 0x1aa   : > { %v12032_v14 = vpop.f32.mrb[11].mxu0 }
 0x1ab   : > { %v14479_v39 = vadd.f32 %v12032_v14, %v12031_v50 }
 0x1af   : > { %v12034_v26 = vpop.f32.mrb[12].mxu0 }
 0x1b0   : > { %v12035_v57 = vpop.f32.mrb[13].mxu0 }
 0x1b1   : > { %v14481_v24 = vadd.f32 %v12035_v57, %v12034_v26  ;;  %v12037_v21 = vpop.f32.mrb[14].mxu0 }
 0x1b2   : > { %v12038_v17 = vpop.f32.mrb[15].mxu0 }
 0x1b3   : > { %v14483_v9 = vadd.f32 %v12038_v17, %v12037_v21 }
 0x1bb   : > { %v12040_v3 = vpop.f32.mrb[16].mxu0 }
 0x1bc   : > { %v12404_v55 = vpop.f32.mrb[0].mxu1  ;;  %v12041_v11 = vpop.f32.mrb[17].mxu0 }
 0x1bd   : > { %v3343_v23 = vpop.f32.mrb[1].mxu1  ;;  %v12042_v22 = vadd.f32 %v12041_v11, %v12040_v3  ;;  %v12043_v54 = vpop.f32.mrb[18].mxu0 }
 0x1be   : > { %v12405_v58 = vpop.f32.mrb[2].mxu1  ;;  %v12044_v10 = vpop.f32.mrb[19].mxu0 }
 0x1bf   : > { %v3346_v36 = vpop.f32.mrb[3].mxu1  ;;  %v12045_v19 = vadd.f32 %v12044_v10, %v12043_v54  ;;  %v3344_v40 = vadd.f32 %v12042_v22, %v3343_v23 }
 0x1c1   : > { %v3453_v31 = vmul.f32 %v14488_v59, %v3344_v40  ;;  %v3347_v44 = vadd.f32 %v12045_v19, %v3346_v36 }
 0x1c3   : > { %v3492_v63 = vadd.f32 %v14493_v33, %v3453_v31  ;;  %v3454_v28 = vmul.f32 %v14488_v59, %v3347_v44 }
 0x1c5   : > { %vm3524_vm14 = vcmp.gt.f32.partialorder %v3492_v63, 0.0  ;;  %v3556_v56 = vmul.f32 0.1, %v3492_v63  ;;  %v3493_v5 = vadd.f32 %v14493_v33, %v3454_v28 }
 0x1c7   : > { %v3588_v53 = vsel %vm3524_vm14, %v3492_v63, %v3556_v56  ;;  %vm3525_vm15 = vcmp.gt.f32.partialorder %v3493_v5, 0.0  ;;  %v3557_v18 = vmul.f32 0.1, %v3493_v5  ;;  %v12046_v48 = vpop.f32.mrb[20].mxu0 }
 0x1c8   : > { %v11943_v41 = vpack.c.bf16 %v3588_v53, %v3588_v53  ;;  %v12047_v7 = vpop.f32.mrb[21].mxu0 }
 0x1c9   : > { %v3589_v29 = vsel %vm3525_vm15, %v3493_v5, %v3557_v18  ;;  %v12048_v30 = vadd.f32 %v12047_v7, %v12046_v48  ;;  %v12049_v35 = vpop.f32.mrb[22].mxu0 }
 0x1ca   : > { %v14499_v62 = vpop.f32.mrb[4].mxu1  ;;  %v3777_v4 = vshrl.u32 %v11943_v41, 16  ;;  %v11944_v38 = vpack.c.bf16 %v3589_v29, %v3589_v29  ;;  %v12050_v8 = vpop.f32.mrb[23].mxu0  ;;  %v3780_v6 = vshll.u32 %v11943_v41, 16 }
 0x1cb   : > { %v3359_v45 = vpop.f32.mrb[5].mxu1  ;;  %v3352_v25 = vadd.f32 %v12404_v55, %v12048_v30  ;;  %v12051_v37 = vadd.f32 %v12050_v8, %v12049_v35  ;;  %v4062_v30 = vld [vmem:[#allocation2 + $0x48] sm:$0xf] }
 0x1cc   : > { %v14501_v43 = vpop.f32.mrb[6].mxu1  ;;  %v3779_v13 = vrot.slane %v3777_v4, 7  ;;  %v3785_v20 = vshrl.u32 %v11944_v38, 16  ;;  %v3788_v2 = vshll.u32 %v11944_v38, 16  ;;  %v4066_v38 = vld [vmem:[#allocation2 + $0x50] sm:$0x1] }
 0x1cd   : > { %v3362_v32 = vpop.f32.mrb[7].mxu1  ;;  %v3455_v34 = vmul.f32 %v14488_v59, %v3352_v25  ;;  %v3355_v46 = vadd.f32 %v12405_v58, %v12051_v37 }
 0x1ce   : > { %v3782_v51 = vor.u32 %v3780_v6, %v3779_v13  ;;  %v3787_v61 = vrot.slane %v3785_v20, 7  ;;  %v3783_v26 = vrot.slane %v3779_v13, 4 }
 0x1cf   : > { %v3494_v50 = vadd.f32 %v14493_v33, %v3455_v34  ;;  %v3456_v14 = vmul.f32 %v14488_v59, %v3355_v46 }
 0x1d0   : > { %v4056_v57 = vsel %vm13321_vm8, %v3782_v51, %v4055_v0  ;;  %v3790_v21 = vor.u32 %v3788_v2, %v3787_v61  ;;  %v3792_v17 = vrot.slane %v3787_v61, 4 }
 0x1d1   : > { %4057 = vst [vmem:[#allocation2 + $0x3c] sm:$0xf] %v4056_v57  ;;  %vm3526_vm1 = vcmp.gt.f32.partialorder %v3494_v50, 0.0  ;;  %v3558_v55 = vmul.f32 0.1, %v3494_v50  ;;  %v3495_v23 = vadd.f32 %v14493_v33, %v3456_v14 }
 0x1d2   : > { %v14509_v3 = vpop.f32.mrb[8].mxu1  ;;  %v3791_v58 = vsel %vm13329_vm9, %v3783_v26, %v3790_v21  ;;  %v4060_v11 = vsel %vm13270_vm3, %v3792_v17, %v4059_v52 }
 0x1d3   : > { %v14515_v36 = vpop.f32.mrb[9].mxu1  ;;  %4058 = vst.msk [vmem:[#allocation2 + $0x40] sm:$0xf] %vm359_vm0, %v3791_v58  ;;  %4061 = vst [vmem:[#allocation2 + $0x44] sm:$0x1] %v4060_v11  ;;  %v3590_v22 = vsel %vm3526_vm1, %v3494_v50, %v3558_v55  ;;  %vm3527_vm2 = vcmp.gt.f32.partialorder %v3495_v23, 0.0 }
 0x1d4   : > { %v3559_v54 = vmul.f32 0.1, %v3495_v23  ;;  %v12052_v10 = vpop.f32.mrb[24].mxu0  ;;  %v14518_v19 = vpop.f32.mrb[10].mxu1  ;;  %v11945_v40 = vpack.c.bf16 %v3590_v22, %v3590_v22 }
 0x1d5   : > { %v12053_v31 = vpop.f32.mrb[25].mxu0  ;;  %v14520_v44 = vpop.f32.mrb[11].mxu1 }
 0x1d6   : > { %v3591_v63 = vsel %vm3527_vm2, %v3495_v23, %v3559_v54  ;;  %v12054_v28 = vadd.f32 %v12053_v31, %v12052_v10  ;;  %v12055_v56 = vpop.f32.mrb[26].mxu0  ;;  %v3794_v5 = vshrl.u32 %v11945_v40, 16  ;;  %v3797_v29 = vshll.u32 %v11945_v40, 16 }
 0x1d7   : > { %v11946_v53 = vpack.c.bf16 %v3591_v63, %v3591_v63  ;;  %v12056_v18 = vpop.f32.mrb[27].mxu0 }
 0x1d8   : > { %v12057_v48 = vadd.f32 %v12056_v18, %v12055_v56  ;;  %v3360_v41 = vadd.f32 %v12054_v28, %v3359_v45  ;;  %v3796_v7 = vrot.slane %v3794_v5, 7  ;;  %v4273_v37 = vld [vmem:[#allocation2 + $0x3c] sm:$0xf] }
 0x1d9   : > { %v3802_v35 = vshrl.u32 %v11946_v53, 16  ;;  %v3805_v4 = vshll.u32 %v11946_v53, 16  ;;  %v4211_v13 = vld [vmem:[#allocation2 + $0x3c] sm:$0xf] }
 0x1da   : > { %v3457_v8 = vmul.f32 %v14488_v59, %v3360_v41  ;;  %v3363_v25 = vadd.f32 %v12057_v48, %v3362_v32  ;;  %v4255_v6 = vld [vmem:[#allocation2 + $0x3c] sm:$0xe]  ;;  %v3799_v20 = vor.u32 %v3797_v29, %v3796_v7  ;;  %v3800_v0 = vrot.slane %v3796_v7, 4  ;;  %v4274_v46 = vld [vmem:[#allocation2 + $0x40] sm:$0xf]  ;;  %v14527_v14 = vpop.f32.mrb[12].mxu1 }
 0x1db   : > { %v3804_v34 = vrot.slane %v3802_v35, 7  ;;  %v4212_v51 = vld [vmem:[#allocation2 + $0x40] sm:$0xf]  ;;  %v11532_v2 = vcombine.low %v4273_v37, %v4274_v46  ;;  %v12685_v50 = vld [vmem:[#allocation2 + $0x44] ss:$0 sps:$4 sm:$0x11]  }
 0x1dc   : > { %v3496_v61 = vadd.f32 %v14493_v33, %v3457_v8  ;;  %v3458_v45 = vmul.f32 %v14488_v59, %v3363_v25  ;;  %v14525_v52 = vcombine.low %v4211_v13, %v4212_v51  ;;  %v4063_v32 = vsel %vm13321_vm8, %v3799_v20, %v4062_v30  ;;  %v14531_v17 = vpop.f32.mrb[13].mxu1  ;;  %v4150_v11 = vld [vmem:[#allocation2 + $0x40] sm:$0xf]  ;;  %v4192_v22 = vld [vmem:[#allocation2 + $0x3c] sm:$0xe] }
 0x1dd   : > { %v3807_v26 = vor.u32 %v3805_v4, %v3804_v34  ;;  %v3809_v57 = vrot.slane %v3804_v34, 4  ;;  %v11517_v21 = vcombine.low %v4255_v6, %v4212_v51  ;;  %4064 = vst [vmem:[#allocation2 + $0x48] sm:$0xf] %v4063_v32  ;;  %5377 = vrot.lane.b32.xlu0 %v11532_v2, %s13156_s30  ;;  %v5488_v58 = vshrl.u32 %v11532_v2, 16  ;;  %v4149_v28 = vld [vmem:[#allocation2 + $0x3c] sm:$0xf] }
 0x1de   : > { %vm3528_vm4 = vcmp.gt.f32.partialorder %v3496_v61, 0.0  ;;  %v3560_v55 = vmul.f32 0.1, %v3496_v61  ;;  %v3497_v23 = vadd.f32 %v14493_v33, %v3458_v45  ;;  %4899 = vrot.lane.b32.xlu1 %v14525_v52, %s13158_s12  ;;  %v5490_v40 = vshll.u32 %v11532_v2, 16  ;;  %v14543_v56 = vpop.f32.mrb[14].mxu1 }
 0x1df   : > { %v3808_v54 = vsel %vm13329_vm9, %v3800_v0, %v3807_v26  ;;  %v4067_v10 = vsel %vm13270_vm3, %v3809_v57, %v4066_v38  ;;  %v5223_v31 = vrot.slane %v11517_v21, 1  ;;  %v14541_v63 = vld [vmem:[#allocation2 + $0x44] ss:$0 sps:$4 sm:$0x11]   ;;  %v12058_v18 = vpop.f32.mrb[28].mxu0  ;;  %v5224_v48 = vrot.slane %v12685_v50, 1 }
 0x1e0   : > { %4065 = vst.msk [vmem:[#allocation2 + $0x4c] sm:$0xf] %vm359_vm0, %v3808_v54  ;;  %4068 = vst [vmem:[#allocation2 + $0x50] sm:$0x1] %v4067_v10  ;;  %v3592_v5 = vsel %vm3528_vm4, %v3496_v61, %v3560_v55  ;;  %vm3529_vm5 = vcmp.gt.f32.partialorder %v3497_v23, 0.0  ;;  %v14547_v41 = vpop.f32.mrb[15].mxu1  ;;  %v11470_v35 = vcombine.low %v4192_v22, %v4150_v11  ;;  %v14551_v37 = vcombine.low %v4149_v28, %v4150_v11 }
 0x1e1   : > { %v3561_v53 = vmul.f32 0.1, %v3497_v23  ;;  %v11947_v7 = vpack.c.bf16 %v3592_v5, %v3592_v5  ;;  %v5492_v29 = vrot.slane %v5490_v40, 1  ;;  %v12059_v30 = vpop.f32.mrb[29].mxu0  ;;  %v4747_v4 = vrot.slane %v14541_v63, 1 }
 0x1e2   : > { %v12060_v8 = vadd.f32 %v12059_v30, %v12058_v18  ;;  %v5225_v25 = vsel %vm1640_vm7, %v5223_v31, %v5224_v48  ;;  %v12061_v13 = vpop.f32.mrb[30].mxu0  ;;  %v12690_v6 = vld [vmem:[#allocation2 + $0x44] ss:$0 sps:$4 sm:$0x11]   ;;  %v14553_v20 = vpop.f32.mrb[16].mxu1  ;;  %v4746_v51 = vrot.slane %v11470_v35, 1 }
 0x1e3   : > { %v3593_v38 = vsel %vm3529_vm5, %v3497_v23, %v3561_v53  ;;  %v3811_v0 = vshrl.u32 %v11947_v7, 16  ;;  %v3814_v34 = vshll.u32 %v11947_v7, 16  ;;  %5267 = vrot.lane.b32.xlu0 %v5225_v25, %s13157_s11  ;;  %v12062_v61 = vpop.f32.mrb[31].mxu0  ;;  %v14556_v45 = vpop.f32.mrb[17].mxu1  ;;  %v5493_v32 = vor.u32 %v5492_v29, %v5488_v58  ;;  %v4069_v54 = vld [vmem:[#allocation2 + $0x54] sm:$0xf] }
 0x1e4   : > { %v11948_v46 = vpack.c.bf16 %v3593_v38, %v3593_v38  ;;  %v3368_v2 = vadd.f32 %v14499_v62, %v12060_v8  ;;  %v12063_v50 = vadd.f32 %v12062_v61, %v12061_v13  ;;  %v5495_v26 = vshll.u32 %v12690_v6, 16  ;;  %v14559_v57 = vpop.f32.mrb[18].mxu1  ;;  %v4073_v10 = vld [vmem:[#allocation2 + $0x5c] sm:$0x1]  ;;  %v4213_v6 = vld [vmem:[#allocation2 + $0x48] sm:$0xf] }
 0x1e5   : > { %v3813_v21 = vrot.slane %v3811_v0, 7  ;;  %v4748_v11 = vsel %vm1640_vm7, %v4746_v51, %v4747_v4  ;;  %v14562_v22 = vpop.f32.mrb[19].mxu1  ;;  %v4520_v58 = vshrl.u32 %v14551_v37, 16  ;;  %v4522_v18 = vshll.u32 %v14551_v37, 16  ;;  %v4275_v4 = vld [vmem:[#allocation2 + $0x48] sm:$0xf] }
 0x1e6   : > { %v3819_v55 = vshrl.u32 %v11948_v46, 16  ;;  %v3822_v23 = vshll.u32 %v11948_v46, 16  ;;  %v3459_v40 = vmul.f32 %v14488_v59, %v3368_v2  ;;  %4789 = vrot.lane.b32.xlu1 %v4748_v11, %s13156_s30  ;;  %v3371_v62 = vadd.f32 %v14501_v43, %v12063_v50  ;;  %v4256_v61 = vld [vmem:[#allocation2 + $0x48] sm:$0xe] }
 0x1e7   : > { %v5497_v31 = vrot.slane %v5495_v26, 1  ;;  %v3816_v28 = vor.u32 %v3814_v34, %v3813_v21  ;;  %v3817_v5 = vrot.slane %v3813_v21, 4  ;;  %v4276_v48 = vld [vmem:[#allocation2 + $0x4c] sm:$0xf]  ;;  %v4527_v35 = vshll.u32 %v14541_v63, 16 }
 0x1e8   : > { %v3821_v53 = vrot.slane %v3819_v55, 7  ;;  %v3498_v7 = vadd.f32 %v14493_v33, %v3459_v40  ;;  %v3460_v29 = vmul.f32 %v14488_v59, %v3371_v62  ;;  %v4214_v38 = vld [vmem:[#allocation2 + $0x4c] sm:$0xf]  ;;  %v4524_v13 = vrot.slane %v4522_v18, 1  ;;  %v4193_v21 = vld [vmem:[#allocation2 + $0x48] sm:$0xe] }
 0x1e9   : > { %v5498_v30 = vsel %vm1367_vm10, %v5493_v32, %v5497_v31  ;;  %v4070_v43 = vsel %vm13321_vm8, %v3816_v28, %v4069_v54  ;;  %v12693_v0 = vld [vmem:[#allocation2 + $0x50] ss:$0 sps:$4 sm:$0x11]   ;;  %v4529_v51 = vrot.slane %v4527_v35, 1  ;;  %v4152_v63 = vld [vmem:[#allocation2 + $0x4c] sm:$0xf]  ;;  %v11533_v26 = vcombine.low %v4275_v4, %v4276_v48 }
 0x1ea   : > { %v3824_v8 = vor.u32 %v3822_v23, %v3821_v53  ;;  %v3826_v25 = vrot.slane %v3821_v53, 4  ;;  %5649 = vrot.lane.b32.xlu0 %v5498_v30, %s13158_s12  ;;  %4071 = vst [vmem:[#allocation2 + $0x54] sm:$0xf] %v4070_v43  ;;  %vm3530_vm6 = vcmp.gt.f32.partialorder %v3498_v7, 0.0  ;;  %v3562_v34 = vmul.f32 0.1, %v3498_v7 }
 0x1eb   : > { %v3499_v46 = vadd.f32 %v14493_v33, %v3460_v29  ;;  %v4525_v32 = vor.u32 %v4524_v13, %v4520_v58  ;;  %v4151_v55 = vld [vmem:[#allocation2 + $0x48] sm:$0xf]  ;;  %v14582_v54 = vcombine.low %v4213_v6, %v4214_v38  ;;  %v14584_v40 = vld [vmem:[#allocation2 + $0x50] ss:$0 sps:$4 sm:$0x11]   ;;  %v11518_v58 = vcombine.low %v4256_v61, %v4214_v38 }
 0x1ec   : > { %v3825_v2 = vsel %vm13329_vm9, %v3817_v5, %v3824_v8  ;;  %v4074_v50 = vsel %vm13270_vm3, %v3826_v25, %v4073_v10  ;;  %v3594_v23 = vsel %vm3530_vm6, %v3498_v7, %v3562_v34  ;;  %v12064_v10 = vpop.f32.mrb[32].mxu0  ;;  %v5227_v28 = vrot.slane %v12693_v0, 1  ;;  %v14588_v5 = vpop.f32.mrb[20].mxu1  ;;  %v12698_v30 = vld [vmem:[#allocation2 + $0x50] ss:$0 sps:$4 sm:$0x11]  }
 0x1ed   : > { %4072 = vst.msk [vmem:[#allocation2 + $0x58] sm:$0xf] %vm359_vm0, %v3825_v2  ;;  %4075 = vst [vmem:[#allocation2 + $0x5c] sm:$0x1] %v4074_v50  ;;  %vm3531_vm14 = vcmp.gt.f32.partialorder %v3499_v46, 0.0  ;;  %v11949_v62 = vpack.c.bf16 %v3594_v23, %v3594_v23  ;;  %v4530_v31 = vsel %vm1367_vm10, %v4525_v32, %v4529_v51  ;;  %v12065_v18 = vpop.f32.mrb[33].mxu0  ;;  %v11471_v48 = vcombine.low %v4193_v21, %v4152_v63 }
 0x1ee   : > { %v3563_v11 = vmul.f32 0.1, %v3499_v46  ;;  %5379 = vrot.lane.b32.xlu0 %v11533_v26, %s13156_s30  ;;  %4661 = vrot.lane.b32.xlu1 %v4530_v31, %s13157_s11  ;;  %v4750_v7 = vrot.slane %v14584_v40, 1  ;;  %v14592_v29 = vcombine.low %v4151_v55, %v4152_v63  ;;  %v14594_v35 = vpop.f32.mrb[21].mxu1  ;;  %v12066_v25 = vadd.f32 %v12065_v18, %v12064_v10  ;;  %v12067_v38 = vpop.f32.mrb[34].mxu0 }
 0x1ef   : > { %v3828_v4 = vshrl.u32 %v11949_v62, 16  ;;  %v3831_v43 = vshll.u32 %v11949_v62, 16  ;;  %v14596_v13 = vpop.f32.mrb[22].mxu1  ;;  %v5226_v6 = vrot.slane %v11518_v58, 1  ;;  %v4749_v0 = vrot.slane %v11471_v48, 1  ;;  %v12068_v34 = vpop.f32.mrb[35].mxu0 }
 0x1f0   : > { %v3595_v53 = vsel %vm3531_vm14, %v3499_v46, %v3563_v11  ;;  %17810 = vst [vmem:[#allocation9_spill] sm:$0xff] %v14592_v29  ;;  %v5500_v46 = vshrl.u32 %v11533_v26, 16  ;;  %v5502_v51 = vshll.u32 %v11533_v26, 16  ;;  %v14598_v61 = vpop.f32.mrb[23].mxu1  ;;  %v12069_v32 = vadd.f32 %v12068_v34, %v12067_v38  ;;  %v4076_v21 = vld [vmem:[#allocation2 + $0x60] sm:$0xf] }
 0x1f1   : > { %v11950_v8 = vpack.c.bf16 %v3595_v53, %v3595_v53  ;;  %v3830_v2 = vrot.slane %v3828_v4, 7  ;;  %v5228_v55 = vsel %vm1640_vm7, %v5226_v6, %v5227_v28  ;;  %v4751_v23 = vsel %vm1640_vm7, %v4749_v0, %v4750_v7  ;;  %v4080_v58 = vld [vmem:[#allocation2 + $0x68] sm:$0x1]  ;;  %v4277_v38 = vld [vmem:[#allocation2 + $0x54] sm:$0xf] }
 0x1f2   : > { %4901 = vrot.lane.b32.xlu1 %v14582_v54, %s13158_s12  ;;  %v3376_v11 = vadd.f32 %v12066_v25, %v14515_v36  ;;  %v5504_v62 = vrot.slane %v5502_v51, 1  ;;  %5269 = vrot.lane.b32.xlu0 %v5228_v55, %s13157_s11  ;;  %v3379_v53 = vadd.f32 %v12069_v32, %v14520_v44  ;;  %v4532_v28 = vshrl.u32 %v14592_v29, 16 }
 0x1f3   : > { %v3836_v63 = vshrl.u32 %v11950_v8, 16  ;;  %v3839_v50 = vshll.u32 %v11950_v8, 16  ;;  %v3833_v31 = vor.u32 %v3831_v43, %v3830_v2  ;;  %v3834_v10 = vrot.slane %v3830_v2, 4 }
 0x1f4   : > { %v4278_v18 = vld [vmem:[#allocation2 + $0x58] sm:$0xf]  ;;  %v3461_v48 = vmul.f32 %v14488_v59, %v3376_v11  ;;  %v5505_v4 = vor.u32 %v5504_v62, %v5500_v46  ;;  %v5507_v8 = vshll.u32 %v12698_v30, 16  ;;  %v3462_v43 = vmul.f32 %v14488_v59, %v3379_v53  ;;  %v12700_v46 = vld [vmem:[#allocation2 + $0x5c] ss:$0 sps:$4 sm:$0x11]  }
 0x1f5   : > { %v3838_v26 = vrot.slane %v3836_v63, 7  ;;  %v4077_v7 = vsel %vm13321_vm8, %v3833_v31, %v4076_v21  ;;  %v4216_v6 = vld [vmem:[#allocation2 + $0x58] sm:$0xf]  ;;  %v4534_v34 = vshll.u32 %v14592_v29, 16  ;;  %v4539_v30 = vshll.u32 %v14584_v40, 16 }
 0x1f6   : > { %4078 = vst [vmem:[#allocation2 + $0x60] sm:$0xf] %v4077_v7  ;;  %4791 = vrot.lane.b32.xlu1 %v4751_v23, %s13156_s30  ;;  %v3500_v44 = vadd.f32 %v14493_v33, %v3461_v48  ;;  %v5509_v0 = vrot.slane %v5507_v8, 1  ;;  %v3501_v63 = vadd.f32 %v14493_v33, %v3462_v43  ;;  %v12702_v32 = vld [vmem:[#allocation2 + $0x5c] ss:$0 sps:$4 sm:$0x11]  }
 0x1f7   : > { %v3841_v36 = vor.u32 %v3839_v50, %v3838_v26  ;;  %v3843_v25 = vrot.slane %v3838_v26, 4  ;;  %v11534_v50 = vcombine.low %v4277_v38, %v4278_v18  ;;  %v4536_v23 = vrot.slane %v4534_v34, 1  ;;  %v4257_v40 = vld [vmem:[#allocation2 + $0x54] sm:$0xe]  ;;  %v12070_v62 = vpop.f32.mrb[36].mxu0 }
 0x1f8   : > { %vm3532_vm15 = vcmp.gt.f32.partialorder %v3500_v44, 0.0  ;;  %v3564_v21 = vmul.f32 0.1, %v3500_v44  ;;  %v5510_v55 = vsel %vm1367_vm10, %v5505_v4, %v5509_v0  ;;  %vm3533_vm1 = vcmp.gt.f32.partialorder %v3501_v63, 0.0  ;;  %v12071_v53 = vpop.f32.mrb[37].mxu0 }
 0x1f9   : > { %v3842_v51 = vsel %vm13329_vm9, %v3834_v10, %v3841_v36  ;;  %v4081_v2 = vsel %vm13270_vm3, %v3843_v25, %v4080_v58  ;;  %v3565_v11 = vmul.f32 0.1, %v3501_v63  ;;  %5651 = vrot.lane.b32.xlu0 %v5510_v55, %s13158_s12  ;;  %v11519_v31 = vcombine.low %v4257_v40, %v4216_v6  ;;  %v12073_v25 = vpop.f32.mrb[38].mxu0  ;;  %v4083_v40 = vld [vmem:[#allocation2 + $0x6c] sm:$0xf] }
 0x1fa   : > { %4079 = vst.msk [vmem:[#allocation2 + $0x64] sm:$0xf] %vm359_vm0, %v3842_v51  ;;  %4082 = vst [vmem:[#allocation2 + $0x68] sm:$0x1] %v4081_v2  ;;  %v3596_v10 = vsel %vm3532_vm15, %v3500_v44, %v3564_v21  ;;  %v4537_v26 = vor.u32 %v4536_v23, %v4532_v28  ;;  %v4541_v58 = vrot.slane %v4539_v30, 1  ;;  %v5230_v18 = vrot.slane %v12700_v46, 1 }
 0x1fb   : > { %v11951_v48 = vpack.c.bf16 %v3596_v10, %v3596_v10  ;;  %v3597_v8 = vsel %vm3533_vm1, %v3501_v63, %v3565_v11  ;;  %v12072_v7 = vadd.f32 %v12071_v53, %v12070_v62  ;;  %v5229_v36 = vrot.slane %v11519_v31, 1  ;;  %v12074_v38 = vpop.f32.mrb[39].mxu0 }
 0x1fc   : > { %v11952_v43 = vpack.c.bf16 %v3597_v8, %v3597_v8  ;;  %v4542_v4 = vsel %vm1367_vm10, %v4537_v26, %v4541_v58  ;;  %v5514_v0 = vshll.u32 %v11534_v50, 16  ;;  %v5519_v34 = vshll.u32 %v12702_v32, 16 }
 0x1fd   : > { %v3845_v51 = vshrl.u32 %v11951_v48, 16  ;;  %4663 = vrot.lane.b32.xlu1 %v4542_v4, %s13157_s11  ;;  %5381 = vrot.lane.b32.xlu0 %v11534_v50, %s13156_s30  ;;  %v3384_v28 = vadd.f32 %v14509_v3, %v12072_v7  ;;  %v5512_v6 = vshrl.u32 %v11534_v50, 16  ;;  %v5231_v30 = vsel %vm1640_vm7, %v5229_v36, %v5230_v18  ;;  %v4087_v3 = vld [vmem:[#allocation2 + $0x74] sm:$0x1]  ;;  %v4279_v4 = vld [vmem:[#allocation2 + $0x60] sm:$0xf] }
 0x1fe   : > { %v3853_v44 = vshrl.u32 %v11952_v43, 16  ;;  %v12075_v46 = vadd.f32 %v12074_v38, %v12073_v25  ;;  %v5516_v2 = vrot.slane %v5514_v0, 1  ;;  %v3848_v21 = vshll.u32 %v11951_v48, 16 }
 0x1ff   : > { %v3847_v63 = vrot.slane %v3845_v51, 7  ;;  %v3856_v55 = vshll.u32 %v11952_v43, 16  ;;  %v3463_v23 = vmul.f32 %v14488_v59, %v3384_v28  ;;  %v5521_v31 = vrot.slane %v5519_v34, 1  ;;  %v12708_v34 = vld [vmem:[%s17716_s2 + $0x80] sm:$0xff]   ;;  %v12712_v51 = vld [vmem:[%s17716_s2 + $0x88] sm:$0xff]  }
 0x200   : > { %v3855_v32 = vrot.slane %v3853_v44, 7  ;;  %v3387_v11 = vadd.f32 %v14518_v19, %v12075_v46  ;;  %v5517_v62 = vor.u32 %v5516_v2, %v5512_v6  ;;  %12426 = vmatprep.subr.bf16.mxu0 %v12708_v34 }
 0x201   : > { %v3850_v10 = vor.u32 %v3848_v21, %v3847_v63  ;;  %v3851_v26 = vrot.slane %v3847_v63, 4  ;;  %v3502_v50 = vadd.f32 %v14493_v33, %v3463_v23  ;;  %5271 = vrot.lane.b32.xlu0 %v5231_v30, %s13157_s11  ;;  %v4280_v8 = vld [vmem:[#allocation2 + $0x64] sm:$0xf]  ;;  %12427 = vmatpush3.bf16.msra.mxu0 %v12708_v34  ;;  %v4090_v21 = vld [vmem:[#allocation2 + $0x78] sm:$0xf] }
 0x202   : > { %v3858_v58 = vor.u32 %v3856_v55, %v3855_v32  ;;  %v3860_v53 = vrot.slane %v3855_v32, 4  ;;  %v3464_v18 = vmul.f32 %v14488_v59, %v3387_v11  ;;  %v5522_v48 = vsel %vm1367_vm10, %v5517_v62, %v5521_v31  ;;  %12428 = vmatprep.subr.bf16.mxu0 %v12712_v51 }
 0x203   : > { %v4084_v7 = vsel %vm13321_vm8, %v3850_v10, %v4083_v40  ;;  %vm3534_vm2 = vcmp.gt.f32.partialorder %v3502_v50, 0.0  ;;  %v3566_v19 = vmul.f32 0.1, %v3502_v50  ;;  %v14644_v0 = vcombine.low %v4279_v4, %v4280_v8 }
 0x204   : > { %4085 = vst [vmem:[#allocation2 + $0x6c] sm:$0xf] %v4084_v7  ;;  %v3859_v36 = vsel %vm13329_vm9, %v3851_v26, %v3858_v58  ;;  %v4088_v25 = vsel %vm13270_vm3, %v3860_v53, %v4087_v3  ;;  %v3503_v43 = vadd.f32 %v14493_v33, %v3464_v18 }
 0x205   : > { %4086 = vst.msk [vmem:[#allocation2 + $0x70] sm:$0xf] %vm359_vm0, %v3859_v36  ;;  %4089 = vst [vmem:[#allocation2 + $0x74] sm:$0x1] %v4088_v25  ;;  %v3598_v38 = vsel %vm3534_vm2, %v3502_v50, %v3566_v19  ;;  %5653 = vrot.lane.b32.xlu0 %v5522_v48, %s13158_s12  ;;  %12429 = vmatpush3.bf16.msra.mxu0 %v12712_v51  ;;  %v4094_v50 = vld [vmem:[#allocation2 + $0x80] sm:$0x1] }
 0x206   : > { %v11953_v28 = vpack.c.bf16 %v3598_v38, %v3598_v38  ;;  %vm3535_vm4 = vcmp.gt.f32.partialorder %v3503_v43, 0.0  ;;  %v3567_v6 = vmul.f32 0.1, %v3503_v43 }
 0x208   : > { %v3862_v44 = vshrl.u32 %v11953_v28, 16  ;;  %v3599_v30 = vsel %vm3535_vm4, %v3503_v43, %v3567_v6  ;;  %v3865_v63 = vshll.u32 %v11953_v28, 16  ;;  %v12076_v23 = vpop.f32.mrb[40].mxu0 }
 0x209   : > { %v11954_v46 = vpack.c.bf16 %v3599_v30, %v3599_v30  ;;  %5383 = vrot.lane.b32.xlu0 %v14644_v0, %s13156_s30  ;;  %v12077_v32 = vpop.f32.mrb[41].mxu0 }
 0x20a   : > { %v3864_v2 = vrot.slane %v3862_v44, 7  ;;  %v12078_v31 = vadd.f32 %v12077_v32, %v12076_v23  ;;  %v12079_v10 = vpop.f32.mrb[42].mxu0 }
 0x20b   : > { %v3870_v55 = vshrl.u32 %v11954_v46, 16  ;;  %v3873_v62 = vshll.u32 %v11954_v46, 16  ;;  %v12080_v58 = vpop.f32.mrb[43].mxu0 }
 0x20c   : > { %v3867_v40 = vor.u32 %v3865_v63, %v3864_v2  ;;  %v3868_v26 = vrot.slane %v3864_v2, 4  ;;  %v12081_v48 = vadd.f32 %v12080_v58, %v12079_v10  ;;  %v3392_v8 = vadd.f32 %v12078_v31, %v14531_v17  ;;  %v4101_v58 = vld [vmem:[#allocation2 + $0x8c] sm:$0x1] }
 0x20d   : > { %v3872_v11 = vrot.slane %v3870_v55, 7 }
 0x20e   : > { %v4091_v3 = vsel %vm13321_vm8, %v3867_v40, %v4090_v21  ;;  %v3465_v36 = vmul.f32 %v14488_v59, %v3392_v8  ;;  %v3395_v25 = vadd.f32 %v12081_v48, %v14547_v41 }
 0x20f   : > { %4092 = vst [vmem:[#allocation2 + $0x78] sm:$0xf] %v4091_v3  ;;  %v3875_v53 = vor.u32 %v3873_v62, %v3872_v11  ;;  %v3877_v18 = vrot.slane %v3872_v11, 4  ;;  %v4097_v62 = vld [vmem:[#allocation2 + $0x84] sm:$0xf] }
 0x210   : > { %v3504_v43 = vadd.f32 %v14493_v33, %v3465_v36  ;;  %v3466_v4 = vmul.f32 %v14488_v59, %v3395_v25 }
 0x211   : > { %v3876_v7 = vsel %vm13329_vm9, %v3868_v26, %v3875_v53  ;;  %v4095_v19 = vsel %vm13270_vm3, %v3877_v18, %v4094_v50 }
 0x212   : > { %4093 = vst.msk [vmem:[#allocation2 + $0x7c] sm:$0xf] %vm359_vm0, %v3876_v7  ;;  %4096 = vst [vmem:[#allocation2 + $0x80] sm:$0x1] %v4095_v19  ;;  %vm3536_vm5 = vcmp.gt.f32.partialorder %v3504_v43, 0.0  ;;  %v3505_v17 = vadd.f32 %v14493_v33, %v3466_v4 }
 0x213   : > { %v3568_v38 = vmul.f32 0.1, %v3504_v43 }
 0x214   : > { %vm3537_vm6 = vcmp.gt.f32.partialorder %v3505_v17, 0.0  ;;  %v3569_v51 = vmul.f32 0.1, %v3505_v17 }
 0x215   : > { %v3600_v34 = vsel %vm3536_vm5, %v3504_v43, %v3568_v38  ;;  %v12082_v28 = vpop.f32.mrb[44].mxu0 }
 0x216   : > { %v11955_v6 = vpack.c.bf16 %v3600_v34, %v3600_v34  ;;  %v12083_v44 = vpop.f32.mrb[45].mxu0  ;;  %v3601_v30 = vsel %vm3537_vm6, %v3505_v17, %v3569_v51 }
 0x217   : > { %v12084_v46 = vadd.f32 %v12083_v44, %v12082_v28  ;;  %v12085_v41 = vpop.f32.mrb[46].mxu0  ;;  %v11956_v63 = vpack.c.bf16 %v3601_v30, %v3601_v30  ;;  %v4104_v30 = vld [vmem:[#allocation2 + $0x90] sm:$0xf] }
 0x218   : > { %v3879_v2 = vshrl.u32 %v11955_v6, 16  ;;  %v12086_v21 = vpop.f32.mrb[47].mxu0  ;;  %v3882_v32 = vshll.u32 %v11955_v6, 16 }
 0x219   : > { %v3400_v55 = vadd.f32 %v14527_v14, %v12084_v46  ;;  %v12087_v23 = vadd.f32 %v12086_v21, %v12085_v41  ;;  %v3887_v11 = vshrl.u32 %v11956_v63, 16  ;;  %v3890_v50 = vshll.u32 %v11956_v63, 16 }
 0x21a   : > { %v3881_v40 = vrot.slane %v3879_v2, 7 }
 0x21b   : > { %v3467_v31 = vmul.f32 %v14488_v59, %v3400_v55  ;;  %v3403_v10 = vadd.f32 %v14543_v56, %v12087_v23  ;;  %v3889_v3 = vrot.slane %v3887_v11, 7  ;;  %v4108_v55 = vld [vmem:[#allocation2 + $0x98] sm:$0x1] }
 0x21c   : > { %v3884_v26 = vor.u32 %v3882_v32, %v3881_v40  ;;  %v3885_v48 = vrot.slane %v3881_v40, 4 }
 0x21d   : > { %v3506_v53 = vadd.f32 %v14493_v33, %v3467_v31  ;;  %v3468_v18 = vmul.f32 %v14488_v59, %v3403_v10  ;;  %v3892_v8 = vor.u32 %v3890_v50, %v3889_v3  ;;  %v3894_v7 = vrot.slane %v3889_v3, 4 }
 0x21e   : > { %v4098_v14 = vsel %vm13321_vm8, %v3884_v26, %v4097_v62 }
 0x21f   : > { %4099 = vst [vmem:[#allocation2 + $0x84] sm:$0xf] %v4098_v14  ;;  %vm3538_vm14 = vcmp.gt.f32.partialorder %v3506_v53, 0.0  ;;  %v3570_v19 = vmul.f32 0.1, %v3506_v53  ;;  %v3507_v36 = vadd.f32 %v14493_v33, %v3468_v18  ;;  %v3893_v56 = vsel %vm13329_vm9, %v3885_v48, %v3892_v8 }
 0x220   : > { %v4102_v25 = vsel %vm13270_vm3, %v3894_v7, %v4101_v58  ;;  %4100 = vst.msk [vmem:[#allocation2 + $0x88] sm:$0xf] %vm359_vm0, %v3893_v56 }
 0x221   : > { %4103 = vst [vmem:[#allocation2 + $0x8c] sm:$0x1] %v4102_v25  ;;  %v3602_v43 = vsel %vm3538_vm14, %v3506_v53, %v3570_v19  ;;  %vm3539_vm15 = vcmp.gt.f32.partialorder %v3507_v36, 0.0  ;;  %v3571_v4 = vmul.f32 0.1, %v3507_v36 }
 0x222   : > { %v11957_v38 = vpack.c.bf16 %v3602_v43, %v3602_v43 }
 0x223   : > { %v3603_v17 = vsel %vm3539_vm15, %v3507_v36, %v3571_v4 }
 0x224   : > { %v3896_v34 = vshrl.u32 %v11957_v38, 16  ;;  %v11958_v51 = vpack.c.bf16 %v3603_v17, %v3603_v17  ;;  %v3899_v6 = vshll.u32 %v11957_v38, 16 }
 0x226   : > { %v3898_v28 = vrot.slane %v3896_v34, 7  ;;  %v3904_v44 = vshrl.u32 %v11958_v51, 16  ;;  %v3907_v2 = vshll.u32 %v11958_v51, 16 }
 0x228   : > { %v3901_v46 = vor.u32 %v3899_v6, %v3898_v28  ;;  %v3906_v41 = vrot.slane %v3904_v44, 7  ;;  %v12088_v63 = vpop.f32.mrb[48].mxu0  ;;  %v3902_v21 = vrot.slane %v3898_v28, 4 }
 0x229   : > { %v12089_v23 = vpop.f32.mrb[49].mxu0 }
 0x22a   : > { %v4105_v40 = vsel %vm13321_vm8, %v3901_v46, %v4104_v30  ;;  %v3909_v32 = vor.u32 %v3907_v2, %v3906_v41  ;;  %v3911_v11 = vrot.slane %v3906_v41, 4  ;;  %v12090_v62 = vadd.f32 %v12089_v23, %v12088_v63  ;;  %v12091_v31 = vpop.f32.mrb[50].mxu0  ;;  %v4111_v46 = vld [vmem:[#allocation2 + $0x9c] sm:$0xf]  ;;  %v4115_v23 = vld [vmem:[#allocation2 + $0xa4] sm:$0x1] }
 0x22b   : > { %4106 = vst [vmem:[#allocation2 + $0x90] sm:$0xf] %v4105_v40  ;;  %v12092_v10 = vpop.f32.mrb[51].mxu0 }
 0x22c   : > { %v3910_v26 = vsel %vm13329_vm9, %v3902_v21, %v3909_v32  ;;  %v4109_v3 = vsel %vm13270_vm3, %v3911_v11, %v4108_v55  ;;  %v12093_v50 = vadd.f32 %v12092_v10, %v12091_v31  ;;  %v3408_v58 = vadd.f32 %v12090_v62, %v14556_v45 }
 0x22d   : > { %4107 = vst.msk [vmem:[#allocation2 + $0x94] sm:$0xf] %vm359_vm0, %v3910_v26  ;;  %4110 = vst [vmem:[#allocation2 + $0x98] sm:$0x1] %v4109_v3 }
 0x22e   : > { %v3469_v53 = vmul.f32 %v14488_v59, %v3408_v58  ;;  %v3411_v18 = vadd.f32 %v12093_v50, %v14562_v22 }
 0x230   : > { %v3508_v48 = vadd.f32 %v14493_v33, %v3469_v53  ;;  %v3470_v14 = vmul.f32 %v14488_v59, %v3411_v18 }
 0x232   : > { %vm3540_vm1 = vcmp.gt.f32.partialorder %v3508_v48, 0.0  ;;  %v3572_v8 = vmul.f32 0.1, %v3508_v48  ;;  %v3509_v7 = vadd.f32 %v14493_v33, %v3470_v14 }
 0x234   : > { %v3604_v19 = vsel %vm3540_vm1, %v3508_v48, %v3572_v8  ;;  %vm3541_vm2 = vcmp.gt.f32.partialorder %v3509_v7, 0.0  ;;  %v3573_v36 = vmul.f32 0.1, %v3509_v7 }
 0x235   : > { %v12094_v56 = vpop.f32.mrb[52].mxu0  ;;  %v11959_v45 = vpack.c.bf16 %v3604_v19, %v3604_v19 }
 0x236   : > { %v12095_v25 = vpop.f32.mrb[53].mxu0  ;;  %v3605_v43 = vsel %vm3541_vm2, %v3509_v7, %v3573_v36  ;;  %v4118_v36 = vld [vmem:[#allocation2 + $0xa8] sm:$0xf] }
 0x237   : > { %v12096_v4 = vadd.f32 %v12095_v25, %v12094_v56  ;;  %v12097_v38 = vpop.f32.mrb[54].mxu0  ;;  %v3913_v17 = vshrl.u32 %v11959_v45, 16  ;;  %v11960_v34 = vpack.c.bf16 %v3605_v43, %v3605_v43  ;;  %v3916_v44 = vshll.u32 %v11959_v45, 16 }
 0x238   : > { %v12098_v22 = vpop.f32.mrb[55].mxu0 }
 0x239   : > { %v3416_v51 = vadd.f32 %v14553_v20, %v12096_v4  ;;  %v12099_v28 = vadd.f32 %v12098_v22, %v12097_v38  ;;  %v3915_v6 = vrot.slane %v3913_v17, 7  ;;  %v3921_v30 = vshrl.u32 %v11960_v34, 16  ;;  %v4122_v17 = vld [vmem:[#allocation2 + $0xb0] sm:$0x1] }
 0x23a   : > { %v3924_v55 = vshll.u32 %v11960_v34, 16 }
 0x23b   : > { %v3471_v41 = vmul.f32 %v14488_v59, %v3416_v51  ;;  %v3419_v2 = vadd.f32 %v14559_v57, %v12099_v28  ;;  %v3918_v63 = vor.u32 %v3916_v44, %v3915_v6  ;;  %v3923_v21 = vrot.slane %v3921_v30, 7  ;;  %v14712_v30 = vld [vmem:[%s17718_s4] ss:$0 sm:$0xff] }
 0x23c   : > { %v3919_v11 = vrot.slane %v3915_v6, 4 }
 0x23d   : > { %v3510_v40 = vadd.f32 %v14493_v33, %v3471_v41  ;;  %v3472_v32 = vmul.f32 %v14488_v59, %v3419_v2  ;;  %v4112_v20 = vsel %vm13321_vm8, %v3918_v63, %v4111_v46  ;;  %v3926_v62 = vor.u32 %v3924_v55, %v3923_v21  ;;  %v14724_v63 = vld [vmem:[%s17719_s5] ss:$0 sm:$0xff] }
 0x23e   : > { %v3928_v31 = vrot.slane %v3923_v21, 4  ;;  %4113 = vst [vmem:[#allocation2 + $0x9c] sm:$0xf] %v4112_v20 }
 0x23f   : > { %vm3542_vm4 = vcmp.gt.f32.partialorder %v3510_v40, 0.0  ;;  %v3574_v10 = vmul.f32 0.1, %v3510_v40  ;;  %v3511_v26 = vadd.f32 %v14493_v33, %v3472_v32  ;;  %v3927_v57 = vsel %vm13329_vm9, %v3919_v11, %v3926_v62 }
 0x240   : > { %v4116_v3 = vsel %vm13270_vm3, %v3928_v31, %v4115_v23  ;;  %4114 = vst.msk [vmem:[#allocation2 + $0xa0] sm:$0xf] %vm359_vm0, %v3927_v57 }
 0x241   : > { %4117 = vst [vmem:[#allocation2 + $0xa4] sm:$0x1] %v4116_v3  ;;  %v3606_v59 = vsel %vm3542_vm4, %v3510_v40, %v3574_v10  ;;  %vm3543_vm5 = vcmp.gt.f32.partialorder %v3511_v26, 0.0  ;;  %v3575_v50 = vmul.f32 0.1, %v3511_v26 }
 0x242   : > { %v11961_v58 = vpack.c.bf16 %v3606_v59, %v3606_v59 }
 0x243   : > { %v3607_v53 = vsel %vm3543_vm5, %v3511_v26, %v3575_v50 }
 0x244   : > { %v3930_v18 = vshrl.u32 %v11961_v58, 16  ;;  %v11962_v48 = vpack.c.bf16 %v3607_v53, %v3607_v53  ;;  %v3933_v7 = vshll.u32 %v11961_v58, 16 }
 0x245   : > { %v12100_v14 = vpop.f32.mrb[56].mxu0 }
 0x246   : > { %v3932_v8 = vrot.slane %v3930_v18, 7  ;;  %v3938_v33 = vshrl.u32 %v11962_v48, 16  ;;  %v12101_v19 = vpop.f32.mrb[57].mxu0  ;;  %v3941_v4 = vshll.u32 %v11962_v48, 16 }
 0x247   : > { %v12102_v56 = vadd.f32 %v12101_v19, %v12100_v14  ;;  %v12103_v45 = vpop.f32.mrb[58].mxu0  ;;  %v4125_v14 = vld [vmem:[#allocation2 + $0xb4] sm:$0xf] }
 0x248   : > { %v3935_v25 = vor.u32 %v3933_v7, %v3932_v8  ;;  %v3940_v43 = vrot.slane %v3938_v33, 7  ;;  %v12104_v38 = vpop.f32.mrb[59].mxu0  ;;  %v3936_v51 = vrot.slane %v3932_v8, 4 }
 0x249   : > { %v12105_v34 = vadd.f32 %v12104_v38, %v12103_v45  ;;  %v3424_v22 = vadd.f32 %v12102_v56, %v14594_v35  ;;  %v4129_v45 = vld [vmem:[#allocation2 + $0xbc] sm:$0x1] }
 0x24a   : > { %v4119_v28 = vsel %vm13321_vm8, %v3935_v25, %v4118_v36  ;;  %v3943_v6 = vor.u32 %v3941_v4, %v3940_v43  ;;  %v3945_v44 = vrot.slane %v3940_v43, 4 }
 0x24b   : > { %4120 = vst [vmem:[#allocation2 + $0xa8] sm:$0xf] %v4119_v28  ;;  %v3473_v46 = vmul.f32 %v14712_v30, %v3424_v22  ;;  %v3427_v41 = vadd.f32 %v12105_v34, %v14598_v61 }
 0x24c   : > { %v3944_v2 = vsel %vm13329_vm9, %v3936_v51, %v3943_v6  ;;  %v4123_v35 = vsel %vm13270_vm3, %v3945_v44, %v4122_v17 }
 0x24d   : > { %4121 = vst.msk [vmem:[#allocation2 + $0xac] sm:$0xf] %vm359_vm0, %v3944_v2  ;;  %4124 = vst [vmem:[#allocation2 + $0xb0] sm:$0x1] %v4123_v35  ;;  %v3512_v21 = vadd.f32 %v14724_v63, %v3473_v46  ;;  %v3474_v55 = vmul.f32 %v14712_v30, %v3427_v41 }
 0x24f   : > { %vm3544_vm6 = vcmp.gt.f32.partialorder %v3512_v21, 0.0  ;;  %v3576_v61 = vmul.f32 0.1, %v3512_v21  ;;  %v3513_v23 = vadd.f32 %v14724_v63, %v3474_v55 }
 0x251   : > { %v3608_v40 = vsel %vm3544_vm6, %v3512_v21, %v3576_v61  ;;  %vm3545_vm14 = vcmp.gt.f32.partialorder %v3513_v23, 0.0  ;;  %v3577_v32 = vmul.f32 0.1, %v3513_v23  ;;  %v12106_v11 = vpop.f32.mrb[60].mxu0  ;;  %v12788_v61 = vld [vmem:[%s17716_s2] sm:$0xff]  }
 0x252   : > { %v11963_v20 = vpack.c.bf16 %v3608_v40, %v3608_v40  ;;  %v12107_v62 = vpop.f32.mrb[61].mxu0 }
 0x253   : > { %v3609_v31 = vsel %vm3545_vm14, %v3513_v23, %v3577_v32  ;;  %v12108_v10 = vadd.f32 %v12107_v62, %v12106_v11  ;;  %v12109_v26 = vpop.f32.mrb[62].mxu0 }
 0x254   : > { %v3947_v57 = vshrl.u32 %v11963_v20, 16  ;;  %v11964_v3 = vpack.c.bf16 %v3609_v31, %v3609_v31  ;;  %v12110_v59 = vpop.f32.mrb[63].mxu0  ;;  %v3950_v18 = vshll.u32 %v11963_v20, 16 }
 0x255   : > { %v3432_v50 = vadd.f32 %v14588_v5, %v12108_v10  ;;  %v12111_v58 = vadd.f32 %v12110_v59, %v12109_v26  ;;  %v12785_v5 = vld [vmem:[%s17716_s2 + $0x40] sm:$0xff]  }
 0x256   : > { %v3949_v53 = vrot.slane %v3947_v57, 7  ;;  %v3955_v48 = vshrl.u32 %v11964_v3, 16  ;;  %v3958_v36 = vshll.u32 %v11964_v3, 16  ;;  %12130 = vmatprep.subr.bf16.mxu1 %v12785_v5  ;;  %v4136_v5 = vld [vmem:[#allocation2 + $0xc8] sm:$0x1] }
 0x257   : > { %v3475_v8 = vmul.f32 %v14712_v30, %v3432_v50  ;;  %v3435_v7 = vadd.f32 %v14596_v13, %v12111_v58  ;;  %12131 = vmatpush3.bf16.msra.mxu1 %v12788_v61  ;;  %v4132_v58 = vld [vmem:[#allocation2 + $0xc0] sm:$0xf] }
 0x258   : > { %v3952_v33 = vor.u32 %v3950_v18, %v3949_v53  ;;  %v3957_v19 = vrot.slane %v3955_v48, 7  ;;  %v3953_v56 = vrot.slane %v3949_v53, 4 }
 0x259   : > { %v3514_v25 = vadd.f32 %v14724_v63, %v3475_v8  ;;  %v3476_v43 = vmul.f32 %v14712_v30, %v3435_v7  ;;  %v12396_v4 = vpop.f32.mrb[64].mxu0 }
 0x25a   : > { %v4126_v38 = vsel %vm13321_vm8, %v3952_v33, %v4125_v14  ;;  %v3960_v17 = vor.u32 %v3958_v36, %v3957_v19  ;;  %v3962_v34 = vrot.slane %v3957_v19, 4  ;;  %v3320_v13 = vadd.f32 %v12396_v4, %v14473_v12  ;;  %v3311_v22 = vpop.f32.mrb[65].mxu0  ;;  %v12791_v19 = vld [vmem:[%s17716_s2 + $0x48] sm:$0xff]  }
 0x25b   : > { %4127 = vst [vmem:[#allocation2 + $0xb4] sm:$0xf] %v4126_v38  ;;  %vm3546_vm15 = vcmp.gt.f32.partialorder %v3514_v25, 0.0  ;;  %v3578_v51 = vmul.f32 0.1, %v3514_v25  ;;  %v3515_v28 = vadd.f32 %v14724_v63, %v3476_v43  ;;  %v3312_v6 = vadd.f32 %v14469_v27, %v3311_v22  ;;  %v12397_v44 = vpop.f32.mrb[66].mxu0  ;;  %12132 = vmatprep.subr.bf16.mxu1 %v12791_v19 }
 0x25c   : > { %v3961_v46 = vsel %vm13329_vm9, %v3953_v56, %v3960_v17  ;;  %v4130_v41 = vsel %vm13270_vm3, %v3962_v34, %v4129_v45  ;;  %v3447_v2 = vmul.f32 %v14712_v30, %v3320_v13  ;;  %v3323_v12 = vadd.f32 %v12397_v44, %v14475_v49  ;;  %v3314_v35 = vpop.f32.mrb[67].mxu0  ;;  %v12792_v36 = vld [vmem:[%s17716_s2 + $0x8] sm:$0xff]   ;;  %v12796_v22 = vld [vmem:[%s17716_s2 + $0x50] sm:$0xff]  }
 0x25d   : > { %4128 = vst.msk [vmem:[#allocation2 + $0xb8] sm:$0xf] %vm359_vm0, %v3961_v46  ;;  %4131 = vst [vmem:[#allocation2 + $0xbc] sm:$0x1] %v4130_v41  ;;  %v3610_v21 = vsel %vm3546_vm15, %v3514_v25, %v3578_v51  ;;  %vm3547_vm1 = vcmp.gt.f32.partialorder %v3515_v28, 0.0  ;;  %v3445_v27 = vmul.f32 %v14712_v30, %v3312_v6  ;;  %v3315_v49 = vadd.f32 %v14471_v16, %v3314_v35  ;;  %v12797_v46 = vld [vmem:[%s17716_s2 + $0x10] sm:$0xff]  }
 0x25e   : > { %v3579_v55 = vmul.f32 0.1, %v3515_v28  ;;  %v11965_v23 = vpack.c.bf16 %v3610_v21, %v3610_v21  ;;  %v3486_v40 = vadd.f32 %v14724_v63, %v3447_v2  ;;  %v3448_v32 = vmul.f32 %v14712_v30, %v3323_v12  ;;  %12133 = vmatpush3.bf16.msra.mxu1 %v12792_v36 }
 0x25f   : > { %v3484_v20 = vadd.f32 %v14724_v63, %v3445_v27  ;;  %v3446_v16 = vmul.f32 %v14712_v30, %v3315_v49  ;;  %12134 = vmatprep.subr.bf16.mxu1 %v12796_v22 }
 0x260   : > { %v3611_v11 = vsel %vm3547_vm1, %v3515_v28, %v3579_v55  ;;  %v3964_v62 = vshrl.u32 %v11965_v23, 16  ;;  %v3967_v31 = vshll.u32 %v11965_v23, 16  ;;  %vm3518_vm2 = vcmp.gt.f32.partialorder %v3486_v40, 0.0  ;;  %v4034_v55 = vld [vmem:[#allocation2 + $0x18] sm:$0xf] }
 0x261   : > { %v11966_v10 = vpack.c.bf16 %v3611_v11, %v3611_v11  ;;  %v3550_v26 = vmul.f32 0.1, %v3486_v40  ;;  %vm3516_vm4 = vcmp.gt.f32.partialorder %v3484_v20, 0.0  ;;  %v3548_v57 = vmul.f32 0.1, %v3484_v20  ;;  %v12400_v59 = vpop.f32.mrb[68].mxu0 }
 0x262   : > { %v3487_v3 = vadd.f32 %v14724_v63, %v3448_v32  ;;  %v3966_v50 = vrot.slane %v3964_v62, 7  ;;  %v3327_v48 = vpop.f32.mrb[69].mxu0  ;;  %v3485_v34 = vadd.f32 %v14724_v63, %v3446_v16  ;;  %v3336_v13 = vadd.f32 %v12400_v59, %v14481_v24  ;;  %v12800_v32 = vld [vmem:[%s17716_s2 + $0x58] sm:$0xff]   ;;  %12135 = vmatpush3.bf16.msra.mxu1 %v12797_v46 }
 0x263   : > { %v3972_v53 = vshrl.u32 %v11966_v10, 16  ;;  %v3975_v18 = vshll.u32 %v11966_v10, 16  ;;  %v3582_v14 = vsel %vm3518_vm2, %v3486_v40, %v3550_v26  ;;  %v3580_v8 = vsel %vm3516_vm4, %v3484_v20, %v3548_v57  ;;  %v12401_v33 = vpop.f32.mrb[70].mxu0  ;;  %12136 = vmatprep.subr.bf16.mxu1 %v12800_v32 }
 0x264   : > { %vm3519_vm5 = vcmp.gt.f32.partialorder %v3487_v3, 0.0  ;;  %v3551_v7 = vmul.f32 0.1, %v3487_v3  ;;  %v3969_v56 = vor.u32 %v3967_v31, %v3966_v50  ;;  %v3970_v45 = vrot.slane %v3966_v50, 4  ;;  %v14765_v4 = vpop.f32.mrb[71].mxu0  ;;  %v12801_v31 = vld [vmem:[%s17716_s2 + $0x18] sm:$0xff]  }
 0x265   : > { %v3974_v25 = vrot.slane %v3972_v53, 7  ;;  %v11937_v43 = vpack.c.bf16 %v3582_v14, %v3582_v14  ;;  %v11935_v38 = vpack.c.bf16 %v3580_v8, %v3580_v8  ;;  %vm3517_vm6 = vcmp.gt.f32.partialorder %v3485_v34, 0.0  ;;  %v4038_v50 = vld [vmem:[#allocation2 + $0x20] sm:$0x1] }
 0x266   : > { %v3583_v17 = vsel %vm3519_vm5, %v3487_v3, %v3551_v7  ;;  %v4133_v51 = vsel %vm13321_vm8, %v3969_v56, %v4132_v58  ;;  %v3549_v40 = vmul.f32 0.1, %v3485_v34  ;;  %v3451_v20 = vmul.f32 %v14712_v30, %v3336_v13  ;;  %v12804_v7 = vld [vmem:[%s17716_s2 + $0x60] sm:$0xff]   ;;  %12137 = vmatpush3.bf16.msra.mxu1 %v12801_v31  ;;  %v15310_v29 = vld [vmem:[#allocation2 + $0xbc] ss:$0 sps:$4 sm:$0x11]  }
 0x267   : > { %v3977_v28 = vor.u32 %v3975_v18, %v3974_v25  ;;  %v3979_v6 = vrot.slane %v3974_v25, 4  ;;  %v3726_v44 = vshrl.u32 %v11937_v43, 16  ;;  %4134 = vst [vmem:[#allocation2 + $0xc0] sm:$0xf] %v4133_v51  ;;  %v3729_v41 = vshll.u32 %v11937_v43, 16  ;;  %v12805_v56 = vld [vmem:[%s17716_s2 + $0x20] sm:$0xff]   ;;  %12138 = vmatprep.subr.bf16.mxu1 %v12804_v7 }
 0x268   : > { %v3709_v2 = vshrl.u32 %v11935_v38, 16  ;;  %v11938_v24 = vpack.c.bf16 %v3583_v17, %v3583_v17  ;;  %v3712_v61 = vshll.u32 %v11935_v38, 16  ;;  %v3328_v62 = vadd.f32 %v14477_v60, %v3327_v48  ;;  %v13023_v18 = vld [vmem:[#allocation2 + $0xc] sm:$0xf]  ;;  %v12817_v7 = vld [vmem:[%s17716_s2 + $0x78] sm:$0xff]   ;;  %17832 = vst [vmem:[#allocation31_spill] sm:$0xff] %v15310_v29 }
 0x269   : > { %v3978_v12 = vsel %vm13329_vm9, %v3970_v45, %v3977_v28  ;;  %v4137_v35 = vsel %vm13270_vm3, %v3979_v6, %v4136_v5  ;;  %v3728_v21 = vrot.slane %v3726_v44, 7  ;;  %v3581_v3 = vsel %vm3517_vm6, %v3485_v34, %v3549_v40  ;;  %v4031_v34 = vld [vmem:[#allocation2 + $0x14] sm:$0x1] }
 0x26a   : > { %4135 = vst.msk [vmem:[#allocation2 + $0xc4] sm:$0xf] %vm359_vm0, %v3978_v12  ;;  %4138 = vst [vmem:[#allocation2 + $0xc8] sm:$0x1] %v4137_v35  ;;  %v3711_v27 = vrot.slane %v3709_v2, 7  ;;  %v3734_v23 = vshrl.u32 %v11938_v24, 16  ;;  %v11936_v58 = vpack.c.bf16 %v3581_v3, %v3581_v3  ;;  %v3490_v53 = vadd.f32 %v14724_v63, %v3451_v20  ;;  %12139 = vmatpush3.bf16.msra.mxu1 %v12805_v56 }
 0x26b   : > { %v3731_v49 = vor.u32 %v3729_v41, %v3728_v21  ;;  %v3737_v11 = vshll.u32 %v11938_v24, 16  ;;  %v3732_v10 = vrot.slane %v3728_v21, 4  ;;  %v3449_v60 = vmul.f32 %v14712_v30, %v3328_v62  ;;  %v12809_v41 = vld [vmem:[%s17716_s2 + $0x68] sm:$0xff]   ;;  %v4048_v35 = vld [vmem:[#allocation2 + $0x30] sm:$0xf] }
 0x26c   : > { %v3714_v26 = vor.u32 %v3712_v61, %v3711_v27  ;;  %v3736_v57 = vrot.slane %v3734_v23, 7  ;;  %v3339_v8 = vadd.f32 %v12401_v33, %v14483_v9  ;;  %v3717_v19 = vshrl.u32 %v11936_v58, 16  ;;  %12140 = vmatprep.subr.bf16.mxu1 %v12809_v41  ;;  %v12813_v40 = vld [vmem:[%s17716_s2 + $0x70] sm:$0xff]   ;;  %v4052_v56 = vld [vmem:[#allocation2 + $0x38] sm:$0x1] }
 0x26d   : > { %v4035_v59 = vsel %vm13321_vm8, %v3731_v49, %v4034_v55  ;;  %vm3522_vm14 = vcmp.gt.f32.partialorder %v3490_v53, 0.0  ;;  %v3554_v36 = vmul.f32 0.1, %v3490_v53  ;;  %v3488_v9 = vadd.f32 %v14724_v63, %v3449_v60  ;;  %v12814_v60 = vld [vmem:[%s17716_s2 + $0x30] sm:$0xff]  }
 0x26e   : > { %4036 = vst [vmem:[#allocation2 + $0x18] sm:$0xf] %v4035_v59  ;;  %v4028_v16 = vsel %vm13321_vm8, %v3714_v26, %v13023_v18  ;;  %v3739_v48 = vor.u32 %v3737_v11, %v3736_v57  ;;  %v3741_v14 = vrot.slane %v3736_v57, 4  ;;  %v3452_v33 = vmul.f32 %v14712_v30, %v3339_v8 }
 0x26f   : > { %4029 = vst [vmem:[#allocation2 + $0xc] sm:$0xf] %v4028_v16  ;;  %v3719_v43 = vrot.slane %v3717_v19, 7  ;;  %v3720_v5 = vshll.u32 %v11936_v58, 16  ;;  %v3586_v38 = vsel %vm3522_vm14, %v3490_v53, %v3554_v36  ;;  %v3331_v17 = vadd.f32 %v14479_v39, %v14765_v4  ;;  %v12810_v39 = vld [vmem:[%s17716_s2 + $0x28] sm:$0xff]  }
 0x270   : > { %v3740_v45 = vsel %vm13329_vm9, %v3732_v10, %v3739_v48  ;;  %v4039_v25 = vsel %vm13270_vm3, %v3741_v14, %v4038_v50  ;;  %v11941_v13 = vpack.c.bf16 %v3586_v38, %v3586_v38  ;;  %vm3520_vm15 = vcmp.gt.f32.partialorder %v3488_v9, 0.0  ;;  %12141 = vmatpush3.bf16.msra.mxu1 %v12810_v39  ;;  %v4041_v10 = vld [vmem:[#allocation2 + $0x24] sm:$0xf] }
 0x271   : > { %4037 = vst.msk [vmem:[#allocation2 + $0x1c] sm:$0xf] %vm359_vm0, %v3740_v45  ;;  %4040 = vst [vmem:[#allocation2 + $0x20] sm:$0x1] %v4039_v25  ;;  %v3552_v22 = vmul.f32 0.1, %v3488_v9  ;;  %v3491_v51 = vadd.f32 %v14724_v63, %v3452_v33  ;;  %v3722_v6 = vor.u32 %v3720_v5, %v3719_v43  ;;  %v3450_v46 = vmul.f32 %v14712_v30, %v3331_v17 }
 0x272   : > { %v3715_v28 = vrot.slane %v3711_v27, 4  ;;  %v3724_v44 = vrot.slane %v3719_v43, 4  ;;  %v3760_v4 = vshrl.u32 %v11941_v13, 16  ;;  %v3763_v27 = vshll.u32 %v11941_v13, 16  ;;  %12142 = vmatprep.subr.bf16.mxu1 %v12813_v40  ;;  %v12818_v13 = vld [vmem:[%s17716_s2 + $0x38] sm:$0xff]  }
 0x273   : > { %v3584_v2 = vsel %vm3520_vm15, %v3488_v9, %v3552_v22  ;;  %vm3523_vm1 = vcmp.gt.f32.partialorder %v3491_v51, 0.0  ;;  %v3555_v21 = vmul.f32 0.1, %v3491_v51  ;;  %v3489_v61 = vadd.f32 %v14724_v63, %v3450_v46 }
 0x274   : > { %v3723_v24 = vsel %vm13329_vm9, %v3715_v28, %v3722_v6  ;;  %v4032_v12 = vsel %vm13270_vm3, %v3724_v44, %v4031_v34  ;;  %v11939_v30 = vpack.c.bf16 %v3584_v2, %v3584_v2  ;;  %v14826_v55 = vrot.slane %v3760_v4, 7  ;;  %12143 = vmatpush3.bf16.msra.mxu1 %v12814_v60 }
 0x275   : > { %4030 = vst.msk [vmem:[#allocation2 + $0x10] sm:$0xf] %vm359_vm0, %v3723_v24  ;;  %4033 = vst [vmem:[#allocation2 + $0x14] sm:$0x1] %v4032_v12  ;;  %v4267_v23 = vld [vmem:[#allocation2 + $0x18] sm:$0xf]  ;;  %v3587_v49 = vsel %vm3523_vm1, %v3491_v51, %v3555_v21  ;;  %12144 = vmatprep.subr.bf16.mxu1 %v12817_v7 }
 0x276   : > { %v3743_v32 = vshrl.u32 %v11939_v30, 16  ;;  %v4205_v11 = vld [vmem:[#allocation2 + $0x18] sm:$0xf]  ;;  %v3765_v62 = vor.u32 %v3763_v27, %v14826_v55  ;;  %v3746_v31 = vshll.u32 %v11939_v30, 16  ;;  %v11942_v26 = vpack.c.bf16 %v3587_v49, %v3587_v49  ;;  %v4203_v17 = vld [vmem:[#allocation2 + $0xc] sm:$0xf] }
 0x277   : > { %v4315_v20 = vld [vmem:[#allocation2 + $0x18] sm:$0xe]  ;;  %vm3521_vm2 = vcmp.gt.f32.partialorder %v3489_v61, 0.0  ;;  %v3553_v50 = vmul.f32 0.1, %v3489_v61  ;;  %v3766_v18 = vrot.slane %v14826_v55, 4 }
 0x278   : > { %v4268_v57 = vld [vmem:[#allocation2 + $0x1c] sm:$0xf]  ;;  %v4252_v59 = vld [vmem:[#allocation2 + $0x18] sm:$0xe]  ;;  %v14833_v63 = vrot.slane %v3743_v32, 7  ;;  %v4049_v16 = vsel %vm13321_vm8, %v3765_v62, %v4048_v35  ;;  %v3768_v48 = vshrl.u32 %v11942_v26, 16  ;;  %12145 = vmatpush3.bf16.msra.mxu1 %v12818_v13 }
 0x279   : > { %v4206_v3 = vld [vmem:[#allocation2 + $0x1c] sm:$0xf]  ;;  %v14835_v58 = vcombine.low %v4267_v23, %v4268_v57  ;;  %v14845_v14 = vld [vmem:[#allocation2 + $0x20] ss:$0 sps:$4 sm:$0x11]   ;;  %v11561_v8 = vcombine.low %v4315_v20, %v4268_v57  ;;  %v3771_v36 = vshll.u32 %v11942_v26, 16  ;;  %v3585_v45 = vsel %vm3521_vm2, %v3489_v61, %v3553_v50 }
 0x27a   : > { %v14837_v53 = vcombine.low %v4205_v11, %v4206_v3  ;;  %4050 = vst [vmem:[#allocation2 + $0x30] sm:$0xf] %v4049_v16  ;;  %v3748_v19 = vor.u32 %v3746_v31, %v14833_v63  ;;  %v12709_v25 = vld [vmem:[#allocation2 + $0x20] ss:$0 sps:$4 sm:$0x11]   ;;  %v11514_v9 = vcombine.low %v4252_v59, %v4206_v3  ;;  %v3770_v33 = vrot.slane %v3768_v48, 7 }
 0x27b   : > { %5371 = vrot.lane.b32.xlu0 %v14835_v58, %s13156_s30  ;;  %v11940_v43 = vpack.c.bf16 %v3585_v45, %v3585_v45  ;;  %v5723_v5 = vrot.slane %v11561_v8, 1  ;;  %v5724_v38 = vrot.slane %v14845_v14, 1  ;;  %v4251_v34 = vld [vmem:[#allocation2 + $0xc] sm:$0xe]  ;;  %v5215_v28 = vrot.slane %v12709_v25, 1 }
 0x27c   : > { %4893 = vrot.lane.b32.xlu1 %v14837_v53, %s13158_s12  ;;  %v4042_v22 = vsel %vm13321_vm8, %v3748_v19, %v4041_v10  ;;  %v5214_v51 = vrot.slane %v11514_v9, 1  ;;  %v4204_v6 = vld [vmem:[#allocation2 + $0x10] sm:$0xf]  ;;  %v3773_v44 = vor.u32 %v3771_v36, %v3770_v33  ;;  %v3775_v46 = vrot.slane %v3770_v33, 4  ;;  %v4143_v2 = vld [vmem:[#allocation2 + $0x18] sm:$0xf] }
 0x27d   : > { %4043 = vst [vmem:[#allocation2 + $0x24] sm:$0xf] %v4042_v22  ;;  %v3751_v41 = vshrl.u32 %v11940_v43, 16  ;;  %v3754_v39 = vshll.u32 %v11940_v43, 16  ;;  %v4045_v24 = vld [vmem:[#allocation2 + $0x2c] sm:$0x1]  ;;  %v5725_v12 = vsel %vm1640_vm7, %v5723_v5, %v5724_v38  ;;  %v14864_v30 = vcombine.low %v4203_v17, %v4204_v6 }
 0x27e   : > { %v12713_v4 = vld [vmem:[#allocation2 + $0x14] ss:$0 sps:$4 sm:$0x11]   ;;  %v5216_v35 = vsel %vm1640_vm7, %v5214_v51, %v5215_v28  ;;  %v11513_v21 = vcombine.low %v4251_v34, %v4204_v6  ;;  %v4144_v55 = vld [vmem:[#allocation2 + $0x1c] sm:$0xf]  ;;  %v3774_v61 = vsel %vm13329_vm9, %v3766_v18, %v3773_v44  ;;  %v4053_v23 = vsel %vm13270_vm3, %v3775_v46, %v4052_v56  ;;  %12430 = vmatprep.mubr.msk.bf16.mxu0 %vm2681_vm11, %v5725_v12 }
 0x27f   : > { %v4189_v27 = vld [vmem:[#allocation2 + $0x18] sm:$0xe]  ;;  %v3753_v40 = vrot.slane %v3751_v41, 7  ;;  %5261 = vrot.lane.b32.xlu0 %v5216_v35, %s13157_s11  ;;  %v5212_v32 = vrot.slane %v12713_v4, 1  ;;  %v3749_v11 = vrot.slane %v14833_v63, 4  ;;  %v14876_v62 = vcombine.low %v4143_v2, %v4144_v55 }
 0x280   : > { %v12716_v49 = vld [vmem:[#allocation2 + $0x20] ss:$0 sps:$4 sm:$0x11]   ;;  %4051 = vst.msk [vmem:[#allocation2 + $0x34] sm:$0xf] %vm359_vm0, %v3774_v61  ;;  %4891 = vrot.lane.b32.xlu1 %v14864_v30, %s13158_s12  ;;  %v5211_v20 = vrot.slane %v11513_v21, 1  ;;  %v11467_v31 = vcombine.low %v4189_v27, %v4144_v55 }
 0x281   : > { %4054 = vst [vmem:[#allocation2 + $0x38] sm:$0x1] %v4053_v23  ;;  %v4142_v10 = vld [vmem:[#allocation2 + $0x10] sm:$0xf]  ;;  %v3756_v26 = vor.u32 %v3754_v39, %v3753_v40  ;;  %v3758_v57 = vrot.slane %v3753_v40, 4  ;;  %v4738_v3 = vrot.slane %v12716_v49, 1 }
 0x282   : > { %v5454_v59 = vshll.u32 %v14835_v58, 16  ;;  %v4188_v50 = vld [vmem:[#allocation2 + $0xc] sm:$0xe]  ;;  %v5213_v63 = vsel %vm1640_vm7, %v5211_v20, %v5212_v32  ;;  %v4737_v60 = vrot.slane %v11467_v31, 1  ;;  %v5459_v18 = vshll.u32 %v14845_v14, 16 }
 0x283   : > { %v12720_v16 = vld [vmem:[#allocation2 + $0x14] ss:$0 sps:$4 sm:$0x11]   ;;  %v11466_v48 = vcombine.low %v4188_v50, %v4142_v10  ;;  %v3757_v8 = vsel %vm13329_vm9, %v3749_v11, %v3756_v26  ;;  %v4046_v7 = vsel %vm13270_vm3, %v3758_v57, %v4045_v24  ;;  %5259 = vrot.lane.b32.xlu0 %v5213_v63, %s13157_s11  ;;  %v5452_v19 = vshrl.u32 %v14835_v58, 16  ;;  %v4141_v25 = vld [vmem:[#allocation2 + $0xc] sm:$0xf] }
 0x284   : > { %v5456_v36 = vrot.slane %v5454_v59, 1  ;;  %4044 = vst.msk [vmem:[#allocation2 + $0x28] sm:$0xf] %vm359_vm0, %v3757_v8  ;;  %4047 = vst [vmem:[#allocation2 + $0x2c] sm:$0x1] %v4046_v7  ;;  %v4739_v56 = vsel %vm1640_vm7, %v4737_v60, %v4738_v3  ;;  %v4735_v14 = vrot.slane %v12720_v16, 1  ;;  %v14890_v43 = vcombine.low %v4141_v25, %v4142_v10 }
 0x285   : > { %v4734_v45 = vrot.slane %v11466_v48, 1  ;;  %4783 = vrot.lane.b32.xlu1 %v4739_v56, %s13156_s30  ;;  %v5461_v33 = vrot.slane %v5459_v18, 1  ;;  %v4486_v5 = vshll.u32 %v14876_v62, 16  ;;  %v4317_v38 = vld [vmem:[#allocation2 + $0x30] sm:$0xe]  ;;  %v4491_v17 = vshll.u32 %v12716_v49, 16 }
 0x286   : > { %v5457_v9 = vor.u32 %v5456_v36, %v5452_v19  ;;  %v4271_v13 = vld [vmem:[#allocation2 + $0x30] sm:$0xf]  ;;  %v4484_v22 = vshrl.u32 %v14876_v62, 16  ;;  %v4474_v44 = vshll.u32 %v14890_v43, 16  ;;  %v4479_v46 = vshll.u32 %v12720_v16, 16 }
 0x287   : > { %v4272_v34 = vld [vmem:[#allocation2 + $0x34] sm:$0xf]  ;;  %v4488_v51 = vrot.slane %v4486_v5, 1  ;;  %v4736_v28 = vsel %vm1640_vm7, %v4734_v45, %v4735_v14  ;;  %v4316_v41 = vld [vmem:[#allocation2 + $0x24] sm:$0xe]  ;;  %v4493_v21 = vrot.slane %v4491_v17, 1 }
 0x288   : > { %v5462_v58 = vsel %vm1367_vm10, %v5457_v9, %v5461_v33  ;;  %v14897_v6 = vld [vmem:[#allocation2 + $0x38] ss:$0 sps:$4 sm:$0x11]   ;;  %v11563_v39 = vcombine.low %v4317_v38, %v4272_v34  ;;  %v4318_v2 = vld [vmem:[#allocation2 + $0x3c] sm:$0xe]  ;;  %v14901_v35 = vcombine.low %v4271_v13, %v4272_v34  ;;  %v4472_v55 = vshrl.u32 %v14890_v43, 16 }
 0x289   : > { %5643 = vrot.lane.b32.xlu0 %v5462_v58, %s13158_s12  ;;  %4781 = vrot.lane.b32.xlu1 %v4736_v28, %s13156_s30  ;;  %v4489_v4 = vor.u32 %v4488_v51, %v4484_v22  ;;  %v4210_v24 = vld [vmem:[#allocation2 + $0x34] sm:$0xf]  ;;  %v4254_v12 = vld [vmem:[#allocation2 + $0x30] sm:$0xe]  ;;  %v4476_v27 = vrot.slane %v4474_v44, 1  ;;  %v5730_v50 = vrot.slane %v14897_v6, 1 }
 0x28a   : > { %v4319_v61 = vld [vmem:[#allocation2 + $0x48] sm:$0xe]  ;;  %v12727_v23 = vld [vmem:[#allocation2 + $0x38] ss:$0 sps:$4 sm:$0x11]   ;;  %v11516_v49 = vcombine.low %v4254_v12, %v4210_v24  ;;  %v5729_v59 = vrot.slane %v11563_v39, 1 }
 0x28b   : > { %v4270_v40 = vld [vmem:[#allocation2 + $0x28] sm:$0xf]  ;;  %v4269_v32 = vld [vmem:[#allocation2 + $0x24] sm:$0xf]  ;;  %v4494_v10 = vsel %vm1367_vm10, %v4489_v4, %v4493_v21  ;;  %v13024_v26 = vld [vmem:[#allocation2 + $0x40] sm:$0xf]  ;;  %v4477_v3 = vor.u32 %v4476_v27, %v4472_v55 }
 0x28c   : > { %v14904_v11 = vld [vmem:[#allocation2 + $0x28] sm:$0xf]  ;;  %v14906_v20 = vld [vmem:[#allocation2 + $0x2c] ss:$0 sps:$4 sm:$0x11]   ;;  %v11562_v31 = vcombine.low %v4316_v41, %v4270_v40  ;;  %v11564_v57 = vcombine.low %v4318_v2, %v13024_v26  ;;  %v4481_v63 = vrot.slane %v4479_v46, 1  ;;  %v14914_v7 = vcombine.low %v4269_v32, %v4270_v40 }
 0x28d   : > { %5375 = vrot.lane.b32.xlu0 %v14901_v35, %s13156_s30  ;;  %4655 = vrot.lane.b32.xlu1 %v4494_v10, %s13157_s11  ;;  %v13025_v60 = vld [vmem:[#allocation2 + $0x4c] sm:$0xf]  ;;  %v4253_v16 = vld [vmem:[#allocation2 + $0x24] sm:$0xe]  ;;  %v5727_v8 = vrot.slane %v14906_v20, 1  ;;  %v5220_v56 = vrot.slane %v11516_v49, 1  ;;  %v5731_v5 = vsel %vm1640_vm7, %v5729_v59, %v5730_v50 }
 0x28e   : > { %v11565_v18 = vcombine.low %v4319_v61, %v13025_v60  ;;  %v5726_v48 = vrot.slane %v11562_v31, 1  ;;  %v12730_v19 = vld [vmem:[#allocation2 + $0x2c] ss:$0 sps:$4 sm:$0x11]   ;;  %v11515_v36 = vcombine.low %v4253_v16, %v14904_v11  ;;  %v5221_v45 = vrot.slane %v12727_v23, 1 }
 0x28f   : > { %v5478_v14 = vshll.u32 %v14901_v35, 16  ;;  %v5732_v9 = vrot.slane %v11564_v57, 1  ;;  %v4482_v33 = vsel %vm1367_vm10, %v4477_v3, %v4481_v63  ;;  %v13026_v38 = vld [vmem:[#allocation2 + $0x44] ss:$0 sps:$4 sm:$0x11]   ;;  %v5218_v44 = vrot.slane %v12730_v19, 1 }
 0x290   : > { %v5728_v25 = vsel %vm1640_vm7, %v5726_v48, %v5727_v8  ;;  %v5733_v17 = vrot.slane %v13026_v38, 1  ;;  %v5735_v58 = vrot.slane %v11565_v18, 1  ;;  %v13027_v34 = vld [vmem:[#allocation2 + $0x50] ss:$0 sps:$4 sm:$0x11]   ;;  %v5217_v28 = vrot.slane %v11515_v36, 1 }
 0x291   : > { %5373 = vrot.lane.b32.xlu0 %v14914_v7, %s13156_s30  ;;  %12431 = vmatmul.mubr.msk.bf16.vlgmr.msra.gmra.mrb[72].mxu0 %vm2681_vm11, %v5728_v25  ;;  %v5736_v13 = vrot.slane %v13027_v34, 1  ;;  %v4148_v22 = vld [vmem:[#allocation2 + $0x34] sm:$0xf]  ;;  %v4209_v51 = vld [vmem:[#allocation2 + $0x30] sm:$0xf]  ;;  %v5222_v41 = vsel %vm1640_vm7, %v5220_v56, %v5221_v45  ;;  %v5480_v4 = vrot.slane %v5478_v14, 1 }
 0x292   : > { %4653 = vrot.lane.b32.xlu1 %v4482_v33, %s13157_s11  ;;  %12434 = vmatprep.mubr.msk.bf16.mxu0 %vm2681_vm11, %v5731_v5  ;;  %v4147_v46 = vld [vmem:[#allocation2 + $0x30] sm:$0xf]  ;;  %v14927_v39 = vcombine.low %v4209_v51, %v4210_v24  ;;  %v5466_v12 = vshll.u32 %v14914_v7, 16  ;;  %v14933_v55 = vld [vmem:[#allocation2 + $0x38] ss:$0 sps:$4 sm:$0x11]   ;;  %v5734_v32 = vsel %vm1640_vm7, %v5732_v9, %v5733_v17  ;;  %v5219_v50 = vsel %vm1640_vm7, %v5217_v28, %v5218_v44 }
 0x293   : > { %v4191_v2 = vld [vmem:[#allocation2 + $0x30] sm:$0xe]  ;;  %v14931_v21 = vcombine.low %v4147_v46, %v4148_v22  ;;  %v4320_v61 = vld [vmem:[#allocation2 + $0x54] sm:$0xe]  ;;  %v5476_v23 = vshrl.u32 %v14901_v35, 16  ;;  %v5483_v24 = vshll.u32 %v14897_v6, 16  ;;  %v5737_v49 = vsel %vm1640_vm7, %v5735_v58, %v5736_v13 }
 0x294   : > { %v11469_v27 = vcombine.low %v4191_v2, %v4148_v22  ;;  %v14939_v40 = vld [vmem:[#allocation2 + $0x28] sm:$0xf]  ;;  %v13028_v31 = vld [vmem:[#allocation2 + $0x58] sm:$0xf]  ;;  %v4207_v26 = vld [vmem:[#allocation2 + $0x24] sm:$0xf] }
 0x295   : > { %5265 = vrot.lane.b32.xlu0 %v5222_v41, %s13157_s11  ;;  %v11566_v10 = vcombine.low %v4320_v61, %v13028_v31  ;;  %v4321_v57 = vld [vmem:[#allocation2 + $0x60] sm:$0xe]  ;;  %v14943_v3 = vld [vmem:[#allocation2 + $0x68] ss:$0 sps:$4 sm:$0x11]   ;;  %v5526_v59 = vshll.u32 %v14644_v0, 16  ;;  %v14948_v35 = vcombine.low %v4207_v26, %v14904_v11  ;;  %v5481_v6 = vor.u32 %v5480_v4, %v5476_v23 }
 0x296   : > { %4897 = vrot.lane.b32.xlu1 %v14927_v39, %s13158_s12  ;;  %v5468_v63 = vrot.slane %v5466_v12, 1  ;;  %v4190_v60 = vld [vmem:[#allocation2 + $0x24] sm:$0xe]  ;;  %v14950_v18 = vld [vmem:[#allocation2 + $0x58] sm:$0xf]  ;;  %v4743_v16 = vrot.slane %v11469_v27, 1 }
 0x297   : > { %v4744_v48 = vrot.slane %v14933_v55, 1  ;;  %v14954_v8 = vld [vmem:[#allocation2 + $0x2c] ss:$0 sps:$4 sm:$0x11]   ;;  %v11468_v19 = vcombine.low %v4190_v60, %v14939_v40  ;;  %v4510_v36 = vshll.u32 %v14931_v21, 16  ;;  %v5485_v45 = vrot.slane %v5483_v24, 1 }
 0x298   : > { %v13029_v11 = vld [vmem:[#allocation2 + $0x64] sm:$0xf]  ;;  %v5464_v14 = vshrl.u32 %v14914_v7, 16  ;;  %v5471_v25 = vshll.u32 %v14906_v20, 16  ;;  %v5738_v33 = vrot.slane %v11566_v10, 1  ;;  %v5742_v17 = vrot.slane %v14943_v3, 1 }
 0x299   : > { %5263 = vrot.lane.b32.xlu0 %v5219_v50, %s13157_s11  ;;  %12435 = vmatmul.mubr.msk.bf16.gmra.mrb[76].mxu0 %vm2681_vm11, %v5734_v32  ;;  %v11567_v56 = vcombine.low %v4321_v57, %v13029_v11  ;;  %v14963_v9 = vld [vmem:[#allocation2 + $0x64] sm:$0xf]  ;;  %v13030_v5 = vld [vmem:[#allocation2 + $0x5c] ss:$0 sps:$4 sm:$0x11]   ;;  %v5486_v34 = vsel %vm1367_vm10, %v5481_v6, %v5485_v45  ;;  %v5528_v28 = vrot.slane %v5526_v59, 1  ;;  %v4745_v20 = vsel %vm1640_vm7, %v4743_v16, %v4744_v48 }
 0x29a   : > { %4895 = vrot.lane.b32.xlu1 %v14948_v35, %s13158_s12  ;;  %12438 = vmatprep.mubr.msk.bf16.mxu0 %vm2681_vm11, %v5737_v49  ;;  %v5739_v38 = vrot.slane %v13030_v5, 1  ;;  %v4153_v58 = vld [vmem:[#allocation2 + $0x54] sm:$0xf]  ;;  %v4282_v13 = vld [vmem:[#allocation2 + $0x70] sm:$0xf]  ;;  %v5469_v51 = vor.u32 %v5468_v63, %v5464_v14  ;;  %v4740_v41 = vrot.slane %v11468_v19, 1 }
 0x29b   : > { %v4322_v22 = vld [vmem:[#allocation2 + $0x6c] sm:$0xe]  ;;  %v4258_v44 = vld [vmem:[#allocation2 + $0x60] sm:$0xe]  ;;  %v14969_v7 = vcombine.low %v4153_v58, %v14950_v18  ;;  %v4741_v4 = vrot.slane %v14954_v8, 1  ;;  %v4512_v2 = vrot.slane %v4510_v36, 1 }
 0x29c   : > { %v14973_v46 = vld [vmem:[#allocation2 + $0x74] ss:$0 sps:$4 sm:$0x11]   ;;  %v5741_v12 = vrot.slane %v11567_v56, 1  ;;  %v5473_v27 = vrot.slane %v5471_v25, 1  ;;  %v5524_v23 = vshrl.u32 %v14644_v0, 16  ;;  %v11568_v32 = vcombine.low %v4322_v22, %v4282_v13 }
 0x29d   : > { %17811 = vst [vmem:[#allocation13_spill] sm:$0xff] %v14969_v7  ;;  %5647 = vrot.lane.b32.xlu0 %v5486_v34, %s13158_s12  ;;  %v14977_v61 = vld [vmem:[#allocation2 + $0x7c] sm:$0xf]  ;;  %v5531_v24 = vshll.u32 %v14943_v3, 16  ;;  %v4508_v49 = vshrl.u32 %v14931_v21, 16  ;;  %v4515_v31 = vshll.u32 %v14933_v55, 16  ;;  %v11520_v10 = vcombine.low %v4258_v44, %v14963_v9 }
 0x29e   : > { %4787 = vrot.lane.b32.xlu1 %v4745_v20, %s13156_s30  ;;  %v4281_v26 = vld [vmem:[#allocation2 + $0x6c] sm:$0xf]  ;;  %v5474_v57 = vsel %vm1367_vm10, %v5469_v51, %v5473_v27  ;;  %v4323_v59 = vld [vmem:[#allocation2 + $0x78] sm:$0xe]  ;;  %v5529_v50 = vor.u32 %v5528_v28, %v5524_v23  ;;  %v4546_v60 = vshll.u32 %v14969_v7, 16  ;;  %v5740_v0 = vsel %vm1640_vm7, %v5738_v33, %v5739_v38 }
 0x29f   : > { %v12746_v6 = vld [vmem:[#allocation2 + $0x68] ss:$0 sps:$4 sm:$0x11]   ;;  %v14985_v63 = vcombine.low %v4281_v26, %v4282_v13  ;;  %v4742_v3 = vsel %vm1640_vm7, %v4740_v41, %v4741_v4  ;;  %v14991_v16 = vld [vmem:[#allocation2 + $0x80] ss:$0 sps:$4 sm:$0x11]   ;;  %v11569_v55 = vcombine.low %v4323_v59, %v14977_v61  ;;  %v4513_v48 = vor.u32 %v4512_v2, %v4508_v49 }
 0x2a0   : > { %v5743_v19 = vsel %vm1640_vm7, %v5741_v12, %v5742_v17  ;;  %v5533_v36 = vrot.slane %v5531_v24, 1  ;;  %v14997_v11 = vld [vmem:[#allocation2 + $0x5c] ss:$0 sps:$4 sm:$0x11]   ;;  %v5744_v56 = vrot.slane %v11568_v32, 1  ;;  %v5745_v45 = vrot.slane %v14973_v46, 1 }
 0x2a1   : > { %5645 = vrot.lane.b32.xlu0 %v5474_v57, %s13158_s12  ;;  %12439 = vmatmul.mubr.msk.bf16.gmra.mrb[80].mxu0 %vm2681_vm11, %v5740_v0  ;;  %v4517_v14 = vrot.slane %v4515_v31, 1  ;;  %v5232_v25 = vrot.slane %v11520_v10, 1  ;;  %v4145_v33 = vld [vmem:[#allocation2 + $0x24] sm:$0xf]  ;;  %v5233_v38 = vrot.slane %v12746_v6, 1  ;;  %v4548_v58 = vrot.slane %v4546_v60, 1 }
 0x2a2   : > { %4785 = vrot.lane.b32.xlu1 %v4742_v3, %s13156_s30  ;;  %12442 = vmatprep.mubr.msk.bf16.mxu0 %vm2681_vm11, %v5743_v19  ;;  %v5534_v5 = vsel %vm1367_vm10, %v5529_v50, %v5533_v36  ;;  %v5538_v34 = vshll.u32 %v14985_v63, 16  ;;  %v15004_v17 = vcombine.low %v4145_v33, %v14939_v40  ;;  %v5747_v13 = vrot.slane %v11569_v55, 1  ;;  %v4215_v28 = vld [vmem:[#allocation2 + $0x54] sm:$0xf]  ;;  %v15010_v44 = vld [vmem:[#allocation2 + $0x88] sm:$0xf] }
 0x2a3   : > { %v5748_v22 = vrot.slane %v14991_v16, 1  ;;  %v4518_v51 = vsel %vm1367_vm10, %v4513_v48, %v4517_v14  ;;  %v4544_v20 = vshrl.u32 %v14969_v7, 16  ;;  %v4551_v41 = vshll.u32 %v14997_v11, 16  ;;  %v13031_v4 = vld [vmem:[#allocation2 + $0x58] sm:$0xf] }
 0x2a4   : > { %v15014_v2 = vcombine.low %v4215_v28, %v13031_v4  ;;  %v15016_v40 = vld [vmem:[#allocation2 + $0x94] sm:$0xf]  ;;  %v15018_v27 = vld [vmem:[#allocation2 + $0x70] sm:$0xf]  ;;  %v4324_v23 = vld [vmem:[#allocation2 + $0x84] sm:$0xe]  ;;  %v5234_v24 = vsel %vm1640_vm7, %v5232_v25, %v5233_v38  ;;  %v5746_v57 = vsel %vm1640_vm7, %v5744_v56, %v5745_v45 }
 0x2a5   : > { %5655 = vrot.lane.b32.xlu0 %v5534_v5, %s13158_s12  ;;  %v4194_v12 = vld [vmem:[#allocation2 + $0x54] sm:$0xe]  ;;  %v4549_v32 = vor.u32 %v4548_v58, %v4544_v20  ;;  %v5540_v49 = vrot.slane %v5538_v34, 1  ;;  %v4259_v10 = vld [vmem:[#allocation2 + $0x6c] sm:$0xe]  ;;  %v5749_v59 = vsel %vm1640_vm7, %v5747_v13, %v5748_v22  ;;  %v11570_v6 = vcombine.low %v4324_v23, %v15010_v44 }
 0x2a6   : > { %4659 = vrot.lane.b32.xlu1 %v4518_v51, %s13157_s11  ;;  %v11472_v31 = vcombine.low %v4194_v12, %v14950_v18  ;;  %v15022_v26 = vld [vmem:[#allocation2 + $0x64] sm:$0xf]  ;;  %v15026_v50 = vld [vmem:[#allocation2 + $0x8c] ss:$0 sps:$4 sm:$0x11]   ;;  %v4498_v0 = vshll.u32 %v15004_v17, 16  ;;  %v11521_v56 = vcombine.low %v4259_v10, %v15018_v27 }
 0x2a7   : > { %v4325_v60 = vld [vmem:[#allocation2 + $0x90] sm:$0xe]  ;;  %v15034_v18 = vld [vmem:[#allocation2 + $0x98] ss:$0 sps:$4 sm:$0x11]   ;;  %v4553_v55 = vrot.slane %v4551_v41, 1 }
 0x2a8   : > { %v11571_v3 = vcombine.low %v4325_v60, %v15016_v40  ;;  %v5536_v48 = vshrl.u32 %v14985_v63, 16  ;;  %v5543_v19 = vshll.u32 %v14973_v46, 16  ;;  %v4753_v36 = vrot.slane %v14997_v11, 1  ;;  %v4283_v45 = vld [vmem:[#allocation2 + $0x78] sm:$0xf] }
 0x2a9   : > { %5273 = vrot.lane.b32.xlu0 %v5234_v24, %s13157_s11  ;;  %12443 = vmatmul.mubr.msk.bf16.gmra.mrb[84].mxu0 %vm2681_vm11, %v5746_v57  ;;  %v4554_v14 = vsel %vm1367_vm10, %v4549_v32, %v4553_v55  ;;  %v4752_v33 = vrot.slane %v11472_v31, 1  ;;  %v12758_v5 = vld [vmem:[#allocation2 + $0x74] ss:$0 sps:$4 sm:$0x11]   ;;  %v15044_v38 = vcombine.low %v4283_v45, %v14977_v61  ;;  %v4155_v58 = vld [vmem:[#allocation2 + $0x60] sm:$0xf]  ;;  %v15075_v55 = vpop.permute.xlu0 %5377 }
 0x2aa   : > { %4903 = vrot.lane.b32.xlu1 %v15014_v2, %s13158_s12  ;;  %12446 = vmatprep.mubr.msk.bf16.mxu0 %vm2681_vm11, %v5749_v59  ;;  %v5541_v25 = vor.u32 %v5540_v49, %v5536_v48  ;;  %v5750_v34 = vrot.slane %v11570_v6, 1  ;;  %v5751_v13 = vrot.slane %v15026_v50, 1  ;;  %v4500_v46 = vrot.slane %v4498_v0, 1  ;;  %v15054_v28 = vld [vmem:[#allocation2 + $0xa0] sm:$0xf] }
 0x2ab   : > { %v15050_v11 = vcombine.low %v4155_v58, %v15022_v26  ;;  %v5753_v22 = vrot.slane %v11571_v3, 1  ;;  %v5754_v51 = vrot.slane %v15034_v18, 1  ;;  %v5545_v61 = vrot.slane %v5543_v19, 1  ;;  %v15056_v20 = vld [vmem:[#allocation2 + $0xac] sm:$0xf] }
 0x2ac   : > { %v5235_v41 = vrot.slane %v11521_v56, 1  ;;  %v4496_v4 = vshrl.u32 %v15004_v17, 16  ;;  %v4503_v12 = vshll.u32 %v14954_v8, 16  ;;  %v4754_v24 = vsel %vm1640_vm7, %v4752_v33, %v4753_v36  ;;  %v15064_v10 = vld [vmem:[#allocation2 + $0xa4] ss:$0 sps:$4 sm:$0x11]  }
 0x2ad   : > { %5385 = vrot.lane.b32.xlu0 %v14985_v63, %s13156_s30  ;;  %17812 = vst [vmem:[#allocation10_spill] sm:$0xff] %v15050_v11  ;;  %v4326_v63 = vld [vmem:[#allocation2 + $0x9c] sm:$0xe]  ;;  %v5546_v23 = vsel %vm1367_vm10, %v5541_v25, %v5545_v61  ;;  %v5236_v32 = vrot.slane %v12758_v5, 1  ;;  %v5550_v49 = vshll.u32 %v15044_v38, 16  ;;  %v5752_v31 = vsel %vm1640_vm7, %v5750_v34, %v5751_v13 }
 0x2ae   : > { %4665 = vrot.lane.b32.xlu1 %v4554_v14, %s13157_s11  ;;  %v11572_v57 = vcombine.low %v4326_v63, %v15054_v28  ;;  %v4327_v59 = vld [vmem:[#allocation2 + $0xa8] sm:$0xe]  ;;  %v4501_v6 = vor.u32 %v4500_v46, %v4496_v4  ;;  %v4558_v8 = vshll.u32 %v15050_v11, 16  ;;  %v5755_v60 = vsel %vm1640_vm7, %v5753_v22, %v5754_v51  ;;  %v15072_v0 = vld [vmem:[#allocation2 + $0xb0] ss:$0 sps:$4 sm:$0x11]  }
 0x2af   : > { %v11573_v3 = vcombine.low %v4327_v59, %v15056_v20  ;;  %v4505_v48 = vrot.slane %v4503_v12, 1  ;;  %v15078_v19 = vld [vmem:[#allocation2 + $0x68] ss:$0 sps:$4 sm:$0x11]   ;;  %v5237_v36 = vsel %vm1640_vm7, %v5235_v41, %v5236_v32  ;;  %v5552_v56 = vrot.slane %v5550_v49, 1 }
 0x2b0   : > { %v15081_v45 = vld [vmem:[#allocation2 + $0x7c] sm:$0xf]  ;;  %v4260_v14 = vld [vmem:[#allocation2 + $0x78] sm:$0xe]  ;;  %v15083_v25 = vld [vmem:[#allocation2 + $0x70] sm:$0xf] }
 0x2b1   : > { %5657 = vrot.lane.b32.xlu0 %v5546_v23, %s13158_s12  ;;  %12447 = vmatmul.mubr.msk.bf16.gmra.mrb[88].mxu0 %vm2681_vm11, %v5752_v31  ;;  %v5756_v33 = vrot.slane %v11572_v57, 1  ;;  %v5757_v5 = vrot.slane %v15064_v10, 1  ;;  %v4506_v58 = vsel %vm1367_vm10, %v4501_v6, %v4505_v48  ;;  %v4217_v34 = vld [vmem:[#allocation2 + $0x60] sm:$0xf]  ;;  %v4560_v13 = vrot.slane %v4558_v8, 1 }
 0x2b2   : > { %4793 = vrot.lane.b32.xlu1 %v4754_v24, %s13156_s30  ;;  %12450 = vmatprep.mubr.msk.bf16.mxu0 %vm2681_vm11, %v5755_v60  ;;  %v12768_v46 = vld [vmem:[#allocation2 + $0x80] ss:$0 sps:$4 sm:$0x11]   ;;  %v4195_v22 = vld [vmem:[#allocation2 + $0x60] sm:$0xe]  ;;  %v5759_v51 = vrot.slane %v11573_v3, 1  ;;  %v11522_v32 = vcombine.low %v4260_v14, %v15081_v45  ;;  %v15100_v57 = vcombine.low %v4217_v34, %v14963_v9 }
 0x2b3   : > { %v5760_v61 = vrot.slane %v15072_v0, 1  ;;  %v15090_v41 = vld [vmem:[#allocation2 + $0xb8] sm:$0xf]  ;;  %v5548_v4 = vshrl.u32 %v15044_v38, 16  ;;  %v5555_v12 = vshll.u32 %v14991_v16, 16  ;;  %v4556_v23 = vshrl.u32 %v15050_v11, 16  ;;  %v15104_v16 = vpop.permute.xlu0 %5267 }
 0x2b4   : > { %v15094_v63 = vld [vmem:[#allocation2 + $0xc4] sm:$0xf]  ;;  %v4563_v24 = vshll.u32 %v15078_v19, 16  ;;  %v4328_v31 = vld [vmem:[#allocation2 + $0xb4] sm:$0xe]  ;;  %v11473_v6 = vcombine.low %v4195_v22, %v15022_v26  ;;  %v5758_v3 = vsel %vm1640_vm7, %v5756_v33, %v5757_v5  ;;  %v5239_v34 = vrot.slane %v12768_v46, 1  ;;  %v15131_v46 = vpop.permute.xlu1 %4651 }
 0x2b5   : > { %5275 = vrot.lane.b32.xlu0 %v5237_v36, %s13157_s11  ;;  %v4285_v49 = vld [vmem:[#allocation2 + $0x84] sm:$0xf]  ;;  %v5553_v59 = vor.u32 %v5552_v56, %v5548_v4  ;;  %v4157_v60 = vld [vmem:[#allocation2 + $0x6c] sm:$0xf]  ;;  %v11574_v36 = vcombine.low %v4328_v31, %v15090_v41  ;;  %v4329_v14 = vld [vmem:[#allocation2 + $0xc0] sm:$0xe]  ;;  %v4561_v9 = vor.u32 %v4560_v13, %v4556_v23 }
 0x2b6   : > { %4657 = vrot.lane.b32.xlu1 %v4506_v58, %s13157_s11  ;;  %v11538_v8 = vcombine.low %v4285_v49, %v15010_v44  ;;  %v15107_v48 = vld [vmem:[#allocation2 + $0xbc] ss:$0 sps:$4 sm:$0x11]   ;;  %v15113_v56 = vcombine.low %v4157_v60, %v15083_v25  ;;  %v5761_v44 = vsel %vm1640_vm7, %v5759_v51, %v5760_v61  ;;  %v15119_v26 = vld [vmem:[#allocation2 + $0xc8] ss:$0 sps:$4 sm:$0x11]   ;;  %v11575_v33 = vcombine.low %v4329_v14, %v15094_v63 }
 0x2b7   : > { %v5557_v5 = vrot.slane %v5555_v12, 1  ;;  %v5238_v58 = vrot.slane %v11522_v32, 1  ;;  %v4755_v22 = vrot.slane %v11473_v6, 1  ;;  %v4756_v4 = vrot.slane %v15078_v19, 1  ;;  %v15133_v32 = vpop.permute.xlu0 %5649  ;;  %v4165_v11 = vld [vmem:[#allocation2 + $0x9c] sm:$0xf] }
 0x2b8   : > { %17813 = vst [vmem:[#allocation11_spill] sm:$0xff] %v15113_v56  ;;  %v5562_v23 = vshll.u32 %v11538_v8, 16  ;;  %v5762_v51 = vrot.slane %v11574_v36, 1  ;;  %v5763_v61 = vrot.slane %v15107_v48, 1  ;;  %v4570_v12 = vshll.u32 %v15113_v56, 16 }
 0x2b9   : > { %5387 = vrot.lane.b32.xlu0 %v15044_v38, %s13156_s30  ;;  %12451 = vmatmul.mubr.msk.bf16.gmra.mrb[92].mxu0 %vm2681_vm11, %v5758_v3  ;;  %v4565_v38 = vrot.slane %v4563_v24, 1  ;;  %v5558_v13 = vsel %vm1367_vm10, %v5553_v59, %v5557_v5  ;;  %v5765_v31 = vrot.slane %v11575_v33, 1  ;;  %v5766_v24 = vrot.slane %v15119_v26, 1  ;;  %v12774_v19 = vld [vmem:[#allocation2 + $0x74] ss:$0 sps:$4 sm:$0x11]  }
 0x2ba   : > { %4905 = vrot.lane.b32.xlu1 %v15100_v57, %s13158_s12  ;;  %12454 = vmatprep.mubr.msk.bf16.mxu0 %vm2681_vm11, %v5761_v44  ;;  %v5240_v59 = vsel %vm1640_vm7, %v5238_v58, %v5239_v34  ;;  %v5564_v6 = vrot.slane %v5562_v23, 1  ;;  %v5764_v60 = vsel %vm1640_vm7, %v5762_v51, %v5763_v61  ;;  %v4757_v3 = vsel %vm1640_vm7, %v4755_v22, %v4756_v4  ;;  %v4219_v36 = vld [vmem:[#allocation2 + $0x6c] sm:$0xf]  ;;  %v15145_v58 = vld [vmem:[#allocation2 + $0x7c] sm:$0xf] }
 0x2bb   : > { %v4566_v49 = vsel %vm1367_vm10, %v4561_v9, %v4565_v38  ;;  %v4572_v14 = vrot.slane %v4570_v12, 1  ;;  %v15139_v9 = vld [vmem:[#allocation2 + $0x88] sm:$0xf]  ;;  %v5767_v44 = vsel %vm1640_vm7, %v5765_v31, %v5766_v24  ;;  %v5560_v33 = vshrl.u32 %v11538_v8, 16  ;;  %v4196_v38 = vld [vmem:[#allocation2 + $0x6c] sm:$0xe]  ;;  %v15156_v31 = vpop.permute.xlu1 %4779  ;;  %v15158_v24 = vpop.permute.xlu0 %5379 }
 0x2bc   : > { %v5567_v5 = vshll.u32 %v15026_v50, 16  ;;  %v4568_v34 = vshrl.u32 %v15113_v56, 16  ;;  %v4261_v22 = vld [vmem:[#allocation2 + $0x84] sm:$0xe]  ;;  %v4287_v4 = vld [vmem:[#allocation2 + $0x90] sm:$0xf]  ;;  %v15150_v23 = vcombine.low %v4219_v36, %v15018_v27 }
 0x2bd   : > { %5659 = vrot.lane.b32.xlu0 %v5558_v13, %s13158_s12  ;;  %v4575_v13 = vshll.u32 %v12774_v19, 16  ;;  %v5565_v51 = vor.u32 %v5564_v6, %v5560_v33  ;;  %v15152_v61 = vld [vmem:[#allocation2 + $0x8c] ss:$0 sps:$4 sm:$0x11]   ;;  %v11539_v50 = vcombine.low %v4287_v4, %v15016_v40  ;;  %v4159_v12 = vld [vmem:[#allocation2 + $0x78] sm:$0xf] }
 0x2be   : > { %4667 = vrot.lane.b32.xlu1 %v4566_v49, %s13157_s11  ;;  %17814 = vst [vmem:[#allocation12_spill] sm:$0xff] %v15150_v23  ;;  %17815 = vst [vmem:[#allocation14_spill] sm:$0xff] %v15152_v61  ;;  %v11523_v49 = vcombine.low %v4261_v22, %v15139_v9  ;;  %v15163_v27 = vcombine.low %v4159_v12, %v15145_v58  ;;  %v5569_v6 = vrot.slane %v5567_v5, 1 }
 0x2bf   : > { %v5574_v33 = vshll.u32 %v11539_v50, 16  ;;  %v15175_v5 = vpop.permute.xlu0 %5269 }
 0x2c0   : > { %17816 = vst [vmem:[#allocation15_spill] sm:$0xff] %v15163_v27  ;;  %v5570_v40 = vsel %vm1367_vm10, %v5565_v51, %v5569_v6  ;;  %v5241_v36 = vrot.slane %v11523_v49, 1  ;;  %v4221_v49 = vld [vmem:[#allocation2 + $0x78] sm:$0xf] }
 0x2c1   : > { %5277 = vrot.lane.b32.xlu0 %v5240_v59, %s13157_s11  ;;  %12455 = vmatmul.mubr.msk.bf16.gmra.mrb[96].mxu0 %vm2681_vm11, %v5764_v60  ;;  %v4573_v59 = vor.u32 %v4572_v14, %v4568_v34  ;;  %v11474_v60 = vcombine.low %v4196_v38, %v15083_v25  ;;  %v4759_v25 = vrot.slane %v12774_v19, 1  ;;  %v4582_v38 = vshll.u32 %v15163_v27, 16  ;;  %v15173_v34 = vpop.permute.xlu1 %4899  ;;  %v4197_v6 = vld [vmem:[#allocation2 + $0x78] sm:$0xe] }
 0x2c2   : > { %4795 = vrot.lane.b32.xlu1 %v4757_v3, %s13156_s30  ;;  %12458 = vmatprep.mubr.msk.bf16.mxu0 %vm2681_vm11, %v5767_v44  ;;  %v4577_v3 = vrot.slane %v4575_v13, 1  ;;  %v5242_v44 = vrot.slane %v15152_v61, 1  ;;  %v12781_v13 = vld [vmem:[#allocation2 + $0x80] ss:$0 sps:$4 sm:$0x11]   ;;  %v5576_v4 = vrot.slane %v5574_v33, 1  ;;  %v11475_v42 = vcombine.low %v4197_v6, %v15145_v58 }
 0x2c3   : > { %v4758_v14 = vrot.slane %v11474_v60, 1  ;;  %v4584_v12 = vrot.slane %v4582_v38, 1  ;;  %v5572_v19 = vshrl.u32 %v11539_v50, 16  ;;  %v5579_v60 = vshll.u32 %v15034_v18, 16  ;;  %v4289_v33 = vld [vmem:[#allocation2 + $0x9c] sm:$0xf]  ;;  %v15196_v1 = vpop.permute.xlu0 %5651 }
 0x2c4   : > { %v5243_v22 = vsel %vm1640_vm7, %v5241_v36, %v5242_v44  ;;  %v4587_v36 = vshll.u32 %v12781_v13, 16  ;;  %v4262_v44 = vld [vmem:[#allocation2 + $0x90] sm:$0xe]  ;;  %v4762_v58 = vrot.slane %v12781_v13, 1 }
 0x2c5   : > { %5389 = vrot.lane.b32.xlu0 %v11538_v8, %s13156_s30  ;;  %v4578_v8 = vsel %vm1367_vm10, %v4573_v59, %v4577_v3  ;;  %v4760_v51 = vsel %vm1640_vm7, %v4758_v14, %v4759_v25  ;;  %v15180_v59 = vld [vmem:[#allocation2 + $0x94] sm:$0xf]  ;;  %v15184_v3 = vld [vmem:[#allocation2 + $0x88] sm:$0xf]  ;;  %v5577_v14 = vor.u32 %v5576_v4, %v5572_v19  ;;  %v15194_v18 = vpop.permute.xlu1 %4789  ;;  %v5581_v4 = vrot.slane %v5579_v60, 1 }
 0x2c6   : > { %4907 = vrot.lane.b32.xlu1 %v15150_v23, %s13158_s12  ;;  %v15190_v25 = vld [vmem:[#allocation2 + $0x98] ss:$0 sps:$4 sm:$0x11]   ;;  %v11524_v38 = vcombine.low %v4262_v44, %v15180_v59  ;;  %17819 = vst [vmem:[#allocation18_spill] sm:$0xff] %v15194_v18 }
 0x2c7   : > { %17818 = vst [vmem:[#allocation17_spill] sm:$0xff] %v15190_v25  ;;  %v5245_v44 = vrot.slane %v15190_v25, 1  ;;  %v15213_v60 = vpop.permute.xlu0 %5381  ;;  %v4163_v25 = vld [vmem:[#allocation2 + $0x90] sm:$0xf] }
 0x2c8   : > { %v5244_v19 = vrot.slane %v11524_v38, 1 }
 0x2c9   : > { %5661 = vrot.lane.b32.xlu0 %v5570_v40, %s13158_s12  ;;  %v4580_v40 = vshrl.u32 %v15163_v27, 16 }
 0x2ca   : > { %4669 = vrot.lane.b32.xlu1 %v4578_v8, %s13157_s11  ;;  %v15188_v8 = vcombine.low %v4221_v49, %v15081_v45  ;;  %v4589_v49 = vrot.slane %v4587_v36, 1  ;;  %v12790_v36 = vld [vmem:[#allocation2 + $0x8c] ss:$0 sps:$4 sm:$0x11]  }
 0x2cb   : > { %v4585_v47 = vor.u32 %v4584_v12, %v4580_v40  ;;  %v4761_v12 = vrot.slane %v11475_v42, 1  ;;  %v15211_v40 = vpop.permute.xlu1 %4661  ;;  %v15218_v42 = vld [vmem:[#allocation2 + $0xa0] sm:$0xf]  ;;  %v15234_v56 = vpop.permute.xlu0 %5271 }
 0x2cc   : > { %17817 = vst [vmem:[#allocation16_spill] sm:$0xff] %v15188_v8 }
 0x2cd   : > { %5279 = vrot.lane.b32.xlu0 %v5243_v22, %s13157_s11  ;;  %v11540_v22 = vcombine.low %v4289_v33, %v15054_v28  ;;  %v5582_v28 = vsel %vm1367_vm10, %v5577_v14, %v5581_v4  ;;  %v5246_v14 = vsel %vm1640_vm7, %v5244_v19, %v5245_v44  ;;  %v4223_v4 = vld [vmem:[#allocation2 + $0x84] sm:$0xf]  ;;  %v4599_v19 = vshll.u32 %v12790_v36, 16  ;;  %v4263_v44 = vld [vmem:[#allocation2 + $0x9c] sm:$0xe] }
 0x2ce   : > { %4797 = vrot.lane.b32.xlu1 %v4760_v51, %s13156_s30  ;;  %v4161_v51 = vld [vmem:[#allocation2 + $0x84] sm:$0xf] }
 0x2cf   : > { %v15201_v45 = vcombine.low %v4161_v51, %v15184_v3  ;;  %v5586_v33 = vshll.u32 %v11540_v22, 16  ;;  %v4763_v51 = vsel %vm1640_vm7, %v4761_v12, %v4762_v58  ;;  %v5584_v13 = vshrl.u32 %v11540_v22, 16  ;;  %v15228_v58 = vld [vmem:[#allocation2 + $0xa4] ss:$0 sps:$4 sm:$0x11]  }
 0x2d0   : > { %17822 = vst [vmem:[#allocation21_spill] sm:$0xff] %v15228_v58 }
 0x2d1   : > { %5391 = vrot.lane.b32.xlu0 %v11539_v50, %s13156_s30  ;;  %17820 = vst [vmem:[#allocation19_spill] sm:$0xff] %v15201_v45  ;;  %v4590_v50 = vsel %vm1367_vm10, %v4585_v47, %v4589_v49  ;;  %v4594_v6 = vshll.u32 %v15201_v45, 16  ;;  %v5588_v38 = vrot.slane %v5586_v33, 1  ;;  %v5591_v49 = vshll.u32 %v15064_v10, 16  ;;  %v4291_v33 = vld [vmem:[#allocation2 + $0xa8] sm:$0xf]  ;;  %v15232_v10 = vpop.permute.xlu1 %4901 }
 0x2d2   : > { %4909 = vrot.lane.b32.xlu1 %v15188_v8, %s13158_s12  ;;  %v4592_v27 = vshrl.u32 %v15201_v45, 16  ;;  %17823 = vst [vmem:[#allocation22_spill] sm:$0xff] %v15232_v10 }
 0x2d3   : > { %v4596_v47 = vrot.slane %v4594_v6, 1  ;;  %v5589_v12 = vor.u32 %v5588_v38, %v5584_v13  ;;  %v11525_v6 = vcombine.low %v4263_v44, %v15218_v42  ;;  %v5593_v38 = vrot.slane %v5591_v49, 1  ;;  %v15251_v49 = vpop.permute.xlu0 %5653 }
 0x2d4   : > { %v5248_v44 = vrot.slane %v15228_v58, 1 }
 0x2d5   : > { %5663 = vrot.lane.b32.xlu0 %v5582_v28, %s13158_s12  ;;  %v4198_v28 = vld [vmem:[#allocation2 + $0x84] sm:$0xe]  ;;  %v4597_v45 = vor.u32 %v4596_v47, %v4592_v27  ;;  %v5247_v13 = vrot.slane %v11525_v6, 1  ;;  %v15249_v47 = vpop.permute.xlu1 %4791 }
 0x2d6   : > { %4671 = vrot.lane.b32.xlu1 %v4590_v50, %s13157_s11  ;;  %v15222_v50 = vld [vmem:[#allocation2 + $0x94] sm:$0xf]  ;;  %v11476_v61 = vcombine.low %v4198_v28, %v15184_v3  ;;  %v4765_v3 = vrot.slane %v12790_v36, 1  ;;  %17825 = vst [vmem:[#allocation24_spill] sm:$0xff] %v15249_v47 }
 0x2d7   : > { %v12803_v28 = vld [vmem:[#allocation2 + $0x98] ss:$0 sps:$4 sm:$0x11]  }
 0x2d9   : > { %5281 = vrot.lane.b32.xlu0 %v5246_v14, %s13157_s11  ;;  %v15226_v14 = vcombine.low %v4223_v4, %v15139_v9  ;;  %v15239_v9 = vcombine.low %v4163_v25, %v15222_v50  ;;  %v4601_v4 = vrot.slane %v4599_v19, 1  ;;  %v5249_v19 = vsel %vm1640_vm7, %v5247_v13, %v5248_v44  ;;  %v4264_v44 = vld [vmem:[#allocation2 + $0xa8] sm:$0xe] }
 0x2da   : > { %4799 = vrot.lane.b32.xlu1 %v4763_v51, %s13156_s30  ;;  %v11541_v51 = vcombine.low %v4291_v33, %v15056_v20  ;;  %v5594_v20 = vsel %vm1367_vm10, %v5589_v12, %v5593_v38  ;;  %v4225_v38 = vld [vmem:[#allocation2 + $0x90] sm:$0xf]  ;;  %v4611_v13 = vshll.u32 %v12803_v28, 16 }
 0x2db   : > { %17821 = vst [vmem:[#allocation20_spill] sm:$0xff] %v15226_v14  ;;  %17824 = vst [vmem:[#allocation23_spill] sm:$0xff] %v15239_v9  ;;  %v4602_v27 = vsel %vm1367_vm10, %v4597_v45, %v4601_v4  ;;  %v4606_v25 = vshll.u32 %v15239_v9, 16  ;;  %v5603_v4 = vshll.u32 %v15072_v0, 16  ;;  %v4604_v58 = vshrl.u32 %v15239_v9, 16  ;;  %v15270_v0 = vpop.permute.xlu1 %4663 }
 0x2dc   : > { %v5598_v33 = vshll.u32 %v11541_v51, 16  ;;  %v5596_v36 = vshrl.u32 %v11541_v51, 16  ;;  %17828 = vst [vmem:[#allocation27_spill] sm:$0xff] %v15270_v0  ;;  %v4167_v0 = vld [vmem:[#allocation2 + $0xa8] sm:$0xf] }
 0x2dd   : > { %5393 = vrot.lane.b32.xlu0 %v11540_v22, %s13156_s30  ;;  %v4764_v22 = vrot.slane %v11476_v61, 1  ;;  %v4608_v45 = vrot.slane %v4606_v25, 1  ;;  %v15256_v61 = vld [vmem:[#allocation2 + $0xac] sm:$0xf] }
 0x2de   : > { %4911 = vrot.lane.b32.xlu1 %v15226_v14, %s13158_s12  ;;  %v5600_v12 = vrot.slane %v5598_v33, 1  ;;  %v4293_v33 = vld [vmem:[#allocation2 + $0xb4] sm:$0xf]  ;;  %v11526_v25 = vcombine.low %v4264_v44, %v15256_v61  ;;  %v15272_v14 = vpop.permute.xlu0 %5383 }
 0x2df   : > { %v4766_v6 = vsel %vm1640_vm7, %v4764_v22, %v4765_v3  ;;  %v15266_v3 = vld [vmem:[#allocation2 + $0xb0] ss:$0 sps:$4 sm:$0x11]   ;;  %17829 = vst [vmem:[#allocation28_spill] sm:$0xff] %v15272_v14  ;;  %v4609_v9 = vor.u32 %v4608_v45, %v4604_v58  ;;  %v4768_v45 = vrot.slane %v12803_v28, 1  ;;  %v4972_v28 = vshrl.u32 %v14864_v30, 16 }
 0x2e0   : > { %v5601_v22 = vor.u32 %v5600_v12, %v5596_v36  ;;  %17827 = vst [vmem:[#allocation26_spill] sm:$0xff] %v15266_v3  ;;  %v5605_v12 = vrot.slane %v5603_v4, 1  ;;  %v5250_v44 = vrot.slane %v11526_v25, 1  ;;  %v4996_v14 = vshrl.u32 %v14948_v35, 16 }
 0x2e1   : > { %5665 = vrot.lane.b32.xlu0 %v5594_v20, %s13158_s12  ;;  %v4199_v20 = vld [vmem:[#allocation2 + $0x90] sm:$0xe] }
 0x2e2   : > { %4673 = vrot.lane.b32.xlu1 %v4602_v27, %s13157_s11  ;;  %v15260_v27 = vld [vmem:[#allocation2 + $0xa0] sm:$0xf]  ;;  %v11477_v7 = vcombine.low %v4199_v20, %v15222_v50  ;;  %v5606_v36 = vsel %vm1367_vm10, %v5601_v22, %v5605_v12  ;;  %v15293_v12 = vld [vmem:[#allocation2 + $0xb8] sm:$0xf] }
 0x2e5   : > { %5283 = vrot.lane.b32.xlu0 %v5249_v19, %s13157_s11  ;;  %v15264_v19 = vcombine.low %v4225_v38, %v15180_v59  ;;  %v15277_v59 = vcombine.low %v4165_v11, %v15260_v27  ;;  %v4613_v38 = vrot.slane %v4611_v13, 1  ;;  %v15290_v13 = vld [vmem:[#allocation2 + $0xa4] ss:$0 sps:$4 sm:$0x11]  }
 0x2e6   : > { %4801 = vrot.lane.b32.xlu1 %v4766_v6, %s13156_s30  ;;  %v11542_v6 = vcombine.low %v4293_v33, %v15090_v41  ;;  %v4974_v41 = vshll.u32 %v14864_v30, 16  ;;  %v5251_v33 = vrot.slane %v15266_v3, 1  ;;  %v4200_v30 = vld [vmem:[#allocation2 + $0x9c] sm:$0xe] }
 0x2e7   : > { %17826 = vst [vmem:[#allocation25_spill] sm:$0xff] %v15264_v19  ;;  %17830 = vst [vmem:[#allocation29_spill] sm:$0xff] %v15277_v59  ;;  %v4614_v50 = vsel %vm1367_vm10, %v4609_v9, %v4613_v38  ;;  %v4618_v4 = vshll.u32 %v15277_v59, 16  ;;  %v4227_v38 = vld [vmem:[#allocation2 + $0x9c] sm:$0xf] }
 0x2e8   : > { %v5610_v8 = vshll.u32 %v11542_v6, 16  ;;  %v4976_v20 = vrot.slane %v4974_v41, 1  ;;  %v5252_v22 = vsel %vm1640_vm7, %v5250_v44, %v5251_v33  ;;  %v5615_v44 = vshll.u32 %v15107_v48, 16  ;;  %v15302_v33 = vld [vmem:[#allocation2 + $0xac] sm:$0xf] }
 0x2e9   : > { %5395 = vrot.lane.b32.xlu0 %v11541_v51, %s13156_s30  ;;  %v4767_v51 = vrot.slane %v11477_v7, 1  ;;  %v4620_v3 = vrot.slane %v4618_v4, 1  ;;  %v4295_v4 = vld [vmem:[#allocation2 + $0xc0] sm:$0xf]  ;;  %v15316_v23 = vcombine.low %v4167_v0, %v15302_v33  ;;  %v5254_v0 = vrot.slane %v15310_v29, 1 }
 0x2ea   : > { %4913 = vrot.lane.b32.xlu1 %v15264_v19, %s13158_s12  ;;  %v5612_v25 = vrot.slane %v5610_v8, 1  ;;  %v4265_v8 = vld [vmem:[#allocation2 + $0xb4] sm:$0xe]  ;;  %v11543_v48 = vcombine.low %v4295_v4, %v15094_v63 }
 0x2eb   : > { %v4769_v9 = vsel %vm1640_vm7, %v4767_v51, %v4768_v45  ;;  %v4616_v51 = vshrl.u32 %v15277_v59, 16  ;;  %v4623_v45 = vshll.u32 %v15290_v13, 16  ;;  %v11478_v59 = vcombine.low %v4200_v30, %v15260_v27  ;;  %17833 = vst [vmem:[#allocation32_spill] sm:$0xff] %v15316_v23  ;;  %v15337_v30 = vld [vmem:[#allocation2 + $0xd0] sm:$0xf] }
 0x2ed   : > { %5667 = vrot.lane.b32.xlu0 %v5606_v36, %s13158_s12  ;;  %v5372_v58 = vpop.permute.xlu0 %5371  ;;  %v13032_v36 = vld [vmem:[#allocation2 + $0x14] ss:$0 sps:$4 sm:$0x11]  }
 0x2ee   : > { %v15286_v11 = vpop.permute.xlu1 %4893  ;;  %4675 = vrot.lane.b32.xlu1 %v4614_v50, %s13157_s11  ;;  %v4979_v7 = vshll.u32 %v13032_v36, 16  ;;  %v5608_v50 = vshrl.u32 %v11542_v6, 16  ;;  %v11527_v36 = vcombine.low %v4265_v8, %v15293_v12  ;;  %v5622_v8 = vshll.u32 %v11543_v48, 16 }
 0x2f0   : > { %v5613_v47 = vor.u32 %v5612_v25, %v5608_v50  ;;  %v5772_v25 = vsel %vm2681_vm11, %v14428_v15, %v15131_v46  ;;  %v4625_v50 = vrot.slane %v4623_v45, 1  ;;  %v4771_v15 = vrot.slane %v15290_v13, 1 }
 0x2f1   : > { %5285 = vrot.lane.b32.xlu0 %v5252_v22, %s13157_s11  ;;  %v15299_v41 = vpop.permute.xlu0 %5261  ;;  %v4977_v22 = vor.u32 %v4976_v20, %v4972_v28  ;;  %v4981_v20 = vrot.slane %v4979_v7, 1  ;;  %v4621_v28 = vor.u32 %v4620_v3, %v4616_v51  ;;  %v4770_v51 = vrot.slane %v11478_v59, 1 }
 0x2f2   : > { %4803 = vrot.lane.b32.xlu1 %v4769_v9, %s13156_s30  ;;  %v4892_v19 = vpop.permute.xlu1 %4891  ;;  %v15308_v9 = vcombine.low %v4227_v38, %v15218_v42  ;;  %v5617_v38 = vrot.slane %v5615_v44, 1  ;;  %v4630_v46 = vshll.u32 %v15316_v23, 16  ;;  %v5804_v4 = vsel %vm2714_vm12, %v5772_v25, %v15156_v31  ;;  %v4229_v31 = vld [vmem:[#allocation2 + $0xa8] sm:$0xf] }
 0x2f3   : > { %v4982_v63 = vsel %vm1367_vm10, %v4977_v22, %v4981_v20  ;;  %v4626_v44 = vsel %vm1367_vm10, %v4621_v28, %v4625_v50  ;;  %v15334_v22 = vld [vmem:[#allocation2 + $0xb0] ss:$0 sps:$4 sm:$0x11]   ;;  %v5624_v28 = vrot.slane %v5622_v8, 1  ;;  %v5620_v25 = vshrl.u32 %v11543_v48, 16 }
 0x2f4   : > { %17831 = vst [vmem:[#allocation30_spill] sm:$0xff] %v15308_v9  ;;  %v5618_v27 = vsel %vm1367_vm10, %v5613_v47, %v5617_v38  ;;  %v4297_v47 = vld [vmem:[#allocation2 + $0xcc] sm:$0xf]  ;;  %v4632_v38 = vrot.slane %v4630_v46, 1  ;;  %v5627_v50 = vshll.u32 %v15119_v26, 16 }
 0x2f5   : > { %5397 = vrot.lane.b32.xlu0 %v11542_v6, %s13156_s30  ;;  %v5260_v42 = vpop.permute.xlu0 %5259  ;;  %v5253_v6 = vrot.slane %v11527_v36, 1  ;;  %v4201_v8 = vld [vmem:[#allocation2 + $0xa8] sm:$0xe]  ;;  %v5625_v46 = vor.u32 %v5624_v28, %v5620_v25  ;;  %v15366_v26 = vld [vmem:[#allocation2 + $0xc8] ss:$0 sps:$4 sm:$0x11]  }
 0x2f6   : > { %4915 = vrot.lane.b32.xlu1 %v15308_v9, %s13158_s12  ;;  %v5885_v3 = vsel %vm2681_vm11, %v4982_v63, %v5260_v42  ;;  %v5836_v42 = vsel %vm2747_vm13, %v5804_v4, %v4892_v19  ;;  %v15348_v63 = vld [vmem:[#allocation2 + $0xc4] sm:$0xf]  ;;  %17835 = vst [vmem:[#allocation34_spill] sm:$0xff] %v15366_v26  ;;  %v11479_v4 = vcombine.low %v4201_v8, %v15302_v33  ;;  %v4774_v33 = vrot.slane %v15334_v22, 1 }
 0x2f7   : > { %v15325_v7 = vpop.permute.xlu1 %4783  ;;  %v5932_v36 = vsel %vm2714_vm12, %v5885_v3, %v5372_v58  ;;  %v5255_v59 = vsel %vm1640_vm7, %v5253_v6, %v5254_v0  ;;  %v4772_v58 = vsel %vm1640_vm7, %v4770_v51, %v4771_v15  ;;  %v15353_v6 = vcombine.low %v4297_v47, %v15337_v30  ;;  %v15355_v3 = vld [vmem:[#allocation2 + $0xb8] sm:$0xf]  ;;  %v13034_v9 = vld [vmem:[#allocation2 + $0x2c] ss:$0 sps:$4 sm:$0x11]  }
 0x2f8   : > { %v4635_v0 = vshll.u32 %v15334_v22, 16  ;;  %v15364_v15 = vcombine.low %v4229_v31, %v15256_v61  ;;  %v15376_v61 = vld [vmem:[#allocation2 + $0xd4] ss:$0 sps:$4 sm:$0x11]   ;;  %v5003_v10 = vshll.u32 %v13034_v9, 16 }
 0x2f9   : > { %5669 = vrot.lane.b32.xlu0 %v5618_v27, %s13158_s12  ;;  %v4628_v27 = vshrl.u32 %v15316_v23, 16  ;;  %v5634_v28 = vshll.u32 %v15353_v6, 16 }
 0x2fa   : > { %4677 = vrot.lane.b32.xlu1 %v4626_v44, %s13157_s11  ;;  %v4266_v44 = vld [vmem:[#allocation2 + $0xc0] sm:$0xe]  ;;  %17834 = vst [vmem:[#allocation33_spill] sm:$0xff] %v15364_v15  ;;  %v4637_v31 = vrot.slane %v4635_v0, 1  ;;  %v5632_v0 = vshrl.u32 %v15353_v6, 16 }
 0x2fb   : > { %v5644_v45 = vpop.permute.xlu0 %5643  ;;  %v15341_v20 = vpop.permute.xlu1 %4781  ;;  %v4633_v47 = vor.u32 %v4632_v38, %v4628_v27  ;;  %v5257_v27 = vrot.slane %v15366_v26, 1  ;;  %v5636_v23 = vrot.slane %v5634_v28, 1  ;;  %v4984_v26 = vshrl.u32 %v14837_v53, 16 }
 0x2fc   : > { %v5964_v13 = vsel %vm2747_vm13, %v5932_v36, %v5644_v45  ;;  %v11528_v45 = vcombine.low %v4266_v44, %v15348_v63  ;;  %v4169_v36 = vld [vmem:[#allocation2 + $0xb4] sm:$0xf]  ;;  %v4998_v44 = vshll.u32 %v14948_v35, 16 }
 0x2fd   : > { %5287 = vrot.lane.b32.xlu0 %v5255_v59, %s13157_s11  ;;  %6235 = vmatprep.mubr.bf16.mxu1 %v5964_v13  ;;  %v15372_v59 = vcombine.low %v4169_v36, %v15355_v3  ;;  %v5629_v13 = vrot.slane %v5627_v50, 1  ;;  %v4638_v8 = vsel %vm1367_vm10, %v4633_v47, %v4637_v31  ;;  %v4773_v50 = vrot.slane %v11479_v4, 1 }
 0x2fe   : > { %4805 = vrot.lane.b32.xlu1 %v4772_v58, %s13156_s30  ;;  %6236 = vmatmul.mubr.bf16.vlgmr.msra.gmra.mrb[24].mxu1 %v5836_v42  ;;  %v4986_v42 = vshll.u32 %v14837_v53, 16  ;;  %v5256_v25 = vrot.slane %v11528_v45, 1  ;;  %v15394_v45 = vld [vmem:[#allocation2 + $0xbc] ss:$0 sps:$4 sm:$0x11]   ;;  %v5000_v28 = vrot.slane %v4998_v44, 1 }
 0x2ff   : > { %v15357_v19 = vpop.permute.xlu0 %5375  ;;  %v15361_v51 = vpop.permute.xlu1 %4655  ;;  %v5630_v38 = vsel %vm1367_vm10, %v5625_v46, %v5629_v13  ;;  %v4642_v36 = vshll.u32 %v15372_v59, 16  ;;  %v5639_v46 = vshll.u32 %v15376_v61, 16  ;;  %v13033_v13 = vld [vmem:[#allocation2 + $0x20] ss:$0 sps:$4 sm:$0x11]   ;;  %v4640_v53 = vshrl.u32 %v15372_v59, 16 }
 0x300   : > { %v4991_v47 = vshll.u32 %v13033_v13, 16  ;;  %v4988_v31 = vrot.slane %v4986_v42, 1  ;;  %v5258_v4 = vsel %vm1640_vm7, %v5256_v25, %v5257_v27  ;;  %v5637_v13 = vor.u32 %v5636_v23, %v5632_v0  ;;  %v4231_v25 = vld [vmem:[#allocation2 + $0xb4] sm:$0xf] }
 0x301   : > { %5399 = vrot.lane.b32.xlu0 %v11543_v48, %s13156_s30  ;;  %v4644_v29 = vrot.slane %v4642_v36, 1  ;;  %v5641_v42 = vrot.slane %v5639_v46, 1  ;;  %v15410_v44 = vcombine.low %v4231_v25, %v15293_v12  ;;  %v4202_v36 = vld [vmem:[#allocation2 + $0xb4] sm:$0xe]  ;;  %v5005_v46 = vrot.slane %v5003_v10, 1 }
 0x302   : > { %4917 = vrot.lane.b32.xlu1 %v15364_v15, %s13158_s12  ;;  %v5010_v15 = vshll.u32 %v14927_v39, 16  ;;  %v4989_v27 = vor.u32 %v4988_v31, %v4984_v26  ;;  %v11480_v35 = vcombine.low %v4202_v36, %v15355_v3  ;;  %v4993_v9 = vrot.slane %v4991_v47, 1  ;;  %v4330_v31 = vld [vmem:[#allocation2 + $0xcc] sm:$0xe] }
 0x303   : > { %v15380_v58 = vpop.permute.xlu0 %5373  ;;  %v4645_v23 = vor.u32 %v4644_v29, %v4640_v53  ;;  %v5642_v26 = vsel %vm1367_vm10, %v5637_v13, %v5641_v42  ;;  %v5769_v29 = vrot.slane %v15376_v61, 1  ;;  %v5008_v3 = vshrl.u32 %v14927_v39, 16  ;;  %v13035_v10 = vld [vmem:[#allocation2 + $0x38] ss:$0 sps:$4 sm:$0x11]  }
 0x304   : > { %v4654_v48 = vpop.permute.xlu1 %4653  ;;  %v5012_v0 = vrot.slane %v5010_v15, 1  ;;  %v5015_v15 = vshll.u32 %v13035_v10, 16  ;;  %v4777_v13 = vrot.slane %v15394_v45, 1 }
 0x305   : > { %5671 = vrot.lane.b32.xlu0 %v5630_v38, %s13158_s12  ;;  %v5774_v12 = vsel %vm2681_vm11, %v14890_v43, %v4654_v48  ;;  %v4776_v48 = vrot.slane %v11480_v35, 1 }
 0x306   : > { %4679 = vrot.lane.b32.xlu1 %v4638_v8, %s13157_s11  ;;  %v4775_v8 = vsel %vm1640_vm7, %v4773_v50, %v4774_v33  ;;  %v4647_v33 = vshll.u32 %v15394_v45, 16  ;;  %v5806_v39 = vsel %vm2714_vm12, %v5774_v12, %v15341_v20  ;;  %v5013_v53 = vor.u32 %v5012_v0, %v5008_v3  ;;  %v4233_v0 = vld [vmem:[#allocation2 + $0xc0] sm:$0xf] }
 0x307   : > { %v15392_v22 = vpop.permute.xlu0 %5265  ;;  %v5020_v3 = vshrl.u32 %v14525_v52, 16 }
 0x308   : > { %v15396_v38 = vpop.permute.xlu1 %4897 }
 0x309   : > { %5289 = vrot.lane.b32.xlu0 %v5258_v4, %s13157_s11  ;;  %v5001_v4 = vor.u32 %v5000_v28, %v4996_v14  ;;  %v4649_v14 = vrot.slane %v4647_v33, 1  ;;  %v11576_v28 = vcombine.low %v4330_v31, %v15337_v30 }
 0x30a   : > { %4807 = vrot.lane.b32.xlu1 %v4775_v8, %s13156_s30 }
 0x30b   : > { %v5264_v18 = vpop.permute.xlu0 %5263  ;;  %v5006_v42 = vsel %vm1367_vm10, %v5001_v4, %v5005_v46  ;;  %v4650_v43 = vsel %vm1367_vm10, %v4645_v23, %v4649_v14  ;;  %v5768_v30 = vrot.slane %v11576_v28, 1  ;;  %v5839_v23 = vsel %vm2747_vm13, %v5806_v39, %v15286_v11  ;;  %v13037_v39 = vld [vmem:[#allocation2 + $0x50] ss:$0 sps:$4 sm:$0x11]  }
 0x30c   : > { %v15407_v50 = vpop.permute.xlu1 %4895  ;;  %v5891_v25 = vsel %vm2681_vm11, %v5006_v42, %v5264_v18  ;;  %v4778_v18 = vsel %vm1640_vm7, %v4776_v48, %v4777_v13  ;;  %v15454_v11 = vcombine.low %v4233_v0, %v15348_v63  ;;  %v5022_v63 = vshll.u32 %v14525_v52, 16 }
 0x30d   : > { %5401 = vrot.lane.b32.xlu0 %v15353_v6, %s13156_s30  ;;  %v4994_v6 = vsel %vm1367_vm10, %v4989_v27, %v4993_v9  ;;  %v5770_v27 = vsel %vm1640_vm7, %v5768_v30, %v5769_v29  ;;  %v5936_v20 = vsel %vm2714_vm12, %v5891_v25, %v15357_v19  ;;  %v5776_v19 = vsel %vm2681_vm11, %v14876_v62, %v15361_v51  ;;  %v13036_v29 = vld [vmem:[#allocation2 + $0x44] ss:$0 sps:$4 sm:$0x11]  }
 0x30e   : > { %4919 = vrot.lane.b32.xlu1 %v15410_v44, %s13158_s12  ;;  %v5888_v61 = vsel %vm2681_vm11, %v4994_v6, %v15299_v41  ;;  %12459 = vmatmul.mubr.msk.bf16.gmra.mrb[100].mxu0 %vm2681_vm11, %v5770_v27  ;;  %v5017_v41 = vrot.slane %v5015_v15, 1  ;;  %v5027_v6 = vshll.u32 %v13036_v29, 16  ;;  %v5044_v0 = vshrl.u32 %v15014_v2, 16  ;;  %v17837_v29 = vld [vmem:[#allocation28_spill] sm:$0xff] }
 0x30f   : > { %v5648_v8 = vpop.permute.xlu0 %5647  ;;  %v5934_v45 = vsel %vm2714_vm12, %v5888_v61, %v15380_v58 }
 0x310   : > { %v15424_v47 = vpop.permute.xlu1 %4787  ;;  %v5970_v58 = vsel %vm2747_vm13, %v5936_v20, %v5648_v8  ;;  %v5018_v35 = vsel %vm1367_vm10, %v5013_v53, %v5017_v41  ;;  %v5029_v13 = vrot.slane %v5027_v6, 1  ;;  %v5032_v53 = vshrl.u32 %v14582_v54, 16 }
 0x311   : > { %5673 = vrot.lane.b32.xlu0 %v5642_v26, %s13158_s12  ;;  %v5894_v46 = vsel %vm2681_vm11, %v5018_v35, %v15392_v22  ;;  %v5808_v22 = vsel %vm2714_vm12, %v5776_v19, %v15325_v7  ;;  %v13038_v35 = vld [vmem:[#allocation2 + $0x5c] ss:$0 sps:$4 sm:$0x11]  }
 0x312   : > { %4681 = vrot.lane.b32.xlu1 %v4650_v43, %s13157_s11  ;;  %v5938_v12 = vsel %vm2714_vm12, %v5894_v46, %v15075_v55  ;;  %v5842_v14 = vsel %vm2747_vm13, %v5808_v22, %v15407_v50  ;;  %v5024_v55 = vrot.slane %v5022_v63, 1  ;;  %v5034_v50 = vshll.u32 %v14582_v54, 16 }
 0x313   : > { %v5646_v33 = vpop.permute.xlu0 %5645  ;;  %v5973_v62 = vsel %vm2747_vm13, %v5938_v12, %v15133_v32 }
 0x314   : > { %v4786_v36 = vpop.permute.xlu1 %4785  ;;  %v5967_v4 = vsel %vm2747_vm13, %v5934_v45, %v5646_v33  ;;  %v5025_v15 = vor.u32 %v5024_v55, %v5020_v3  ;;  %v5036_v48 = vrot.slane %v5034_v50, 1  ;;  %v5039_v45 = vshll.u32 %v13037_v39, 16  ;;  %v17838_v50 = vld [vmem:[#allocation22_spill] sm:$0xff] }
 0x315   : > { %6243 = vmatprep.mubr.bf16.mxu1 %v5967_v4  ;;  %v5056_v3 = vshrl.u32 %v15100_v57, 16 }
 0x316   : > { %4809 = vrot.lane.b32.xlu1 %v4778_v18, %s13156_s30  ;;  %6244 = vmatmul.mubr.bf16.gmra.mrb[28].mxu1 %v5839_v23  ;;  %v5030_v43 = vsel %vm1367_vm10, %v5025_v15, %v5029_v13  ;;  %v5041_v41 = vrot.slane %v5039_v45, 1 }
 0x317   : > { %v15449_v9 = vpop.permute.xlu0 %5655  ;;  %6251 = vmatprep.mubr.bf16.mxu1 %v5970_v58  ;;  %v5897_v52 = vsel %vm2681_vm11, %v5030_v43, %v15104_v16  ;;  %v5037_v16 = vor.u32 %v5036_v48, %v5032_v53  ;;  %v17839_v48 = vld [vmem:[#allocation12_spill] sm:$0xff] }
 0x318   : > { %v4660_v26 = vpop.permute.xlu1 %4659  ;;  %v5940_v25 = vsel %vm2714_vm12, %v5897_v52, %v15158_v24  ;;  %v17840_v52 = vld [vmem:[#allocation27_spill] sm:$0xff] }
 0x319   : > { %v5780_v24 = vsel %vm2681_vm11, %v14931_v21, %v4660_v26  ;;  %v5042_v23 = vsel %vm1367_vm10, %v5037_v16, %v5041_v41  ;;  %v5051_v21 = vshll.u32 %v13038_v35, 16  ;;  %v13040_v41 = vld [vmem:[#allocation2 + $0x74] ss:$0 sps:$4 sm:$0x11]   ;;  %v17843_v35 = vld [vmem:[#allocation16_spill] sm:$0xff] }
 0x31a   : > { %4921 = vrot.lane.b32.xlu1 %v15454_v11, %s13158_s12 }
 0x31b   : > { %v15461_v31 = vpop.permute.xlu0 %5273 }
 0x31c   : > { %v15465_v8 = vpop.permute.xlu1 %4903 }
 0x31e   : > { %6252 = vmatmul.mubr.bf16.gmra.mrb[32].mxu1 %v5842_v14 }
 0x31f   : > { %v15474_v51 = vpop.permute.xlu0 %5385  ;;  %6259 = vmatprep.mubr.bf16.mxu1 %v5973_v62 }
 0x320   : > { %v15476_v28 = vpop.permute.xlu1 %4665 }
 0x323   : > { %v15479_v7 = vpop.permute.xlu0 %5657 }
 0x324   : > { %v15481_v10 = vpop.permute.xlu1 %4793 }
 0x327   : > { %v15484_v42 = vpop.permute.xlu0 %5275 }
 0x328   : > { %v4658_v32 = vpop.permute.xlu1 %4657 }
 0x329   : > { %v5778_v30 = vsel %vm2681_vm11, %v15004_v17, %v4658_v32  ;;  %v5976_v17 = vsel %vm2747_vm13, %v5940_v25, %v15196_v1  ;;  %v5900_v1 = vsel %vm2681_vm11, %v5042_v23, %v15175_v5  ;;  %v5058_v5 = vshll.u32 %v15100_v57, 16 }
 0x32a   : > { %v5810_v61 = vsel %vm2714_vm12, %v5778_v30, %v4786_v36  ;;  %v5046_v36 = vshll.u32 %v15014_v2, 16  ;;  %v5942_v58 = vsel %vm2714_vm12, %v5900_v1, %v15213_v60  ;;  %v5782_v60 = vsel %vm2681_vm11, %v14551_v37, %v15211_v40  ;;  %v13039_v37 = vld [vmem:[#allocation2 + $0x68] ss:$0 sps:$4 sm:$0x11]  }
 0x32b   : > { %v15495_v33 = vpop.permute.xlu0 %5387  ;;  %v5845_v27 = vsel %vm2747_vm13, %v5810_v61, %v15396_v38  ;;  %v5812_v38 = vsel %vm2714_vm12, %v5780_v24, %v15424_v47  ;;  %v5979_v19 = vsel %vm2747_vm13, %v5942_v58, %v15251_v49  ;;  %v5053_v2 = vrot.slane %v5051_v21, 1  ;;  %v17836_v49 = vld [vmem:[#allocation18_spill] sm:$0xff]  ;;  %v17841_v61 = vld [vmem:[#allocation9_spill] sm:$0xff] }
 0x32c   : > { %6260 = vmatmul.mubr.bf16.gmra.mrb[36].mxu1 %v5845_v27  ;;  %v15499_v4 = vpop.permute.xlu1 %4905  ;;  %v5048_v20 = vrot.slane %v5046_v36, 1  ;;  %v5848_v26 = vsel %vm2747_vm13, %v5812_v38, %v15173_v34  ;;  %v5060_v14 = vrot.slane %v5058_v5, 1  ;;  %v5814_v55 = vsel %vm2714_vm12, %v5782_v60, %v17836_v49 }
 0x32d   : > { %6267 = vmatprep.mubr.bf16.mxu1 %v5976_v17  ;;  %v5063_v40 = vshll.u32 %v13039_v37, 16  ;;  %v5851_v13 = vsel %vm2747_vm13, %v5814_v55, %v17838_v50  ;;  %v5070_v30 = vshll.u32 %v17839_v48, 16  ;;  %v5784_v57 = vsel %vm2681_vm11, %v17841_v61, %v17840_v52 }
 0x32e   : > { %v5049_v12 = vor.u32 %v5048_v20, %v5044_v0  ;;  %v5061_v43 = vor.u32 %v5060_v14, %v5056_v3  ;;  %v5068_v24 = vshrl.u32 %v17839_v48, 16  ;;  %v5075_v38 = vshll.u32 %v13040_v41, 16  ;;  %v13041_v14 = vld [vmem:[#allocation2 + $0x80] ss:$0 sps:$4 sm:$0x11]  }
 0x32f   : > { %v15506_v54 = vpop.permute.xlu0 %5659  ;;  %v5065_v25 = vrot.slane %v5063_v40, 1  ;;  %v5072_v27 = vrot.slane %v5070_v30, 1  ;;  %v5082_v21 = vshll.u32 %v17843_v35, 16  ;;  %v17846_v40 = vld [vmem:[#allocation10_spill] sm:$0xff] }
 0x330   : > { %v15508_v18 = vpop.permute.xlu1 %4667  ;;  %v5054_v34 = vsel %vm1367_vm10, %v5049_v12, %v5053_v2  ;;  %v5077_v0 = vrot.slane %v5075_v38, 1  ;;  %v17847_v30 = vld [vmem:[#allocation14_spill] sm:$0xff] }
 0x331   : > { %v5903_v62 = vsel %vm2681_vm11, %v5054_v34, %v15234_v56  ;;  %v5066_v53 = vsel %vm1367_vm10, %v5061_v43, %v5065_v25  ;;  %v5084_v60 = vrot.slane %v5082_v21, 1  ;;  %v5080_v34 = vshrl.u32 %v17843_v35, 16 }
 0x332   : > { %v5944_v6 = vsel %vm2714_vm12, %v5903_v62, %v17837_v29  ;;  %v5906_v17 = vsel %vm2681_vm11, %v5066_v53, %v15461_v31  ;;  %v5073_v31 = vor.u32 %v5072_v27, %v5068_v24  ;;  %v5087_v62 = vshll.u32 %v13041_v14, 16  ;;  %v17848_v53 = vld [vmem:[#allocation25_spill] sm:$0xff] }
 0x333   : > { %v15518_v46 = vpop.permute.xlu0 %5277  ;;  %v5982_v56 = vsel %vm2747_vm13, %v5944_v6, %v15449_v9  ;;  %v17842_v9 = vld [vmem:[#allocation24_spill] sm:$0xff]  ;;  %v5946_v36 = vsel %vm2714_vm12, %v5906_v17, %v15474_v51  ;;  %v5788_v50 = vsel %vm2681_vm11, %v17846_v40, %v15508_v18  ;;  %v5099_v52 = vshll.u32 %v17847_v30, 16  ;;  %v17853_v14 = vld [vmem:[#allocation21_spill] sm:$0xff] }
 0x334   : > { %6268 = vmatmul.mubr.bf16.gmra.mrb[40].mxu1 %v5848_v26  ;;  %v15522_v47 = vpop.permute.xlu1 %4795  ;;  %v5816_v16 = vsel %vm2714_vm12, %v5784_v57, %v17842_v9  ;;  %v5985_v58 = vsel %vm2747_vm13, %v5946_v36, %v15479_v7  ;;  %v5078_v5 = vsel %vm1367_vm10, %v5073_v31, %v5077_v0  ;;  %v17845_v6 = vld [vmem:[#allocation20_spill] sm:$0xff]  ;;  %v5106_v27 = vshll.u32 %v17848_v53, 16  ;;  %v17849_v9 = vld [vmem:[#allocation11_spill] sm:$0xff] }
 0x335   : > { %6275 = vmatprep.mubr.bf16.mxu1 %v5979_v19  ;;  %v5854_v20 = vsel %vm2747_vm13, %v5816_v16, %v15465_v8  ;;  %v17844_v19 = vld [vmem:[#allocation13_spill] sm:$0xff]  ;;  %v5909_v7 = vsel %vm2681_vm11, %v5078_v5, %v15484_v42  ;;  %v5094_v3 = vshll.u32 %v17845_v6, 16  ;;  %v5089_v42 = vrot.slane %v5087_v62, 1 }
 0x336   : > { %v5786_v12 = vsel %vm2681_vm11, %v17844_v19, %v15476_v28  ;;  %v5948_v2 = vsel %vm2714_vm12, %v5909_v7, %v15495_v33  ;;  %v5092_v48 = vshrl.u32 %v17845_v6, 16  ;;  %v5108_v24 = vrot.slane %v5106_v27, 1  ;;  %v17851_v19 = vld [vmem:[#allocation30_spill] sm:$0xff] }
 0x337   : > { %v15530_v22 = vpop.permute.xlu0 %5389  ;;  %v5818_v8 = vsel %vm2714_vm12, %v5786_v12, %v15481_v10  ;;  %v5988_v29 = vsel %vm2747_vm13, %v5948_v2, %v15506_v54  ;;  %v5085_v10 = vor.u32 %v5084_v60, %v5080_v34  ;;  %v5820_v54 = vsel %vm2714_vm12, %v5788_v50, %v15522_v47  ;;  %v17852_v60 = vld [vmem:[#allocation15_spill] sm:$0xff] }
 0x338   : > { %v15532_v63 = vpop.permute.xlu1 %4907  ;;  %v5857_v28 = vsel %vm2747_vm13, %v5818_v8, %v15499_v4  ;;  %v5101_v47 = vrot.slane %v5099_v52, 1  ;;  %v5104_v38 = vshrl.u32 %v17848_v53, 16  ;;  %v5118_v12 = vshll.u32 %v17851_v19, 16 }
 0x339   : > { %v5860_v18 = vsel %vm2747_vm13, %v5820_v54, %v15532_v63  ;;  %v5123_v62 = vshll.u32 %v17853_v14, 16 }
 0x33a   : > { %v5109_v0 = vor.u32 %v5108_v24, %v5104_v38  ;;  %v5120_v7 = vrot.slane %v5118_v12, 1 }
 0x33b   : > { %v15542_v15 = vpop.permute.xlu0 %5661 }
 0x33c   : > { %6276 = vmatmul.mubr.bf16.gmra.mrb[44].mxu1 %v5851_v13  ;;  %v15546_v32 = vpop.permute.xlu1 %4669  ;;  %v5090_v13 = vsel %vm1367_vm10, %v5085_v10, %v5089_v42  ;;  %v17854_v42 = vld [vmem:[#allocation33_spill] sm:$0xff] }
 0x33d   : > { %6283 = vmatprep.mubr.bf16.mxu1 %v5982_v56  ;;  %v5096_v56 = vrot.slane %v5094_v3, 1  ;;  %v5912_v4 = vsel %vm2681_vm11, %v5090_v13, %v15518_v46  ;;  %v5790_v16 = vsel %vm2681_vm11, %v17849_v9, %v15546_v32 }
 0x33e   : > { %v5950_v43 = vsel %vm2714_vm12, %v5912_v4, %v15530_v22 }
 0x33f   : > { %v15554_v39 = vpop.permute.xlu0 %5279  ;;  %v5991_v25 = vsel %vm2747_vm13, %v5950_v43, %v15542_v15  ;;  %v5097_v46 = vor.u32 %v5096_v56, %v5092_v48 }
 0x340   : > { %v15556_v45 = vpop.permute.xlu1 %4797 }
 0x341   : > { %v5102_v36 = vsel %vm1367_vm10, %v5097_v46, %v5101_v47  ;;  %v5822_v15 = vsel %vm2714_vm12, %v5790_v16, %v15556_v45 }
 0x342   : > { %v5915_v63 = vsel %vm2681_vm11, %v5102_v36, %v15554_v39 }
 0x343   : > { %v5392_v23 = vpop.permute.xlu0 %5391 }
 0x344   : > { %6284 = vmatmul.mubr.bf16.gmra.mrb[48].mxu1 %v5854_v20  ;;  %v4910_v1 = vpop.permute.xlu1 %4909  ;;  %v5952_v41 = vsel %vm2714_vm12, %v5915_v63, %v5392_v23  ;;  %v17850_v20 = vld [vmem:[#allocation17_spill] sm:$0xff] }
 0x345   : > { %6291 = vmatprep.mubr.bf16.mxu1 %v5985_v58  ;;  %v5111_v58 = vshll.u32 %v17850_v20, 16  ;;  %v5863_v35 = vsel %vm2747_vm13, %v5822_v15, %v4910_v1 }
 0x347   : > { %v5664_v26 = vpop.permute.xlu0 %5663  ;;  %v5113_v39 = vrot.slane %v5111_v58, 1 }
 0x348   : > { %v4672_v51 = vpop.permute.xlu1 %4671  ;;  %v5994_v21 = vsel %vm2747_vm13, %v5952_v41, %v5664_v26  ;;  %v5116_v26 = vshrl.u32 %v17851_v19, 16  ;;  %v17857_v41 = vld [vmem:[#allocation23_spill] sm:$0xff] }
 0x349   : > { %v5792_v23 = vsel %vm2681_vm11, %v17852_v60, %v4672_v51  ;;  %v5114_v8 = vsel %vm1367_vm10, %v5109_v0, %v5113_v39  ;;  %v17858_v0 = vld [vmem:[#allocation31_spill] sm:$0xff]  ;;  %v5154_v60 = vshll.u32 %v15454_v11, 16 }
 0x34a   : > { %v5121_v6 = vor.u32 %v5120_v7, %v5116_v26  ;;  %v5147_v19 = vshll.u32 %v17858_v0, 16 }
 0x34b   : > { %v5282_v49 = vpop.permute.xlu0 %5281  ;;  %v5156_v14 = vrot.slane %v5154_v60, 1 }
 0x34c   : > { %6292 = vmatmul.mubr.bf16.gmra.mrb[52].mxu1 %v5857_v28  ;;  %v4800_v55 = vpop.permute.xlu1 %4799  ;;  %v5918_v2 = vsel %vm2681_vm11, %v5114_v8, %v5282_v49  ;;  %v5130_v49 = vshll.u32 %v17854_v42, 16 }
 0x34d   : > { %6299 = vmatprep.mubr.bf16.mxu1 %v5988_v29  ;;  %v5824_v1 = vsel %vm2714_vm12, %v5792_v23, %v4800_v55 }
 0x34e   : > { %v5132_v43 = vrot.slane %v5130_v49, 1  ;;  %v5152_v49 = vshrl.u32 %v15454_v11, 16  ;;  %v7226_v11 = vld [vmem:[#allocation2] sm:$0xf] }
 0x34f   : > { %v5394_v37 = vpop.permute.xlu0 %5393 }
 0x350   : > { %v4912_v33 = vpop.permute.xlu1 %4911  ;;  %v5954_v34 = vsel %vm2714_vm12, %v5918_v2, %v5394_v37  ;;  %v5125_v37 = vrot.slane %v5123_v62, 1  ;;  %v17859_v62 = vld [vmem:[#allocation29_spill] sm:$0xff] }
 0x351   : > { %v5866_v29 = vsel %vm2747_vm13, %v5824_v1, %v4912_v33  ;;  %v17855_v33 = vld [vmem:[#allocation19_spill] sm:$0xff] }
 0x352   : > { %v5126_v54 = vsel %vm1367_vm10, %v5121_v6, %v5125_v37  ;;  %v17860_v6 = vld [vmem:[#allocation34_spill] sm:$0xff] }
 0x353   : > { %v5666_v61 = vpop.permute.xlu0 %5665 }
 0x354   : > { %6300 = vmatmul.mubr.bf16.gmra.mrb[56].mxu1 %v5860_v18  ;;  %v4674_v57 = vpop.permute.xlu1 %4673  ;;  %v5997_v51 = vsel %vm2747_vm13, %v5954_v34, %v5666_v61  ;;  %v5128_v61 = vshrl.u32 %v17854_v42, 16  ;;  %v17856_v18 = vld [vmem:[#allocation26_spill] sm:$0xff]  ;;  %v5159_v42 = vshll.u32 %v17860_v6, 16 }
 0x355   : > { %6307 = vmatprep.mubr.bf16.mxu1 %v5991_v25  ;;  %v5794_v4 = vsel %vm2681_vm11, %v17855_v33, %v4674_v57  ;;  %v5135_v25 = vshll.u32 %v17856_v18, 16  ;;  %v5157_v33 = vor.u32 %v5156_v14, %v5152_v49  ;;  %v7227_v18 = vld [vmem:[#allocation2 + $0x4] sm:$0xf] }
 0x356   : > { %v5133_v47 = vor.u32 %v5132_v43, %v5128_v61 }
 0x357   : > { %v5284_v17 = vpop.permute.xlu0 %5283  ;;  %v5137_v16 = vrot.slane %v5135_v25, 1 }
 0x358   : > { %v4802_v22 = vpop.permute.xlu1 %4801  ;;  %v5921_v48 = vsel %vm2681_vm11, %v5126_v54, %v5284_v17  ;;  %v5142_v17 = vshll.u32 %v15410_v44, 16 }
 0x359   : > { %v5826_v30 = vsel %vm2714_vm12, %v5794_v4, %v4802_v22  ;;  %v5138_v20 = vsel %vm1367_vm10, %v5133_v47, %v5137_v16  ;;  %v15696_v47 = vcombine.low %v7226_v11, %v7227_v18 }
 0x35a   : > { %v5144_v58 = vrot.slane %v5142_v17, 1  ;;  %v12838_v17 = vld [vmem:[#allocation2 + $0x8] ss:$0 sps:$4 sm:$0x11]  }
 0x35b   : > { %v5396_v31 = vpop.permute.xlu0 %5395 }
 0x35c   : > { %6308 = vmatmul.mubr.bf16.gmra.mrb[60].mxu1 %v5863_v35  ;;  %v4914_v32 = vpop.permute.xlu1 %4913  ;;  %v5956_v52 = vsel %vm2714_vm12, %v5921_v48, %v5396_v31 }
 0x35d   : > { %6315 = vmatprep.mubr.bf16.mxu1 %v5994_v21  ;;  %v5869_v53 = vsel %vm2747_vm13, %v5826_v30, %v4914_v32  ;;  %v5140_v21 = vshrl.u32 %v15410_v44, 16  ;;  %v5149_v44 = vrot.slane %v5147_v19, 1  ;;  %v5161_v30 = vrot.slane %v5159_v42, 1 }
 0x35f   : > { %v5668_v5 = vpop.permute.xlu0 %5667  ;;  %v5145_v8 = vor.u32 %v5144_v58, %v5140_v21 }
 0x360   : > { %v4676_v45 = vpop.permute.xlu1 %4675  ;;  %v6000_v57 = vsel %vm2747_vm13, %v5956_v52, %v5668_v5 }
 0x361   : > { %v5796_v38 = vsel %vm2681_vm11, %v17857_v41, %v4676_v45  ;;  %v7547_v41 = vshrl.u32 %v15696_v47, 16 }
 0x363   : > { %v5286_v28 = vpop.permute.xlu0 %5285 }
 0x364   : > { %6316 = vmatmul.mubr.bf16.gmra.mrb[64].mxu1 %v5866_v29  ;;  %v4804_v10 = vpop.permute.xlu1 %4803  ;;  %v15628_v3 = vpop.f32.mrb[72].mxu0  ;;  %v5924_v31 = vsel %vm2681_vm11, %v5138_v20, %v5286_v28  ;;  %v5150_v29 = vsel %vm1367_vm10, %v5145_v8, %v5149_v44  ;;  %v7554_v20 = vshll.u32 %v12838_v17, 16  ;;  %v7819_v8 = vrot.slane %v12838_v17, 1  ;;  %v15752_v17 = vld [vmem:[%s17721_s7] ss:$0 sm:$0xff] }
 0x365   : > { %6323 = vmatprep.mubr.bf16.mxu1 %v5997_v51  ;;  %v15631_v55 = vpop.f32.mrb[73].mxu0  ;;  %v5828_v35 = vsel %vm2714_vm12, %v5796_v38, %v4804_v10  ;;  %v7549_v38 = vshll.u32 %v15696_v47, 16 }
 0x366   : > { %v15633_v40 = vpop.f32.mrb[74].mxu0 }
 0x367   : > { %v5398_v50 = vpop.permute.xlu0 %5397  ;;  %v15635_v13 = vpop.f32.mrb[75].mxu0  ;;  %v7551_v19 = vrot.slane %v7549_v38, 1 }
 0x368   : > { %v4916_v56 = vpop.permute.xlu1 %4915  ;;  %v5958_v32 = vsel %vm2714_vm12, %v5924_v31, %v5398_v50 }
 0x369   : > { %v5872_v39 = vsel %vm2747_vm13, %v5828_v35, %v4916_v56 }
 0x36b   : > { %v5670_v46 = vpop.permute.xlu0 %5669 }
 0x36c   : > { %6324 = vmatmul.mubr.bf16.gmra.mrb[68].mxu1 %v5869_v53  ;;  %v4678_v27 = vpop.permute.xlu1 %4677  ;;  %v15647_v9 = vpop.f32.mrb[76].mxu0  ;;  %v6003_v45 = vsel %vm2747_vm13, %v5958_v32, %v5670_v46  ;;  %v17861_v46 = vld [vmem:[#allocation32_spill] sm:$0xff] }
 0x36d   : > { %6331 = vmatprep.mubr.bf16.mxu1 %v6000_v57  ;;  %v15650_v22 = vpop.f32.mrb[77].mxu0  ;;  %v5798_v28 = vsel %vm2681_vm11, %v17859_v62, %v4678_v27  ;;  %v5162_v27 = vsel %vm1367_vm10, %v5157_v33, %v5161_v30 }
 0x36e   : > { %v15652_v36 = vpop.f32.mrb[78].mxu0 }
 0x36f   : > { %v5288_v24 = vpop.permute.xlu0 %5287  ;;  %v15654_v63 = vpop.f32.mrb[79].mxu0 }
 0x370   : > { %v4806_v15 = vpop.permute.xlu1 %4805  ;;  %v5927_v10 = vsel %vm2681_vm11, %v5150_v29, %v5288_v24 }
 0x371   : > { %v5830_v51 = vsel %vm2714_vm12, %v5798_v28, %v4806_v15  ;;  %v7274_v15 = vld [vmem:[#allocation2] sm:$0xe] }
 0x372   : > { %v11677_v58 = vcombine.low %v7274_v15, %v7227_v18 }
 0x373   : > { %v5400_v12 = vpop.permute.xlu0 %5399 }
 0x374   : > { %6332 = vmatmul.mubr.bf16.gmra.mrb[72].mxu1 %v5872_v39  ;;  %v4918_v5 = vpop.permute.xlu1 %4917  ;;  %v15667_v23 = vpop.f32.mrb[80].mxu0  ;;  %v5960_v37 = vsel %vm2714_vm12, %v5927_v10, %v5400_v12  ;;  %v7556_v12 = vrot.slane %v7554_v20, 1  ;;  %v7818_v60 = vrot.slane %v11677_v58, 1 }
 0x375   : > { %6339 = vmatprep.mubr.bf16.mxu1 %v6003_v45  ;;  %v15669_v7 = vpop.f32.mrb[81].mxu0  ;;  %v5875_v56 = vsel %vm2747_vm13, %v5830_v51, %v4918_v5  ;;  %v7552_v45 = vor.u32 %v7551_v19, %v7547_v41 }
 0x376   : > { %v15671_v2 = vpop.f32.mrb[82].mxu0  ;;  %v7820_v62 = vsel %vm1640_vm7, %v7818_v60, %v7819_v8 }
 0x377   : > { %v5672_v1 = vpop.permute.xlu0 %5671  ;;  %v15673_v34 = vpop.f32.mrb[83].mxu0  ;;  %v7557_v14 = vsel %vm1367_vm10, %v7552_v45, %v7556_v12 }
 0x378   : > { %v4680_v26 = vpop.permute.xlu1 %4679  ;;  %v6006_v54 = vsel %vm2747_vm13, %v5960_v37, %v5672_v1  ;;  %7738 = vrot.lane.b32.xlu1 %v7557_v14, %s13157_s11  ;;  %v7223_v14 = vld [vmem:[#allocation2 + $0xc8] sm:$0x1] }
 0x379   : > { %v5800_v53 = vsel %vm2681_vm11, %v17861_v46, %v4680_v26  ;;  %v15746_v46 = vld [vmem:[%s17720_s6] ss:$0 sm:$0xff] }
 0x37b   : > { %v5290_v50 = vpop.permute.xlu0 %5289 }
 0x37c   : > { %6340 = vmatmul.mubr.bf16.gmra.mrb[76].mxu1 %v5875_v56  ;;  %v4808_v4 = vpop.permute.xlu1 %4807  ;;  %v15685_v43 = vpop.f32.mrb[84].mxu0  ;;  %v5930_v16 = vsel %vm2681_vm11, %v5162_v27, %v5290_v50  ;;  %7866 = vrot.lane.b32.xlu1 %v7820_v62, %s13156_s30 }
 0x37d   : > { %6347 = vmatprep.mubr.bf16.mxu1 %v6006_v54  ;;  %v15687_v48 = vpop.f32.mrb[85].mxu0  ;;  %v5832_v24 = vsel %vm2714_vm12, %v5800_v53, %v4808_v4  ;;  %v12846_v4 = vld [vmem:[%s17717_s3 + $0x80] sm:$0xff]   ;;  %v12854_v54 = vld [vmem:[%s17717_s3 + $0x88] sm:$0xff]  }
 0x37e   : > { %v15689_v52 = vpop.f32.mrb[86].mxu0  ;;  %12462 = vmatprep.subr.bf16.mxu0 %v12846_v4 }
 0x37f   : > { %v5402_v61 = vpop.permute.xlu0 %5401  ;;  %v15691_v25 = vpop.f32.mrb[87].mxu0  ;;  %12463 = vmatpush3.bf16.msra.mxu0 %v12846_v4 }
 0x380   : > { %v4920_v57 = vpop.permute.xlu1 %4919  ;;  %v5962_v31 = vsel %vm2714_vm12, %v5930_v16, %v5402_v61  ;;  %12464 = vmatprep.subr.bf16.mxu0 %v12854_v54 }
 0x381   : > { %v5878_v32 = vsel %vm2747_vm13, %v5832_v24, %v4920_v57 }
 0x383   : > { %v5674_v35 = vpop.permute.xlu0 %5673  ;;  %12465 = vmatpush3.bf16.msra.mxu0 %v12854_v54 }
 0x384   : > { %6348 = vmatmul.mubr.bf16.gmra.mrb[80].mxu1 %v5878_v32  ;;  %v4682_v21 = vpop.permute.xlu1 %4681  ;;  %v6009_v0 = vsel %vm2747_vm13, %v5962_v31, %v5674_v35  ;;  %v15705_v39 = vpop.f32.mrb[88].mxu0 }
 0x385   : > { %6355 = vmatprep.mubr.bf16.mxu1 %v6009_v0  ;;  %v15707_v5 = vpop.f32.mrb[89].mxu0  ;;  %v5802_v28 = vsel %vm2681_vm11, %v15372_v59, %v4682_v21 }
 0x386   : > { %v15709_v44 = vpop.f32.mrb[90].mxu0 }
 0x387   : > { %v15711_v1 = vpop.f32.mrb[91].mxu0 }
 0x388   : > { %v4810_v26 = vpop.permute.xlu1 %4809 }
 0x389   : > { %v5834_v29 = vsel %vm2714_vm12, %v5802_v28, %v4810_v26  ;;  %v13042_v26 = vld [vmem:[#allocation2 + $0xc] sm:$0xf] }
 0x38c   : > { %v4922_v10 = vpop.permute.xlu1 %4921  ;;  %v15719_v51 = vpop.f32.mrb[92].mxu0 }
 0x38d   : > { %v5881_v6 = vsel %vm2747_vm13, %v5834_v29, %v4922_v10  ;;  %v15723_v42 = vpop.f32.mrb[93].mxu0  ;;  %v7118_v10 = vld [vmem:[#allocation2 + $0x14] sm:$0x1] }
 0x38e   : > { %6356 = vmatmul.mubr.bf16.gmra.mrb[84].mxu1 %v5881_v6  ;;  %v15725_v49 = vpop.f32.mrb[94].mxu0 }
 0x38f   : > { %v15727_v37 = vpop.f32.mrb[95].mxu0 }
 0x394   : > { %v15729_v50 = vpop.f32.mrb[96].mxu0 }
 0x395   : > { %v15731_v56 = vpop.f32.mrb[97].mxu0 }
 0x396   : > { %v15733_v59 = vpop.f32.mrb[98].mxu0 }
 0x397   : > { %v15735_v33 = vpop.f32.mrb[99].mxu0 }
 0x3d1   : > { %v12146_v30 = vpop.f32.mrb[24].mxu1 }
 0x3d2   : > { %v12147_v61 = vpop.f32.mrb[25].mxu1 }
 0x3d3   : > { %v12148_v11 = vadd.f32 %v12147_v61, %v12146_v30  ;;  %v12149_v18 = vpop.f32.mrb[26].mxu1 }
 0x3d4   : > { %v12150_v53 = vpop.f32.mrb[27].mxu1 }
 0x3d5   : > { %v6399_v27 = vadd.f32 %v12148_v11, %v15631_v55  ;;  %v12151_v57 = vadd.f32 %v12150_v53, %v12149_v18  ;;  %v12885_v11 = vld [vmem:[%s17717_s3 + $0x40] sm:$0xff]  }
 0x3d6   : > { %12260 = vmatprep.subr.bf16.mxu1 %v12885_v11 }
 0x3d7   : > { %v6532_v16 = vmul.f32 %v15746_v46, %v6399_v27  ;;  %v6402_v24 = vadd.f32 %v12151_v57, %v15635_v13 }
 0x3d9   : > { %v6571_v15 = vadd.f32 %v15752_v17, %v6532_v16  ;;  %v6533_v41 = vmul.f32 %v15746_v46, %v6402_v24 }
 0x3db   : > { %vm6603_vm4 = vcmp.gt.f32.partialorder %v6571_v15, 0.0  ;;  %v6635_v38 = vmul.f32 0.1, %v6571_v15  ;;  %v6572_v20 = vadd.f32 %v15752_v17, %v6533_v41 }
 0x3dd   : > { %v6667_v58 = vsel %vm6603_vm4, %v6571_v15, %v6635_v38  ;;  %vm6604_vm5 = vcmp.gt.f32.partialorder %v6572_v20, 0.0  ;;  %v6636_v55 = vmul.f32 0.1, %v6572_v20 }
 0x3de   : > { %v11967_v31 = vpack.c.bf16 %v6667_v58, %v6667_v58 }
 0x3df   : > { %v6668_v35 = vsel %vm6604_vm5, %v6572_v20, %v6636_v55 }
 0x3e0   : > { %v6796_v32 = vshrl.u32 %v11967_v31, 16  ;;  %v11968_v21 = vpack.c.bf16 %v6668_v35, %v6668_v35  ;;  %v6799_v19 = vshll.u32 %v11967_v31, 16 }
 0x3e2   : > { %v6798_v0 = vrot.slane %v6796_v32, 7  ;;  %v6804_v12 = vshrl.u32 %v11968_v21, 16  ;;  %v6807_v60 = vshll.u32 %v11968_v21, 16 }
 0x3e4   : > { %v6801_v45 = vor.u32 %v6799_v19, %v6798_v0  ;;  %v6806_v13 = vrot.slane %v6804_v12, 7  ;;  %v6802_v8 = vrot.slane %v6798_v0, 4 }
 0x3e6   : > { %v7115_v62 = vsel %vm13321_vm8, %v6801_v45, %v13042_v26  ;;  %v6809_v28 = vor.u32 %v6807_v60, %v6806_v13  ;;  %v6811_v29 = vrot.slane %v6806_v13, 4 }
 0x3e7   : > { %7116 = vst [vmem:[#allocation2 + $0xc] sm:$0xf] %v7115_v62 }
 0x3e8   : > { %v6810_v4 = vsel %vm13329_vm9, %v6802_v8, %v6809_v28  ;;  %v7119_v30 = vsel %vm13270_vm3, %v6811_v29, %v7118_v10  ;;  %v12891_v29 = vld [vmem:[%s17717_s3] sm:$0xff]  }
 0x3e9   : > { %7117 = vst.msk [vmem:[#allocation2 + $0x10] sm:$0xf] %vm359_vm0, %v6810_v4  ;;  %7120 = vst [vmem:[#allocation2 + $0x14] sm:$0x1] %v7119_v30  ;;  %v12152_v61 = vpop.f32.mrb[28].mxu1  ;;  %12261 = vmatpush3.bf16.msra.mxu1 %v12891_v29 }
 0x3ea   : > { %v12153_v18 = vpop.f32.mrb[29].mxu1 }
 0x3eb   : > { %v12154_v53 = vadd.f32 %v12153_v18, %v12152_v61  ;;  %v12155_v27 = vpop.f32.mrb[30].mxu1 }
 0x3ec   : > { %v12156_v57 = vpop.f32.mrb[31].mxu1 }
 0x3ed   : > { %v6407_v16 = vadd.f32 %v15628_v3, %v12154_v53  ;;  %v12157_v24 = vadd.f32 %v12156_v57, %v12155_v27 }
 0x3ee   : > { %v7290_v15 = vld [vmem:[#allocation2 + $0xc] sm:$0xf] }
 0x3ef   : > { %v6534_v41 = vmul.f32 %v15746_v46, %v6407_v16  ;;  %v6410_v38 = vadd.f32 %v15633_v40, %v12157_v24  ;;  %v7338_v20 = vld [vmem:[#allocation2 + $0xc] sm:$0xe] }
 0x3f0   : > { %v7275_v58 = vld [vmem:[#allocation2 + $0xc] sm:$0xe]  ;;  %v7291_v31 = vld [vmem:[#allocation2 + $0x10] sm:$0xf] }
 0x3f1   : > { %v7228_v55 = vld [vmem:[#allocation2 + $0xc] sm:$0xf]  ;;  %v7229_v35 = vld [vmem:[#allocation2 + $0x10] sm:$0xf]  ;;  %v6573_v32 = vadd.f32 %v15752_v17, %v6534_v41  ;;  %v6535_v21 = vmul.f32 %v15746_v46, %v6410_v38  ;;  %v12158_v0 = vpop.f32.mrb[32].mxu1  ;;  %v15774_v19 = vcombine.low %v7290_v15, %v7291_v31  ;;  %v11725_v3 = vcombine.low %v7338_v20, %v7291_v31 }
 0x3f2   : > { %v12840_v12 = vld [vmem:[#allocation2 + $0x14] ss:$0 sps:$4 sm:$0x11]   ;;  %v12159_v45 = vpop.f32.mrb[33].mxu1  ;;  %v11678_v60 = vcombine.low %v7275_v58, %v7229_v35  ;;  %v15776_v8 = vcombine.low %v7228_v55, %v7229_v35 }
 0x3f3   : > { %v12841_v13 = vld [vmem:[#allocation2 + $0x14] ss:$0 sps:$4 sm:$0x11]   ;;  %vm6605_vm6 = vcmp.gt.f32.partialorder %v6573_v32, 0.0  ;;  %v6637_v40 = vmul.f32 0.1, %v6573_v32  ;;  %v6574_v26 = vadd.f32 %v15752_v17, %v6535_v21  ;;  %v12160_v62 = vadd.f32 %v12159_v45, %v12158_v0  ;;  %7978 = vrot.lane.b32.xlu1 %v15774_v19, %s13158_s12 }
 0x3f4   : > { %v12161_v28 = vpop.f32.mrb[34].mxu1  ;;  %v8298_v4 = vrot.slane %v11725_v3, 1  ;;  %v8299_v30 = vrot.slane %v12840_v12, 1  ;;  %v7821_v61 = vrot.slane %v11678_v60, 1  ;;  %v7822_v11 = vrot.slane %v12841_v13, 1 }
 0x3f5   : > { %v12162_v10 = vpop.f32.mrb[35].mxu1  ;;  %v6669_v18 = vsel %vm6605_vm6, %v6573_v32, %v6637_v40  ;;  %vm6606_vm14 = vcmp.gt.f32.partialorder %v6574_v26, 0.0  ;;  %v6638_v53 = vmul.f32 0.1, %v6574_v26  ;;  %v6415_v27 = vadd.f32 %v12160_v62, %v15650_v22 }
 0x3f6   : > { %v11969_v57 = vpack.c.bf16 %v6669_v18, %v6669_v18  ;;  %v12163_v16 = vadd.f32 %v12162_v10, %v12161_v28  ;;  %v8300_v24 = vsel %vm1640_vm7, %v8298_v4, %v8299_v30  ;;  %v7823_v15 = vsel %vm1640_vm7, %v7821_v61, %v7822_v11  ;;  %v7121_v4 = vld [vmem:[#allocation2 + $0x18] sm:$0xf] }
 0x3f7   : > { %v6670_v41 = vsel %vm6606_vm14, %v6574_v26, %v6638_v53  ;;  %v6536_v38 = vmul.f32 %v15746_v46, %v6415_v27  ;;  %8346 = vrot.lane.b32.xlu0 %v8300_v24, %s13157_s11  ;;  %7868 = vrot.lane.b32.xlu1 %v7823_v15, %s13156_s30  ;;  %v7561_v20 = vshll.u32 %v15776_v8, 16  ;;  %v7559_v35 = vshrl.u32 %v15776_v8, 16  ;;  %v7125_v27 = vld [vmem:[#allocation2 + $0x20] sm:$0x1] }
 0x3f8   : > { %v6813_v58 = vshrl.u32 %v11969_v57, 16  ;;  %v11970_v55 = vpack.c.bf16 %v6670_v41, %v6670_v41  ;;  %v6418_v22 = vadd.f32 %v12163_v16, %v15654_v63  ;;  %v7566_v21 = vshll.u32 %v12841_v13, 16 }
 0x3f9   : > { %v6575_v31 = vadd.f32 %v15752_v17, %v6536_v38  ;;  %v7563_v32 = vrot.slane %v7561_v20, 1  ;;  %v6816_v12 = vshll.u32 %v11969_v57, 16 }
 0x3fa   : > { %v6815_v0 = vrot.slane %v6813_v58, 7  ;;  %v6821_v3 = vshrl.u32 %v11970_v55, 16  ;;  %v6537_v45 = vmul.f32 %v15746_v46, %v6418_v22  ;;  %v7568_v26 = vrot.slane %v7566_v21, 1  ;;  %v12901_v22 = vld [vmem:[%s17717_s3 + $0x48] sm:$0xff]  }
 0x3fb   : > { %vm6607_vm15 = vcmp.gt.f32.partialorder %v6575_v31, 0.0  ;;  %v6639_v60 = vmul.f32 0.1, %v6575_v31  ;;  %v7564_v40 = vor.u32 %v7563_v32, %v7559_v35  ;;  %v6824_v29 = vshll.u32 %v11970_v55, 16  ;;  %12262 = vmatprep.subr.bf16.mxu1 %v12901_v22 }
 0x3fc   : > { %v6818_v62 = vor.u32 %v6816_v12, %v6815_v0  ;;  %v6823_v28 = vrot.slane %v6821_v3, 7  ;;  %v6576_v63 = vadd.f32 %v15752_v17, %v6537_v45  ;;  %v6819_v10 = vrot.slane %v6815_v0, 4 }
 0x3fd   : > { %v6671_v30 = vsel %vm6607_vm15, %v6575_v31, %v6639_v60  ;;  %v7569_v61 = vsel %vm1367_vm10, %v7564_v40, %v7568_v26  ;;  %v7128_v60 = vld [vmem:[#allocation2 + $0x24] sm:$0xf] }
 0x3fe   : > { %v7122_v13 = vsel %vm13321_vm8, %v6818_v62, %v7121_v4  ;;  %v6826_v11 = vor.u32 %v6824_v29, %v6823_v28  ;;  %v6828_v18 = vrot.slane %v6823_v28, 4  ;;  %v11971_v53 = vpack.c.bf16 %v6671_v30, %v6671_v30  ;;  %7740 = vrot.lane.b32.xlu1 %v7569_v61, %s13157_s11 }
 0x3ff   : > { %7123 = vst [vmem:[#allocation2 + $0x18] sm:$0xf] %v7122_v13  ;;  %vm6608_vm1 = vcmp.gt.f32.partialorder %v6576_v63, 0.0  ;;  %v6640_v57 = vmul.f32 0.1, %v6576_v63  ;;  %v12164_v16 = vpop.f32.mrb[36].mxu1 }
 0x400   : > { %v6827_v24 = vsel %vm13329_vm9, %v6819_v10, %v6826_v11  ;;  %v7126_v15 = vsel %vm13270_vm3, %v6828_v18, %v7125_v27  ;;  %v6830_v41 = vshrl.u32 %v11971_v53, 16  ;;  %v12165_v38 = vpop.f32.mrb[37].mxu1  ;;  %v6833_v35 = vshll.u32 %v11971_v53, 16  ;;  %v7132_v10 = vld [vmem:[#allocation2 + $0x2c] sm:$0x1] }
 0x401   : > { %7124 = vst.msk [vmem:[#allocation2 + $0x1c] sm:$0xf] %vm359_vm0, %v6827_v24  ;;  %7127 = vst [vmem:[#allocation2 + $0x20] sm:$0x1] %v7126_v15  ;;  %v6672_v20 = vsel %vm6608_vm1, %v6576_v63, %v6640_v57  ;;  %v12166_v58 = vadd.f32 %v12165_v38, %v12164_v16  ;;  %v12167_v55 = vpop.f32.mrb[38].mxu1 }
 0x402   : > { %v6832_v31 = vrot.slane %v6830_v41, 7  ;;  %v11972_v32 = vpack.c.bf16 %v6672_v20, %v6672_v20  ;;  %v12168_v21 = vpop.f32.mrb[39].mxu1 }
 0x403   : > { %v6423_v0 = vadd.f32 %v15647_v9, %v12166_v58  ;;  %v12169_v12 = vadd.f32 %v12168_v21, %v12167_v55 }
 0x404   : > { %v6835_v3 = vor.u32 %v6833_v35, %v6832_v31  ;;  %v6838_v45 = vshrl.u32 %v11972_v32, 16  ;;  %v6841_v29 = vshll.u32 %v11972_v32, 16  ;;  %v6836_v63 = vrot.slane %v6832_v31, 4 }
 0x405   : > { %v6538_v40 = vmul.f32 %v15746_v46, %v6423_v0  ;;  %v6426_v26 = vadd.f32 %v15652_v36, %v12169_v12 }
 0x406   : > { %v7129_v62 = vsel %vm13321_vm8, %v6835_v3, %v7128_v60  ;;  %v6840_v28 = vrot.slane %v6838_v45, 7  ;;  %v7354_v61 = vld [vmem:[#allocation2 + $0x18] sm:$0xf] }
 0x407   : > { %7130 = vst [vmem:[#allocation2 + $0x24] sm:$0xf] %v7129_v62  ;;  %v6577_v4 = vadd.f32 %v15752_v17, %v6538_v40  ;;  %v6539_v9 = vmul.f32 %v15746_v46, %v6426_v26  ;;  %v12170_v30 = vpop.f32.mrb[40].mxu1  ;;  %v7292_v13 = vld [vmem:[#allocation2 + $0x18] sm:$0xf] }
 0x408   : > { %v6843_v11 = vor.u32 %v6841_v29, %v6840_v28  ;;  %v6845_v18 = vrot.slane %v6840_v28, 4  ;;  %v12171_v53 = vpop.f32.mrb[41].mxu1  ;;  %v7355_v27 = vld [vmem:[#allocation2 + $0x1c] sm:$0xf]  ;;  %v7402_v41 = vld [vmem:[#allocation2 + $0x18] sm:$0xe] }
 0x409   : > { %v7293_v36 = vld [vmem:[#allocation2 + $0x1c] sm:$0xf]  ;;  %vm6609_vm2 = vcmp.gt.f32.partialorder %v6577_v4, 0.0  ;;  %v6641_v57 = vmul.f32 0.1, %v6577_v4  ;;  %v6578_v16 = vadd.f32 %v15752_v17, %v6539_v9  ;;  %v12172_v24 = vadd.f32 %v12171_v53, %v12170_v30  ;;  %v12173_v15 = vpop.f32.mrb[42].mxu1 }
 0x40a   : > { %v6844_v38 = vsel %vm13329_vm9, %v6836_v63, %v6843_v11  ;;  %v7133_v20 = vsel %vm13270_vm3, %v6845_v18, %v7132_v10  ;;  %v12174_v58 = vpop.f32.mrb[43].mxu1  ;;  %v15820_v55 = vcombine.low %v7354_v61, %v7355_v27  ;;  %v15822_v22 = vcombine.low %v7292_v13, %v7293_v36  ;;  %v15824_v31 = vld [vmem:[#allocation2 + $0x20] ss:$0 sps:$4 sm:$0x11]   ;;  %v7339_v35 = vld [vmem:[#allocation2 + $0x18] sm:$0xe] }
 0x40b   : > { %7131 = vst.msk [vmem:[#allocation2 + $0x28] sm:$0xf] %vm359_vm0, %v6844_v38  ;;  %7134 = vst [vmem:[#allocation2 + $0x2c] sm:$0x1] %v7133_v20  ;;  %v6673_v32 = vsel %vm6609_vm2, %v6577_v4, %v6641_v57  ;;  %vm6610_vm4 = vcmp.gt.f32.partialorder %v6578_v16, 0.0  ;;  %v6431_v0 = vadd.f32 %v12172_v24, %v15669_v7  ;;  %v12175_v45 = vadd.f32 %v12174_v58, %v12173_v15  ;;  %v12902_v57 = vld [vmem:[%s17717_s3 + $0x8] sm:$0xff]  }
 0x40c   : > { %v6642_v21 = vmul.f32 0.1, %v6578_v16  ;;  %v12849_v12 = vld [vmem:[#allocation2 + $0x20] ss:$0 sps:$4 sm:$0x11]   ;;  %v11973_v3 = vpack.c.bf16 %v6673_v32, %v6673_v32  ;;  %8458 = vrot.lane.b32.xlu0 %v15820_v55, %s13156_s30  ;;  %7980 = vrot.lane.b32.xlu1 %v15822_v22, %s13158_s12  ;;  %v11773_v60 = vcombine.low %v7402_v41, %v7355_v27  ;;  %v8811_v40 = vrot.slane %v15824_v31, 1 }
 0x40d   : > { %v7231_v26 = vld [vmem:[#allocation2 + $0x1c] sm:$0xf]  ;;  %v6540_v28 = vmul.f32 %v15746_v46, %v6431_v0  ;;  %v11726_v29 = vcombine.low %v7339_v35, %v7293_v36  ;;  %v8302_v63 = vrot.slane %v12849_v12, 1  ;;  %v7276_v10 = vld [vmem:[#allocation2 + $0x18] sm:$0xe]  ;;  %v6434_v30 = vadd.f32 %v12175_v45, %v15673_v34  ;;  %12263 = vmatpush3.bf16.msra.mxu1 %v12902_v57  ;;  %v15847_v45 = vpop.f32.mrb[100].mxu0 }
 0x40e   : > { %v6674_v62 = vsel %vm6610_vm4, %v6578_v16, %v6642_v21  ;;  %v6847_v7 = vshrl.u32 %v11973_v3, 16  ;;  %v6850_v4 = vshll.u32 %v11973_v3, 16  ;;  %v15835_v61 = vld [vmem:[#allocation2 + $0x20] ss:$0 sps:$4 sm:$0x11]   ;;  %v8810_v18 = vrot.slane %v11773_v60, 1 }
 0x40f   : > { %v11974_v9 = vpack.c.bf16 %v6674_v62, %v6674_v62  ;;  %v6579_v13 = vadd.f32 %v15752_v17, %v6540_v28  ;;  %v12176_v11 = vpop.f32.mrb[44].mxu1  ;;  %v8301_v53 = vrot.slane %v11726_v29, 1  ;;  %v11679_v27 = vcombine.low %v7276_v10, %v7231_v26  ;;  %v7230_v12 = vld [vmem:[#allocation2 + $0x18] sm:$0xf]  ;;  %v7135_v60 = vld [vmem:[#allocation2 + $0x30] sm:$0xf] }
 0x410   : > { %v6849_v36 = vrot.slane %v6847_v7, 7  ;;  %v6541_v15 = vmul.f32 %v15746_v46, %v6434_v30  ;;  %v12177_v41 = vpop.f32.mrb[45].mxu1  ;;  %v8812_v38 = vsel %vm1640_vm7, %v8810_v18, %v8811_v40  ;;  %v7825_v28 = vrot.slane %v15835_v61, 1 }
 0x411   : > { %v6855_v16 = vshrl.u32 %v11974_v9, 16  ;;  %v6858_v24 = vshll.u32 %v11974_v9, 16  ;;  %vm6611_vm5 = vcmp.gt.f32.partialorder %v6579_v13, 0.0  ;;  %v6643_v34 = vmul.f32 0.1, %v6579_v13  ;;  %v12179_v58 = vpop.f32.mrb[46].mxu1  ;;  %12466 = vmatprep.mubr.msk.bf16.mxu0 %vm2681_vm11, %v8812_v38 }
 0x412   : > { %v8303_v20 = vsel %vm1640_vm7, %v8301_v53, %v8302_v63  ;;  %v6852_v35 = vor.u32 %v6850_v4, %v6849_v36  ;;  %v6853_v32 = vrot.slane %v6849_v36, 4  ;;  %v6580_v0 = vadd.f32 %v15752_v17, %v6541_v15  ;;  %v12180_v3 = vpop.f32.mrb[47].mxu1  ;;  %v7139_v9 = vld [vmem:[#allocation2 + $0x38] sm:$0x1] }
 0x413   : > { %v6857_v21 = vrot.slane %v6855_v16, 7  ;;  %8348 = vrot.lane.b32.xlu0 %v8303_v20, %s13157_s11  ;;  %v6675_v40 = vsel %vm6611_vm5, %v6579_v13, %v6643_v34  ;;  %v7824_v62 = vrot.slane %v11679_v27, 1  ;;  %v15851_v29 = vcombine.low %v7230_v12, %v7231_v26 }
 0x414   : > { %v7136_v63 = vsel %vm13321_vm8, %v6852_v35, %v7135_v60  ;;  %v11975_v4 = vpack.c.bf16 %v6675_v40, %v6675_v40  ;;  %vm6612_vm6 = vcmp.gt.f32.partialorder %v6580_v0, 0.0  ;;  %v6644_v30 = vmul.f32 0.1, %v6580_v0 }
 0x415   : > { %17865 = vst [vmem:[#allocation18_spill] sm:$0xff] %v15851_v29  ;;  %v6860_v10 = vor.u32 %v6858_v24, %v6857_v21  ;;  %v6862_v7 = vrot.slane %v6857_v21, 4  ;;  %7137 = vst [vmem:[#allocation2 + $0x30] sm:$0xf] %v7136_v63  ;;  %v7826_v18 = vsel %vm1640_vm7, %v7824_v62, %v7825_v28  ;;  %v12178_v53 = vadd.f32 %v12177_v41, %v12176_v11  ;;  %v12913_v28 = vld [vmem:[%s17717_s3 + $0x50] sm:$0xff]  }
 0x416   : > { %v6864_v27 = vshrl.u32 %v11975_v4, 16  ;;  %v6867_v57 = vshll.u32 %v11975_v4, 16  ;;  %7870 = vrot.lane.b32.xlu1 %v7826_v18, %s13156_s30  ;;  %v6676_v36 = vsel %vm6612_vm6, %v6580_v0, %v6644_v30  ;;  %v12181_v24 = vadd.f32 %v12180_v3, %v12179_v58  ;;  %v7142_v63 = vld [vmem:[#allocation2 + $0x3c] sm:$0xf]  ;;  %v12915_v30 = vld [vmem:[%s17717_s3 + $0x10] sm:$0xff]   ;;  %12264 = vmatprep.subr.bf16.mxu1 %v12913_v28 }
 0x417   : > { %v6861_v13 = vsel %vm13329_vm9, %v6853_v32, %v6860_v10  ;;  %v7140_v26 = vsel %vm13270_vm3, %v6862_v7, %v7139_v9  ;;  %v6439_v16 = vadd.f32 %v15667_v23, %v12178_v53  ;;  %v8539_v15 = vshrl.u32 %v15820_v55, 16  ;;  %v15864_v11 = vpop.f32.mrb[48].mxu1  ;;  %v15870_v32 = vpop.f32.mrb[101].mxu0  ;;  %12265 = vmatpush3.bf16.msra.mxu1 %v12915_v30  ;;  %v7295_v28 = vld [vmem:[#allocation2 + $0x28] sm:$0xf] }
 0x418   : > { %7138 = vst.msk [vmem:[#allocation2 + $0x34] sm:$0xf] %vm359_vm0, %v6861_v13  ;;  %7141 = vst [vmem:[#allocation2 + $0x38] sm:$0x1] %v7140_v26  ;;  %v6866_v41 = vrot.slane %v6864_v27, 7  ;;  %v11976_v34 = vpack.c.bf16 %v6676_v36, %v6676_v36  ;;  %v8541_v38 = vshll.u32 %v15820_v55, 16  ;;  %v6442_v0 = vadd.f32 %v15671_v2, %v12181_v24 }
 0x419   : > { %v8546_v20 = vshll.u32 %v15824_v31, 16  ;;  %v15868_v35 = vpop.f32.mrb[49].mxu1  ;;  %v6542_v21 = vmul.f32 %v15746_v46, %v6439_v16  ;;  %v7571_v23 = vshrl.u32 %v15851_v29, 16  ;;  %v7573_v58 = vshll.u32 %v15851_v29, 16  ;;  %v15878_v31 = vpop.f32.mrb[102].mxu0 }
 0x41a   : > { %v15876_v12 = vpop.f32.mrb[50].mxu1  ;;  %v6869_v3 = vor.u32 %v6867_v57, %v6866_v41  ;;  %v6870_v60 = vrot.slane %v6866_v41, 4  ;;  %v6872_v40 = vshrl.u32 %v11976_v34, 16  ;;  %v6875_v55 = vshll.u32 %v11976_v34, 16  ;;  %v15885_v9 = vpop.f32.mrb[103].mxu0 }
 0x41b   : > { %v12186_v62 = vpop.f32.mrb[51].mxu1  ;;  %v6581_v2 = vadd.f32 %v15752_v17, %v6542_v21  ;;  %v6543_v10 = vmul.f32 %v15746_v46, %v6442_v0  ;;  %v8543_v7 = vrot.slane %v8541_v38, 1  ;;  %v8548_v4 = vrot.slane %v8546_v20, 1  ;;  %v7146_v27 = vld [vmem:[#allocation2 + $0x44] sm:$0x1] }
 0x41c   : > { %v7143_v18 = vsel %vm13321_vm8, %v6869_v3, %v7142_v63  ;;  %v6874_v53 = vrot.slane %v6872_v40, 7  ;;  %v7575_v13 = vrot.slane %v7573_v58, 1  ;;  %v7578_v26 = vshll.u32 %v15835_v61, 16  ;;  %v15894_v24 = vld [vmem:[#allocation2 + $0x2c] ss:$0 sps:$4 sm:$0x11]  }
 0x41d   : > { %7144 = vst [vmem:[#allocation2 + $0x3c] sm:$0xf] %v7143_v18  ;;  %vm6613_vm14 = vcmp.gt.f32.partialorder %v6581_v2, 0.0  ;;  %v6645_v57 = vmul.f32 0.1, %v6581_v2  ;;  %v6582_v36 = vadd.f32 %v15752_v17, %v6543_v10  ;;  %v8544_v16 = vor.u32 %v8543_v7, %v8539_v15 }
 0x41e   : > { %v6877_v41 = vor.u32 %v6875_v55, %v6874_v53  ;;  %v6879_v34 = vrot.slane %v6874_v53, 4  ;;  %v7576_v38 = vor.u32 %v7575_v13, %v7571_v23  ;;  %v7580_v20 = vrot.slane %v7578_v26, 1  ;;  %v7357_v21 = vld [vmem:[#allocation2 + $0x28] sm:$0xf]  ;;  %v7403_v0 = vld [vmem:[#allocation2 + $0x24] sm:$0xe] }
 0x41f   : > { %v7356_v58 = vld [vmem:[#allocation2 + $0x24] sm:$0xf]  ;;  %v6677_v3 = vsel %vm6613_vm14, %v6581_v2, %v6645_v57  ;;  %vm6614_vm15 = vcmp.gt.f32.partialorder %v6582_v36, 0.0  ;;  %v6646_v61 = vmul.f32 0.1, %v6582_v36  ;;  %v8549_v40 = vsel %vm1367_vm10, %v8544_v16, %v8548_v4  ;;  %v15897_v63 = vpop.f32.mrb[52].mxu1 }
 0x420   : > { %v6878_v15 = vsel %vm13329_vm9, %v6870_v60, %v6877_v41  ;;  %v7147_v55 = vsel %vm13270_vm3, %v6879_v34, %v7146_v27  ;;  %v11977_v10 = vpack.c.bf16 %v6677_v3, %v6677_v3  ;;  %8730 = vrot.lane.b32.xlu0 %v8549_v40, %s13158_s12  ;;  %v7581_v23 = vsel %vm1367_vm10, %v7576_v38, %v7580_v20  ;;  %v7294_v7 = vld [vmem:[#allocation2 + $0x24] sm:$0xf]  ;;  %v12859_v2 = vld [vmem:[#allocation2 + $0x2c] ss:$0 sps:$4 sm:$0x11]   ;;  %v15905_v30 = vpop.f32.mrb[53].mxu1 }
 0x421   : > { %7145 = vst.msk [vmem:[#allocation2 + $0x40] sm:$0xf] %vm359_vm0, %v6878_v15  ;;  %7148 = vst [vmem:[#allocation2 + $0x44] sm:$0x1] %v7147_v55  ;;  %v6678_v4 = vsel %vm6614_vm15, %v6582_v36, %v6646_v61  ;;  %7742 = vrot.lane.b32.xlu1 %v7581_v23, %s13157_s11  ;;  %v11774_v18 = vcombine.low %v7403_v0, %v7357_v21  ;;  %v8814_v60 = vrot.slane %v15894_v24, 1  ;;  %v15912_v26 = vpop.f32.mrb[54].mxu1 }
 0x422   : > { %v15910_v53 = vcombine.low %v7356_v58, %v7357_v21  ;;  %v7340_v13 = vld [vmem:[#allocation2 + $0x24] sm:$0xe]  ;;  %v6881_v27 = vshrl.u32 %v11977_v10, 16  ;;  %v6884_v57 = vshll.u32 %v11977_v10, 16  ;;  %v11978_v16 = vpack.c.bf16 %v6678_v4, %v6678_v4  ;;  %v7233_v34 = vld [vmem:[#allocation2 + $0x28] sm:$0xf] }
 0x423   : > { %v15914_v41 = vcombine.low %v7294_v7, %v7295_v28  ;;  %v15916_v38 = vpop.f32.mrb[55].mxu1  ;;  %v8813_v20 = vrot.slane %v11774_v18, 1  ;;  %v12184_v36 = vadd.f32 %v15868_v35, %v15864_v11  ;;  %v12187_v0 = vadd.f32 %v12186_v62, %v15876_v12  ;;  %v15921_v21 = vld [vmem:[#allocation2 + $0x2c] ss:$0 sps:$4 sm:$0x11]  }
 0x424   : > { %v11727_v3 = vcombine.low %v7340_v13, %v7295_v28  ;;  %v6883_v58 = vrot.slane %v6881_v27, 7  ;;  %v6889_v61 = vshrl.u32 %v11978_v16, 16  ;;  %v6892_v40 = vshll.u32 %v11978_v16, 16  ;;  %8460 = vrot.lane.b32.xlu0 %v15910_v53, %s13156_s30  ;;  %v7277_v12 = vld [vmem:[#allocation2 + $0x24] sm:$0xe] }
 0x425   : > { %v8305_v15 = vrot.slane %v12859_v2, 1  ;;  %v8815_v55 = vsel %vm1640_vm7, %v8813_v20, %v8814_v60  ;;  %7982 = vrot.lane.b32.xlu1 %v15914_v41, %s13158_s12  ;;  %v6447_v10 = vadd.f32 %v12184_v36, %v15687_v48  ;;  %v6450_v11 = vadd.f32 %v12187_v0, %v15691_v25  ;;  %v7149_v4 = vld [vmem:[#allocation2 + $0x48] sm:$0xf]  ;;  %v7232_v20 = vld [vmem:[#allocation2 + $0x24] sm:$0xf] }
 0x426   : > { %v8304_v35 = vrot.slane %v11727_v3, 1  ;;  %v6886_v62 = vor.u32 %v6884_v57, %v6883_v58  ;;  %v6887_v28 = vrot.slane %v6883_v58, 4  ;;  %v6891_v23 = vrot.slane %v6889_v61, 7  ;;  %12467 = vmatmul.mubr.msk.bf16.vlgmr.msra.gmra.mrb[104].mxu0 %vm2681_vm11, %v8815_v55  ;;  %v7153_v0 = vld [vmem:[#allocation2 + $0x50] sm:$0x1] }
 0x427   : > { %v11680_v7 = vcombine.low %v7277_v12, %v7233_v34  ;;  %v6544_v2 = vmul.f32 %v15746_v46, %v6447_v10  ;;  %v6545_v18 = vmul.f32 %v15746_v46, %v6450_v11  ;;  %v7828_v13 = vrot.slane %v15921_v21, 1  ;;  %v15935_v48 = vpop.f32.mrb[56].mxu1 }
 0x428   : > { %v8306_v60 = vsel %vm1640_vm7, %v8304_v35, %v8305_v15  ;;  %v7150_v25 = vsel %vm13321_vm8, %v6886_v62, %v7149_v4  ;;  %v6894_v27 = vor.u32 %v6892_v40, %v6891_v23  ;;  %v6896_v57 = vrot.slane %v6891_v23, 4  ;;  %v15940_v36 = vpop.f32.mrb[57].mxu1 }
 0x429   : > { %8350 = vrot.lane.b32.xlu0 %v8306_v60, %s13157_s11  ;;  %v7827_v16 = vrot.slane %v11680_v7, 1  ;;  %7151 = vst [vmem:[#allocation2 + $0x48] sm:$0xf] %v7150_v25  ;;  %v6583_v3 = vadd.f32 %v15752_v17, %v6544_v2  ;;  %v6584_v58 = vadd.f32 %v15752_v17, %v6545_v18  ;;  %v15944_v61 = vcombine.low %v7232_v20, %v7233_v34  ;;  %v15947_v55 = vpop.f32.mrb[58].mxu1 }
 0x42a   : > { %v8551_v15 = vshrl.u32 %v15910_v53, 16  ;;  %v6895_v40 = vsel %vm13329_vm9, %v6887_v28, %v6894_v27  ;;  %v7154_v10 = vsel %vm13270_vm3, %v6896_v57, %v7153_v0  ;;  %v8553_v35 = vshll.u32 %v15910_v53, 16  ;;  %v15955_v12 = vpop.f32.mrb[59].mxu1 }
 0x42b   : > { %17866 = vst [vmem:[#allocation28_spill] sm:$0xff] %v15944_v61  ;;  %v7829_v11 = vsel %vm1640_vm7, %v7827_v16, %v7828_v13  ;;  %7152 = vst.msk [vmem:[#allocation2 + $0x4c] sm:$0xf] %vm359_vm0, %v6895_v40  ;;  %vm6615_vm1 = vcmp.gt.f32.partialorder %v6583_v3, 0.0  ;;  %v6647_v34 = vmul.f32 0.1, %v6583_v3  ;;  %v12190_v60 = vadd.f32 %v15905_v30, %v15897_v63 }
 0x42c   : > { %7155 = vst [vmem:[#allocation2 + $0x50] sm:$0x1] %v7154_v10  ;;  %vm6616_vm2 = vcmp.gt.f32.partialorder %v6584_v58, 0.0  ;;  %v6648_v62 = vmul.f32 0.1, %v6584_v58  ;;  %7872 = vrot.lane.b32.xlu1 %v7829_v11, %s13156_s30  ;;  %v8555_v23 = vrot.slane %v8553_v35, 1 }
 0x42d   : > { %v8558_v28 = vshll.u32 %v15894_v24, 16  ;;  %v7583_v7 = vshrl.u32 %v15944_v61, 16  ;;  %v7585_v4 = vshll.u32 %v15944_v61, 16  ;;  %v6679_v2 = vsel %vm6615_vm1, %v6583_v3, %v6647_v34  ;;  %v15965_v13 = vld [vmem:[#allocation2 + $0x38] ss:$0 sps:$4 sm:$0x11]  }
 0x42e   : > { %v6680_v53 = vsel %vm6616_vm2, %v6584_v58, %v6648_v62  ;;  %v7590_v18 = vshll.u32 %v15921_v21, 16  ;;  %v11979_v25 = vpack.c.bf16 %v6679_v2, %v6679_v2  ;;  %v8556_v57 = vor.u32 %v8555_v23, %v8551_v15  ;;  %v12926_v24 = vld [vmem:[%s17717_s3 + $0x58] sm:$0xff]   ;;  %v7359_v58 = vld [vmem:[#allocation2 + $0x34] sm:$0xf]  ;;  %v7358_v23 = vld [vmem:[#allocation2 + $0x30] sm:$0xf] }
 0x42f   : > { %v11980_v27 = vpack.c.bf16 %v6680_v53, %v6680_v53  ;;  %v8560_v16 = vrot.slane %v8558_v28, 1  ;;  %v7587_v20 = vrot.slane %v7585_v4, 1  ;;  %v6455_v3 = vadd.f32 %v15685_v43, %v12190_v60  ;;  %v15973_v40 = vpop.f32.mrb[60].mxu1  ;;  %v12932_v63 = vld [vmem:[%s17717_s3 + $0x18] sm:$0xff]   ;;  %12266 = vmatprep.subr.bf16.mxu1 %v12926_v24  ;;  %v7297_v60 = vld [vmem:[#allocation2 + $0x34] sm:$0xf] }
 0x430   : > { %v7592_v0 = vrot.slane %v7590_v18, 1  ;;  %v12193_v21 = vadd.f32 %v15916_v38, %v15912_v26  ;;  %v6898_v30 = vshrl.u32 %v11979_v25, 16  ;;  %v6901_v15 = vshll.u32 %v11979_v25, 16  ;;  %v15978_v35 = vpop.f32.mrb[61].mxu1  ;;  %v7404_v38 = vld [vmem:[#allocation2 + $0x30] sm:$0xe]  ;;  %12267 = vmatpush3.bf16.msra.mxu1 %v12932_v63 }
 0x431   : > { %v6906_v10 = vshrl.u32 %v11980_v27, 16  ;;  %v6909_v11 = vshll.u32 %v11980_v27, 16  ;;  %v8561_v34 = vsel %vm1367_vm10, %v8556_v57, %v8560_v16  ;;  %v7588_v43 = vor.u32 %v7587_v20, %v7583_v7  ;;  %v15983_v28 = vpop.f32.mrb[62].mxu1  ;;  %v7156_v7 = vld [vmem:[#allocation2 + $0x54] sm:$0xf] }
 0x432   : > { %v6546_v62 = vmul.f32 %v15746_v46, %v6455_v3  ;;  %v6458_v26 = vadd.f32 %v15689_v52, %v12193_v21  ;;  %v6900_v4 = vrot.slane %v6898_v30, 7  ;;  %8732 = vrot.lane.b32.xlu0 %v8561_v34, %s13158_s12  ;;  %v11775_v53 = vcombine.low %v7404_v38, %v7359_v58  ;;  %v15987_v25 = vpop.f32.mrb[63].mxu1  ;;  %v7160_v27 = vld [vmem:[#allocation2 + $0x5c] sm:$0x1]  ;;  %v7296_v20 = vld [vmem:[#allocation2 + $0x30] sm:$0xf] }
 0x433   : > { %v6908_v2 = vrot.slane %v6906_v10, 7  ;;  %v8817_v18 = vrot.slane %v15965_v13, 1  ;;  %v7593_v57 = vsel %vm1367_vm10, %v7588_v43, %v7592_v0  ;;  %v15992_v24 = vcombine.low %v7358_v23, %v7359_v58  ;;  %v12867_v3 = vld [vmem:[#allocation2 + $0x38] ss:$0 sps:$4 sm:$0x11]  }
 0x434   : > { %v6585_v52 = vadd.f32 %v15752_v17, %v6546_v62  ;;  %v6547_v16 = vmul.f32 %v15746_v46, %v6458_v26  ;;  %v6903_v21 = vor.u32 %v6901_v15, %v6900_v4  ;;  %v6904_v63 = vrot.slane %v6900_v4, 4  ;;  %7744 = vrot.lane.b32.xlu1 %v7593_v57, %s13157_s11  ;;  %v15995_v34 = vld [vmem:[#allocation2 + $0x38] ss:$0 sps:$4 sm:$0x11]   ;;  %v7341_v62 = vld [vmem:[#allocation2 + $0x30] sm:$0xe] }
 0x435   : > { %v6911_v30 = vor.u32 %v6909_v11, %v6908_v2  ;;  %v6913_v10 = vrot.slane %v6908_v2, 4  ;;  %v8816_v43 = vrot.slane %v11775_v53, 1  ;;  %v7235_v61 = vld [vmem:[#allocation2 + $0x34] sm:$0xf]  ;;  %v16006_v26 = vcombine.low %v7296_v20, %v7297_v60  ;;  %v7278_v23 = vld [vmem:[#allocation2 + $0x30] sm:$0xe] }
 0x436   : > { %vm6617_vm4 = vcmp.gt.f32.partialorder %v6585_v52, 0.0  ;;  %v6649_v38 = vmul.f32 0.1, %v6585_v52  ;;  %v6586_v0 = vadd.f32 %v15752_v17, %v6547_v16  ;;  %v7157_v58 = vsel %vm13321_vm8, %v6903_v21, %v7156_v7  ;;  %8462 = vrot.lane.b32.xlu0 %v15992_v24, %s13156_s30  ;;  %v7234_v4 = vld [vmem:[#allocation2 + $0x30] sm:$0xf] }
 0x437   : > { %v6912_v15 = vsel %vm13329_vm9, %v6904_v63, %v6911_v30  ;;  %v7161_v11 = vsel %vm13270_vm3, %v6913_v10, %v7160_v27  ;;  %17867 = vst [vmem:[#allocation22_spill] sm:$0xff] %v16006_v26  ;;  %7158 = vst [vmem:[#allocation2 + $0x54] sm:$0xf] %v7157_v58  ;;  %v8818_v53 = vsel %vm1640_vm7, %v8816_v43, %v8817_v18  ;;  %v16011_v7 = vld [vmem:[#allocation2 + $0x40] sm:$0xf]  ;;  %v16013_v27 = vpop.f32.mrb[64].mxu1 }
 0x438   : > { %7159 = vst.msk [vmem:[#allocation2 + $0x58] sm:$0xf] %vm359_vm0, %v6912_v15  ;;  %7162 = vst [vmem:[#allocation2 + $0x5c] sm:$0x1] %v7161_v11  ;;  %v6681_v17 = vsel %vm6617_vm4, %v6585_v52, %v6649_v38  ;;  %vm6618_vm5 = vcmp.gt.f32.partialorder %v6586_v0, 0.0  ;;  %12470 = vmatprep.mubr.msk.bf16.mxu0 %vm2681_vm11, %v8818_v53  ;;  %7984 = vrot.lane.b32.xlu1 %v16006_v26, %s13158_s12  ;;  %v11728_v16 = vcombine.low %v7341_v62, %v7297_v60  ;;  %v16020_v52 = vpop.f32.mrb[65].mxu1 }
 0x439   : > { %v6650_v2 = vmul.f32 0.1, %v6586_v0  ;;  %v11981_v57 = vpack.c.bf16 %v6681_v17, %v6681_v17  ;;  %v8308_v20 = vrot.slane %v12867_v3, 1  ;;  %v11681_v21 = vcombine.low %v7278_v23, %v7235_v61  ;;  %v16018_v63 = vld [vmem:[#allocation2 + $0x44] ss:$0 sps:$4 sm:$0x11]  }
 0x43a   : > { %v12936_v18 = vld [vmem:[%s17717_s3 + $0x60] sm:$0xff]   ;;  %v7831_v10 = vrot.slane %v15995_v34, 1  ;;  %v16026_v38 = vcombine.low %v7234_v4, %v7235_v61  ;;  %v12196_v43 = vadd.f32 %v15940_v36, %v15935_v48  ;;  %v7405_v58 = vld [vmem:[#allocation2 + $0x3c] sm:$0xe]  ;;  %v16030_v60 = vpop.f32.mrb[66].mxu1  ;;  %v8307_v11 = vrot.slane %v11728_v16, 1 }
 0x43b   : > { %v6682_v30 = vsel %vm6618_vm5, %v6586_v0, %v6650_v2  ;;  %v6915_v3 = vshrl.u32 %v11981_v57, 16  ;;  %v6918_v62 = vshll.u32 %v11981_v57, 16  ;;  %v16032_v23 = vpop.f32.mrb[67].mxu1  ;;  %12268 = vmatprep.subr.bf16.mxu1 %v12936_v18  ;;  %v12937_v0 = vld [vmem:[%s17717_s3 + $0x20] sm:$0xff]   ;;  %v12945_v61 = vld [vmem:[%s17717_s3 + $0x68] sm:$0xff]   ;;  %v7830_v4 = vrot.slane %v11681_v21, 1 }
 0x43c   : > { %17868 = vst [vmem:[#allocation12_spill] sm:$0xff] %v16026_v38  ;;  %v11982_v15 = vpack.c.bf16 %v6682_v30, %v6682_v30  ;;  %v6463_v48 = vadd.f32 %v12196_v43, %v15707_v5  ;;  %v12199_v36 = vadd.f32 %v15955_v12, %v15947_v55  ;;  %v11776_v17 = vcombine.low %v7405_v58, %v16011_v7  ;;  %v12946_v18 = vld [vmem:[%s17717_s3 + $0x28] sm:$0xff]   ;;  %v12947_v30 = vld [vmem:[%s17717_s3 + $0x70] sm:$0xff]  }
 0x43d   : > { %v6917_v2 = vrot.slane %v6915_v3, 7  ;;  %v8309_v16 = vsel %vm1640_vm7, %v8307_v11, %v8308_v20  ;;  %12269 = vmatpush3.bf16.msra.mxu1 %v12937_v0  ;;  %v7832_v21 = vsel %vm1640_vm7, %v7830_v4, %v7831_v10  ;;  %v8820_v3 = vrot.slane %v16018_v63, 1  ;;  %v16066_v10 = vld [vmem:[%s17720_s6] ss:$0 sm:$0xff] }
 0x43e   : > { %v6923_v53 = vshrl.u32 %v11982_v15, 16  ;;  %v6926_v57 = vshll.u32 %v11982_v15, 16  ;;  %8352 = vrot.lane.b32.xlu0 %v8309_v16, %s13157_s11  ;;  %v6548_v5 = vmul.f32 %v15746_v46, %v6463_v48  ;;  %v6466_v55 = vadd.f32 %v12199_v36, %v15711_v1  ;;  %12270 = vmatprep.subr.bf16.mxu1 %v12945_v61  ;;  %v7163_v15 = vld [vmem:[#allocation2 + $0x60] sm:$0xf]  ;;  %v7167_v36 = vld [vmem:[#allocation2 + $0x68] sm:$0x1] }
 0x43f   : > { %v8819_v12 = vrot.slane %v11776_v17, 1  ;;  %v6920_v20 = vor.u32 %v6918_v62, %v6917_v2  ;;  %v6921_v43 = vrot.slane %v6917_v2, 4  ;;  %7874 = vrot.lane.b32.xlu1 %v7832_v21, %s13156_s30  ;;  %v16060_v46 = vld [vmem:[%s17721_s7] ss:$0 sm:$0xff]  ;;  %v8563_v11 = vshrl.u32 %v15992_v24, 16  ;;  %v16074_v2 = vpop.f32.mrb[68].mxu1 }
 0x440   : > { %v6925_v58 = vrot.slane %v6923_v53, 7  ;;  %v6587_v1 = vadd.f32 %v16060_v46, %v6548_v5  ;;  %v6549_v62 = vmul.f32 %v16066_v10, %v6466_v55  ;;  %v8565_v0 = vshll.u32 %v15992_v24, 16  ;;  %v12948_v53 = vld [vmem:[%s17717_s3 + $0x30] sm:$0xff]   ;;  %v12951_v5 = vld [vmem:[%s17717_s3 + $0x78] sm:$0xff]  }
 0x441   : > { %v7164_v61 = vsel %vm13321_vm8, %v6920_v20, %v7163_v15  ;;  %v8821_v17 = vsel %vm1640_vm7, %v8819_v12, %v8820_v3  ;;  %12271 = vmatpush3.bf16.msra.mxu1 %v12946_v18  ;;  %v8570_v12 = vshll.u32 %v15965_v13, 16  ;;  %v7595_v20 = vshrl.u32 %v16026_v38, 16  ;;  %v16092_v3 = vld [vmem:[#allocation2 + $0x40] sm:$0xf] }
 0x442   : > { %v6928_v4 = vor.u32 %v6926_v57, %v6925_v58  ;;  %v6930_v48 = vrot.slane %v6925_v58, 4  ;;  %7165 = vst [vmem:[#allocation2 + $0x60] sm:$0xf] %v7164_v61  ;;  %vm6619_vm6 = vcmp.gt.f32.partialorder %v6587_v1, 0.0  ;;  %v6651_v16 = vmul.f32 0.1, %v6587_v1  ;;  %12471 = vmatmul.mubr.msk.bf16.gmra.mrb[108].mxu0 %vm2681_vm11, %v8821_v17  ;;  %12272 = vmatprep.subr.bf16.mxu1 %v12947_v30 }
 0x443   : > { %v6588_v24 = vadd.f32 %v16060_v46, %v6549_v62  ;;  %v8567_v21 = vrot.slane %v8565_v0, 1  ;;  %v16081_v57 = vpop.f32.mrb[69].mxu1  ;;  %v7360_v58 = vld [vmem:[#allocation2 + $0x3c] sm:$0xf]  ;;  %v8572_v13 = vrot.slane %v8570_v12, 1 }
 0x444   : > { %v6929_v18 = vsel %vm13329_vm9, %v6921_v43, %v6928_v4  ;;  %v7168_v55 = vsel %vm13270_vm3, %v6930_v48, %v7167_v36  ;;  %v16094_v15 = vpop.f32.mrb[70].mxu1  ;;  %v6683_v30 = vsel %vm6619_vm6, %v6587_v1, %v6651_v16  ;;  %v7298_v0 = vld [vmem:[#allocation2 + $0x3c] sm:$0xf]  ;;  %v7597_v48 = vshll.u32 %v16026_v38, 16  ;;  %v16102_v17 = vld [vmem:[#allocation2 + $0x4c] sm:$0xf] }
 0x445   : > { %7166 = vst.msk [vmem:[#allocation2 + $0x64] sm:$0xf] %vm359_vm0, %v6929_v18  ;;  %7169 = vst [vmem:[#allocation2 + $0x68] sm:$0x1] %v7168_v55  ;;  %vm6620_vm14 = vcmp.gt.f32.partialorder %v6588_v24, 0.0  ;;  %v8568_v43 = vor.u32 %v8567_v21, %v8563_v11  ;;  %v16098_v61 = vpop.f32.mrb[71].mxu1  ;;  %v11983_v4 = vpack.c.bf16 %v6683_v30, %v6683_v30  ;;  %12273 = vmatpush3.bf16.msra.mxu1 %v12948_v53 }
 0x446   : > { %v6652_v62 = vmul.f32 0.1, %v6588_v24  ;;  %v7602_v36 = vshll.u32 %v15995_v34, 16  ;;  %v12952_v18 = vld [vmem:[%s17717_s3 + $0x38] sm:$0xff]   ;;  %v16108_v16 = vcombine.low %v7360_v58, %v16011_v7  ;;  %v16111_v11 = vcombine.low %v7298_v0, %v16092_v3  ;;  %12274 = vmatprep.subr.bf16.mxu1 %v12951_v5  ;;  %v7406_v0 = vld [vmem:[#allocation2 + $0x48] sm:$0xe] }
 0x447   : > { %v12202_v21 = vadd.f32 %v15978_v35, %v15973_v40  ;;  %v16115_v55 = vld [vmem:[#allocation2 + $0x50] ss:$0 sps:$4 sm:$0x11]   ;;  %v6932_v34 = vshrl.u32 %v11983_v4, 16  ;;  %v6935_v12 = vshll.u32 %v11983_v4, 16  ;;  %v8573_v30 = vsel %vm1367_vm10, %v8568_v43, %v8572_v13  ;;  %v16122_v38 = vpop.f32.mrb[72].mxu1 }
 0x448   : > { %v6684_v1 = vsel %vm6620_vm14, %v6588_v24, %v6652_v62  ;;  %17869 = vst [vmem:[#allocation27_spill] sm:$0xff] %v16111_v11  ;;  %8734 = vrot.lane.b32.xlu0 %v8573_v30, %s13158_s12  ;;  %v7599_v24 = vrot.slane %v7597_v48, 1  ;;  %v7604_v62 = vrot.slane %v7602_v36, 1  ;;  %v12205_v58 = vadd.f32 %v15987_v25, %v15983_v28  ;;  %v16125_v29 = vpop.f32.mrb[73].mxu1 }
 0x449   : > { %v11984_v53 = vpack.c.bf16 %v6684_v1, %v6684_v1  ;;  %v6471_v7 = vadd.f32 %v15705_v39, %v12202_v21  ;;  %v6934_v40 = vrot.slane %v6932_v34, 7  ;;  %v11777_v4 = vcombine.low %v7406_v0, %v16102_v17  ;;  %v12878_v1 = vld [vmem:[#allocation2 + $0x44] ss:$0 sps:$4 sm:$0x11]   ;;  %12275 = vmatpush3.bf16.msra.mxu1 %v12952_v18  ;;  %v16130_v28 = vpop.f32.mrb[74].mxu1 }
 0x44a   : > { %v7600_v43 = vor.u32 %v7599_v24, %v7595_v20  ;;  %v6474_v39 = vadd.f32 %v15709_v44, %v12205_v58  ;;  %v8823_v48 = vrot.slane %v16115_v55, 1  ;;  %v16132_v30 = vpop.f32.mrb[75].mxu1  ;;  %v7170_v0 = vld [vmem:[#allocation2 + $0x6c] sm:$0xf]  ;;  %v7237_v24 = vld [vmem:[#allocation2 + $0x40] sm:$0xf] }
 0x44b   : > { %v6940_v35 = vshrl.u32 %v11984_v53, 16  ;;  %v6943_v5 = vshll.u32 %v11984_v53, 16  ;;  %v6550_v13 = vmul.f32 %v16066_v10, %v6471_v7  ;;  %v6937_v25 = vor.u32 %v6935_v12, %v6934_v40  ;;  %v7342_v53 = vld [vmem:[#allocation2 + $0x3c] sm:$0xe] }
 0x44c   : > { %v6938_v36 = vrot.slane %v6934_v40, 4  ;;  %v8822_v34 = vrot.slane %v11777_v4, 1  ;;  %v7605_v26 = vsel %vm1367_vm10, %v7600_v43, %v7604_v62  ;;  %8464 = vrot.lane.b32.xlu0 %v16108_v16, %s13156_s30  ;;  %v6551_v44 = vmul.f32 %v16066_v10, %v6474_v39  ;;  %v7174_v40 = vld [vmem:[#allocation2 + $0x74] sm:$0x1] }
 0x44d   : > { %v6942_v21 = vrot.slane %v6940_v35, 7  ;;  %v6589_v20 = vadd.f32 %v16060_v46, %v6550_v13  ;;  %v11729_v18 = vcombine.low %v7342_v53, %v16092_v3  ;;  %v7171_v12 = vsel %vm13321_vm8, %v6937_v25, %v7170_v0  ;;  %7746 = vrot.lane.b32.xlu1 %v7605_v26, %s13157_s11  ;;  %v12880_v35 = vld [vmem:[#allocation2 + $0x44] ss:$0 sps:$4 sm:$0x11]   ;;  %v7236_v13 = vld [vmem:[#allocation2 + $0x3c] sm:$0xf] }
 0x44e   : > { %v8824_v62 = vsel %vm1640_vm7, %v8822_v34, %v8823_v48  ;;  %7172 = vst [vmem:[#allocation2 + $0x6c] sm:$0xf] %v7171_v12  ;;  %v6590_v43 = vadd.f32 %v16060_v46, %v6551_v44  ;;  %v8311_v25 = vrot.slane %v12878_v1, 1  ;;  %v7279_v26 = vld [vmem:[#allocation2 + $0x3c] sm:$0xe]  ;;  %v8575_v1 = vshrl.u32 %v16108_v16, 16 }
 0x44f   : > { %v6945_v7 = vor.u32 %v6943_v5, %v6942_v21  ;;  %v6947_v58 = vrot.slane %v6942_v21, 4  ;;  %vm6621_vm15 = vcmp.gt.f32.partialorder %v6589_v20, 0.0  ;;  %v6653_v4 = vmul.f32 0.1, %v6589_v20  ;;  %12474 = vmatprep.mubr.msk.bf16.mxu0 %vm2681_vm11, %v8824_v62  ;;  %v16153_v0 = vpop.f32.mrb[76].mxu1 }
 0x450   : > { %v8310_v3 = vrot.slane %v11729_v18, 1  ;;  %v16150_v21 = vcombine.low %v7236_v13, %v7237_v24  ;;  %vm6622_vm1 = vcmp.gt.f32.partialorder %v6590_v43, 0.0  ;;  %v6654_v34 = vmul.f32 0.1, %v6590_v43  ;;  %v16159_v12 = vpop.f32.mrb[77].mxu1 }
 0x451   : > { %v6946_v39 = vsel %vm13329_vm9, %v6938_v36, %v6945_v7  ;;  %v7175_v5 = vsel %vm13270_vm3, %v6947_v58, %v7174_v40  ;;  %v6685_v48 = vsel %vm6621_vm15, %v6589_v20, %v6653_v4  ;;  %v11682_v53 = vcombine.low %v7279_v26, %v7237_v24  ;;  %7986 = vrot.lane.b32.xlu1 %v16111_v11, %s13158_s12  ;;  %v16164_v40 = vpop.f32.mrb[78].mxu1 }
 0x452   : > { %17870 = vst [vmem:[#allocation9_spill] sm:$0xff] %v16150_v21  ;;  %7173 = vst.msk [vmem:[#allocation2 + $0x70] sm:$0xf] %vm359_vm0, %v6946_v39  ;;  %v11985_v36 = vpack.c.bf16 %v6685_v48, %v6685_v48  ;;  %v8312_v44 = vsel %vm1640_vm7, %v8310_v3, %v8311_v25  ;;  %v7834_v18 = vrot.slane %v12880_v35, 1  ;;  %v6686_v7 = vsel %vm6622_vm1, %v6590_v43, %v6654_v34  ;;  %v16167_v39 = vpop.f32.mrb[79].mxu1 }
 0x453   : > { %7176 = vst [vmem:[#allocation2 + $0x74] sm:$0x1] %v7175_v5  ;;  %8354 = vrot.lane.b32.xlu0 %v8312_v44, %s13157_s11  ;;  %v7833_v20 = vrot.slane %v11682_v53, 1  ;;  %v8577_v58 = vshll.u32 %v16108_v16, 16  ;;  %v8582_v24 = vshll.u32 %v16018_v63, 16  ;;  %v11986_v13 = vpack.c.bf16 %v6686_v7, %v6686_v7 }
 0x454   : > { %v6949_v62 = vshrl.u32 %v11985_v36, 16  ;;  %v6952_v4 = vshll.u32 %v11985_v36, 16  ;;  %v7607_v3 = vshrl.u32 %v16150_v21, 16  ;;  %v7609_v26 = vshll.u32 %v16150_v21, 16  ;;  %v7177_v53 = vld [vmem:[#allocation2 + $0x78] sm:$0xf] }
 0x455   : > { %v7835_v5 = vsel %vm1640_vm7, %v7833_v20, %v7834_v18  ;;  %v8579_v25 = vrot.slane %v8577_v58, 1  ;;  %v8584_v43 = vrot.slane %v8582_v24, 1  ;;  %v6957_v34 = vshrl.u32 %v11986_v13, 16  ;;  %v16176_v18 = vld [vmem:[#allocation2 + $0x58] sm:$0xf] }
 0x456   : > { %v6951_v48 = vrot.slane %v6949_v62, 7  ;;  %v6960_v16 = vshll.u32 %v11986_v13, 16  ;;  %7876 = vrot.lane.b32.xlu1 %v7835_v5, %s13156_s30  ;;  %v7614_v63 = vshll.u32 %v12880_v35, 16  ;;  %v7611_v36 = vrot.slane %v7609_v26, 1  ;;  %v7301_v21 = vld [vmem:[#allocation2 + $0x4c] sm:$0xf] }
 0x457   : > { %v8580_v44 = vor.u32 %v8579_v25, %v8575_v1  ;;  %v12208_v7 = vadd.f32 %v16020_v52, %v16013_v27  ;;  %v12211_v11 = vadd.f32 %v16032_v23, %v16030_v60  ;;  %v16178_v20 = vld [vmem:[#allocation2 + $0x5c] ss:$0 sps:$4 sm:$0x11]   ;;  %v6959_v62 = vrot.slane %v6957_v34, 7  ;;  %v7181_v5 = vld [vmem:[#allocation2 + $0x80] sm:$0x1] }
 0x458   : > { %v6954_v58 = vor.u32 %v6952_v4, %v6951_v48  ;;  %v6955_v24 = vrot.slane %v6951_v48, 4  ;;  %v7616_v13 = vrot.slane %v7614_v63, 1  ;;  %v7612_v1 = vor.u32 %v7611_v36, %v7607_v3  ;;  %v7407_v52 = vld [vmem:[#allocation2 + $0x54] sm:$0xe]  ;;  %v7362_v26 = vld [vmem:[#allocation2 + $0x48] sm:$0xf] }
 0x459   : > { %v8585_v35 = vsel %vm1367_vm10, %v8580_v44, %v8584_v43  ;;  %v6479_v25 = vadd.f32 %v12208_v7, %v15723_v42  ;;  %v6482_v27 = vadd.f32 %v12211_v11, %v15727_v37  ;;  %v16183_v60 = vpop.f32.mrb[80].mxu1  ;;  %v6962_v4 = vor.u32 %v6960_v16, %v6959_v62  ;;  %v7300_v63 = vld [vmem:[#allocation2 + $0x48] sm:$0xf]  ;;  %v12886_v3 = vld [vmem:[#allocation2 + $0x50] ss:$0 sps:$4 sm:$0x11]  }
 0x45a   : > { %v7178_v23 = vsel %vm13321_vm8, %v6954_v58, %v7177_v53  ;;  %v6964_v48 = vrot.slane %v6959_v62, 4  ;;  %8736 = vrot.lane.b32.xlu0 %v8585_v35, %s13158_s12  ;;  %v11778_v34 = vcombine.low %v7407_v52, %v16176_v18  ;;  %v7343_v43 = vld [vmem:[#allocation2 + $0x48] sm:$0xe]  ;;  %v16189_v44 = vpop.f32.mrb[81].mxu1  ;;  %v7617_v42 = vsel %vm1367_vm10, %v7612_v1, %v7616_v13  ;;  %v7239_v16 = vld [vmem:[#allocation2 + $0x4c] sm:$0xf] }
 0x45b   : > { %7179 = vst [vmem:[#allocation2 + $0x78] sm:$0xf] %v7178_v23  ;;  %v6552_v37 = vmul.f32 %v16066_v10, %v6479_v25  ;;  %v6553_v11 = vmul.f32 %v16066_v10, %v6482_v27  ;;  %v8826_v53 = vrot.slane %v16178_v20, 1  ;;  %v16195_v36 = vpop.f32.mrb[82].mxu1  ;;  %v6963_v7 = vsel %vm13329_vm9, %v6955_v24, %v6962_v4  ;;  %7748 = vrot.lane.b32.xlu1 %v7617_v42, %s13157_s11  ;;  %v7280_v23 = vld [vmem:[#allocation2 + $0x48] sm:$0xe] }
 0x45c   : > { %v7182_v58 = vsel %vm13270_vm3, %v6964_v48, %v7181_v5  ;;  %v8825_v62 = vrot.slane %v11778_v34, 1  ;;  %v11745_v13 = vcombine.low %v7362_v26, %v16102_v17  ;;  %v16203_v35 = vld [vmem:[#allocation2 + $0x50] ss:$0 sps:$4 sm:$0x11]   ;;  %v16205_v1 = vpop.f32.mrb[83].mxu1  ;;  %v16210_v24 = vcombine.low %v7300_v63, %v7301_v21 }
 0x45d   : > { %7180 = vst.msk [vmem:[#allocation2 + $0x7c] sm:$0xf] %vm359_vm0, %v6963_v7  ;;  %7183 = vst [vmem:[#allocation2 + $0x80] sm:$0x1] %v7182_v58  ;;  %v6591_v25 = vadd.f32 %v16060_v46, %v6552_v37  ;;  %v6592_v27 = vadd.f32 %v16060_v46, %v6553_v11  ;;  %v11730_v52 = vcombine.low %v7343_v43, %v7301_v21  ;;  %v7238_v5 = vld [vmem:[#allocation2 + $0x48] sm:$0xf] }
 0x45e   : > { %v8827_v4 = vsel %vm1640_vm7, %v8825_v62, %v8826_v53  ;;  %8466 = vrot.lane.b32.xlu0 %v11745_v13, %s13156_s30  ;;  %v8314_v17 = vrot.slane %v12886_v3, 1  ;;  %v16214_v26 = vcombine.low %v7238_v5, %v7239_v16  ;;  %v11683_v48 = vcombine.low %v7280_v23, %v7239_v16 }
 0x45f   : > { %vm6623_vm2 = vcmp.gt.f32.partialorder %v6591_v25, 0.0  ;;  %v6655_v34 = vmul.f32 0.1, %v6591_v25  ;;  %vm6624_vm4 = vcmp.gt.f32.partialorder %v6592_v27, 0.0  ;;  %v6656_v42 = vmul.f32 0.1, %v6592_v27  ;;  %12475 = vmatmul.mubr.msk.bf16.gmra.mrb[112].mxu0 %vm2681_vm11, %v8827_v4  ;;  %7988 = vrot.lane.b32.xlu1 %v16210_v24, %s13158_s12 }
 0x460   : > { %17871 = vst [vmem:[#allocation24_spill] sm:$0xff] %v16214_v26  ;;  %v8313_v21 = vrot.slane %v11730_v52, 1  ;;  %v7836_v63 = vrot.slane %v11683_v48, 1  ;;  %v7837_v43 = vrot.slane %v16203_v35, 1  ;;  %v12214_v37 = vadd.f32 %v16081_v57, %v16074_v2 }
 0x461   : > { %v6687_v3 = vsel %vm6623_vm2, %v6591_v25, %v6655_v34  ;;  %v6688_v11 = vsel %vm6624_vm4, %v6592_v27, %v6656_v42  ;;  %v12217_v53 = vadd.f32 %v16098_v61, %v16094_v15  ;;  %v8587_v16 = vshrl.u32 %v11745_v13, 16  ;;  %v16230_v57 = vpop.f32.mrb[84].mxu1 }
 0x462   : > { %v11987_v7 = vpack.c.bf16 %v6687_v3, %v6687_v3  ;;  %v11988_v58 = vpack.c.bf16 %v6688_v11, %v6688_v11  ;;  %v8315_v62 = vsel %vm1640_vm7, %v8313_v21, %v8314_v17  ;;  %v7838_v5 = vsel %vm1640_vm7, %v7836_v63, %v7837_v43  ;;  %v7184_v43 = vld [vmem:[#allocation2 + $0x84] sm:$0xf] }
 0x463   : > { %8356 = vrot.lane.b32.xlu0 %v8315_v62, %s13157_s11  ;;  %v6487_v52 = vadd.f32 %v15719_v51, %v12214_v37  ;;  %v6490_v23 = vadd.f32 %v15725_v49, %v12217_v53  ;;  %v8589_v4 = vshll.u32 %v11745_v13, 16  ;;  %v8594_v2 = vshll.u32 %v16115_v55, 16  ;;  %7878 = vrot.lane.b32.xlu1 %v7838_v5, %s13156_s30  ;;  %v16235_v51 = vpop.f32.mrb[85].mxu1  ;;  %v7188_v37 = vld [vmem:[#allocation2 + $0x8c] sm:$0x1] }
 0x464   : > { %v6966_v25 = vshrl.u32 %v11987_v7, 16  ;;  %v6969_v15 = vshll.u32 %v11987_v7, 16  ;;  %v6974_v61 = vshrl.u32 %v11988_v58, 16  ;;  %v6977_v27 = vshll.u32 %v11988_v58, 16  ;;  %v16239_v63 = vpop.f32.mrb[86].mxu1 }
 0x465   : > { %v6554_v17 = vmul.f32 %v16066_v10, %v6487_v52  ;;  %v6555_v48 = vmul.f32 %v16066_v10, %v6490_v23  ;;  %v8591_v34 = vrot.slane %v8589_v4, 1  ;;  %v8596_v42 = vrot.slane %v8594_v2, 1  ;;  %v16244_v58 = vld [vmem:[#allocation2 + $0x68] ss:$0 sps:$4 sm:$0x11]   ;;  %v16246_v62 = vpop.f32.mrb[87].mxu1 }
 0x466   : > { %v6968_v49 = vrot.slane %v6966_v25, 7  ;;  %v6976_v13 = vrot.slane %v6974_v61, 7  ;;  %v7619_v55 = vshrl.u32 %v16214_v26, 16  ;;  %v7621_v21 = vshll.u32 %v16214_v26, 16  ;;  %v16248_v2 = vld [vmem:[#allocation2 + $0x64] sm:$0xf] }
 0x467   : > { %v6593_v3 = vadd.f32 %v16060_v46, %v6554_v17  ;;  %v6594_v11 = vadd.f32 %v16060_v46, %v6555_v48  ;;  %v8592_v53 = vor.u32 %v8591_v34, %v8587_v16  ;;  %v7626_v7 = vshll.u32 %v16203_v35, 16  ;;  %v7364_v48 = vld [vmem:[#allocation2 + $0x54] sm:$0xf] }
 0x468   : > { %v6971_v5 = vor.u32 %v6969_v15, %v6968_v49  ;;  %v6972_v52 = vrot.slane %v6968_v49, 4  ;;  %v6979_v23 = vor.u32 %v6977_v27, %v6976_v13  ;;  %v6981_v4 = vrot.slane %v6976_v13, 4  ;;  %v7303_v27 = vld [vmem:[#allocation2 + $0x58] sm:$0xf] }
 0x469   : > { %vm6625_vm5 = vcmp.gt.f32.partialorder %v6593_v3, 0.0  ;;  %v6657_v25 = vmul.f32 0.1, %v6593_v3  ;;  %vm6626_vm6 = vcmp.gt.f32.partialorder %v6594_v11, 0.0  ;;  %v6658_v61 = vmul.f32 0.1, %v6594_v11 }
 0x46a   : > { %v7185_v17 = vsel %vm13321_vm8, %v6971_v5, %v7184_v43  ;;  %v6980_v35 = vsel %vm13329_vm9, %v6972_v52, %v6979_v23  ;;  %v7189_v16 = vsel %vm13270_vm3, %v6981_v4, %v7188_v37  ;;  %v8597_v15 = vsel %vm1367_vm10, %v8592_v53, %v8596_v42  ;;  %v7408_v5 = vld [vmem:[#allocation2 + $0x60] sm:$0xe]  ;;  %v7302_v42 = vld [vmem:[#allocation2 + $0x54] sm:$0xf] }
 0x46b   : > { %7186 = vst [vmem:[#allocation2 + $0x84] sm:$0xf] %v7185_v17  ;;  %7187 = vst.msk [vmem:[#allocation2 + $0x88] sm:$0xf] %vm359_vm0, %v6980_v35  ;;  %v6689_v34 = vsel %vm6625_vm5, %v6593_v3, %v6657_v25  ;;  %v6690_v49 = vsel %vm6626_vm6, %v6594_v11, %v6658_v61  ;;  %8738 = vrot.lane.b32.xlu0 %v8597_v15, %s13158_s12  ;;  %v7623_v13 = vrot.slane %v7621_v21, 1  ;;  %v7628_v43 = vrot.slane %v7626_v7, 1 }
 0x46c   : > { %7190 = vst [vmem:[#allocation2 + $0x8c] sm:$0x1] %v7189_v16  ;;  %v11989_v26 = vpack.c.bf16 %v6689_v34, %v6689_v34  ;;  %v11990_v52 = vpack.c.bf16 %v6690_v49, %v6690_v49  ;;  %v11779_v23 = vcombine.low %v7408_v5, %v16248_v2  ;;  %v8829_v37 = vrot.slane %v16244_v58, 1  ;;  %v12895_v53 = vld [vmem:[#allocation2 + $0x5c] ss:$0 sps:$4 sm:$0x11]  }
 0x46d   : > { %v7624_v4 = vor.u32 %v7623_v13, %v7619_v55  ;;  %v16262_v17 = vcombine.low %v7364_v48, %v16176_v18  ;;  %v16264_v35 = vcombine.low %v7302_v42, %v7303_v27  ;;  %v12220_v3 = vadd.f32 %v16125_v29, %v16122_v38  ;;  %v7241_v61 = vld [vmem:[#allocation2 + $0x58] sm:$0xf]  ;;  %v7344_v48 = vld [vmem:[#allocation2 + $0x54] sm:$0xe] }
 0x46e   : > { %v6983_v21 = vshrl.u32 %v11989_v26, 16  ;;  %v6986_v11 = vshll.u32 %v11989_v26, 16  ;;  %v6991_v7 = vshrl.u32 %v11990_v52, 16  ;;  %v6994_v25 = vshll.u32 %v11990_v52, 16  ;;  %v7240_v34 = vld [vmem:[#allocation2 + $0x54] sm:$0xf] }
 0x46f   : > { %v7629_v16 = vsel %vm1367_vm10, %v7624_v4, %v7628_v43  ;;  %v8828_v15 = vrot.slane %v11779_v23, 1  ;;  %8468 = vrot.lane.b32.xlu0 %v16262_v17, %s13156_s30  ;;  %v6495_v55 = vadd.f32 %v12220_v3, %v15731_v56  ;;  %v12223_v18 = vadd.f32 %v16132_v30, %v16130_v28  ;;  %v16275_v13 = vld [vmem:[#allocation2 + $0x5c] ss:$0 sps:$4 sm:$0x11]   ;;  %v7191_v43 = vld [vmem:[#allocation2 + $0x90] sm:$0xf] }
 0x470   : > { %v6985_v49 = vrot.slane %v6983_v21, 7  ;;  %v6993_v29 = vrot.slane %v6991_v7, 7  ;;  %7750 = vrot.lane.b32.xlu1 %v7629_v16, %s13157_s11  ;;  %v11731_v38 = vcombine.low %v7344_v48, %v7303_v27  ;;  %v8317_v26 = vrot.slane %v12895_v53, 1  ;;  %v16282_v28 = vld [vmem:[#allocation2 + $0x74] ss:$0 sps:$4 sm:$0x11]  }
 0x471   : > { %v8830_v5 = vsel %vm1640_vm7, %v8828_v15, %v8829_v37  ;;  %v6556_v52 = vmul.f32 %v16066_v10, %v6495_v55  ;;  %v6498_v56 = vadd.f32 %v12223_v18, %v15735_v33  ;;  %v16280_v23 = vcombine.low %v7240_v34, %v7241_v61  ;;  %v7281_v27 = vld [vmem:[#allocation2 + $0x54] sm:$0xe]  ;;  %v7195_v53 = vld [vmem:[#allocation2 + $0x98] sm:$0x1]  ;;  %v16287_v15 = vld [vmem:[#allocation2 + $0x70] sm:$0xf]  ;;  %v16298_v18 = vpop.permute.xlu1 %7738 }
 0x472   : > { %v6988_v30 = vor.u32 %v6986_v11, %v6985_v49  ;;  %v6989_v42 = vrot.slane %v6985_v49, 4  ;;  %v6996_v4 = vor.u32 %v6994_v25, %v6993_v29  ;;  %v6998_v3 = vrot.slane %v6993_v29, 4  ;;  %12478 = vmatprep.mubr.msk.bf16.mxu0 %vm2681_vm11, %v8830_v5  ;;  %v7409_v49 = vld [vmem:[#allocation2 + $0x6c] sm:$0xe] }
 0x473   : > { %17872 = vst [vmem:[#allocation16_spill] sm:$0xff] %v16280_v23  ;;  %v6595_v21 = vadd.f32 %v16060_v46, %v6556_v52  ;;  %v6557_v37 = vmul.f32 %v16066_v10, %v6498_v56  ;;  %v8316_v7 = vrot.slane %v11731_v38, 1  ;;  %v11684_v16 = vcombine.low %v7281_v27, %v7241_v61 }
 0x474   : > { %v7192_v33 = vsel %vm13321_vm8, %v6988_v30, %v7191_v43  ;;  %v6997_v11 = vsel %vm13329_vm9, %v6989_v42, %v6996_v4  ;;  %v7196_v25 = vsel %vm13270_vm3, %v6998_v3, %v7195_v53  ;;  %7990 = vrot.lane.b32.xlu1 %v16264_v35, %s13158_s12  ;;  %v7840_v55 = vrot.slane %v16275_v13, 1 }
 0x475   : > { %7193 = vst [vmem:[#allocation2 + $0x90] sm:$0xf] %v7192_v33  ;;  %7194 = vst.msk [vmem:[#allocation2 + $0x94] sm:$0xf] %vm359_vm0, %v6997_v11  ;;  %vm6627_vm14 = vcmp.gt.f32.partialorder %v6595_v21, 0.0  ;;  %v6596_v48 = vadd.f32 %v16060_v46, %v6557_v37  ;;  %v8318_v34 = vsel %vm1640_vm7, %v8316_v7, %v8317_v26  ;;  %v7839_v29 = vrot.slane %v11684_v16, 1 }
 0x476   : > { %7197 = vst [vmem:[#allocation2 + $0x98] sm:$0x1] %v7196_v25  ;;  %v6659_v61 = vmul.f32 0.1, %v6595_v21  ;;  %8358 = vrot.lane.b32.xlu0 %v8318_v34, %s13157_s11  ;;  %v11780_v38 = vcombine.low %v7409_v49, %v16287_v15  ;;  %v8832_v43 = vrot.slane %v16282_v28, 1  ;;  %v8599_v5 = vshrl.u32 %v16262_v17, 16 }
 0x477   : > { %vm6628_vm15 = vcmp.gt.f32.partialorder %v6596_v48, 0.0  ;;  %v6660_v56 = vmul.f32 0.1, %v6596_v48  ;;  %v8601_v30 = vshll.u32 %v16262_v17, 16  ;;  %v7841_v4 = vsel %vm1640_vm7, %v7839_v29, %v7840_v55  ;;  %v16314_v17 = vpop.permute.xlu1 %7866 }
 0x478   : > { %v6691_v52 = vsel %vm6627_vm14, %v6595_v21, %v6659_v61  ;;  %v8831_v3 = vrot.slane %v11780_v38, 1  ;;  %v8606_v26 = vshll.u32 %v16178_v20, 16  ;;  %7880 = vrot.lane.b32.xlu1 %v7841_v4, %s13156_s30  ;;  %v7631_v37 = vshrl.u32 %v16280_v23, 16 }
 0x479   : > { %v11991_v42 = vpack.c.bf16 %v6691_v52, %v6691_v52  ;;  %v6692_v27 = vsel %vm6628_vm15, %v6596_v48, %v6660_v56  ;;  %v8603_v53 = vrot.slane %v8601_v30, 1  ;;  %v7633_v7 = vshll.u32 %v16280_v23, 16  ;;  %v7305_v48 = vld [vmem:[#allocation2 + $0x64] sm:$0xf]  ;;  %v7366_v52 = vld [vmem:[#allocation2 + $0x60] sm:$0xf] }
 0x47a   : > { %v11992_v33 = vpack.c.bf16 %v6692_v27, %v6692_v27  ;;  %v8833_v11 = vsel %vm1640_vm7, %v8831_v3, %v8832_v43  ;;  %v8608_v55 = vrot.slane %v8606_v26, 1  ;;  %v7638_v61 = vshll.u32 %v16275_v13, 16  ;;  %v7304_v56 = vld [vmem:[#allocation2 + $0x60] sm:$0xf]  ;;  %v7198_v43 = vld [vmem:[#allocation2 + $0x9c] sm:$0xf] }
 0x47b   : > { %v7000_v16 = vshrl.u32 %v11991_v42, 16  ;;  %v7003_v21 = vshll.u32 %v11991_v42, 16  ;;  %12479 = vmatmul.mubr.msk.bf16.gmra.mrb[116].mxu0 %vm2681_vm11, %v8833_v11  ;;  %v8604_v25 = vor.u32 %v8603_v53, %v8599_v5  ;;  %v7635_v20 = vrot.slane %v7633_v7, 1  ;;  %v12906_v30 = vld [vmem:[#allocation2 + $0x68] ss:$0 sps:$4 sm:$0x11]  }
 0x47c   : > { %v7008_v49 = vshrl.u32 %v11992_v33, 16  ;;  %v7011_v29 = vshll.u32 %v11992_v33, 16  ;;  %v12226_v38 = vadd.f32 %v16159_v12, %v16153_v0  ;;  %v7640_v3 = vrot.slane %v7638_v61, 1  ;;  %v16323_v26 = vld [vmem:[#allocation2 + $0x80] ss:$0 sps:$4 sm:$0x11]   ;;  %v16342_v61 = vpop.permute.xlu1 %7978 }
 0x47d   : > { %v7002_v34 = vrot.slane %v7000_v16, 7  ;;  %v8609_v42 = vsel %vm1367_vm10, %v8604_v25, %v8608_v55  ;;  %v7636_v4 = vor.u32 %v7635_v20, %v7631_v37  ;;  %v12229_v5 = vadd.f32 %v16167_v39, %v16164_v40  ;;  %v16327_v12 = vld [vmem:[#allocation2 + $0x7c] sm:$0xf]  ;;  %v7345_v7 = vld [vmem:[#allocation2 + $0x60] sm:$0xe] }
 0x47e   : > { %v7010_v53 = vrot.slane %v7008_v49, 7  ;;  %8740 = vrot.lane.b32.xlu0 %v8609_v42, %s13158_s12  ;;  %v6503_v0 = vadd.f32 %v15729_v50, %v12226_v38  ;;  %v16332_v33 = vcombine.low %v7366_v52, %v16248_v2  ;;  %v16334_v40 = vcombine.low %v7304_v56, %v7305_v48  ;;  %v7243_v39 = vld [vmem:[#allocation2 + $0x64] sm:$0xf]  ;;  %v7410_v20 = vld [vmem:[#allocation2 + $0x78] sm:$0xe] }
 0x47f   : > { %v7005_v13 = vor.u32 %v7003_v21, %v7002_v34  ;;  %v7006_v27 = vrot.slane %v7002_v34, 4  ;;  %v7641_v16 = vsel %vm1367_vm10, %v7636_v4, %v7640_v3  ;;  %v6506_v37 = vadd.f32 %v15733_v59, %v12229_v5  ;;  %v16336_v21 = vld [vmem:[#allocation2 + $0x68] ss:$0 sps:$4 sm:$0x11]   ;;  %v7202_v59 = vld [vmem:[#allocation2 + $0xa4] sm:$0x1] }
 0x480   : > { %v7013_v25 = vor.u32 %v7011_v29, %v7010_v53  ;;  %v7015_v50 = vrot.slane %v7010_v53, 4  ;;  %7752 = vrot.lane.b32.xlu1 %v7641_v16, %s13157_s11  ;;  %v6558_v55 = vmul.f32 %v16066_v10, %v6503_v0  ;;  %v11781_v34 = vcombine.low %v7410_v20, %v16327_v12  ;;  %v7282_v42 = vld [vmem:[#allocation2 + $0x60] sm:$0xe] }
 0x481   : > { %v7199_v11 = vsel %vm13321_vm8, %v7005_v13, %v7198_v43  ;;  %v6559_v2 = vmul.f32 %v16066_v10, %v6506_v37  ;;  %v8835_v49 = vrot.slane %v16323_v26, 1  ;;  %v11732_v38 = vcombine.low %v7345_v7, %v7305_v48  ;;  %v7242_v13 = vld [vmem:[#allocation2 + $0x60] sm:$0xf] }
 0x482   : > { %7200 = vst [vmem:[#allocation2 + $0x9c] sm:$0xf] %v7199_v11  ;;  %v7014_v29 = vsel %vm13329_vm9, %v7006_v27, %v7013_v25  ;;  %v7203_v52 = vsel %vm13270_vm3, %v7015_v50, %v7202_v59  ;;  %v6597_v56 = vadd.f32 %v16060_v46, %v6558_v55  ;;  %8470 = vrot.lane.b32.xlu0 %v16332_v33, %s13156_s30  ;;  %v8320_v43 = vrot.slane %v12906_v30, 1 }
 0x483   : > { %7201 = vst.msk [vmem:[#allocation2 + $0xa0] sm:$0xf] %vm359_vm0, %v7014_v29  ;;  %7204 = vst [vmem:[#allocation2 + $0xa4] sm:$0x1] %v7203_v52  ;;  %v6598_v4 = vadd.f32 %v16060_v46, %v6559_v2  ;;  %v8834_v3 = vrot.slane %v11781_v34, 1  ;;  %v8319_v48 = vrot.slane %v11732_v38, 1  ;;  %v11685_v5 = vcombine.low %v7282_v42, %v7243_v39  ;;  %v16373_v34 = vpop.permute.xlu0 %8346 }
 0x484   : > { %vm6629_vm1 = vcmp.gt.f32.partialorder %v6597_v56, 0.0  ;;  %v6661_v27 = vmul.f32 0.1, %v6597_v56  ;;  %7992 = vrot.lane.b32.xlu1 %v16334_v40, %s13158_s12  ;;  %v7843_v53 = vrot.slane %v16336_v21, 1  ;;  %v16359_v0 = vcombine.low %v7242_v13, %v7243_v39  ;;  %v16369_v39 = vpop.permute.xlu1 %7868 }
 0x485   : > { %vm6630_vm2 = vcmp.gt.f32.partialorder %v6598_v4, 0.0  ;;  %v6662_v30 = vmul.f32 0.1, %v6598_v4  ;;  %v8836_v7 = vsel %vm1640_vm7, %v8834_v3, %v8835_v49  ;;  %v8321_v16 = vsel %vm1640_vm7, %v8319_v48, %v8320_v43 }
 0x486   : > { %17873 = vst [vmem:[#allocation13_spill] sm:$0xff] %v16359_v0  ;;  %v6693_v37 = vsel %vm6629_vm1, %v6597_v56, %v6661_v27  ;;  %12482 = vmatprep.mubr.msk.bf16.mxu0 %vm2681_vm11, %v8836_v7  ;;  %8360 = vrot.lane.b32.xlu0 %v8321_v16, %s13157_s11  ;;  %v7842_v11 = vrot.slane %v11685_v5, 1  ;;  %v12232_v25 = vadd.f32 %v16189_v44, %v16183_v60  ;;  %v8611_v59 = vshrl.u32 %v16332_v33, 16 }
 0x487   : > { %v12235_v50 = vadd.f32 %v16205_v1, %v16195_v36  ;;  %v11993_v55 = vpack.c.bf16 %v6693_v37, %v6693_v37  ;;  %v6694_v20 = vsel %vm6630_vm2, %v6598_v4, %v6662_v30  ;;  %v8613_v2 = vshll.u32 %v16332_v33, 16  ;;  %v16383_v5 = vpop.permute.xlu0 %8458 }
 0x488   : > { %v11994_v49 = vpack.c.bf16 %v6694_v20, %v6694_v20  ;;  %v7844_v38 = vsel %vm1640_vm7, %v7842_v11, %v7843_v53  ;;  %v6511_v29 = vadd.f32 %v12232_v25, %v15870_v32  ;;  %v8618_v1 = vshll.u32 %v16244_v58, 16  ;;  %v16388_v30 = vpop.permute.xlu1 %7740  ;;  %v16392_v25 = vld [vmem:[#allocation2 + $0x8c] ss:$0 sps:$4 sm:$0x11]  }
 0x489   : > { %v6514_v60 = vadd.f32 %v12235_v50, %v15885_v9  ;;  %v7017_v44 = vshrl.u32 %v11993_v55, 16  ;;  %v7020_v52 = vshll.u32 %v11993_v55, 16  ;;  %7882 = vrot.lane.b32.xlu1 %v7844_v38, %s13156_s30  ;;  %v8615_v36 = vrot.slane %v8613_v2, 1  ;;  %v7205_v9 = vld [vmem:[#allocation2 + $0xa8] sm:$0xf] }
 0x48a   : > { %v7025_v56 = vshrl.u32 %v11994_v49, 16  ;;  %v7028_v43 = vshll.u32 %v11994_v49, 16  ;;  %v6560_v33 = vmul.f32 %v16066_v10, %v6511_v29  ;;  %v8620_v48 = vrot.slane %v8618_v1, 1 }
 0x48b   : > { %v6561_v42 = vmul.f32 %v16066_v10, %v6514_v60  ;;  %v7019_v4 = vrot.slane %v7017_v44, 7  ;;  %v8616_v3 = vor.u32 %v8615_v36, %v8611_v59  ;;  %v7643_v32 = vshrl.u32 %v16359_v0, 16  ;;  %v7209_v10 = vld [vmem:[#allocation2 + $0xb0] sm:$0x1]  ;;  %v7411_v44 = vld [vmem:[#allocation2 + $0x84] sm:$0xe] }
 0x48c   : > { %v7027_v13 = vrot.slane %v7025_v56, 7  ;;  %v6599_v27 = vadd.f32 %v16060_v46, %v6560_v33  ;;  %v7645_v58 = vshll.u32 %v16359_v0, 16  ;;  %v7650_v11 = vshll.u32 %v16336_v21, 16  ;;  %v7368_v33 = vld [vmem:[#allocation2 + $0x6c] sm:$0xf] }
 0x48d   : > { %v6600_v53 = vadd.f32 %v16060_v46, %v6561_v42  ;;  %v7022_v7 = vor.u32 %v7020_v52, %v7019_v4  ;;  %v7023_v16 = vrot.slane %v7019_v4, 4  ;;  %v8621_v37 = vsel %vm1367_vm10, %v8616_v3, %v8620_v48  ;;  %v16395_v46 = vld [vmem:[#allocation2 + $0x88] sm:$0xf]  ;;  %v16403_v52 = vpop.permute.xlu1 %7980  ;;  %v7307_v42 = vld [vmem:[#allocation2 + $0x70] sm:$0xf]  ;;  %v16407_v4 = vpop.permute.xlu0 %8348 }
 0x48e   : > { %v7030_v50 = vor.u32 %v7028_v43, %v7027_v13  ;;  %v7032_v55 = vrot.slane %v7027_v13, 4  ;;  %vm6631_vm4 = vcmp.gt.f32.partialorder %v6599_v27, 0.0  ;;  %v6663_v20 = vmul.f32 0.1, %v6599_v27  ;;  %8742 = vrot.lane.b32.xlu0 %v8621_v37, %s13158_s12  ;;  %v7306_v13 = vld [vmem:[#allocation2 + $0x6c] sm:$0xf] }
 0x48f   : > { %v7206_v59 = vsel %vm13321_vm8, %v7022_v7, %v7205_v9  ;;  %vm6632_vm5 = vcmp.gt.f32.partialorder %v6600_v53, 0.0  ;;  %v6664_v2 = vmul.f32 0.1, %v6600_v53  ;;  %v7647_v49 = vrot.slane %v7645_v58, 1  ;;  %v7245_v58 = vld [vmem:[#allocation2 + $0x70] sm:$0xf] }
 0x490   : > { %7207 = vst [vmem:[#allocation2 + $0xa8] sm:$0xf] %v7206_v59  ;;  %v7031_v21 = vsel %vm13329_vm9, %v7023_v16, %v7030_v50  ;;  %v7210_v38 = vsel %vm13270_vm3, %v7032_v55, %v7209_v10  ;;  %v6695_v29 = vsel %vm6631_vm4, %v6599_v27, %v6663_v20  ;;  %v7652_v60 = vrot.slane %v7650_v11, 1  ;;  %v12916_v27 = vld [vmem:[#allocation2 + $0x74] ss:$0 sps:$4 sm:$0x11]  }
 0x491   : > { %7208 = vst.msk [vmem:[#allocation2 + $0xac] sm:$0xf] %vm359_vm0, %v7031_v21  ;;  %7211 = vst [vmem:[#allocation2 + $0xb0] sm:$0x1] %v7210_v38  ;;  %v11995_v36 = vpack.c.bf16 %v6695_v29, %v6695_v29  ;;  %v6696_v1 = vsel %vm6632_vm5, %v6600_v53, %v6664_v2  ;;  %v7648_v56 = vor.u32 %v7647_v49, %v7643_v32  ;;  %v8838_v48 = vrot.slane %v16392_v25, 1 }
 0x492   : > { %v11782_v43 = vcombine.low %v7411_v44, %v16395_v46  ;;  %v11996_v3 = vpack.c.bf16 %v6696_v1, %v6696_v1  ;;  %v16411_v9 = vcombine.low %v7368_v33, %v16287_v15  ;;  %v16414_v32 = vld [vmem:[#allocation2 + $0x74] ss:$0 sps:$4 sm:$0x11]   ;;  %v12238_v15 = vadd.f32 %v16235_v51, %v16230_v57  ;;  %v7346_v50 = vld [vmem:[#allocation2 + $0x6c] sm:$0xe]  ;;  %v16431_v33 = vpop.permute.xlu0 %8730 }
 0x493   : > { %v7034_v7 = vshrl.u32 %v11995_v36, 16  ;;  %v7653_v16 = vsel %vm1367_vm10, %v7648_v56, %v7652_v60  ;;  %v7037_v10 = vshll.u32 %v11995_v36, 16  ;;  %v16422_v59 = vcombine.low %v7306_v13, %v7307_v42  ;;  %v7283_v49 = vld [vmem:[#allocation2 + $0x6c] sm:$0xe]  ;;  %v7212_v21 = vld [vmem:[#allocation2 + $0xb4] sm:$0xf]  ;;  %v16426_v36 = vpop.permute.xlu1 %7870 }
 0x494   : > { %v8837_v53 = vrot.slane %v11782_v43, 1  ;;  %v7042_v37 = vshrl.u32 %v11996_v3, 16  ;;  %v7045_v11 = vshll.u32 %v11996_v3, 16  ;;  %7754 = vrot.lane.b32.xlu1 %v7653_v16, %s13157_s11  ;;  %8472 = vrot.lane.b32.xlu0 %v16411_v9, %s13156_s30  ;;  %v11733_v2 = vcombine.low %v7346_v50, %v7307_v42  ;;  %v16429_v43 = vld [vmem:[#allocation2 + $0x98] ss:$0 sps:$4 sm:$0x11]  }
 0x495   : > { %v7036_v55 = vrot.slane %v7034_v7, 7  ;;  %17874 = vst [vmem:[#allocation20_spill] sm:$0xff] %v16422_v59  ;;  %v6519_v29 = vadd.f32 %v15847_v45, %v12238_v15  ;;  %v8323_v60 = vrot.slane %v12916_v27, 1  ;;  %v11686_v44 = vcombine.low %v7283_v49, %v7245_v58  ;;  %v13045_v45 = vld [vmem:[%s17720_s6] ss:$0 sm:$0xff] }
 0x496   : > { %v8839_v20 = vsel %vm1640_vm7, %v8837_v53, %v8838_v48  ;;  %v7044_v38 = vrot.slane %v7042_v37, 7  ;;  %v8322_v51 = vrot.slane %v11733_v2, 1  ;;  %v7846_v56 = vrot.slane %v16414_v32, 1  ;;  %v16438_v27 = vld [vmem:[#allocation2 + $0x94] sm:$0xf] }
 0x497   : > { %12483 = vmatmul.mubr.msk.bf16.gmra.mrb[120].mxu0 %vm2681_vm11, %v8839_v20  ;;  %v7039_v1 = vor.u32 %v7037_v10, %v7036_v55  ;;  %v7040_v57 = vrot.slane %v7036_v55, 4  ;;  %v6562_v48 = vmul.f32 %v13045_v45, %v6519_v29  ;;  %v7845_v13 = vrot.slane %v11686_v44, 1  ;;  %v7216_v16 = vld [vmem:[#allocation2 + $0xbc] sm:$0x1]  ;;  %v7244_v10 = vld [vmem:[#allocation2 + $0x6c] sm:$0xf] }
 0x498   : > { %v7047_v42 = vor.u32 %v7045_v11, %v7044_v38  ;;  %v7049_v3 = vrot.slane %v7044_v38, 4  ;;  %7994 = vrot.lane.b32.xlu1 %v16422_v59, %s13158_s12  ;;  %v8324_v53 = vsel %vm1640_vm7, %v8322_v51, %v8323_v60  ;;  %v12241_v37 = vadd.f32 %v16246_v62, %v16239_v63  ;;  %v13046_v50 = vld [vmem:[%s17721_s7] ss:$0 sm:$0xff]  ;;  %v7412_v2 = vld [vmem:[#allocation2 + $0x90] sm:$0xe]  ;;  %v16466_v51 = vpop.permute.xlu0 %8460 }
 0x499   : > { %v7213_v7 = vsel %vm13321_vm8, %v7039_v1, %v7212_v21  ;;  %v6601_v55 = vadd.f32 %v13046_v50, %v6562_v48  ;;  %8362 = vrot.lane.b32.xlu0 %v8324_v53, %s13157_s11  ;;  %v16453_v20 = vcombine.low %v7244_v10, %v7245_v58  ;;  %v7847_v63 = vsel %vm1640_vm7, %v7845_v13, %v7846_v56  ;;  %v16462_v58 = vpop.permute.xlu1 %7742  ;;  %v7311_v0 = vld [vmem:[#allocation2 + $0x88] sm:$0xf] }
 0x49a   : > { %7214 = vst [vmem:[#allocation2 + $0xb4] sm:$0xf] %v7213_v7  ;;  %v7048_v11 = vsel %vm13329_vm9, %v7040_v57, %v7047_v42  ;;  %v7217_v15 = vsel %vm13270_vm3, %v7049_v3, %v7216_v16  ;;  %v6522_v62 = vadd.f32 %v15878_v31, %v12241_v37  ;;  %v11783_v49 = vcombine.low %v7412_v2, %v16438_v27  ;;  %v12927_v2 = vld [vmem:[#allocation2 + $0x80] ss:$0 sps:$4 sm:$0x11]  }
 0x49b   : > { %17875 = vst [vmem:[#allocation10_spill] sm:$0xff] %v16453_v20  ;;  %7215 = vst.msk [vmem:[#allocation2 + $0xb8] sm:$0xf] %vm359_vm0, %v7048_v11  ;;  %v8841_v21 = vrot.slane %v16429_v43, 1  ;;  %vm6633_vm6 = vcmp.gt.f32.partialorder %v6601_v55, 0.0  ;;  %v8625_v29 = vshll.u32 %v16411_v9, 16 }
 0x49c   : > { %7218 = vst [vmem:[#allocation2 + $0xbc] sm:$0x1] %v7217_v15  ;;  %v6665_v38 = vmul.f32 0.1, %v6601_v55  ;;  %7884 = vrot.lane.b32.xlu1 %v7847_v63, %s13156_s30  ;;  %v6563_v60 = vmul.f32 %v13045_v45, %v6522_v62  ;;  %v8840_v44 = vrot.slane %v11783_v49, 1  ;;  %v8623_v1 = vshrl.u32 %v16411_v9, 16 }
 0x49d   : > { %v8630_v57 = vshll.u32 %v16282_v28, 16  ;;  %v8627_v56 = vrot.slane %v8625_v29, 1  ;;  %v7657_v42 = vshll.u32 %v16453_v20, 16  ;;  %v7662_v3 = vshll.u32 %v16414_v32, 16  ;;  %v16475_v11 = vld [vmem:[#allocation2 + $0xa0] sm:$0xf]  ;;  %v16478_v63 = vpop.permute.xlu1 %7982 }
 0x49e   : > { %v6697_v31 = vsel %vm6633_vm6, %v6601_v55, %v6665_v38  ;;  %v6602_v13 = vadd.f32 %v13046_v50, %v6563_v60  ;;  %v8842_v7 = vsel %vm1640_vm7, %v8840_v44, %v8841_v21  ;;  %v7655_v9 = vshrl.u32 %v16453_v20, 16  ;;  %v16473_v28 = vld [vmem:[#allocation2 + $0xa4] ss:$0 sps:$4 sm:$0x11]   ;;  %v7370_v55 = vld [vmem:[#allocation2 + $0x78] sm:$0xf]  ;;  %v16481_v60 = vpop.permute.xlu0 %8350 }
 0x49f   : > { %v11997_v48 = vpack.c.bf16 %v6697_v31, %v6697_v31  ;;  %12486 = vmatprep.mubr.msk.bf16.mxu0 %vm2681_vm11, %v8842_v7  ;;  %v8628_v45 = vor.u32 %v8627_v56, %v8623_v1  ;;  %v8632_v16 = vrot.slane %v8630_v57, 1  ;;  %v7659_v53 = vrot.slane %v7657_v42, 1  ;;  %v7309_v38 = vld [vmem:[#allocation2 + $0x7c] sm:$0xf]  ;;  %v7219_v44 = vld [vmem:[#allocation2 + $0xc0] sm:$0xf] }
 0x4a0   : > { %vm6634_vm14 = vcmp.gt.f32.partialorder %v6602_v13, 0.0  ;;  %v6666_v37 = vmul.f32 0.1, %v6602_v13  ;;  %v7664_v50 = vrot.slane %v7662_v3, 1  ;;  %v7413_v29 = vld [vmem:[#allocation2 + $0x9c] sm:$0xe] }
 0x4a1   : > { %v7051_v10 = vshrl.u32 %v11997_v48, 16  ;;  %v8633_v32 = vsel %vm1367_vm10, %v8628_v45, %v8632_v16  ;;  %v7660_v15 = vor.u32 %v7659_v53, %v7655_v9  ;;  %v7054_v49 = vshll.u32 %v11997_v48, 16  ;;  %v7308_v31 = vld [vmem:[#allocation2 + $0x78] sm:$0xf]  ;;  %v7247_v45 = vld [vmem:[#allocation2 + $0x7c] sm:$0xf] }
 0x4a2   : > { %v6698_v21 = vsel %vm6634_vm14, %v6602_v13, %v6666_v37  ;;  %8744 = vrot.lane.b32.xlu0 %v8633_v32, %s13158_s12  ;;  %v11784_v56 = vcombine.low %v7413_v29, %v16475_v11  ;;  %v16485_v42 = vld [vmem:[#allocation2 + $0x80] ss:$0 sps:$4 sm:$0x11]   ;;  %v16489_v48 = vcombine.low %v7370_v55, %v16327_v12  ;;  %v8844_v13 = vrot.slane %v16473_v28, 1  ;;  %v7347_v7 = vld [vmem:[#allocation2 + $0x78] sm:$0xe] }
 0x4a3   : > { %v7053_v62 = vrot.slane %v7051_v10, 7  ;;  %v11998_v1 = vpack.c.bf16 %v6698_v21, %v6698_v21  ;;  %v7665_v57 = vsel %vm1367_vm10, %v7660_v15, %v7664_v50  ;;  %v8061_v9 = vshll.u32 %v15774_v19, 16  ;;  %v7284_v50 = vld [vmem:[#allocation2 + $0x78] sm:$0xe] }
 0x4a4   : > { %7756 = vrot.lane.b32.xlu1 %v7665_v57, %s13157_s11  ;;  %v16493_v53 = vcombine.low %v7308_v31, %v7309_v38  ;;  %v8843_v10 = vrot.slane %v11784_v56, 1  ;;  %v11734_v15 = vcombine.low %v7347_v7, %v7309_v38  ;;  %v8326_v12 = vrot.slane %v12927_v2, 1  ;;  %v7246_v57 = vld [vmem:[#allocation2 + $0x78] sm:$0xf]  ;;  %v16501_v31 = vld [vmem:[#allocation2 + $0xac] sm:$0xf]  ;;  %v16503_v56 = vpop.permute.xlu1 %7872 }
 0x4a5   : > { %v7056_v3 = vor.u32 %v7054_v49, %v7053_v62  ;;  %v7059_v16 = vshrl.u32 %v11998_v1, 16  ;;  %v7062_v32 = vshll.u32 %v11998_v1, 16  ;;  %v11687_v21 = vcombine.low %v7284_v50, %v7247_v45  ;;  %v16513_v50 = vld [vmem:[#allocation2 + $0xb0] ss:$0 sps:$4 sm:$0x11]  }
 0x4a6   : > { %17876 = vst [vmem:[#allocation14_spill] sm:$0xff] %v16493_v53  ;;  %8474 = vrot.lane.b32.xlu0 %v16489_v48, %s13156_s30  ;;  %v8845_v49 = vsel %vm1640_vm7, %v8843_v10, %v8844_v13  ;;  %v7849_v29 = vrot.slane %v16485_v42, 1  ;;  %v8325_v2 = vrot.slane %v11734_v15, 1  ;;  %v16509_v38 = vcombine.low %v7246_v57, %v7247_v45  ;;  %v16511_v13 = vpop.permute.xlu0 %8732 }
 0x4a7   : > { %v7220_v37 = vsel %vm13321_vm8, %v7056_v3, %v7219_v44  ;;  %v7061_v55 = vrot.slane %v7059_v16, 7  ;;  %v13047_v44 = vld [vmem:[#allocation2 + $0x14] ss:$0 sps:$4 sm:$0x11]   ;;  %v8059_v3 = vshrl.u32 %v15774_v19, 16  ;;  %12487 = vmatmul.mubr.msk.bf16.gmra.mrb[124].mxu0 %vm2681_vm11, %v8845_v49  ;;  %v7057_v7 = vrot.slane %v7053_v62, 4 }
 0x4a8   : > { %7221 = vst [vmem:[#allocation2 + $0xc0] sm:$0xf] %v7220_v37  ;;  %v8066_v1 = vshll.u32 %v13047_v44, 16  ;;  %7996 = vrot.lane.b32.xlu1 %v16493_v53, %s13158_s12  ;;  %17877 = vst [vmem:[#allocation25_spill] sm:$0xff] %v16509_v38  ;;  %v7848_v37 = vrot.slane %v11687_v21, 1  ;;  %v8063_v20 = vrot.slane %v8061_v9, 1  ;;  %v8327_v44 = vsel %vm1640_vm7, %v8325_v2, %v8326_v12 }
 0x4a9   : > { %v7064_v16 = vor.u32 %v7062_v32, %v7061_v55  ;;  %v7066_v10 = vrot.slane %v7061_v55, 4  ;;  %v8637_v19 = vshll.u32 %v16489_v48, 16  ;;  %v8642_v53 = vshll.u32 %v16323_v26, 16  ;;  %v7414_v9 = vld [vmem:[#allocation2 + $0xa8] sm:$0xe] }
 0x4aa   : > { %8364 = vrot.lane.b32.xlu0 %v8327_v44, %s13157_s11  ;;  %v7850_v62 = vsel %vm1640_vm7, %v7848_v37, %v7849_v29  ;;  %v7669_v32 = vshll.u32 %v16509_v38, 16  ;;  %v7372_v55 = vld [vmem:[#allocation2 + $0x84] sm:$0xf]  ;;  %v8635_v6 = vshrl.u32 %v16489_v48, 16  ;;  %v7674_v54 = vshll.u32 %v16485_v42, 16 }
 0x4ab   : > { %v7065_v45 = vsel %vm13329_vm9, %v7057_v7, %v7064_v16  ;;  %v7224_v15 = vsel %vm13270_vm3, %v7066_v10, %v7223_v14  ;;  %v7348_v12 = vld [vmem:[#allocation2 + $0x84] sm:$0xe]  ;;  %v8639_v26 = vrot.slane %v8637_v19, 1  ;;  %v11785_v49 = vcombine.low %v7414_v9, %v16501_v31  ;;  %v16530_v21 = vld [vmem:[#allocation2 + $0xbc] ss:$0 sps:$4 sm:$0x11]   ;;  %v16534_v16 = vpop.permute.xlu1 %7744 }
 0x4ac   : > { %7222 = vst.msk [vmem:[#allocation2 + $0xc4] sm:$0xf] %vm359_vm0, %v7065_v45  ;;  %7225 = vst [vmem:[#allocation2 + $0xc8] sm:$0x1] %v7224_v15  ;;  %7886 = vrot.lane.b32.xlu1 %v7850_v62, %s13156_s30  ;;  %v8644_v29 = vrot.slane %v8642_v53, 1  ;;  %v7667_v57 = vshrl.u32 %v16509_v38, 16  ;;  %v11750_v48 = vcombine.low %v7372_v55, %v16395_v46  ;;  %v11735_v42 = vcombine.low %v7348_v12, %v7311_v0  ;;  %v16541_v45 = vpop.permute.xlu0 %8462 }
 0x4ad   : > { %v7671_v14 = vrot.slane %v7669_v32, 1  ;;  %v8847_v2 = vrot.slane %v16513_v50, 1  ;;  %v7249_v7 = vld [vmem:[#allocation2 + $0x88] sm:$0xf]  ;;  %v8640_v10 = vor.u32 %v8639_v26, %v8635_v6  ;;  %v8846_v37 = vrot.slane %v11785_v49, 1 }
 0x4ae   : > { %v16537_v44 = vld [vmem:[#allocation2 + $0x8c] ss:$0 sps:$4 sm:$0x11]   ;;  %v16539_v19 = vld [vmem:[#allocation2 + $0xb8] sm:$0xf]  ;;  %v8859_v53 = vsel %vm2681_vm11, %v15696_v47, %v16298_v18  ;;  %v8064_v15 = vor.u32 %v8063_v20, %v8059_v3  ;;  %v7676_v32 = vrot.slane %v7674_v54, 1 }
 0x4af   : > { %v7672_v62 = vor.u32 %v7671_v14, %v7667_v57  ;;  %v7248_v9 = vld [vmem:[#allocation2 + $0x84] sm:$0xf]  ;;  %v8068_v38 = vrot.slane %v8066_v1, 1  ;;  %v8645_v6 = vsel %vm1367_vm10, %v8640_v10, %v8644_v29  ;;  %v8848_v46 = vsel %vm1640_vm7, %v8846_v37, %v8847_v2  ;;  %v7415_v12 = vld [vmem:[#allocation2 + $0xb4] sm:$0xe]  ;;  %v16560_v37 = vpop.permute.xlu1 %7984 }
 0x4b0   : > { %v7285_v55 = vld [vmem:[#allocation2 + $0x84] sm:$0xe]  ;;  %v16548_v26 = vcombine.low %v7248_v9, %v7249_v7  ;;  %8746 = vrot.lane.b32.xlu0 %v8645_v6, %s13158_s12  ;;  %12490 = vmatprep.mubr.msk.bf16.mxu0 %vm2681_vm11, %v8848_v46  ;;  %v12940_v47 = vld [vmem:[#allocation2 + $0x8c] ss:$0 sps:$4 sm:$0x11]   ;;  %v11786_v20 = vcombine.low %v7415_v12, %v16539_v19  ;;  %v8850_v1 = vrot.slane %v16530_v21, 1  ;;  %v8891_v57 = vsel %vm2714_vm12, %v8859_v53, %v16314_v17  ;;  %v16569_v6 = vpop.permute.xlu0 %8352 }
 0x4b1   : > { %v7677_v49 = vsel %vm1367_vm10, %v7672_v62, %v7676_v32  ;;  %v11688_v18 = vcombine.low %v7285_v55, %v7249_v7  ;;  %v8328_v3 = vrot.slane %v11735_v42, 1  ;;  %v8329_v54 = vrot.slane %v16537_v44, 1  ;;  %v7310_v2 = vld [vmem:[#allocation2 + $0x84] sm:$0xf]  ;;  %v7374_v46 = vld [vmem:[#allocation2 + $0x90] sm:$0xf] }
 0x4b2   : > { %17878 = vst [vmem:[#allocation11_spill] sm:$0xff] %v16548_v26  ;;  %7758 = vrot.lane.b32.xlu1 %v7677_v49, %s13157_s11  ;;  %v8649_v29 = vshll.u32 %v11750_v48, 16  ;;  %v8069_v14 = vsel %vm1367_vm10, %v8064_v15, %v8068_v38  ;;  %v8849_v10 = vrot.slane %v11786_v20, 1  ;;  %v16564_v62 = vcombine.low %v7310_v2, %v7311_v0  ;;  %v7313_v55 = vld [vmem:[#allocation2 + $0x94] sm:$0xf] }
 0x4b3   : > { %v8972_v7 = vsel %vm2681_vm11, %v8069_v14, %v16373_v34  ;;  %v7681_v42 = vshll.u32 %v16548_v26, 16  ;;  %v16567_v9 = vld [vmem:[#allocation2 + $0xc4] sm:$0xf]  ;;  %v7851_v17 = vrot.slane %v11688_v18, 1  ;;  %v7852_v38 = vrot.slane %v12940_v47, 1 }
 0x4b4   : > { %v8651_v32 = vrot.slane %v8649_v29, 1  ;;  %8476 = vrot.lane.b32.xlu0 %v11750_v48, %s13156_s30  ;;  %v8851_v53 = vsel %vm1640_vm7, %v8849_v10, %v8850_v1  ;;  %v8073_v15 = vshll.u32 %v15822_v22, 16  ;;  %v16574_v34 = vld [vmem:[#allocation2 + $0xc8] ss:$0 sps:$4 sm:$0x11]   ;;  %v8330_v0 = vsel %vm1640_vm7, %v8328_v3, %v8329_v54 }
 0x4b5   : > { %12491 = vmatmul.mubr.msk.bf16.gmra.mrb[128].mxu0 %vm2681_vm11, %v8851_v53  ;;  %v8647_v12 = vshrl.u32 %v11750_v48, 16  ;;  %v8654_v49 = vshll.u32 %v16392_v25, 16  ;;  %v7683_v18 = vrot.slane %v7681_v42, 1  ;;  %v7416_v20 = vld [vmem:[#allocation2 + $0xc0] sm:$0xe]  ;;  %v9019_v1 = vsel %vm2714_vm12, %v8972_v7, %v16383_v5 }
 0x4b6   : > { %7998 = vrot.lane.b32.xlu1 %v16564_v62, %s13158_s12  ;;  %v7679_v29 = vshrl.u32 %v16548_v26, 16  ;;  %v7686_v14 = vshll.u32 %v12940_v47, 16  ;;  %v11787_v2 = vcombine.low %v7416_v20, %v16567_v9  ;;  %v7251_v10 = vld [vmem:[#allocation2 + $0x94] sm:$0xf]  ;;  %v8075_v23 = vrot.slane %v8073_v15, 1  ;;  %v16593_v26 = vpop.permute.xlu1 %7874 }
 0x4b7   : > { %v8652_v59 = vor.u32 %v8651_v32, %v8647_v12  ;;  %v16586_v3 = vcombine.low %v7374_v46, %v16438_v27  ;;  %v8853_v48 = vrot.slane %v16574_v34, 1  ;;  %v16589_v54 = vld [vmem:[#allocation2 + $0x98] ss:$0 sps:$4 sm:$0x11]   ;;  %v7853_v25 = vsel %vm1640_vm7, %v7851_v17, %v7852_v38  ;;  %v7349_v53 = vld [vmem:[#allocation2 + $0x90] sm:$0xe] }
 0x4b8   : > { %8366 = vrot.lane.b32.xlu0 %v8330_v0, %s13157_s11  ;;  %v7684_v5 = vor.u32 %v7683_v18, %v7679_v29  ;;  %v13048_v7 = vld [vmem:[#allocation2 + $0x20] ss:$0 sps:$4 sm:$0x11]   ;;  %v8852_v47 = vrot.slane %v11787_v2, 1  ;;  %v7250_v20 = vld [vmem:[#allocation2 + $0x90] sm:$0xf]  ;;  %v11736_v15 = vcombine.low %v7349_v53, %v7313_v55  ;;  %v9051_v2 = vsel %vm2747_vm13, %v9019_v1, %v16431_v33 }
 0x4b9   : > { %v8078_v42 = vshll.u32 %v13048_v7, 16  ;;  %v8656_v27 = vrot.slane %v8654_v49, 1  ;;  %v8071_v32 = vshrl.u32 %v15822_v22, 16  ;;  %v7286_v46 = vld [vmem:[#allocation2 + $0x90] sm:$0xe]  ;;  %v16597_v12 = vcombine.low %v7250_v20, %v7251_v10  ;;  %9322 = vmatprep.mubr.bf16.mxu1 %v9051_v2 }
 0x4ba   : > { %7888 = vrot.lane.b32.xlu1 %v7853_v25, %s13156_s30  ;;  %v16599_v0 = vpop.permute.xlu0 %8734  ;;  %v7688_v17 = vrot.slane %v7686_v14, 1  ;;  %v8854_v38 = vsel %vm1640_vm7, %v8852_v47, %v8853_v48  ;;  %v12957_v18 = vld [vmem:[#allocation2 + $0x98] ss:$0 sps:$4 sm:$0x11]   ;;  %v11689_v29 = vcombine.low %v7286_v46, %v7251_v10  ;;  %v8923_v25 = vsel %vm2747_vm13, %v8891_v57, %v16342_v61 }
 0x4bb   : > { %v8657_v49 = vsel %vm1367_vm10, %v8652_v59, %v8656_v27  ;;  %v8076_v22 = vor.u32 %v8075_v23, %v8071_v32  ;;  %12494 = vmatprep.mubr.msk.bf16.mxu0 %vm2681_vm11, %v8854_v38  ;;  %v8661_v7 = vshll.u32 %v16586_v3, 16  ;;  %9323 = vmatmul.mubr.bf16.vlgmr.msra.gmra.mrb[88].mxu1 %v8923_v25  ;;  %v8080_v10 = vrot.slane %v8078_v42, 1  ;;  %v7312_v59 = vld [vmem:[#allocation2 + $0x90] sm:$0xf] }
 0x4bc   : > { %8748 = vrot.lane.b32.xlu0 %v8657_v49, %s13158_s12  ;;  %v7689_v14 = vsel %vm1367_vm10, %v7684_v5, %v7688_v17  ;;  %v8331_v33 = vrot.slane %v11736_v15, 1  ;;  %v8332_v1 = vrot.slane %v16589_v54, 1  ;;  %v7693_v61 = vshll.u32 %v16597_v12, 16  ;;  %v13049_v2 = vld [vmem:[#allocation2 + $0x2c] ss:$0 sps:$4 sm:$0x11]  }
 0x4bd   : > { %v7854_v23 = vrot.slane %v11689_v29, 1  ;;  %v7855_v57 = vrot.slane %v12957_v18, 1  ;;  %v8085_v48 = vshll.u32 %v15914_v41, 16  ;;  %v8081_v5 = vsel %vm1367_vm10, %v8076_v22, %v8080_v10  ;;  %v7376_v49 = vld [vmem:[#allocation2 + $0x9c] sm:$0xf] }
 0x4be   : > { %7760 = vrot.lane.b32.xlu1 %v7689_v14, %s13157_s11  ;;  %v16617_v53 = vpop.permute.xlu0 %8464  ;;  %v16620_v20 = vcombine.low %v7312_v59, %v7313_v55  ;;  %v8663_v27 = vrot.slane %v8661_v7, 1  ;;  %v8861_v42 = vsel %vm2681_vm11, %v15776_v8, %v16388_v30  ;;  %v8975_v32 = vsel %vm2681_vm11, %v8081_v5, %v16407_v4  ;;  %v7253_v30 = vld [vmem:[#allocation2 + $0xa0] sm:$0xf]  ;;  %v7252_v10 = vld [vmem:[#allocation2 + $0x9c] sm:$0xf] }
 0x4bf   : > { %v16615_v47 = vpop.permute.xlu1 %7746  ;;  %v8659_v15 = vshrl.u32 %v16586_v3, 16  ;;  %v7695_v46 = vrot.slane %v7693_v61, 1  ;;  %v8333_v55 = vsel %vm1640_vm7, %v8331_v33, %v8332_v1  ;;  %v9021_v17 = vsel %vm2714_vm12, %v8975_v32, %v16466_v51  ;;  %v7315_v1 = vld [vmem:[#allocation2 + $0xa0] sm:$0xf]  ;;  %v7287_v5 = vld [vmem:[#allocation2 + $0x9c] sm:$0xe] }
 0x4c0   : > { %8478 = vrot.lane.b32.xlu0 %v16586_v3, %s13156_s30  ;;  %v8666_v38 = vshll.u32 %v16429_v43, 16  ;;  %v7691_v8 = vshrl.u32 %v16597_v12, 16  ;;  %v7856_v4 = vsel %vm1640_vm7, %v7854_v23, %v7855_v57  ;;  %v7698_v29 = vshll.u32 %v12957_v18, 16  ;;  %v7350_v23 = vld [vmem:[#allocation2 + $0x9c] sm:$0xe] }
 0x4c1   : > { %v8090_v25 = vshll.u32 %v13049_v2, 16  ;;  %v8087_v3 = vrot.slane %v8085_v48, 1  ;;  %v8664_v7 = vor.u32 %v8663_v27, %v8659_v15  ;;  %v16641_v14 = vcombine.low %v7376_v49, %v16475_v11  ;;  %v16656_v57 = vld [vmem:[#allocation2 + $0xa4] ss:$0 sps:$4 sm:$0x11]  }
 0x4c2   : > { %8000 = vrot.lane.b32.xlu1 %v16620_v20, %s13158_s12  ;;  %v9054_v43 = vsel %vm2747_vm13, %v9021_v17, %v16511_v13  ;;  %v8893_v51 = vsel %vm2714_vm12, %v8861_v42, %v16369_v39  ;;  %v7696_v18 = vor.u32 %v7695_v46, %v7691_v8  ;;  %v8083_v33 = vshrl.u32 %v15914_v41, 16  ;;  %v12964_v41 = vld [vmem:[#allocation2 + $0xa4] ss:$0 sps:$4 sm:$0x11]  }
 0x4c3   : > { %v16638_v22 = vpop.permute.xlu1 %7986  ;;  %v16649_v61 = vcombine.low %v7252_v10, %v7253_v30  ;;  %9330 = vmatprep.mubr.bf16.mxu1 %v9054_v43  ;;  %v8926_v11 = vsel %vm2747_vm13, %v8893_v51, %v16403_v52  ;;  %v8668_v13 = vrot.slane %v8666_v38, 1  ;;  %v7700_v39 = vrot.slane %v7698_v29, 1  ;;  %v17879_v38 = vld [vmem:[#allocation22_spill] sm:$0xff] }
 0x4c4   : > { %8368 = vrot.lane.b32.xlu0 %v8333_v55, %s13157_s11  ;;  %9331 = vmatmul.mubr.bf16.gmra.mrb[92].mxu1 %v8926_v11  ;;  %v8088_v48 = vor.u32 %v8087_v3, %v8083_v33  ;;  %v11737_v42 = vcombine.low %v7350_v23, %v7315_v1  ;;  %v11690_v32 = vcombine.low %v7287_v5, %v7253_v30  ;;  %v8673_v15 = vshll.u32 %v16641_v14, 16  ;;  %v7314_v55 = vld [vmem:[#allocation2 + $0x9c] sm:$0xf]  ;;  %v13050_v11 = vld [vmem:[#allocation2 + $0x38] ss:$0 sps:$4 sm:$0x11]  }
 0x4c5   : > { %v16653_v59 = vpop.permute.xlu0 %8354  ;;  %v8669_v27 = vsel %vm1367_vm10, %v8664_v7, %v8668_v13  ;;  %v7701_v52 = vsel %vm1367_vm10, %v7696_v18, %v7700_v39  ;;  %v8092_v46 = vrot.slane %v8090_v25, 1  ;;  %v7705_v17 = vshll.u32 %v16649_v61, 16  ;;  %v17880_v29 = vld [vmem:[#allocation18_spill] sm:$0xff] }
 0x4c6   : > { %7890 = vrot.lane.b32.xlu1 %v7856_v4, %s13156_s30  ;;  %v8097_v8 = vshll.u32 %v17879_v38, 16  ;;  %v8863_v2 = vsel %vm2681_vm11, %v17880_v29, %v16462_v58  ;;  %v16670_v30 = vcombine.low %v7314_v55, %v7315_v1  ;;  %v8335_v49 = vrot.slane %v16656_v57, 1 }
 0x4c7   : > { %v8093_v3 = vsel %vm1367_vm10, %v8088_v48, %v8092_v46  ;;  %v7858_v25 = vrot.slane %v12964_v41, 1  ;;  %v8334_v51 = vrot.slane %v11737_v42, 1  ;;  %v7857_v18 = vrot.slane %v11690_v32, 1  ;;  %v7255_v48 = vld [vmem:[#allocation2 + $0xac] sm:$0xf] }
 0x4c8   : > { %8750 = vrot.lane.b32.xlu0 %v8669_v27, %s13158_s12  ;;  %v16664_v4 = vpop.permute.xlu1 %7876  ;;  %v8099_v7 = vrot.slane %v8097_v8, 1  ;;  %v8978_v43 = vsel %vm2681_vm11, %v8093_v3, %v16481_v60  ;;  %v8675_v33 = vrot.slane %v8673_v15, 1  ;;  %v7707_v1 = vrot.slane %v7705_v17, 1  ;;  %v7378_v15 = vld [vmem:[#allocation2 + $0xa8] sm:$0xf] }
 0x4c9   : > { %v9023_v58 = vsel %vm2714_vm12, %v8978_v43, %v16541_v45  ;;  %v8102_v13 = vshll.u32 %v13050_v11, 16  ;;  %v8095_v23 = vshrl.u32 %v17879_v38, 16  ;;  %v8671_v39 = vshrl.u32 %v16641_v14, 16  ;;  %v7254_v17 = vld [vmem:[#allocation2 + $0xa8] sm:$0xf] }
 0x4ca   : > { %7762 = vrot.lane.b32.xlu1 %v7701_v52, %s13157_s11  ;;  %v8678_v60 = vshll.u32 %v16473_v28, 16  ;;  %v9057_v5 = vsel %vm2747_vm13, %v9023_v58, %v16599_v0  ;;  %v8895_v27 = vsel %vm2714_vm12, %v8863_v2, %v16426_v36  ;;  %v7703_v45 = vshrl.u32 %v16649_v61, 16  ;;  %v7317_v0 = vld [vmem:[#allocation2 + $0xac] sm:$0xf]  ;;  %v7288_v11 = vld [vmem:[#allocation2 + $0xa8] sm:$0xe] }
 0x4cb   : > { %v7710_v42 = vshll.u32 %v12964_v41, 16  ;;  %v8100_v32 = vor.u32 %v8099_v7, %v8095_v23  ;;  %9338 = vmatprep.mubr.bf16.mxu1 %v9057_v5  ;;  %v8929_v52 = vsel %vm2747_vm13, %v8895_v27, %v16478_v63  ;;  %v8336_v28 = vsel %vm1640_vm7, %v8334_v51, %v8335_v49  ;;  %v7351_v63 = vld [vmem:[#allocation2 + $0xa8] sm:$0xe]  ;;  %v16707_v3 = vld [vmem:[#allocation2 + $0xb0] ss:$0 sps:$4 sm:$0x11]  }
 0x4cc   : > { %v16674_v10 = vpop.permute.xlu0 %8736  ;;  %8480 = vrot.lane.b32.xlu0 %v16641_v14, %s13156_s30  ;;  %v8676_v14 = vor.u32 %v8675_v33, %v8671_v39  ;;  %v16698_v55 = vcombine.low %v7378_v15, %v16501_v31  ;;  %9339 = vmatmul.mubr.bf16.gmra.mrb[96].mxu1 %v8929_v52  ;;  %v7859_v41 = vsel %vm1640_vm7, %v7857_v18, %v7858_v25  ;;  %v8104_v8 = vrot.slane %v8102_v13, 1  ;;  %v17881_v31 = vld [vmem:[#allocation27_spill] sm:$0xff]  ;;  %v17882_v7 = vld [vmem:[#allocation28_spill] sm:$0xff]  ;;  %v12971_v18 = vld [vmem:[#allocation2 + $0xb0] ss:$0 sps:$4 sm:$0x11]  }
 0x4cd   : > { %v16694_v46 = vpop.permute.xlu1 %7748  ;;  %v7708_v38 = vor.u32 %v7707_v1, %v7703_v45  ;;  %v16704_v29 = vcombine.low %v7254_v17, %v7255_v48  ;;  %v8680_v2 = vrot.slane %v8678_v60, 1  ;;  %v8109_v49 = vshll.u32 %v17881_v31, 16  ;;  %v7316_v45 = vld [vmem:[#allocation2 + $0xa8] sm:$0xf]  ;;  %v16727_v15 = vld [vmem:[#allocation2 + $0xb8] sm:$0xf] }
 0x4ce   : > { %8002 = vrot.lane.b32.xlu1 %v16670_v30, %s13158_s12  ;;  %v8865_v43 = vsel %vm2681_vm11, %v17882_v7, %v16534_v16  ;;  %v7712_v51 = vrot.slane %v7710_v42, 1  ;;  %v8105_v33 = vsel %vm1367_vm10, %v8100_v32, %v8104_v8  ;;  %v11738_v25 = vcombine.low %v7351_v63, %v7317_v0  ;;  %v13051_v42 = vld [vmem:[#allocation2 + $0x44] ss:$0 sps:$4 sm:$0x11]   ;;  %v7256_v8 = vld [vmem:[#allocation2 + $0xb4] sm:$0xf] }
 0x4cf   : > { %v8681_v58 = vsel %vm1367_vm10, %v8676_v14, %v8680_v2  ;;  %v8981_v1 = vsel %vm2681_vm11, %v8105_v33, %v16569_v6  ;;  %v8685_v13 = vshll.u32 %v16698_v55, 16  ;;  %v8111_v23 = vrot.slane %v8109_v49, 1 }
 0x4d0   : > { %v16700_v36 = vpop.permute.xlu0 %8466  ;;  %8370 = vrot.lane.b32.xlu0 %v8336_v28, %s13157_s11  ;;  %v7713_v39 = vsel %vm1367_vm10, %v7708_v38, %v7712_v51  ;;  %v11691_v60 = vcombine.low %v7288_v11, %v7255_v48  ;;  %v9025_v16 = vsel %vm2714_vm12, %v8981_v1, %v16617_v53  ;;  %v7717_v5 = vshll.u32 %v16704_v29, 16  ;;  %v17883_v1 = vld [vmem:[#allocation12_spill] sm:$0xff] }
 0x4d1   : > { %v16723_v27 = vpop.permute.xlu1 %7988  ;;  %v8107_v6 = vshrl.u32 %v17881_v31, 16  ;;  %v8114_v32 = vshll.u32 %v13051_v42, 16  ;;  %v9060_v52 = vsel %vm2747_vm13, %v9025_v16, %v16674_v10  ;;  %v16733_v28 = vcombine.low %v7316_v45, %v7317_v0  ;;  %v7380_v31 = vld [vmem:[#allocation2 + $0xb4] sm:$0xf] }
 0x4d2   : > { %7892 = vrot.lane.b32.xlu1 %v7859_v41, %s13156_s30  ;;  %v8338_v53 = vrot.slane %v16707_v3, 1  ;;  %v7861_v14 = vrot.slane %v12971_v18, 1  ;;  %9346 = vmatprep.mubr.bf16.mxu1 %v9060_v52  ;;  %v8337_v17 = vrot.slane %v11738_v25, 1  ;;  %v8687_v41 = vrot.slane %v8685_v13, 1  ;;  %v7318_v52 = vld [vmem:[#allocation2 + $0xb4] sm:$0xf] }
 0x4d3   : > { %v8112_v38 = vor.u32 %v8111_v23, %v8107_v6  ;;  %v8897_v63 = vsel %vm2714_vm12, %v8865_v43, %v16503_v56  ;;  %v7860_v2 = vrot.slane %v11691_v60, 1  ;;  %v7719_v10 = vrot.slane %v7717_v5, 1  ;;  %v7352_v60 = vld [vmem:[#allocation2 + $0xb4] sm:$0xe] }
 0x4d4   : > { %8752 = vrot.lane.b32.xlu0 %v8681_v58, %s13158_s12  ;;  %v16741_v0 = vcombine.low %v7256_v8, %v16727_v15  ;;  %v8932_v49 = vsel %vm2747_vm13, %v8897_v63, %v16560_v37  ;;  %v8683_v7 = vshrl.u32 %v16698_v55, 16  ;;  %v8690_v51 = vshll.u32 %v16513_v50, 16  ;;  %v7319_v50 = vld [vmem:[#allocation2 + $0xb8] sm:$0xf] }
 0x4d5   : > { %v16731_v48 = vpop.permute.xlu0 %8356  ;;  %v8116_v56 = vrot.slane %v8114_v32, 1  ;;  %v16750_v43 = vcombine.low %v7380_v31, %v16539_v19  ;;  %9347 = vmatmul.mubr.bf16.gmra.mrb[100].mxu1 %v8932_v49  ;;  %v7715_v33 = vshrl.u32 %v16704_v29, 16  ;;  %v7722_v25 = vshll.u32 %v12971_v18, 16  ;;  %v16753_v58 = vpop.permute.xlu1 %7878  ;;  %v16766_v5 = vld [vmem:[#allocation2 + $0xbc] ss:$0 sps:$4 sm:$0x11]  }
 0x4d6   : > { %7764 = vrot.lane.b32.xlu1 %v7713_v39, %s13157_s11  ;;  %v8867_v37 = vsel %vm2681_vm11, %v17883_v1, %v16615_v47  ;;  %v8339_v11 = vsel %vm1640_vm7, %v8337_v17, %v8338_v53  ;;  %v8688_v13 = vor.u32 %v8687_v41, %v8683_v7  ;;  %v7862_v19 = vsel %vm1640_vm7, %v7860_v2, %v7861_v14  ;;  %v12979_v14 = vld [vmem:[#allocation2 + $0xbc] ss:$0 sps:$4 sm:$0x11]   ;;  %v7289_v2 = vld [vmem:[#allocation2 + $0xb4] sm:$0xe] }
 0x4d7   : > { %v7720_v39 = vor.u32 %v7719_v10, %v7715_v33  ;;  %v7729_v16 = vshll.u32 %v16741_v0, 16  ;;  %v8692_v47 = vrot.slane %v8690_v51, 1  ;;  %v8697_v6 = vshll.u32 %v16750_v43, 16  ;;  %v7321_v31 = vld [vmem:[#allocation2 + $0xc4] sm:$0xf] }
 0x4d8   : > { %8482 = vrot.lane.b32.xlu0 %v16698_v55, %s13156_s30  ;;  %v8117_v55 = vsel %vm1367_vm10, %v8112_v38, %v8116_v56  ;;  %v8121_v42 = vshll.u32 %v16210_v24, 16  ;;  %v7724_v32 = vrot.slane %v7722_v25, 1  ;;  %v11739_v53 = vcombine.low %v7352_v60, %v7319_v50  ;;  %v7382_v38 = vld [vmem:[#allocation2 + $0xc0] sm:$0xf] }
 0x4d9   : > { %v8984_v18 = vsel %vm2681_vm11, %v8117_v55, %v16653_v59  ;;  %v8693_v17 = vsel %vm1367_vm10, %v8688_v13, %v8692_v47  ;;  %v16774_v41 = vcombine.low %v7318_v52, %v7319_v50  ;;  %v8899_v8 = vsel %vm2714_vm12, %v8867_v37, %v16593_v26  ;;  %v13052_v50 = vld [vmem:[#allocation2 + $0x50] ss:$0 sps:$4 sm:$0x11]  }
 0x4da   : > { %8004 = vrot.lane.b32.xlu1 %v16733_v28, %s13158_s12  ;;  %v9027_v45 = vsel %vm2714_vm12, %v8984_v18, %v16700_v36  ;;  %v7725_v36 = vsel %vm1367_vm10, %v7720_v39, %v7724_v32  ;;  %v7731_v63 = vrot.slane %v7729_v16, 1  ;;  %v16781_v10 = vcombine.low %v7382_v38, %v16567_v9  ;;  %v7320_v38 = vld [vmem:[#allocation2 + $0xc0] sm:$0xf] }
 0x4db   : > { %v8935_v7 = vsel %vm2747_vm13, %v8899_v8, %v16638_v22  ;;  %v8341_v51 = vrot.slane %v16766_v5, 1  ;;  %v8699_v26 = vrot.slane %v8697_v6, 1  ;;  %v11692_v56 = vcombine.low %v7289_v2, %v16727_v15 }
 0x4dc   : > { %8372 = vrot.lane.b32.xlu0 %v8339_v11, %s13157_s11  ;;  %v8123_v33 = vrot.slane %v8121_v42, 1  ;;  %v8340_v25 = vrot.slane %v11739_v53, 1  ;;  %v7727_v1 = vshrl.u32 %v16741_v0, 16  ;;  %v7734_v9 = vshll.u32 %v12979_v14, 16  ;;  %v7353_v11 = vld [vmem:[#allocation2 + $0xc0] sm:$0xe] }
 0x4dd   : > { %v8739_v23 = vpop.permute.xlu0 %8738  ;;  %v8702_v37 = vshll.u32 %v16530_v21, 16  ;;  %v8695_v55 = vshrl.u32 %v16750_v43, 16  ;;  %v8119_v22 = vshrl.u32 %v16210_v24, 16  ;;  %v11740_v39 = vcombine.low %v7353_v11, %v7321_v31 }
 0x4de   : > { %7894 = vrot.lane.b32.xlu1 %v7862_v19, %s13156_s30  ;;  %v9063_v59 = vsel %vm2747_vm13, %v9027_v45, %v8739_v23  ;;  %v8126_v23 = vshll.u32 %v13052_v50, 16  ;;  %v16794_v19 = vld [vmem:[#allocation2 + $0xc8] ss:$0 sps:$4 sm:$0x11]   ;;  %v7732_v15 = vor.u32 %v7731_v63, %v7727_v1  ;;  %v8709_v18 = vshll.u32 %v16781_v10, 16 }
 0x4df   : > { %9354 = vmatprep.mubr.bf16.mxu1 %v9063_v59  ;;  %v8700_v21 = vor.u32 %v8699_v26, %v8695_v55  ;;  %v7863_v60 = vrot.slane %v11692_v56, 1  ;;  %v7864_v16 = vrot.slane %v12979_v14, 1  ;;  %v8124_v47 = vor.u32 %v8123_v33, %v8119_v22  ;;  %v17884_v59 = vld [vmem:[#allocation9_spill] sm:$0xff]  ;;  %v7384_v63 = vld [vmem:[#allocation2 + $0xcc] sm:$0xf] }
 0x4e0   : > { %8754 = vrot.lane.b32.xlu0 %v8693_v17, %s13158_s12  ;;  %9355 = vmatmul.mubr.bf16.gmra.mrb[104].mxu1 %v8935_v7  ;;  %v8342_v24 = vsel %vm1640_vm7, %v8340_v25, %v8341_v51  ;;  %v7736_v45 = vrot.slane %v7734_v9, 1  ;;  %v8704_v6 = vrot.slane %v8702_v37, 1  ;;  %v8128_v32 = vrot.slane %v8126_v23, 1  ;;  %v16821_v26 = vld [vmem:[#allocation2 + $0xd4] ss:$0 sps:$4 sm:$0x11]  }
 0x4e1   : > { %v8469_v13 = vpop.permute.xlu0 %8468  ;;  %v8343_v52 = vrot.slane %v11740_v39, 1  ;;  %v8714_v53 = vshll.u32 %v16574_v34, 16  ;;  %v8869_v17 = vsel %vm2681_vm11, %v17884_v59, %v16694_v46  ;;  %v8711_v8 = vrot.slane %v8709_v18, 1  ;;  %v16819_v46 = vld [vmem:[#allocation2 + $0xd0] sm:$0xf] }
 0x4e2   : > { %v16783_v49 = vpop.permute.xlu1 %7750  ;;  %7766 = vrot.lane.b32.xlu1 %v7725_v36, %s13157_s11  ;;  %v7737_v14 = vsel %vm1367_vm10, %v7732_v15, %v7736_v45  ;;  %v8705_v2 = vsel %vm1367_vm10, %v8700_v21, %v8704_v6  ;;  %v7865_v7 = vsel %vm1640_vm7, %v7863_v60, %v7864_v16  ;;  %v8129_v34 = vsel %vm1367_vm10, %v8124_v47, %v8128_v32 }
 0x4e3   : > { %v16817_v51 = vcombine.low %v7320_v38, %v7321_v31  ;;  %v8987_v56 = vsel %vm2681_vm11, %v8129_v34, %v16731_v48  ;;  %v8707_v33 = vshrl.u32 %v16781_v10, 16  ;;  %v8131_v25 = vshrl.u32 %v16264_v35, 16  ;;  %v16830_v31 = vld [vmem:[#allocation2 + $0x5c] ss:$0 sps:$4 sm:$0x11]  }
 0x4e4   : > { %8484 = vrot.lane.b32.xlu0 %v16750_v43, %s13156_s30  ;;  %v8344_v43 = vrot.slane %v16794_v19, 1  ;;  %v8133_v1 = vshll.u32 %v16264_v35, 16  ;;  %v9029_v37 = vsel %vm2714_vm12, %v8987_v56, %v8469_v13  ;;  %v8716_v11 = vrot.slane %v8714_v53, 1 }
 0x4e5   : > { %v8138_v55 = vshll.u32 %v16830_v31, 16  ;;  %v8712_v22 = vor.u32 %v8711_v8, %v8707_v33  ;;  %v16837_v48 = vcombine.low %v7384_v63, %v16819_v46  ;;  %v8186_v23 = vshll.u32 %v16537_v44, 16 }
 0x4e6   : > { %8006 = vrot.lane.b32.xlu1 %v16774_v41, %s13158_s12  ;;  %v16802_v42 = vpop.permute.xlu1 %7990  ;;  %v8345_v9 = vsel %vm1640_vm7, %v8343_v52, %v8344_v43  ;;  %v8181_v39 = vshll.u32 %v16564_v62, 16  ;;  %v8726_v13 = vshll.u32 %v16821_v26, 16  ;;  %v8901_v15 = vsel %vm2714_vm12, %v8869_v17, %v16664_v4 }
 0x4e7   : > { %v8198_v18 = vshll.u32 %v16589_v54, 16  ;;  %v8193_v21 = vshll.u32 %v16620_v20, 16  ;;  %v8135_v60 = vrot.slane %v8133_v1, 1  ;;  %v8938_v47 = vsel %vm2747_vm13, %v8901_v15, %v16723_v27 }
 0x4e8   : > { %8374 = vrot.lane.b32.xlu0 %v8342_v24, %s13157_s11  ;;  %v16811_v36 = vpop.permute.xlu0 %8358  ;;  %v8179_v44 = vshrl.u32 %v16564_v62, 16  ;;  %v8183_v24 = vrot.slane %v8181_v39, 1  ;;  %v8191_v6 = vshrl.u32 %v16620_v20, 16  ;;  %v8210_v52 = vshll.u32 %v16656_v57, 16 }
 0x4e9   : > { %v8195_v32 = vrot.slane %v8193_v21, 1  ;;  %v8717_v54 = vsel %vm1367_vm10, %v8712_v22, %v8716_v11  ;;  %v8188_v4 = vrot.slane %v8186_v23, 1  ;;  %v8205_v27 = vshll.u32 %v16670_v30, 16 }
 0x4ea   : > { %7768 = vrot.lane.b32.xlu1 %v7737_v14, %s13157_s11  ;;  %v16834_v50 = vpop.permute.xlu1 %7880  ;;  %v8184_v43 = vor.u32 %v8183_v24, %v8179_v44  ;;  %v8721_v62 = vshll.u32 %v16837_v48, 16  ;;  %v8200_v20 = vrot.slane %v8198_v18, 1  ;;  %v8222_v57 = vshll.u32 %v16707_v3, 16 }
 0x4eb   : > { %v8196_v53 = vor.u32 %v8195_v32, %v8191_v6  ;;  %v8203_v14 = vshrl.u32 %v16670_v30, 16  ;;  %v8207_v38 = vrot.slane %v8205_v27, 1  ;;  %v8217_v8 = vshll.u32 %v16733_v28, 16  ;;  %v7417_v30 = vld [vmem:[#allocation2 + $0xcc] sm:$0xe] }
 0x4ec   : > { %8756 = vrot.lane.b32.xlu0 %v8705_v2, %s13158_s12  ;;  %v16864_v17 = vsel %vm1367_vm10, %v8184_v43, %v8188_v4  ;;  %v8719_v63 = vshrl.u32 %v16837_v48, 16  ;;  %v8234_v34 = vshll.u32 %v16766_v5, 16  ;;  %v8215_v56 = vshrl.u32 %v16733_v28, 16  ;;  %v17885_v43 = vld [vmem:[#allocation24_spill] sm:$0xff] }
 0x4ed   : > { %v16870_v2 = vsel %vm1367_vm10, %v8196_v53, %v8200_v20  ;;  %v8208_v3 = vor.u32 %v8207_v38, %v8203_v14  ;;  %v8219_v33 = vrot.slane %v8217_v8, 1  ;;  %v8229_v1 = vshll.u32 %v16774_v41, 16 }
 0x4ee   : > { %7896 = vrot.lane.b32.xlu1 %v7865_v7, %s13156_s30  ;;  %v8212_v7 = vrot.slane %v8210_v52, 1  ;;  %v8224_v11 = vrot.slane %v8222_v57, 1  ;;  %v8227_v22 = vshrl.u32 %v16774_v41, 16  ;;  %v8246_v23 = vshll.u32 %v16794_v19, 16 }
 0x4ef   : > { %v8220_v15 = vor.u32 %v8219_v33, %v8215_v56  ;;  %v8231_v5 = vrot.slane %v8229_v1, 1  ;;  %v8136_v28 = vor.u32 %v8135_v60, %v8131_v25  ;;  %v8236_v18 = vrot.slane %v8234_v34, 1  ;;  %v13054_v34 = vld [vmem:[#allocation2 + $0x68] ss:$0 sps:$4 sm:$0x11]  }
 0x4f0   : > { %v8741_v16 = vpop.permute.xlu0 %8740  ;;  %8486 = vrot.lane.b32.xlu0 %v16781_v10, %s13156_s30  ;;  %v16879_v39 = vsel %vm1367_vm10, %v8208_v3, %v8212_v7  ;;  %v11788_v21 = vcombine.low %v7417_v30, %v16819_v46  ;;  %v8239_v24 = vshrl.u32 %v16817_v51, 16  ;;  %v8728_v32 = vrot.slane %v8726_v13, 1 }
 0x4f1   : > { %v9066_v45 = vsel %vm2747_vm13, %v9029_v37, %v8741_v16  ;;  %v8723_v37 = vrot.slane %v8721_v62, 1  ;;  %v8856_v16 = vrot.slane %v16821_v26, 1  ;;  %v16888_v19 = vsel %vm1367_vm10, %v8220_v15, %v8224_v11 }
 0x4f2   : > { %9362 = vmatprep.mubr.bf16.mxu1 %v9066_v45  ;;  %8008 = vrot.lane.b32.xlu1 %v16817_v51, %s13158_s12  ;;  %v16861_v59 = vpop.permute.xlu1 %7752  ;;  %v8232_v44 = vor.u32 %v8231_v5, %v8227_v22  ;;  %v8855_v25 = vrot.slane %v11788_v21, 1  ;;  %v8140_v46 = vrot.slane %v8138_v55, 1  ;;  %v8248_v52 = vrot.slane %v8246_v23, 1  ;;  %v17887_v5 = vld [vmem:[#allocation20_spill] sm:$0xff] }
 0x4f3   : > { %9363 = vmatmul.mubr.bf16.gmra.mrb[108].mxu1 %v8938_v47  ;;  %v8724_v6 = vor.u32 %v8723_v37, %v8719_v63  ;;  %v8871_v13 = vsel %vm2681_vm11, %v17885_v43, %v16783_v49  ;;  %v8150_v3 = vshll.u32 %v13054_v34, 16  ;;  %v8143_v56 = vshrl.u32 %v16334_v40, 16  ;;  %v17886_v37 = vld [vmem:[#allocation16_spill] sm:$0xff]  ;;  %v17888_v43 = vld [vmem:[#allocation13_spill] sm:$0xff] }
 0x4f4   : > { %v8471_v10 = vpop.permute.xlu0 %8470  ;;  %8376 = vrot.lane.b32.xlu0 %v8345_v9, %s13157_s11  ;;  %v8241_v9 = vshll.u32 %v16817_v51, 16  ;;  %v16898_v60 = vsel %vm1367_vm10, %v8232_v44, %v8236_v18  ;;  %v8857_v51 = vsel %vm1640_vm7, %v8855_v25, %v8856_v16  ;;  %v8141_v27 = vsel %vm1367_vm10, %v8136_v28, %v8140_v46 }
 0x4f5   : > { %12495 = vmatmul.mubr.msk.bf16.gmra.mrb[132].mxu0 %vm2681_vm11, %v8857_v51  ;;  %v8990_v62 = vsel %vm2681_vm11, %v8141_v27, %v16811_v36  ;;  %v8729_v20 = vsel %vm1367_vm10, %v8724_v6, %v8728_v32  ;;  %v8145_v36 = vshll.u32 %v16334_v40, 16  ;;  %v8873_v11 = vsel %vm2681_vm11, %v17886_v37, %v16861_v59  ;;  %v13055_v32 = vld [vmem:[#allocation2 + $0x74] ss:$0 sps:$4 sm:$0x11]   ;;  %v17889_v27 = vld [vmem:[#allocation14_spill] sm:$0xff] }
 0x4f6   : > { %v7993_v41 = vpop.permute.xlu1 %7992  ;;  %v8243_v45 = vrot.slane %v8241_v9, 1  ;;  %v9031_v53 = vsel %vm2714_vm12, %v8990_v62, %v8471_v10  ;;  %v8157_v9 = vshll.u32 %v17887_v5, 16  ;;  %v8905_v40 = vsel %vm2714_vm12, %v8873_v11, %v16834_v50  ;;  %v17890_v11 = vld [vmem:[#allocation10_spill] sm:$0xff] }
 0x4f7   : > { %v8147_v7 = vrot.slane %v8145_v36, 1  ;;  %v8944_v59 = vsel %vm2747_vm13, %v8905_v40, %v7993_v41  ;;  %v8162_v25 = vshll.u32 %v13055_v32, 16  ;;  %v8155_v50 = vshrl.u32 %v17887_v5, 16 }
 0x4f8   : > { %8758 = vrot.lane.b32.xlu0 %v8717_v54, %s13158_s12  ;;  %v8361_v47 = vpop.permute.xlu0 %8360  ;;  %v8244_v54 = vor.u32 %v8243_v45, %v8239_v24  ;;  %v8159_v45 = vrot.slane %v8157_v9, 1  ;;  %v8169_v62 = vshll.u32 %v17889_v27, 16  ;;  %v8167_v34 = vshrl.u32 %v17889_v27, 16 }
 0x4f9   : > { %v16891_v35 = vpop.f32.mrb[104].mxu0  ;;  %v8148_v33 = vor.u32 %v8147_v7, %v8143_v56  ;;  %v8164_v51 = vrot.slane %v8162_v25, 1  ;;  %vm10513_vm15 = vcmask 1043459   ;;  %vm10515_vm4 = vcmask 1045509  }
 0x4fa   : > { %v16895_v26 = vpop.f32.mrb[105].mxu0  ;;  %v16912_v55 = vsel %vm1367_vm10, %v8244_v54, %v8248_v52  ;;  %v8160_v46 = vor.u32 %v8159_v45, %v8155_v50  ;;  %v8171_v36 = vrot.slane %v8169_v62, 1  ;;  %vm10517_vm6 = vcmask 1047559  }
 0x4fb   : > { %v16900_v4 = vpop.f32.mrb[106].mxu0  ;;  %v7883_v49 = vpop.permute.xlu1 %7882 }
 0x4fc   : > { %8488 = vrot.lane.b32.xlu0 %v16837_v48, %s13156_s30  ;;  %v16909_v31 = vpop.f32.mrb[107].mxu0  ;;  %v8903_v48 = vsel %vm2714_vm12, %v8871_v13, %v16753_v58  ;;  %v8152_v58 = vrot.slane %v8150_v3, 1  ;;  %v8165_v13 = vsel %vm1367_vm10, %v8160_v46, %v8164_v51  ;;  %v17891_v46 = vld [vmem:[#allocation25_spill] sm:$0xff] }
 0x4fd   : > { %v8941_v38 = vsel %vm2747_vm13, %v8903_v48, %v16802_v42 }
 0x4fe   : > { %v8153_v42 = vsel %vm1367_vm10, %v8148_v33, %v8152_v58  ;;  %v8172_v33 = vor.u32 %v8171_v36, %v8167_v34 }
 0x4ff   : > { %v8993_v22 = vsel %vm2681_vm11, %v8153_v42, %v8361_v47 }
 0x500   : > { %v8743_v57 = vpop.permute.xlu0 %8742  ;;  %8760 = vrot.lane.b32.xlu0 %v8729_v20, %s13158_s12 }
 0x501   : > { %v9069_v14 = vsel %vm2747_vm13, %v9031_v53, %v8743_v57 }
 0x502   : > { %9370 = vmatprep.mubr.bf16.mxu1 %v9069_v14 }
 0x503   : > { %9371 = vmatmul.mubr.bf16.gmra.mrb[112].mxu1 %v8941_v38 }
 0x506   : > { %v7755_v8 = vpop.permute.xlu1 %7754  ;;  %v8473_v63 = vpop.permute.xlu0 %8472 }
 0x507   : > { %v9033_v23 = vsel %vm2714_vm12, %v8993_v22, %v8473_v63  ;;  %v8875_v41 = vsel %vm2681_vm11, %v17888_v43, %v7755_v8  ;;  %v13056_v8 = vld [vmem:[#allocation2 + $0x80] ss:$0 sps:$4 sm:$0x11]  }
 0x508   : > { %v8907_v38 = vsel %vm2714_vm12, %v8875_v41, %v7883_v49  ;;  %v8174_v7 = vshll.u32 %v13056_v8, 16 }
 0x50a   : > { %v7995_v10 = vpop.permute.xlu1 %7994 }
 0x50b   : > { %v8363_v1 = vpop.permute.xlu0 %8362  ;;  %v8947_v63 = vsel %vm2747_vm13, %v8907_v38, %v7995_v10 }
 0x50c   : > { %v8996_v20 = vsel %vm2681_vm11, %v8165_v13, %v8363_v1  ;;  %v8176_v1 = vrot.slane %v8174_v7, 1 }
 0x50e   : > { %v7885_v30 = vpop.permute.xlu1 %7884  ;;  %v8177_v49 = vsel %vm1367_vm10, %v8172_v33, %v8176_v1  ;;  %vm10511_vm10 = vcmask 1041409  }
 0x514   : > { %v8745_v15 = vpop.permute.xlu0 %8744 }
 0x515   : > { %v9072_v28 = vsel %vm2747_vm13, %v9033_v23, %v8745_v15  ;;  %v16937_v18 = vpop.f32.mrb[108].mxu0 }
 0x516   : > { %v7757_v21 = vpop.permute.xlu1 %7756  ;;  %9378 = vmatprep.mubr.bf16.mxu1 %v9072_v28  ;;  %v16940_v16 = vpop.f32.mrb[109].mxu0 }
 0x517   : > { %9379 = vmatmul.mubr.bf16.gmra.mrb[116].mxu1 %v8944_v59  ;;  %v16942_v47 = vpop.f32.mrb[110].mxu0  ;;  %v8877_v42 = vsel %vm2681_vm11, %v17890_v11, %v7757_v21 }
 0x518   : > { %v8475_v44 = vpop.permute.xlu0 %8474  ;;  %v16944_v24 = vpop.f32.mrb[111].mxu0  ;;  %v8909_v9 = vsel %vm2714_vm12, %v8877_v42, %v7885_v30 }
 0x519   : > { %v9035_v53 = vsel %vm2714_vm12, %v8996_v20, %v8475_v44 }
 0x51a   : > { %v7997_v6 = vpop.permute.xlu1 %7996 }
 0x51b   : > { %v8950_v28 = vsel %vm2747_vm13, %v8909_v9, %v7997_v6 }
 0x51c   : > { %v8365_v52 = vpop.permute.xlu0 %8364 }
 0x51d   : > { %v8999_v22 = vsel %vm2681_vm11, %v8177_v49, %v8365_v52 }
 0x51e   : > { %v7887_v54 = vpop.permute.xlu1 %7886 }
 0x522   : > { %v8747_v57 = vpop.permute.xlu0 %8746 }
 0x523   : > { %v9075_v48 = vsel %vm2747_vm13, %v9035_v53, %v8747_v57 }
 0x524   : > { %v7759_v14 = vpop.permute.xlu1 %7758  ;;  %9386 = vmatprep.mubr.bf16.mxu1 %v9075_v48 }
 0x525   : > { %9387 = vmatmul.mubr.bf16.gmra.mrb[120].mxu1 %v8947_v63  ;;  %v8879_v52 = vsel %vm2681_vm11, %v17891_v46, %v7759_v14  ;;  %v17892_v14 = vld [vmem:[#allocation11_spill] sm:$0xff] }
 0x526   : > { %v8477_v3 = vpop.permute.xlu0 %8476  ;;  %v8911_v13 = vsel %vm2714_vm12, %v8879_v52, %v7887_v54 }
 0x527   : > { %v9037_v10 = vsel %vm2714_vm12, %v8999_v22, %v8477_v3 }
 0x528   : > { %v7999_v56 = vpop.permute.xlu1 %7998 }
 0x529   : > { %v8953_v27 = vsel %vm2747_vm13, %v8911_v13, %v7999_v56 }
 0x52a   : > { %v8367_v58 = vpop.permute.xlu0 %8366 }
 0x52b   : > { %v9002_v30 = vsel %vm2681_vm11, %v16864_v17, %v8367_v58 }
 0x52c   : > { %v7889_v37 = vpop.permute.xlu1 %7888 }
 0x52e   : > { %v8749_v23 = vpop.permute.xlu0 %8748 }
 0x52f   : > { %v9078_v5 = vsel %vm2747_vm13, %v9037_v10, %v8749_v23 }
 0x530   : > { %v7761_v15 = vpop.permute.xlu1 %7760  ;;  %9394 = vmatprep.mubr.bf16.mxu1 %v9078_v5 }
 0x531   : > { %9395 = vmatmul.mubr.bf16.gmra.mrb[124].mxu1 %v8950_v28  ;;  %v8881_v48 = vsel %vm2681_vm11, %v17892_v14, %v7761_v15 }
 0x532   : > { %v16965_v40 = vpop.f32.mrb[112].mxu0  ;;  %v8479_v21 = vpop.permute.xlu0 %8478  ;;  %v8913_v8 = vsel %vm2714_vm12, %v8881_v48, %v7889_v37 }
 0x533   : > { %v16967_v59 = vpop.f32.mrb[113].mxu0  ;;  %v9039_v6 = vsel %vm2714_vm12, %v9002_v30, %v8479_v21 }
 0x534   : > { %v16969_v44 = vpop.f32.mrb[114].mxu0  ;;  %v8001_v45 = vpop.permute.xlu1 %8000 }
 0x535   : > { %v16971_v32 = vpop.f32.mrb[115].mxu0  ;;  %v8956_v7 = vsel %vm2747_vm13, %v8913_v8, %v8001_v45 }
 0x536   : > { %v8369_v25 = vpop.permute.xlu0 %8368 }
 0x537   : > { %v9005_v17 = vsel %vm2681_vm11, %v16870_v2, %v8369_v25 }
 0x538   : > { %v7891_v50 = vpop.permute.xlu1 %7890 }
 0x53a   : > { %v8751_v51 = vpop.permute.xlu0 %8750 }
 0x53b   : > { %v9081_v41 = vsel %vm2747_vm13, %v9039_v6, %v8751_v51 }
 0x53c   : > { %v7763_v43 = vpop.permute.xlu1 %7762  ;;  %9402 = vmatprep.mubr.bf16.mxu1 %v9081_v41 }
 0x53d   : > { %9403 = vmatmul.mubr.bf16.gmra.mrb[128].mxu1 %v8953_v27  ;;  %v8883_v11 = vsel %vm2681_vm11, %v16597_v12, %v7763_v43 }
 0x53e   : > { %v8481_v62 = vpop.permute.xlu0 %8480  ;;  %v8915_v23 = vsel %vm2714_vm12, %v8883_v11, %v7891_v50 }
 0x53f   : > { %v9041_v38 = vsel %vm2714_vm12, %v9005_v17, %v8481_v62 }
 0x540   : > { %v8003_v20 = vpop.permute.xlu1 %8002 }
 0x541   : > { %v8959_v15 = vsel %vm2747_vm13, %v8915_v23, %v8003_v20 }
 0x542   : > { %v8371_v53 = vpop.permute.xlu0 %8370 }
 0x543   : > { %v9008_v37 = vsel %vm2681_vm11, %v16879_v39, %v8371_v53 }
 0x544   : > { %v7893_v57 = vpop.permute.xlu1 %7892 }
 0x546   : > { %v8753_v36 = vpop.permute.xlu0 %8752 }
 0x547   : > { %v9084_v54 = vsel %vm2747_vm13, %v9041_v38, %v8753_v36 }
 0x548   : > { %v7765_v63 = vpop.permute.xlu1 %7764  ;;  %9410 = vmatprep.mubr.bf16.mxu1 %v9084_v54 }
 0x549   : > { %9411 = vmatmul.mubr.bf16.gmra.mrb[132].mxu1 %v8956_v7  ;;  %v8885_v12 = vsel %vm2681_vm11, %v16649_v61, %v7765_v63 }
 0x54a   : > { %v8483_v34 = vpop.permute.xlu0 %8482  ;;  %v8917_v50 = vsel %vm2714_vm12, %v8885_v12, %v7893_v57 }
 0x54b   : > { %v9043_v42 = vsel %vm2714_vm12, %v9008_v37, %v8483_v34 }
 0x54c   : > { %v8005_v56 = vpop.permute.xlu1 %8004 }
 0x54d   : > { %v8962_v52 = vsel %vm2747_vm13, %v8917_v50, %v8005_v56 }
 0x54e   : > { %v16989_v3 = vpop.f32.mrb[116].mxu0  ;;  %v8373_v1 = vpop.permute.xlu0 %8372 }
 0x54f   : > { %v16991_v33 = vpop.f32.mrb[117].mxu0  ;;  %v9011_v39 = vsel %vm2681_vm11, %v16888_v19, %v8373_v1 }
 0x550   : > { %v16993_v2 = vpop.f32.mrb[118].mxu0  ;;  %v7895_v22 = vpop.permute.xlu1 %7894 }
 0x551   : > { %v16995_v58 = vpop.f32.mrb[119].mxu0 }
 0x552   : > { %v8755_v49 = vpop.permute.xlu0 %8754 }
 0x553   : > { %v9087_v10 = vsel %vm2747_vm13, %v9043_v42, %v8755_v49 }
 0x554   : > { %9418 = vmatprep.mubr.bf16.mxu1 %v9087_v10  ;;  %v7767_v9 = vpop.permute.xlu1 %7766 }
 0x555   : > { %9419 = vmatmul.mubr.bf16.gmra.mrb[136].mxu1 %v8959_v15  ;;  %v8887_v61 = vsel %vm2681_vm11, %v16704_v29, %v7767_v9  ;;  %v17056_v15 = vld [vmem:[%s17722_s8] ss:$0 sm:$0xff] }
 0x556   : > { %v8485_v5 = vpop.permute.xlu0 %8484  ;;  %v8919_v14 = vsel %vm2714_vm12, %v8887_v61, %v7895_v22  ;;  %v13057_v61 = vld [vmem:[%s13296_s29] sm:$0xff] }
 0x557   : > { %v9045_v21 = vsel %vm2714_vm12, %v9011_v39, %v8485_v5 }
 0x558   : > { %v8007_v25 = vpop.permute.xlu1 %8006 }
 0x559   : > { %v8965_v29 = vsel %vm2747_vm13, %v8919_v14, %v8007_v25 }
 0x55a   : > { %v8375_v28 = vpop.permute.xlu0 %8374 }
 0x55b   : > { %v9014_v41 = vsel %vm2681_vm11, %v16898_v60, %v8375_v28 }
 0x55c   : > { %v7769_v6 = vpop.permute.xlu1 %7768 }
 0x55d   : > { %v8889_v38 = vsel %vm2681_vm11, %v16741_v0, %v7769_v6 }
 0x55e   : > { %v8757_v45 = vpop.permute.xlu0 %8756 }
 0x55f   : > { %v9090_v46 = vsel %vm2747_vm13, %v9045_v21, %v8757_v45  ;;  %v17064_v21 = vld [vmem:[%s17723_s9] ss:$0 sm:$0xff] }
 0x560   : > { %9426 = vmatprep.mubr.bf16.mxu1 %v9090_v46  ;;  %v7897_v53 = vpop.permute.xlu1 %7896 }
 0x561   : > { %9427 = vmatmul.mubr.bf16.gmra.mrb[140].mxu1 %v8962_v52  ;;  %v8921_v54 = vsel %vm2714_vm12, %v8889_v38, %v7897_v53  ;;  %v9854_v53 = vlaneseq }
 0x562   : > { %v8487_v30 = vpop.permute.xlu0 %8486 }
 0x563   : > { %v9047_v27 = vsel %vm2714_vm12, %v9014_v41, %v8487_v30 }
 0x564   : > { %v8009_v17 = vpop.permute.xlu1 %8008 }
 0x565   : > { %v8968_v7 = vsel %vm2747_vm13, %v8921_v54, %v8009_v17 }
 0x566   : > { %v8377_v51 = vpop.permute.xlu0 %8376 }
 0x567   : > { %v9017_v60 = vsel %vm2681_vm11, %v16912_v55, %v8377_v51 }
 0x56a   : > { %v17013_v43 = vpop.f32.mrb[120].mxu0  ;;  %v8759_v62 = vpop.permute.xlu0 %8758 }
 0x56b   : > { %v17017_v19 = vpop.f32.mrb[121].mxu0  ;;  %v9093_v57 = vsel %vm2747_vm13, %v9047_v27, %v8759_v62  ;;  %v13159_v27 = vmov 1983009808  }
 0x56c   : > { %v17021_v13 = vpop.f32.mrb[122].mxu0  ;;  %9434 = vmatprep.mubr.bf16.mxu1 %v9093_v57  ;;  %v9852_v62 = vunpack.c.l.s4 %v13159_v27 }
 0x56d   : > { %v17024_v20 = vpop.f32.mrb[123].mxu0  ;;  %9435 = vmatmul.mubr.bf16.gmra.mrb[144].mxu1 %v8965_v29  ;;  %v13058_v29 = vld [vmem:[%s13296_s29 + $0x8] sm:$0xff] }
 0x56e   : > { %v8489_v48 = vpop.permute.xlu0 %8488 }
 0x56f   : > { %v9049_v36 = vsel %vm2714_vm12, %v9017_v60, %v8489_v48 }
 0x572   : > { %v8761_v63 = vpop.permute.xlu0 %8760 }
 0x573   : > { %v9096_v8 = vsel %vm2747_vm13, %v9049_v36, %v8761_v63  ;;  %v17076_v36 = vshrl.u32 %v9854_v53, 7  ;;  %v13059_v63 = vld [vmem:[%s13296_s29 + $0x10] sm:$0xff] }
 0x574   : > { %9442 = vmatprep.mubr.bf16.mxu1 %v9096_v8 }
 0x575   : > { %9443 = vmatmul.mubr.bf16.gmra.mrb[148].mxu1 %v8968_v7 }
 0x57a   : > { %v17037_v34 = vpop.f32.mrb[124].mxu0 }
 0x57b   : > { %v17039_v56 = vpop.f32.mrb[125].mxu0 }
 0x57c   : > { %v17041_v1 = vpop.f32.mrb[126].mxu0 }
 0x57d   : > { %v17043_v55 = vpop.f32.mrb[127].mxu0 }
 0x588   : > { %v17045_v0 = vpop.f32.mrb[128].mxu0 }
 0x589   : > { %v17047_v11 = vpop.f32.mrb[129].mxu0 }
 0x58a   : > { %v17049_v37 = vpop.f32.mrb[130].mxu0 }
 0x58b   : > { %v17051_v42 = vpop.f32.mrb[131].mxu0 }
 0x58e   : > { %v12276_v49 = vpop.f32.mrb[88].mxu1 }
 0x58f   : > { %v12277_v22 = vpop.f32.mrb[89].mxu1 }
 0x590   : > { %v12278_v10 = vadd.f32 %v12277_v22, %v12276_v49  ;;  %v12279_v23 = vpop.f32.mrb[90].mxu1 }
 0x591   : > { %v12280_v5 = vpop.f32.mrb[91].mxu1 }
 0x592   : > { %v9486_v9 = vadd.f32 %v12278_v10, %v16895_v26  ;;  %v12281_v28 = vadd.f32 %v12280_v5, %v12279_v23  ;;  %v13060_v10 = vld [vmem:[%s13296_s29 + $0x18] sm:$0xff] }
 0x594   : > { %v9619_v12 = vmul.f32 %v17056_v15, %v9486_v9  ;;  %v9489_v39 = vadd.f32 %v12281_v28, %v16909_v31 }
 0x596   : > { %v9620_v45 = vmul.f32 %v17056_v15, %v9489_v39  ;;  %v9658_v46 = vadd.f32 %v17064_v21, %v9619_v12 }
 0x597   : > { %v12282_v25 = vpop.f32.mrb[92].mxu1 }
 0x598   : > { %v12283_v50 = vpop.f32.mrb[93].mxu1  ;;  %v9659_v26 = vadd.f32 %v17064_v21, %v9620_v45  ;;  %v9690_v41 = vadd.f32 %v13057_v61, %v9658_v46 }
 0x599   : > { %v12284_v52 = vadd.f32 %v12283_v50, %v12282_v25  ;;  %v12285_v30 = vpop.f32.mrb[94].mxu1 }
 0x59a   : > { %v12286_v6 = vpop.f32.mrb[95].mxu1  ;;  %v9691_v48 = vadd.f32 %v13058_v29, %v9659_v26  ;;  %v9754_v38 = vmul.f32 0.1, %v9690_v41  ;;  %vm9722_vm0 = vcmp.gt.f32.partialorder %v9690_v41, 0.0 }
 0x59b   : > { %v9494_v51 = vadd.f32 %v16891_v35, %v12284_v52  ;;  %v12287_v31 = vadd.f32 %v12286_v6, %v12285_v30  ;;  %v9853_v35 = vunpack.c.0.s8 %v9852_v62 }
 0x59c   : > { %v9755_v49 = vmul.f32 0.1, %v9691_v48  ;;  %v9786_v28 = vsel %vm9722_vm0, %v9690_v41, %v9754_v38  ;;  %vm9723_vm7 = vcmp.gt.f32.partialorder %v9691_v48, 0.0 }
 0x59d   : > { %v9621_v57 = vmul.f32 %v17056_v15, %v9494_v51  ;;  %v9497_v14 = vadd.f32 %v16900_v4, %v12287_v31  ;;  %v17082_v12 = vsub.s32 %v9853_v35, %v17076_v36 }
 0x59e   : > { %v9787_v30 = vsel %vm9723_vm7, %v9691_v48, %v9755_v49  ;;  %v13061_v49 = vld [vmem:[%s13296_s29 + $0x20] sm:$0xff] }
 0x59f   : > { %v9660_v17 = vadd.f32 %v17064_v21, %v9621_v57  ;;  %v9622_v60 = vmul.f32 %v17056_v15, %v9497_v14  ;;  %v12288_v7 = vpop.f32.mrb[96].mxu1 }
 0x5a0   : > { %v12289_v22 = vpop.f32.mrb[97].mxu1 }
 0x5a1   : > { %v9692_v54 = vadd.f32 %v13059_v63, %v9660_v17  ;;  %v9661_v8 = vadd.f32 %v17064_v21, %v9622_v60  ;;  %v12290_v5 = vadd.f32 %v12289_v22, %v12288_v7  ;;  %v12291_v9 = vpop.f32.mrb[98].mxu1 }
 0x5a2   : > { %v12292_v39 = vpop.f32.mrb[99].mxu1 }
 0x5a3   : > { %vm9724_vm3 = vcmp.gt.f32.partialorder %v9692_v54, 0.0  ;;  %v9756_v4 = vmul.f32 0.1, %v9692_v54  ;;  %v9693_v23 = vadd.f32 %v13060_v10, %v9661_v8  ;;  %v9502_v46 = vadd.f32 %v12290_v5, %v16940_v16 }
 0x5a4   : > { %v12293_v52 = vadd.f32 %v12292_v39, %v12291_v9 }
 0x5a5   : > { %v9788_v45 = vsel %vm9724_vm3, %v9692_v54, %v9756_v4  ;;  %vm9725_vm8 = vcmp.gt.f32.partialorder %v9693_v23, 0.0  ;;  %v9757_v25 = vmul.f32 0.1, %v9693_v23  ;;  %v9623_v6 = vmul.f32 %v17056_v15, %v9502_v46 }
 0x5a6   : > { %v9818_v50 = vmax.f32 %v9786_v28, %v9788_v45  ;;  %v9505_v41 = vadd.f32 %v12293_v52, %v16944_v24 }
 0x5a7   : > { %v9789_v26 = vsel %vm9725_vm8, %v9693_v23, %v9757_v25  ;;  %v9662_v16 = vadd.f32 %v17064_v21, %v9623_v6  ;;  %v13062_v6 = vld [vmem:[%s13296_s29 + $0x28] sm:$0xff] }
 0x5a8   : > { %v9850_v51 = vcombine.high %v9818_v50, %v9818_v50  ;;  %v9857_v31 = vrot.slane %v9818_v50, %v17082_v12  ;;  %v9819_v61 = vmax.f32 %v9787_v30, %v9789_v26  ;;  %v12294_v14 = vpop.f32.mrb[100].mxu1  ;;  %v9624_v17 = vmul.f32 %v17056_v15, %v9505_v41 }
 0x5a9   : > { %v12295_v60 = vpop.f32.mrb[101].mxu1  ;;  %v9694_v22 = vadd.f32 %v13061_v49, %v9662_v16 }
 0x5aa   : > { %v9864_v27 = vrot.slane %v9850_v51, %v17082_v12  ;;  %v9865_v62 = vcombine.high %v9857_v31, %v9857_v31  ;;  %v9867_v53 = vcombine.high %v9819_v61, %v9819_v61  ;;  %v9874_v57 = vrot.slane %v9819_v61, %v17082_v12  ;;  %v12297_v35 = vpop.f32.mrb[102].mxu1 }
 0x5ab   : > { %v11825_v63 = vrot.slane %v9857_v31, 9  ;;  %v12298_v54 = vpop.f32.mrb[103].mxu1  ;;  %v9663_v23 = vadd.f32 %v17064_v21, %v9624_v17  ;;  %v12296_v9 = vadd.f32 %v12295_v60, %v12294_v14  ;;  %vm9726_vm9 = vcmp.gt.f32.partialorder %v9694_v22, 0.0 }
 0x5ac   : > { %v9866_v29 = vcombine.high %v9864_v27, %v9864_v27  ;;  %v11826_v48 = vrot.slane %v9865_v62, 9  ;;  %v9882_v38 = vcombine.high %v9874_v57, %v9874_v57  ;;  %v17093_v24 = vrot.slane %v9867_v53, %v17082_v12 }
 0x5ad   : > { %v11827_v8 = vrot.slane %v9864_v27, 9  ;;  %v10378_v28 = vmax.f32 %v9857_v31, %v11825_v63  ;;  %v12299_v45 = vadd.f32 %v12298_v54, %v12297_v35  ;;  %v11829_v46 = vrot.slane %v9874_v57, 9 }
 0x5ae   : > { %v11830_v7 = vrot.slane %v9882_v38, 9  ;;  %v11828_v4 = vrot.slane %v9866_v29, 9  ;;  %v10379_v10 = vmax.f32 %v9865_v62, %v11826_v48  ;;  %v9883_v39 = vcombine.high %v17093_v24, %v17093_v24 }
 0x5af   : > { %v10380_v25 = vmax.f32 %v9864_v27, %v11827_v8  ;;  %v9510_v50 = vadd.f32 %v16937_v18, %v12296_v9  ;;  %v9695_v51 = vadd.f32 %v13062_v6, %v9663_v23  ;;  %v9513_v61 = vadd.f32 %v16942_v47, %v12299_v45  ;;  %v13063_v8 = vld [vmem:[%s13296_s29 + $0x30] sm:$0xff] }
 0x5b0   : > { %v10383_v5 = vmax.f32 %v9882_v38, %v11830_v7  ;;  %v10381_v30 = vmax.f32 %v9866_v29, %v11828_v4  ;;  %v10510_v26 = vrot.slane %v10379_v10, 7  ;;  %v11831_v27 = vrot.slane %v17093_v24, 9 }
 0x5b1   : > { %v9625_v31 = vmul.f32 %v17056_v15, %v9510_v50  ;;  %v11832_v14 = vrot.slane %v9883_v39, 9  ;;  %v9758_v48 = vmul.f32 0.1, %v9694_v22  ;;  %v9626_v18 = vmul.f32 %v17056_v15, %v9513_v61 }
 0x5b2   : > { %v10528_v62 = vrot.slane %v10383_v5, 7  ;;  %v10382_v17 = vmax.f32 %v9874_v57, %v11829_v46  ;;  %v9759_v35 = vmul.f32 0.1, %v9695_v51  ;;  %v10512_v54 = vsel %vm10511_vm10, %v10510_v26, %v10378_v28  ;;  %v13064_v5 = vld [vmem:[%s13296_s29 + $0x38] sm:$0xff] }
 0x5b3   : > { %v12300_v52 = vpop.f32.mrb[104].mxu1  ;;  %v9664_v60 = vadd.f32 %v17064_v21, %v9625_v31  ;;  %v9665_v63 = vadd.f32 %v17064_v21, %v9626_v18  ;;  %v10521_v10 = vrot.slane %v10381_v30, 7  ;;  %v10385_v57 = vmax.f32 %v9883_v39, %v11832_v14 }
 0x5b4   : > { %v12301_v41 = vpop.f32.mrb[105].mxu1  ;;  %v10529_v4 = vsel %vm10511_vm10, %v10528_v62, %v10382_v17  ;;  %v9790_v23 = vsel %vm9726_vm9, %v9694_v22, %v9758_v48  ;;  %vm9727_vm1 = vcmp.gt.f32.partialorder %v9695_v51, 0.0  ;;  %v10514_v45 = vsel %vm10513_vm15, %v10510_v26, %v10512_v54 }
 0x5b5   : > { %v12302_v53 = vadd.f32 %v12301_v41, %v12300_v52  ;;  %v12303_v16 = vpop.f32.mrb[106].mxu1  ;;  %v9696_v7 = vadd.f32 %v13063_v8, %v9664_v60  ;;  %v9791_v50 = vsel %vm9727_vm1, %v9695_v51, %v9759_v35  ;;  %v10522_v39 = vsel %vm10511_vm10, %v10521_v10, %v10380_v25 }
 0x5b6   : > { %v12304_v29 = vpop.f32.mrb[107].mxu1  ;;  %v10516_v6 = vsel %vm10515_vm4, %v10510_v26, %v10514_v45  ;;  %v17119_v61 = vrot.slane %v10385_v57, 7  ;;  %v10384_v41 = vmax.f32 %v17093_v24, %v11831_v27  ;;  %v10523_v25 = vsel %vm10513_vm15, %v10521_v10, %v10522_v39 }
 0x5b7   : > { %v9518_v47 = vadd.f32 %v12302_v53, %v16967_v59  ;;  %v12305_v38 = vadd.f32 %v12304_v29, %v12303_v16  ;;  %v9697_v59 = vadd.f32 %v13064_v5, %v9665_v63  ;;  %vm9728_vm2 = vcmp.gt.f32.partialorder %v9696_v7, 0.0 }
 0x5b8   : > { %v9760_v9 = vmul.f32 0.1, %v9696_v7  ;;  %v17129_v17 = vsel %vm10517_vm6, %v10510_v26, %v10516_v6  ;;  %v10524_v8 = vsel %vm10515_vm4, %v10521_v10, %v10523_v25 }
 0x5b9   : > { %v9521_v49 = vadd.f32 %v12305_v38, %v16971_v32  ;;  %vm9729_vm5 = vcmp.gt.f32.partialorder %v9697_v59, 0.0  ;;  %v9761_v28 = vmul.f32 0.1, %v9697_v59  ;;  %v9627_v46 = vmul.f32 %v17056_v15, %v9518_v47 }
 0x5ba   : > { %v10530_v32 = vsel %vm10513_vm15, %v10528_v62, %v10529_v4  ;;  %v9792_v52 = vsel %vm9728_vm2, %v9696_v7, %v9760_v9  ;;  %v10536_v47 = vsel %vm10511_vm10, %v17119_v61, %v10384_v41  ;;  %v13065_v4 = vld [vmem:[%s13296_s29 + $0x40] sm:$0xff] }
 0x5bb   : > { %v9820_v22 = vmax.f32 %v9790_v23, %v9792_v52  ;;  %v9793_v30 = vsel %vm9729_vm5, %v9697_v59, %v9761_v28  ;;  %v9628_v53 = vmul.f32 %v17056_v15, %v9521_v49  ;;  %v10531_v16 = vsel %vm10515_vm4, %v10528_v62, %v10530_v32 }
 0x5bc   : > { %v9821_v31 = vmax.f32 %v9791_v50, %v9793_v30  ;;  %v9666_v48 = vadd.f32 %v17064_v21, %v9627_v46  ;;  %v17133_v60 = vsel %vm10517_vm6, %v10528_v62, %v10531_v16  ;;  %v10537_v45 = vsel %vm10513_vm15, %v17119_v61, %v10536_v47  ;;  %v13066_v30 = vld [vmem:[%s13296_s29 + $0x48] sm:$0xff] }
 0x5bd   : > { %v9884_v14 = vcombine.high %v9820_v22, %v9820_v22  ;;  %v9891_v51 = vrot.slane %v9820_v22, %v17082_v12  ;;  %v9667_v63 = vadd.f32 %v17064_v21, %v9628_v53  ;;  %v17146_v52 = vsel %vm10517_vm6, %v10521_v10, %v10524_v8 }
 0x5be   : > { %v9901_v18 = vcombine.high %v9821_v31, %v9821_v31  ;;  %v9908_v29 = vrot.slane %v9821_v31, %v17082_v12  ;;  %v17141_v57 = vadd.f32 %v13065_v4, %v9666_v48 }
 0x5bf   : > { %v9898_v24 = vrot.slane %v9884_v14, %v17082_v12  ;;  %v9899_v27 = vcombine.high %v9891_v51, %v9891_v51  ;;  %v11833_v26 = vrot.slane %v9891_v51, 9  ;;  %v9699_v6 = vadd.f32 %v13066_v30, %v9667_v63 }
 0x5c0   : > { %v9915_v38 = vrot.slane %v9901_v18, %v17082_v12  ;;  %v9916_v35 = vcombine.high %v9908_v29, %v9908_v29  ;;  %v11837_v5 = vrot.slane %v9908_v29, 9  ;;  %vm9730_vm14 = vcmp.gt.f32.partialorder %v17141_v57, 0.0 }
 0x5c1   : > { %v9900_v7 = vcombine.high %v9898_v24, %v9898_v24  ;;  %v11834_v49 = vrot.slane %v9899_v27, 9  ;;  %v11835_v28 = vrot.slane %v9898_v24, 9  ;;  %v10386_v31 = vmax.f32 %v9891_v51, %v11833_v26 }
 0x5c2   : > { %v9917_v23 = vcombine.high %v9915_v38, %v9915_v38  ;;  %v11838_v59 = vrot.slane %v9916_v35, 9  ;;  %v11839_v48 = vrot.slane %v9915_v38, 9  ;;  %v10390_v25 = vmax.f32 %v9908_v29, %v11837_v5 }
 0x5c3   : > { %v11836_v46 = vrot.slane %v9900_v7, 9  ;;  %v10387_v32 = vmax.f32 %v9899_v27, %v11834_v49  ;;  %v10388_v47 = vmax.f32 %v9898_v24, %v11835_v28  ;;  %v13067_v28 = vld [vmem:[%s13296_s29 + $0x50] sm:$0xff]  ;;  %vm9731_vm0 = vcmp.gt.f32.partialorder %v9699_v6, 0.0 }
 0x5c4   : > { %v11840_v39 = vrot.slane %v9917_v23, 9  ;;  %v10391_v22 = vmax.f32 %v9916_v35, %v11838_v59  ;;  %v10392_v30 = vmax.f32 %v9915_v38, %v11839_v48  ;;  %v10538_v38 = vsel %vm10515_vm4, %v17119_v61, %v10537_v45 }
 0x5c5   : > { %v10389_v53 = vmax.f32 %v9900_v7, %v11836_v46  ;;  %v10542_v16 = vrot.slane %v10387_v32, 7  ;;  %v17201_v45 = vsel %vm10517_vm6, %v17119_v61, %v10538_v38 }
 0x5c6   : > { %v12306_v54 = vpop.f32.mrb[108].mxu1  ;;  %v10556_v18 = vrot.slane %v10391_v22, 7  ;;  %v10393_v49 = vmax.f32 %v9917_v23, %v11840_v39 }
 0x5c7   : > { %v12307_v62 = vpop.f32.mrb[109].mxu1  ;;  %v10543_v8 = vsel %vm10511_vm10, %v10542_v16, %v10386_v31  ;;  %v10549_v35 = vrot.slane %v10389_v53, 7  ;;  %v13068_v31 = vld [vmem:[%s13296_s29 + $0x58] sm:$0xff] }
 0x5c8   : > { %v12309_v9 = vpop.f32.mrb[110].mxu1  ;;  %v12308_v41 = vadd.f32 %v12307_v62, %v12306_v54  ;;  %v10544_v63 = vsel %vm10513_vm15, %v10542_v16, %v10543_v8  ;;  %v10557_v54 = vsel %vm10511_vm10, %v10556_v18, %v10390_v25  ;;  %v17174_v32 = vpop.f32.mrb[132].mxu0  ;;  %v10563_v22 = vrot.slane %v10393_v49, 7 }
 0x5c9   : > { %v12310_v50 = vpop.f32.mrb[111].mxu1  ;;  %v10545_v29 = vsel %vm10515_vm4, %v10542_v16, %v10544_v63  ;;  %v10550_v24 = vsel %vm10511_vm10, %v10549_v35, %v10388_v47 }
 0x5ca   : > { %v12311_v14 = vadd.f32 %v12310_v50, %v12309_v9  ;;  %v9526_v27 = vadd.f32 %v16965_v40, %v12308_v41  ;;  %v10558_v40 = vsel %vm10513_vm15, %v10556_v18, %v10557_v54  ;;  %v17163_v4 = vsel %vm10517_vm6, %v10542_v16, %v10545_v29  ;;  %v17180_v16 = vpop.f32.mrb[133].mxu0 }
 0x5cb   : > { %v10559_v62 = vsel %vm10515_vm4, %v10556_v18, %v10558_v40  ;;  %v10768_v5 = vcombine.low %v17129_v17, %v17163_v4  ;;  %v10551_v9 = vsel %vm10513_vm15, %v10549_v35, %v10550_v24  ;;  %v9763_v41 = vmul.f32 0.1, %v9699_v6  ;;  %v13072_v17 = vld [vmem:[%s13296_s29 + $0x78] sm:$0xff] }
 0x5cc   : > { %v9529_v10 = vadd.f32 %v16969_v44, %v12311_v14  ;;  %v9629_v51 = vmul.f32 %v17056_v15, %v9526_v27  ;;  %v9762_v44 = vmul.f32 0.1, %v17141_v57  ;;  %v17170_v59 = vsel %vm10517_vm6, %v10556_v18, %v10559_v62  ;;  %v17185_v18 = vpop.f32.mrb[134].mxu0 }
 0x5cd   : > { %v10840_v50 = vcombine.low %v17133_v60, %v17170_v59  ;;  %v10552_v39 = vsel %vm10515_vm4, %v10549_v35, %v10551_v9  ;;  %v10564_v48 = vsel %vm10511_vm10, %v10563_v22, %v10392_v30  ;;  %v9795_v63 = vsel %vm9731_vm0, %v9699_v6, %v9763_v41 }
 0x5ce   : > { %v9630_v7 = vmul.f32 %v17056_v15, %v9529_v10  ;;  %v9668_v26 = vadd.f32 %v17064_v21, %v9629_v51  ;;  %v17183_v14 = vsel %vm10517_vm6, %v10549_v35, %v10552_v39  ;;  %v17189_v10 = vpop.f32.mrb[135].mxu0  ;;  %v9794_v8 = vsel %vm9730_vm14, %v17141_v57, %v9762_v44 }
 0x5cf   : > { %v10565_v51 = vsel %vm10513_vm15, %v10563_v22, %v10564_v48  ;;  %v17893_v59 = vcombine.low %v17146_v52, %v17183_v14 }
 0x5d0   : > { %v9669_v23 = vadd.f32 %v17064_v21, %v9630_v7  ;;  %v9700_v46 = vadd.f32 %v13067_v28, %v9668_v26  ;;  %v10566_v40 = vsel %vm10515_vm4, %v10563_v22, %v10565_v51 }
 0x5d2   : > { %v9701_v53 = vadd.f32 %v13068_v31, %v9669_v23  ;;  %vm9732_vm3 = vcmp.gt.f32.partialorder %v9700_v46, 0.0  ;;  %v9764_v25 = vmul.f32 0.1, %v9700_v46  ;;  %v17204_v23 = vsel %vm10517_vm6, %v10563_v22, %v10566_v40 }
 0x5d4   : > { %vm9733_vm7 = vcmp.gt.f32.partialorder %v9701_v53, 0.0  ;;  %v9765_v47 = vmul.f32 0.1, %v9701_v53  ;;  %v9796_v35 = vsel %vm9732_vm3, %v9700_v46, %v9764_v25  ;;  %v13160_v25 = vmov 1934713408  }
 0x5d5   : > { %v9822_v54 = vmax.f32 %v9794_v8, %v9796_v35 }
 0x5d6   : > { %v12312_v49 = vpop.f32.mrb[112].mxu1  ;;  %v9797_v7 = vsel %vm9733_vm7, %v9701_v53, %v9765_v47  ;;  %v10770_v47 = vunpack.c.l.s4 %v13160_v25  ;;  %v13069_v25 = vld [vmem:[%s13296_s29 + $0x60] sm:$0xff] }
 0x5d7   : > { %v12313_v29 = vpop.f32.mrb[113].mxu1  ;;  %v9823_v24 = vmax.f32 %v9795_v63, %v9797_v7  ;;  %v9925_v28 = vrot.slane %v9822_v54, %v17082_v12  ;;  %v9918_v39 = vcombine.high %v9822_v54, %v9822_v54 }
 0x5d8   : > { %v12314_v26 = vadd.f32 %v12313_v29, %v12312_v49  ;;  %v12315_v62 = vpop.f32.mrb[114].mxu1  ;;  %v10771_v54 = vunpack.c.0.s8 %v10770_v47 }
 0x5d9   : > { %v12316_v57 = vpop.f32.mrb[115].mxu1  ;;  %v9935_v30 = vcombine.high %v9823_v24, %v9823_v24  ;;  %v9933_v41 = vcombine.high %v9925_v28, %v9925_v28  ;;  %v9942_v61 = vrot.slane %v9823_v24, %v17082_v12  ;;  %v9932_v31 = vrot.slane %v9918_v39, %v17082_v12 }
 0x5da   : > { %v9534_v6 = vadd.f32 %v12314_v26, %v16991_v33  ;;  %v12317_v9 = vadd.f32 %v12316_v57, %v12315_v62  ;;  %v11841_v51 = vrot.slane %v9925_v28, 9 }
 0x5db   : > { %v9949_v22 = vrot.slane %v9935_v30, %v17082_v12  ;;  %v11842_v53 = vrot.slane %v9933_v41, 9  ;;  %v9950_v38 = vcombine.high %v9942_v61, %v9942_v61  ;;  %v9934_v48 = vcombine.high %v9932_v31, %v9932_v31 }
 0x5dc   : > { %v9537_v46 = vadd.f32 %v12317_v9, %v16995_v58  ;;  %v9631_v33 = vmul.f32 %v17056_v15, %v9534_v6  ;;  %v10394_v30 = vmax.f32 %v9925_v28, %v11841_v51 }
 0x5dd   : > { %v9951_v8 = vcombine.high %v9949_v22, %v9949_v22  ;;  %v10395_v35 = vmax.f32 %v9933_v41, %v11842_v53  ;;  %v11846_v7 = vrot.slane %v9950_v38, 9  ;;  %v11844_v26 = vrot.slane %v9934_v48, 9 }
 0x5de   : > { %v9632_v58 = vmul.f32 %v17056_v15, %v9537_v46  ;;  %v9670_v29 = vadd.f32 %v17064_v21, %v9631_v33  ;;  %v17220_v41 = vsub.s32 %v10771_v54, %v17076_v36  ;;  %v11843_v36 = vrot.slane %v9932_v31, 9 }
 0x5df   : > { %v11848_v62 = vrot.slane %v9951_v8, 9  ;;  %v10570_v6 = vrot.slane %v10395_v35, 7  ;;  %v10399_v53 = vmax.f32 %v9950_v38, %v11846_v7  ;;  %v13070_v35 = vld [vmem:[%s13296_s29 + $0x68] sm:$0xff]  ;;  %v11845_v38 = vrot.slane %v9942_v61, 9 }
 0x5e0   : > { %v9671_v9 = vadd.f32 %v17064_v21, %v9632_v58  ;;  %v9702_v47 = vadd.f32 %v13069_v25, %v9670_v29  ;;  %v11847_v51 = vrot.slane %v9949_v22, 9  ;;  %v17233_v54 = vrot.slane %v10768_v5, %v17220_v41 }
 0x5e1   : > { %v10401_v44 = vmax.f32 %v9951_v8, %v11848_v62  ;;  %v10571_v28 = vsel %vm10511_vm10, %v10570_v6, %v10394_v30  ;;  %v13071_v8 = vld [vmem:[%s13296_s29 + $0x70] sm:$0xff]  ;;  %v10396_v5 = vmax.f32 %v9932_v31, %v11843_v36 }
 0x5e2   : > { %v9703_v27 = vadd.f32 %v13070_v35, %v9671_v9  ;;  %vm9734_vm8 = vcmp.gt.f32.partialorder %v9702_v47, 0.0  ;;  %v10398_v9 = vmax.f32 %v9942_v61, %v11845_v38  ;;  %v17254_v61 = vrot.slane %v10840_v50, %v17220_v41 }
 0x5e3   : > { %v17270_v50 = vrot.slane %v17893_v59, %v17220_v41 }
 0x5e4   : > { %v9767_v62 = vmul.f32 0.1, %v9703_v27  ;;  %vm9735_vm1 = vcmp.gt.f32.partialorder %v9703_v27, 0.0 }
 0x5e6   : > { %v9799_v35 = vsel %vm9735_vm1, %v9703_v27, %v9767_v62 }
 0x5ea   : > { %v12318_v49 = vpop.f32.mrb[116].mxu1 }
 0x5eb   : > { %v12319_v63 = vpop.f32.mrb[117].mxu1 }
 0x5ec   : > { %v12320_v40 = vadd.f32 %v12319_v63, %v12318_v49  ;;  %v12321_v24 = vpop.f32.mrb[118].mxu1  ;;  %v10397_v63 = vmax.f32 %v9934_v48, %v11844_v26  ;;  %v9766_v48 = vmul.f32 0.1, %v9702_v47  ;;  %v17242_v26 = vrot.slane %v10401_v44, 7 }
 0x5ed   : > { %v12322_v57 = vpop.f32.mrb[119].mxu1 }
 0x5ee   : > { %v9542_v39 = vadd.f32 %v16989_v3, %v12320_v40  ;;  %v12323_v46 = vadd.f32 %v12322_v57, %v12321_v24  ;;  %v10572_v40 = vsel %vm10513_vm15, %v10570_v6, %v10571_v28  ;;  %v17240_v24 = vrot.slane %v10397_v63, 7 }
 0x5f0   : > { %v9633_v33 = vmul.f32 %v17056_v15, %v9542_v39  ;;  %v9545_v49 = vadd.f32 %v16993_v2, %v12323_v46  ;;  %v17235_v2 = vrot.slane %v10399_v53, 7  ;;  %v10400_v39 = vmax.f32 %v9949_v22, %v11847_v51 }
 0x5f1   : > { %v9798_v46 = vsel %vm9734_vm8, %v9702_v47, %v9766_v48  ;;  %v10578_v63 = vsel %vm10511_vm10, %v17240_v24, %v10396_v5 }
 0x5f2   : > { %v9672_v58 = vadd.f32 %v17064_v21, %v9633_v33  ;;  %v9634_v3 = vmul.f32 %v17056_v15, %v9545_v49  ;;  %v10573_v49 = vsel %vm10515_vm4, %v10570_v6, %v10572_v40  ;;  %v10585_v44 = vsel %vm10511_vm10, %v17235_v2, %v10398_v9 }
 0x5f3   : > { %v10592_v22 = vsel %vm10511_vm10, %v17242_v26, %v10400_v39  ;;  %v17260_v27 = vsel %vm10517_vm6, %v10570_v6, %v10573_v49  ;;  %v10586_v48 = vsel %vm10513_vm15, %v17235_v2, %v10585_v44  ;;  %v10579_v60 = vsel %vm10513_vm15, %v17240_v24, %v10578_v63 }
 0x5f4   : > { %v9704_v7 = vadd.f32 %v13071_v8, %v9672_v58  ;;  %v9673_v29 = vadd.f32 %v17064_v21, %v9634_v3  ;;  %v10593_v6 = vsel %vm10513_vm15, %v17242_v26, %v10592_v22  ;;  %v10587_v52 = vsel %vm10515_vm4, %v17235_v2, %v10586_v48  ;;  %v13073_v48 = vld [vmem:[%s13296_s29 + $0x80] sm:$0xff] }
 0x5f5   : > { %v10580_v14 = vsel %vm10515_vm4, %v17240_v24, %v10579_v60 }
 0x5f6   : > { %vm9736_vm9 = vcmp.gt.f32.partialorder %v9704_v7, 0.0  ;;  %v9768_v57 = vmul.f32 0.1, %v9704_v7  ;;  %v9705_v4 = vadd.f32 %v13072_v17, %v9673_v29 }
 0x5f8   : > { %v9800_v30 = vsel %vm9736_vm9, %v9704_v7, %v9768_v57  ;;  %vm9737_vm2 = vcmp.gt.f32.partialorder %v9705_v4, 0.0  ;;  %v9769_v53 = vmul.f32 0.1, %v9705_v4  ;;  %v12324_v33 = vpop.f32.mrb[120].mxu1 }
 0x5f9   : > { %v9824_v25 = vmax.f32 %v9798_v46, %v9800_v30  ;;  %v12325_v31 = vpop.f32.mrb[121].mxu1 }
 0x5fa   : > { %v9801_v58 = vsel %vm9737_vm2, %v9705_v4, %v9769_v53  ;;  %v12326_v36 = vadd.f32 %v12325_v31, %v12324_v33  ;;  %v12327_v38 = vpop.f32.mrb[122].mxu1  ;;  %v10594_v33 = vsel %vm10515_vm4, %v17242_v26, %v10593_v6 }
 0x5fb   : > { %v9952_v47 = vcombine.high %v9824_v25, %v9824_v25  ;;  %v9959_v3 = vrot.slane %v9824_v25, %v17082_v12  ;;  %v9825_v28 = vmax.f32 %v9799_v35, %v9801_v58  ;;  %v12328_v51 = vpop.f32.mrb[123].mxu1 }
 0x5fc   : > { %v9550_v57 = vadd.f32 %v12326_v36, %v17017_v19  ;;  %v12329_v17 = vadd.f32 %v12328_v51, %v12327_v38 }
 0x5fd   : > { %v9966_v8 = vrot.slane %v9952_v47, %v17082_v12  ;;  %v9967_v7 = vcombine.high %v9959_v3, %v9959_v3  ;;  %v9969_v29 = vcombine.high %v9825_v28, %v9825_v28  ;;  %v11849_v40 = vrot.slane %v9959_v3, 9 }
 0x5fe   : > { %v9976_v62 = vrot.slane %v9825_v28, %v17082_v12  ;;  %v9635_v30 = vmul.f32 %v17056_v15, %v9550_v57  ;;  %v9553_v19 = vadd.f32 %v12329_v17, %v17024_v20 }
 0x5ff   : > { %v9968_v4 = vcombine.high %v9966_v8, %v9966_v8  ;;  %v11850_v5 = vrot.slane %v9967_v7, 9  ;;  %v11851_v9 = vrot.slane %v9966_v8, 9  ;;  %v9983_v39 = vrot.slane %v9969_v29, %v17082_v12 }
 0x600   : > { %v9984_v46 = vcombine.high %v9976_v62, %v9976_v62  ;;  %v10402_v49 = vmax.f32 %v9959_v3, %v11849_v40  ;;  %v11853_v63 = vrot.slane %v9976_v62, 9  ;;  %v9674_v22 = vadd.f32 %v17064_v21, %v9635_v30 }
 0x601   : > { %v11852_v53 = vrot.slane %v9968_v4, 9  ;;  %v10403_v25 = vmax.f32 %v9967_v7, %v11850_v5  ;;  %v9985_v44 = vcombine.high %v9983_v39, %v9983_v39  ;;  %v9636_v47 = vmul.f32 %v17056_v15, %v9553_v19 }
 0x602   : > { %v11854_v35 = vrot.slane %v9984_v46, 9  ;;  %v10404_v28 = vmax.f32 %v9966_v8, %v11851_v9  ;;  %v11855_v36 = vrot.slane %v9983_v39, 9  ;;  %v17289_v60 = vadd.f32 %v13073_v48, %v9674_v22 }
 0x603   : > { %v10405_v58 = vmax.f32 %v9968_v4, %v11852_v53  ;;  %v10598_v31 = vrot.slane %v10403_v25, 7  ;;  %v11856_v38 = vrot.slane %v9985_v44, 9  ;;  %v9675_v20 = vadd.f32 %v17064_v21, %v9636_v47 }
 0x604   : > { %v10407_v51 = vmax.f32 %v9984_v46, %v11854_v35  ;;  %v12330_v59 = vpop.f32.mrb[124].mxu1  ;;  %v10406_v29 = vmax.f32 %v9976_v62, %v11853_v63  ;;  %v10588_v5 = vsel %vm10517_vm6, %v17235_v2, %v10587_v52  ;;  %v10581_v9 = vsel %vm10517_vm6, %v17240_v24, %v10580_v14 }
 0x605   : > { %v10599_v3 = vsel %vm10511_vm10, %v10598_v31, %v10402_v49  ;;  %v10605_v7 = vrot.slane %v10405_v58, 7  ;;  %v10409_v6 = vmax.f32 %v9985_v44, %v11856_v38  ;;  %v12331_v57 = vpop.f32.mrb[125].mxu1  ;;  %v17300_v46 = vsel %vm10517_vm6, %v17242_v26, %v10594_v33  ;;  %v13074_v44 = vld [vmem:[%s13296_s29 + $0x88] sm:$0xff] }
 0x606   : > { %v10612_v40 = vrot.slane %v10407_v51, 7  ;;  %v10600_v17 = vsel %vm10513_vm15, %v10598_v31, %v10599_v3  ;;  %v12332_v8 = vadd.f32 %v12331_v57, %v12330_v59  ;;  %v12333_v4 = vpop.f32.mrb[126].mxu1  ;;  %v10408_v49 = vmax.f32 %v9983_v39, %v11855_v36 }
 0x607   : > { %v12334_v30 = vpop.f32.mrb[127].mxu1  ;;  %v10601_v62 = vsel %vm10515_vm4, %v10598_v31, %v10600_v17  ;;  %v10606_v25 = vsel %vm10511_vm10, %v10605_v7, %v10404_v28  ;;  %v10619_v19 = vrot.slane %v10409_v6, 7  ;;  %vm9738_vm5 = vcmp.gt.f32.partialorder %v17289_v60, 0.0 }
 0x608   : > { %v10613_v53 = vsel %vm10511_vm10, %v10612_v40, %v10406_v29  ;;  %v9707_v2 = vadd.f32 %v13074_v44, %v9675_v20  ;;  %v9558_v52 = vadd.f32 %v17013_v43, %v12332_v8  ;;  %v12335_v24 = vadd.f32 %v12334_v30, %v12333_v4  ;;  %v13075_v20 = vld [vmem:[%s13296_s29 + $0x90] sm:$0xff]  ;;  %v13076_v30 = vld [vmem:[%s13296_s29 + $0x98] sm:$0xff] }
 0x609   : > { %v10602_v14 = vsel %vm10517_vm6, %v10598_v31, %v10601_v62  ;;  %v10614_v26 = vsel %vm10513_vm15, %v10612_v40, %v10613_v53  ;;  %v10607_v33 = vsel %vm10513_vm15, %v10605_v7, %v10606_v25  ;;  %v9770_v63 = vmul.f32 0.1, %v17289_v60 }
 0x60a   : > { %v9637_v35 = vmul.f32 %v17056_v15, %v9558_v52  ;;  %v10777_v39 = vcombine.low %v17260_v27, %v10602_v14  ;;  %v10615_v58 = vsel %vm10515_vm4, %v10612_v40, %v10614_v26  ;;  %v9561_v22 = vadd.f32 %v17021_v13, %v12335_v24 }
 0x60b   : > { %v10616_v43 = vsel %vm10517_vm6, %v10612_v40, %v10615_v58  ;;  %v10608_v47 = vsel %vm10515_vm4, %v10605_v7, %v10607_v33  ;;  %v10620_v31 = vsel %vm10511_vm10, %v10619_v19, %v10408_v49  ;;  %vm9739_vm14 = vcmp.gt.f32.partialorder %v9707_v2, 0.0 }
 0x60c   : > { %v9676_v28 = vadd.f32 %v17064_v21, %v9637_v35  ;;  %v17321_v36 = vrot.slane %v10777_v39, %v17220_v41  ;;  %v10849_v38 = vcombine.low %v10588_v5, %v10616_v43  ;;  %v10609_v51 = vsel %vm10517_vm6, %v10605_v7, %v10608_v47 }
 0x60d   : > { %v9638_v27 = vmul.f32 %v17056_v15, %v9561_v22  ;;  %v10813_v48 = vcombine.low %v10581_v9, %v10609_v51  ;;  %v10621_v13 = vsel %vm10513_vm15, %v10619_v19, %v10620_v31  ;;  %v9771_v8 = vmul.f32 0.1, %v9707_v2 }
 0x60e   : > { %v9708_v59 = vadd.f32 %v13075_v20, %v9676_v28  ;;  %v11889_v3 = vcombine.high %v17233_v54, %v17321_v36  ;;  %v17330_v29 = vrot.slane %v10849_v38, %v17220_v41  ;;  %v10622_v6 = vsel %vm10515_vm4, %v10619_v19, %v10621_v13 }
 0x60f   : > { %v9677_v40 = vadd.f32 %v17064_v21, %v9638_v27  ;;  %v17335_v7 = vrot.slane %v10813_v48, %v17220_v41  ;;  %v10623_v57 = vsel %vm10517_vm6, %v10619_v19, %v10622_v6  ;;  %v10916_v17 = vcombine.low %v17233_v54, %v17321_v36  ;;  %v13090_v36 = vld [vmem:[%s13296_s29 + $0xf8] sm:$0xff] }
 0x610   : > { %vm9740_vm0 = vcmp.gt.f32.partialorder %v9708_v59, 0.0  ;;  %v9772_v4 = vmul.f32 0.1, %v9708_v59  ;;  %v12336_v5 = vpop.f32.mrb[128].mxu1  ;;  %v11893_v9 = vcombine.high %v17254_v61, %v17330_v29  ;;  %v10885_v49 = vcombine.low %v17300_v46, %v10623_v57 }
 0x611   : > { %v9709_v62 = vadd.f32 %v13076_v30, %v9677_v40  ;;  %v12337_v53 = vpop.f32.mrb[129].mxu1  ;;  %v10962_v25 = vcombine.low %v17270_v50, %v17335_v7  ;;  %v11891_v19 = vcombine.high %v17270_v50, %v17335_v7  ;;  %v9802_v44 = vsel %vm9738_vm5, %v17289_v60, %v9770_v63 }
 0x612   : > { %v9804_v52 = vsel %vm9740_vm0, %v9708_v59, %v9772_v4  ;;  %v12338_v24 = vadd.f32 %v12337_v53, %v12336_v5  ;;  %v12339_v14 = vpop.f32.mrb[130].mxu1  ;;  %v17894_v39 = vcombine.low %v17201_v45, %v17204_v23  ;;  %v9803_v46 = vsel %vm9739_vm14, %v9707_v2, %v9771_v8 }
 0x613   : > { %v9826_v26 = vmax.f32 %v9802_v44, %v9804_v52  ;;  %vm9741_vm3 = vcmp.gt.f32.partialorder %v9709_v62, 0.0  ;;  %v9773_v33 = vmul.f32 0.1, %v9709_v62  ;;  %v12340_v35 = vpop.f32.mrb[131].mxu1  ;;  %v17360_v60 = vrot.slane %v10885_v49, %v17220_v41 }
 0x614   : > { %v17355_v58 = vrot.slane %v17894_v39, %v17220_v41  ;;  %v9566_v22 = vadd.f32 %v12338_v24, %v17039_v56  ;;  %v12341_v43 = vadd.f32 %v12340_v35, %v12339_v14  ;;  %v11010_v28 = vcombine.low %v17254_v61, %v17330_v29  ;;  %v13077_v39 = vld [vmem:[%s13296_s29 + $0xa0] sm:$0xff] }
 0x615   : > { %v9986_v63 = vcombine.high %v9826_v26, %v9826_v26  ;;  %v9993_v47 = vrot.slane %v9826_v26, %v17082_v12  ;;  %v9805_v31 = vsel %vm9741_vm3, %v9709_v62, %v9773_v33 }
 0x616   : > { %v9827_v38 = vmax.f32 %v9803_v46, %v9805_v31  ;;  %v9569_v45 = vadd.f32 %v12341_v43, %v17043_v55  ;;  %v11056_v23 = vcombine.low %v17355_v58, %v17360_v60  ;;  %v11895_v51 = vcombine.high %v17355_v58, %v17360_v60 }
 0x617   : > { %v10000_v2 = vrot.slane %v9986_v63, %v17082_v12  ;;  %v10001_v56 = vcombine.high %v9993_v47, %v9993_v47  ;;  %v9639_v13 = vmul.f32 %v17056_v15, %v9566_v22  ;;  %v11857_v26 = vrot.slane %v9993_v47, 9 }
 0x618   : > { %v10003_v27 = vcombine.high %v9827_v38, %v9827_v38  ;;  %v10010_v48 = vrot.slane %v9827_v38, %v17082_v12  ;;  %v9640_v55 = vmul.f32 %v17056_v15, %v9569_v45  ;;  %v13078_v45 = vld [vmem:[%s13296_s29 + $0xa8] sm:$0xff]  ;;  %v17560_v7 = vrot.slane %v11056_v23, %v17082_v12 }
 0x619   : > { %v10002_v20 = vcombine.high %v10000_v2, %v10000_v2  ;;  %v11858_v59 = vrot.slane %v10001_v56, 9  ;;  %v9678_v5 = vadd.f32 %v17064_v21, %v9639_v13 }
 0x61a   : > { %v10017_v6 = vrot.slane %v10003_v27, %v17082_v12  ;;  %v10018_v40 = vcombine.high %v10010_v48, %v10010_v48  ;;  %v9679_v52 = vadd.f32 %v17064_v21, %v9640_v55  ;;  %v11861_v35 = vrot.slane %v10010_v48, 9 }
 0x61b   : > { %v11860_v62 = vrot.slane %v10002_v20, 9  ;;  %v10411_v53 = vmax.f32 %v10001_v56, %v11858_v59  ;;  %v9710_v46 = vadd.f32 %v13077_v39, %v9678_v5  ;;  %v11859_v59 = vrot.slane %v10000_v2, 9 }
 0x61c   : > { %v10019_v57 = vcombine.high %v10017_v6, %v10017_v6  ;;  %v11862_v8 = vrot.slane %v10018_v40, 9  ;;  %v12342_v4 = vpop.f32.mrb[132].mxu1  ;;  %v9711_v56 = vadd.f32 %v13078_v45, %v9679_v52  ;;  %v11863_v55 = vrot.slane %v10017_v6, 9 }
 0x61d   : > { %v12343_v30 = vpop.f32.mrb[133].mxu1  ;;  %v10413_v63 = vmax.f32 %v10002_v20, %v11860_v62  ;;  %v10626_v31 = vrot.slane %v10411_v53, 7  ;;  %v9774_v5 = vmul.f32 0.1, %v9710_v46  ;;  %vm9742_vm7 = vcmp.gt.f32.partialorder %v9710_v46, 0.0 }
 0x61e   : > { %v12345_v49 = vpop.f32.mrb[134].mxu1  ;;  %v10415_v44 = vmax.f32 %v10018_v40, %v11862_v8  ;;  %v12344_v24 = vadd.f32 %v12343_v30, %v12342_v4  ;;  %v11864_v33 = vrot.slane %v10019_v57, 9  ;;  %v10410_v40 = vmax.f32 %v9993_v47, %v11857_v26  ;;  %v13080_v26 = vld [vmem:[%s13296_s29 + $0xb8] sm:$0xff] }
 0x61f   : > { %v12346_v14 = vpop.f32.mrb[135].mxu1  ;;  %v10414_v4 = vmax.f32 %v10010_v48, %v11861_v35  ;;  %v17387_v62 = vrot.slane %v10413_v63, 7  ;;  %v9775_v53 = vmul.f32 0.1, %v9711_v56  ;;  %v10412_v48 = vmax.f32 %v10000_v2, %v11859_v59 }
 0x620   : > { %v9574_v22 = vadd.f32 %v17037_v34, %v12344_v24  ;;  %v12347_v43 = vadd.f32 %v12346_v14, %v12345_v49  ;;  %v17379_v38 = vrot.slane %v10415_v44, 7  ;;  %v10417_v8 = vmax.f32 %v10019_v57, %v11864_v33  ;;  %v13079_v49 = vld [vmem:[%s13296_s29 + $0xb0] sm:$0xff] }
 0x621   : > { %v10627_v30 = vsel %vm10511_vm10, %v10626_v31, %v10410_v40  ;;  %v10416_v57 = vmax.f32 %v10017_v6, %v11863_v55  ;;  %vm9743_vm8 = vcmp.gt.f32.partialorder %v9711_v56, 0.0  ;;  %v10634_v2 = vsel %vm10511_vm10, %v17387_v62, %v10412_v48 }
 0x622   : > { %v9641_v27 = vmul.f32 %v17056_v15, %v9574_v22  ;;  %v9577_v13 = vadd.f32 %v17041_v1, %v12347_v43  ;;  %v10641_v47 = vsel %vm10511_vm10, %v17379_v38, %v10414_v4  ;;  %v17393_v24 = vrot.slane %v10417_v8, 7 }
 0x623   : > { %v10628_v43 = vsel %vm10513_vm15, %v10626_v31, %v10627_v30  ;;  %v9807_v6 = vsel %vm9743_vm8, %v9711_v56, %v9775_v53  ;;  %v10635_v56 = vsel %vm10513_vm15, %v17387_v62, %v10634_v2 }
 0x624   : > { %v9680_v34 = vadd.f32 %v17064_v21, %v9641_v27  ;;  %v9642_v20 = vmul.f32 %v17056_v15, %v9577_v13  ;;  %v9806_v15 = vsel %vm9742_vm7, %v9710_v46, %v9774_v5  ;;  %v10648_v40 = vsel %vm10511_vm10, %v17393_v24, %v10416_v57 }
 0x625   : > { %v10629_v8 = vsel %vm10515_vm4, %v10626_v31, %v10628_v43 }
 0x626   : > { %v9712_v44 = vadd.f32 %v13079_v49, %v9680_v34  ;;  %v9681_v1 = vadd.f32 %v17064_v21, %v9642_v20  ;;  %v10642_v21 = vsel %vm10513_vm15, %v17379_v38, %v10641_v47  ;;  %v10649_v49 = vsel %vm10513_vm15, %v17393_v24, %v10648_v40 }
 0x627   : > { %v10643_v4 = vsel %vm10515_vm4, %v17379_v38, %v10642_v21  ;;  %v17421_v48 = vsel %vm10517_vm6, %v10626_v31, %v10629_v8 }
 0x628   : > { %v12348_v52 = vpop.f32.mrb[136].mxu1  ;;  %vm9744_vm9 = vcmp.gt.f32.partialorder %v9712_v44, 0.0  ;;  %v9776_v14 = vmul.f32 0.1, %v9712_v44  ;;  %v9713_v33 = vadd.f32 %v13080_v26, %v9681_v1 }
 0x629   : > { %v12349_v35 = vpop.f32.mrb[137].mxu1 }
 0x62a   : > { %v12350_v39 = vadd.f32 %v12349_v35, %v12348_v52  ;;  %v12351_v22 = vpop.f32.mrb[138].mxu1  ;;  %v9808_v63 = vsel %vm9744_vm9, %v9712_v44, %v9776_v14  ;;  %vm9745_vm1 = vcmp.gt.f32.partialorder %v9713_v33, 0.0  ;;  %v9777_v45 = vmul.f32 0.1, %v9713_v33  ;;  %v17427_v52 = vld [vmem:[%s17723_s9] ss:$0 sm:$0xff] }
 0x62b   : > { %v12352_v46 = vpop.f32.mrb[139].mxu1  ;;  %v9828_v27 = vmax.f32 %v9806_v15, %v9808_v63  ;;  %v10636_v14 = vsel %vm10515_vm4, %v17387_v62, %v10635_v56  ;;  %v10650_v35 = vsel %vm10515_vm4, %v17393_v24, %v10649_v49 }
 0x62c   : > { %v9582_v13 = vadd.f32 %v12350_v39, %v17047_v11  ;;  %v12353_v59 = vadd.f32 %v12352_v46, %v12351_v22  ;;  %v9809_v55 = vsel %vm9745_vm1, %v9713_v33, %v9777_v45  ;;  %v17413_v11 = vld [vmem:[%s17722_s8] ss:$0 sm:$0xff]  ;;  %v17442_v45 = vsel %vm10517_vm6, %v17387_v62, %v10636_v14 }
 0x62d   : > { %v10020_v5 = vcombine.high %v9828_v27, %v9828_v27  ;;  %v10027_v34 = vrot.slane %v9828_v27, %v17082_v12  ;;  %v9829_v20 = vmax.f32 %v9807_v6, %v9809_v55 }
 0x62e   : > { %v9643_v30 = vmul.f32 %v17413_v11, %v9582_v13  ;;  %v9585_v53 = vadd.f32 %v12353_v59, %v17051_v42  ;;  %v17432_v42 = vsel %vm10517_vm6, %v17379_v38, %v10643_v4  ;;  %v13083_v59 = vld [vmem:[%s13296_s29 + $0xc0] sm:$0xff] }
 0x62f   : > { %v10034_v44 = vrot.slane %v10020_v5, %v17082_v12  ;;  %v10035_v1 = vcombine.high %v10027_v34, %v10027_v34  ;;  %v10037_v47 = vcombine.high %v9829_v20, %v9829_v20  ;;  %v10044_v57 = vrot.slane %v9829_v20, %v17082_v12 }
 0x630   : > { %v9682_v15 = vadd.f32 %v17427_v52, %v9643_v30  ;;  %v11865_v31 = vrot.slane %v10027_v34, 9  ;;  %v9644_v21 = vmul.f32 %v17413_v11, %v9585_v53  ;;  %v17449_v20 = vsel %vm10517_vm6, %v17393_v24, %v10650_v35 }
 0x631   : > { %v10036_v26 = vcombine.high %v10034_v44, %v10034_v44  ;;  %v11866_v33 = vrot.slane %v10035_v1, 9  ;;  %v11867_v39 = vrot.slane %v10034_v44, 9  ;;  %v10051_v22 = vrot.slane %v10037_v47, %v17082_v12 }
 0x632   : > { %v10052_v43 = vcombine.high %v10044_v57, %v10044_v57  ;;  %v11869_v38 = vrot.slane %v10044_v57, 9  ;;  %v17445_v40 = vadd.f32 %v13083_v59, %v9682_v15  ;;  %v10418_v8 = vmax.f32 %v10027_v34, %v11865_v31 }
 0x633   : > { %v11868_v2 = vrot.slane %v10036_v26, 9  ;;  %v10419_v6 = vmax.f32 %v10035_v1, %v11866_v33  ;;  %v10053_v46 = vcombine.high %v10051_v22, %v10051_v22  ;;  %v11871_v13 = vrot.slane %v10051_v22, 9 }
 0x634   : > { %v12354_v63 = vpop.f32.mrb[140].mxu1  ;;  %v11870_v27 = vrot.slane %v10052_v43, 9  ;;  %v10420_v30 = vmax.f32 %v10034_v44, %v11867_v39  ;;  %v9683_v49 = vadd.f32 %v17427_v52, %v9644_v21  ;;  %v10422_v47 = vmax.f32 %v10044_v57, %v11869_v38 }
 0x635   : > { %v12355_v55 = vpop.f32.mrb[141].mxu1  ;;  %v10421_v4 = vmax.f32 %v10036_v26, %v11868_v2  ;;  %v10654_v56 = vrot.slane %v10419_v6, 7  ;;  %v11872_v53 = vrot.slane %v10053_v46, 9  ;;  %v10424_v34 = vmax.f32 %v10051_v22, %v11871_v13 }
 0x636   : > { %v12357_v5 = vpop.f32.mrb[142].mxu1  ;;  %v10423_v62 = vmax.f32 %v10052_v43, %v11870_v27  ;;  %v12356_v14 = vadd.f32 %v12355_v55, %v12354_v63  ;;  %v9778_v2 = vmul.f32 0.1, %v17445_v40  ;;  %v13084_v43 = vld [vmem:[%s13296_s29 + $0xc8] sm:$0xff]  ;;  %vm9746_vm2 = vcmp.gt.f32.partialorder %v17445_v40, 0.0 }
 0x637   : > { %v12358_v1 = vpop.f32.mrb[143].mxu1  ;;  %v10655_v33 = vsel %vm10511_vm10, %v10654_v56, %v10418_v8  ;;  %v10425_v26 = vmax.f32 %v10053_v46, %v11872_v53  ;;  %v10661_v39 = vrot.slane %v10421_v4, 7  ;;  %v9715_v21 = vadd.f32 %v13084_v43, %v9683_v49 }
 0x638   : > { %v12359_v15 = vadd.f32 %v12358_v1, %v12357_v5  ;;  %v10668_v31 = vrot.slane %v10423_v62, 7  ;;  %v9590_v24 = vadd.f32 %v17045_v0, %v12356_v14  ;;  %v10656_v35 = vsel %vm10513_vm15, %v10654_v56, %v10655_v33 }
 0x639   : > { %v10657_v57 = vsel %vm10515_vm4, %v10654_v56, %v10656_v35  ;;  %v10675_v38 = vrot.slane %v10425_v26, 7  ;;  %v10662_v13 = vsel %vm10511_vm10, %v10661_v39, %v10420_v30  ;;  %v9779_v5 = vmul.f32 0.1, %v9715_v21  ;;  %v13085_v30 = vld [vmem:[%s13296_s29 + $0xd0] sm:$0xff] }
 0x63a   : > { %v9593_v44 = vadd.f32 %v17049_v37, %v12359_v15  ;;  %v10669_v6 = vsel %vm10511_vm10, %v10668_v31, %v10422_v47  ;;  %v9645_v22 = vmul.f32 %v17413_v11, %v9590_v24  ;;  %v17463_v46 = vsel %vm10517_vm6, %v10654_v56, %v10657_v57  ;;  %v13086_v47 = vld [vmem:[%s13296_s29 + $0xd8] sm:$0xff] }
 0x63b   : > { %v10670_v0 = vsel %vm10513_vm15, %v10668_v31, %v10669_v6  ;;  %v10786_v37 = vcombine.low %v17421_v48, %v17463_v46  ;;  %v10676_v59 = vsel %vm10511_vm10, %v10675_v38, %v10424_v34  ;;  %v10663_v56 = vsel %vm10513_vm15, %v10661_v39, %v10662_v13 }
 0x63c   : > { %v9646_v63 = vmul.f32 %v17413_v11, %v9593_v44  ;;  %v10671_v27 = vsel %vm10515_vm4, %v10668_v31, %v10670_v0  ;;  %v9684_v55 = vadd.f32 %v17427_v52, %v9645_v22  ;;  %v10664_v62 = vsel %vm10515_vm4, %v10661_v39, %v10663_v56 }
 0x63d   : > { %v17474_v4 = vsel %vm10517_vm6, %v10668_v31, %v10671_v27  ;;  %v10677_v49 = vsel %vm10513_vm15, %v10675_v38, %v10676_v59  ;;  %v17484_v33 = vsel %vm10517_vm6, %v10661_v39, %v10664_v62  ;;  %vm9747_vm5 = vcmp.gt.f32.partialorder %v9715_v21, 0.0 }
 0x63e   : > { %v9685_v8 = vadd.f32 %v17427_v52, %v9646_v63  ;;  %v10858_v53 = vcombine.low %v17432_v42, %v17474_v4  ;;  %v9716_v1 = vadd.f32 %v13085_v30, %v9684_v55  ;;  %v10678_v34 = vsel %vm10515_vm4, %v10675_v38, %v10677_v49 }
 0x63f   : > { %v10822_v31 = vcombine.low %v17442_v45, %v17484_v33  ;;  %v17491_v24 = vsel %vm10517_vm6, %v10675_v38, %v10678_v34  ;;  %v9810_v6 = vsel %vm9746_vm2, %v17445_v40, %v9778_v2  ;;  %v9811_v22 = vsel %vm9747_vm5, %v9715_v21, %v9779_v5 }
 0x640   : > { %v9717_v14 = vadd.f32 %v13086_v47, %v9685_v8  ;;  %v12360_v15 = vpop.f32.mrb[144].mxu1  ;;  %vm9748_vm14 = vcmp.gt.f32.partialorder %v9716_v1, 0.0  ;;  %v9780_v44 = vmul.f32 0.1, %v9716_v1  ;;  %v10894_v39 = vcombine.low %v17449_v20, %v17491_v24 }
 0x641   : > { %v12361_v26 = vpop.f32.mrb[145].mxu1 }
 0x642   : > { %vm9749_vm0 = vcmp.gt.f32.partialorder %v9717_v14, 0.0  ;;  %v9781_v35 = vmul.f32 0.1, %v9717_v14  ;;  %v12362_v43 = vadd.f32 %v12361_v26, %v12360_v15  ;;  %v12363_v57 = vpop.f32.mrb[146].mxu1  ;;  %v9812_v63 = vsel %vm9748_vm14, %v9716_v1, %v9780_v44 }
 0x643   : > { %v12364_v27 = vpop.f32.mrb[147].mxu1  ;;  %v9830_v13 = vmax.f32 %v9810_v6, %v9812_v63 }
 0x644   : > { %v9813_v0 = vsel %vm9749_vm0, %v9717_v14, %v9781_v35  ;;  %v12365_v55 = vadd.f32 %v12364_v27, %v12363_v57  ;;  %v9598_v38 = vadd.f32 %v12362_v43, %v17180_v16 }
 0x645   : > { %v9831_v59 = vmax.f32 %v9811_v22, %v9813_v0  ;;  %v10061_v8 = vrot.slane %v9830_v13, %v17082_v12  ;;  %v10054_v56 = vcombine.high %v9830_v13, %v9830_v13  ;;  %v17518_v13 = vrot.slane %v11889_v3, %v17082_v12 }
 0x646   : > { %v9601_v62 = vadd.f32 %v12365_v55, %v17189_v10  ;;  %v9647_v1 = vmul.f32 %v17413_v11, %v9598_v38  ;;  %v13087_v38 = vld [vmem:[%s13296_s29 + $0xe0] sm:$0xff]  ;;  %v17530_v3 = vrot.slane %v11893_v9, %v17082_v12 }
 0x647   : > { %v10078_v30 = vrot.slane %v9831_v59, %v17082_v12  ;;  %v10069_v15 = vcombine.high %v10061_v8, %v10061_v8  ;;  %v17501_v21 = vrot.slane %v10054_v56, %v17082_v12  ;;  %v10071_v5 = vcombine.high %v9831_v59, %v9831_v59 }
 0x648   : > { %v12366_v49 = vpop.f32.mrb[148].mxu1  ;;  %v9648_v16 = vmul.f32 %v17413_v11, %v9601_v62  ;;  %v9686_v44 = vadd.f32 %v17427_v52, %v9647_v1  ;;  %v11873_v0 = vrot.slane %v10061_v8, 9 }
 0x649   : > { %v12367_v47 = vpop.f32.mrb[149].mxu1  ;;  %v10086_v14 = vcombine.high %v10078_v30, %v10078_v30  ;;  %v11874_v34 = vrot.slane %v10069_v15, 9  ;;  %v10070_v10 = vcombine.high %v17501_v21, %v17501_v21  ;;  %v17508_v26 = vrot.slane %v10071_v5, %v17082_v12 }
 0x64a   : > { %v12369_v40 = vpop.f32.mrb[150].mxu1  ;;  %v12368_v35 = vadd.f32 %v12367_v47, %v12366_v49  ;;  %v9687_v57 = vadd.f32 %v17427_v52, %v9648_v16  ;;  %v9718_v56 = vadd.f32 %v13087_v38, %v9686_v44  ;;  %v10426_v5 = vmax.f32 %v10061_v8, %v11873_v0  ;;  %v13089_v44 = vld [vmem:[%s13296_s29 + $0xf0] sm:$0xff] }
 0x64b   : > { %v12370_v2 = vpop.f32.mrb[151].mxu1  ;;  %v11878_v43 = vrot.slane %v10086_v14, 9  ;;  %v10427_v22 = vmax.f32 %v10069_v15, %v11874_v34  ;;  %v11876_v59 = vrot.slane %v10070_v10, 9  ;;  %v10087_v55 = vcombine.high %v17508_v26, %v17508_v26 }
 0x64c   : > { %v12371_v6 = vadd.f32 %v12370_v2, %v12369_v40  ;;  %v9606_v63 = vadd.f32 %v17174_v32, %v12368_v35  ;;  %v13088_v32 = vld [vmem:[%s13296_s29 + $0xe8] sm:$0xff]  ;;  %v17537_v2 = vrot.slane %v10962_v25, %v17082_v12  ;;  %v11877_v1 = vrot.slane %v10078_v30, 9  ;;  %s350_s29 = sand.u32 1, %s13145_s14  }
 0x64d   : > { %v10431_v49 = vmax.f32 %v10086_v14, %v11878_v43  ;;  %v9719_v47 = vadd.f32 %v13088_v32, %v9687_v57  ;;  %v10682_v15 = vrot.slane %v10427_v22, 7  ;;  %v17550_v14 = vrot.slane %v11891_v19, %v17082_v12  ;;  %s11186_s25 = sshll.u32 %s350_s29, 4  ;;  %s11109_s17 = scalar_lea.sflag [#allocation4], %s350_s29 }
 0x64e   : > { %v9609_v27 = vadd.f32 %v17185_v18, %v12371_v6  ;;  %v9649_v62 = vmul.f32 %v17413_v11, %v9606_v63  ;;  %v10429_v16 = vmax.f32 %v10070_v10, %v11876_v59  ;;  %v11880_v34 = vrot.slane %v10087_v55, 9 }
 0x64f   : > { %v9782_v25 = vmul.f32 0.1, %v9718_v56  ;;  %v10696_v43 = vrot.slane %v10431_v49, 7  ;;  %vm9750_vm3 = vcmp.gt.f32.partialorder %v9718_v56, 0.0  ;;  %v9783_v54 = vmul.f32 0.1, %v9719_v47 }
 0x650   : > { %v9650_v18 = vmul.f32 %v17413_v11, %v9609_v27  ;;  %v9688_v40 = vadd.f32 %v17427_v52, %v9649_v62  ;;  %v17543_v11 = vrot.slane %v10916_v17, %v17082_v12  ;;  %vm9751_vm7 = vcmp.gt.f32.partialorder %v9719_v47, 0.0 }
 0x651   : > { %v11875_v57 = vrot.slane %v17501_v21, 9  ;;  %v10430_v19 = vmax.f32 %v10078_v30, %v11877_v1  ;;  %v10433_v10 = vmax.f32 %v10087_v55, %v11880_v34  ;;  %v9814_v6 = vsel %vm9750_vm3, %v9718_v56, %v9782_v25 }
 0x652   : > { %v9689_v9 = vadd.f32 %v17427_v52, %v9650_v18  ;;  %v9720_v35 = vadd.f32 %v13089_v44, %v9688_v40  ;;  %v10683_v52 = vsel %vm10511_vm10, %v10682_v15, %v10426_v5  ;;  %v9815_v63 = vsel %vm9751_vm7, %v9719_v47, %v9783_v54 }
 0x653   : > { %v10684_v59 = vsel %vm10513_vm15, %v10682_v15, %v10683_v52  ;;  %v11879_v38 = vrot.slane %v17508_v26, 9  ;;  %v10697_v49 = vsel %vm10511_vm10, %v10696_v43, %v10430_v19  ;;  %v17565_v32 = vrot.slane %v10429_v16, 7 }
 0x654   : > { %v9721_v17 = vadd.f32 %v13090_v36, %v9689_v9  ;;  %vm9752_vm8 = vcmp.gt.f32.partialorder %v9720_v35, 0.0  ;;  %v9784_v8 = vmul.f32 0.1, %v9720_v35  ;;  %v17572_v30 = vrot.slane %v10786_v37, %v17220_v41 }
 0x655   : > { %v17578_v55 = vrot.slane %v11895_v51, %v17082_v12  ;;  %v10428_v56 = vmax.f32 %v17501_v21, %v11875_v57  ;;  %v10685_v5 = vsel %vm10515_vm4, %v10682_v15, %v10684_v59  ;;  %v10698_v48 = vsel %vm10513_vm15, %v10696_v43, %v10697_v49 }
 0x656   : > { %vm9753_vm9 = vcmp.gt.f32.partialorder %v9721_v17, 0.0  ;;  %v9785_v50 = vmul.f32 0.1, %v9721_v17  ;;  %v9816_v22 = vsel %vm9752_vm8, %v9720_v35, %v9784_v8  ;;  %v10703_v46 = vrot.slane %v10433_v10, 7 }
 0x657   : > { %v9832_v0 = vmax.f32 %v9814_v6, %v9816_v22  ;;  %v10432_v37 = vmax.f32 %v17508_v26, %v11879_v38  ;;  %v10690_v60 = vsel %vm10511_vm10, %v17565_v32, %v10428_v56  ;;  %v10686_v25 = vsel %vm10517_vm6, %v10682_v15, %v10685_v5 }
 0x658   : > { %v9817_v27 = vsel %vm9753_vm9, %v9721_v17, %v9785_v50  ;;  %v10699_v36 = vsel %vm10515_vm4, %v10696_v43, %v10698_v48  ;;  %v10691_v10 = vsel %vm10513_vm15, %v17565_v32, %v10690_v60 }
 0x659   : > { %v9833_v62 = vmax.f32 %v9815_v63, %v9817_v27  ;;  %v10088_v18 = vcombine.high %v9832_v0, %v9832_v0  ;;  %v10095_v23 = vrot.slane %v9832_v0, %v17082_v12  ;;  %v10704_v26 = vsel %vm10511_vm10, %v10703_v46, %v10432_v37 }
 0x65a   : > { %v10700_v15 = vsel %vm10517_vm6, %v10696_v43, %v10699_v36  ;;  %v10705_v38 = vsel %vm10513_vm15, %v10703_v46, %v10704_v26 }
 0x65b   : > { %v10105_v47 = vcombine.high %v9833_v62, %v9833_v62  ;;  %v10112_v40 = vrot.slane %v9833_v62, %v17082_v12  ;;  %v10102_v1 = vrot.slane %v10088_v18, %v17082_v12  ;;  %v10103_v9 = vcombine.high %v10095_v23, %v10095_v23 }
 0x65c   : > { %v11881_v21 = vrot.slane %v10095_v23, 9  ;;  %v10692_v18 = vsel %vm10515_vm4, %v17565_v32, %v10691_v10 }
 0x65d   : > { %v10119_v16 = vrot.slane %v10105_v47, %v17082_v12  ;;  %v10120_v58 = vcombine.high %v10112_v40, %v10112_v40  ;;  %v10104_v51 = vcombine.high %v10102_v1, %v10102_v1  ;;  %v11882_v34 = vrot.slane %v10103_v9, 9 }
 0x65e   : > { %v11885_v35 = vrot.slane %v10112_v40, 9  ;;  %v11883_v17 = vrot.slane %v10102_v1, 9  ;;  %v10434_v6 = vmax.f32 %v10095_v23, %v11881_v21 }
 0x65f   : > { %v10121_v44 = vcombine.high %v10119_v16, %v10119_v16  ;;  %v11886_v54 = vrot.slane %v10120_v58, 9  ;;  %v11884_v8 = vrot.slane %v10104_v51, 9  ;;  %v10435_v52 = vmax.f32 %v10103_v9, %v11882_v34 }
 0x660   : > { %v11887_v57 = vrot.slane %v10119_v16, 9  ;;  %v10438_v0 = vmax.f32 %v10112_v40, %v11885_v35  ;;  %v10436_v62 = vmax.f32 %v10102_v1, %v11883_v17  ;;  %v10706_v1 = vsel %vm10515_vm4, %v10703_v46, %v10705_v38 }
 0x661   : > { %v11888_v50 = vrot.slane %v10121_v44, 9  ;;  %v10439_v19 = vmax.f32 %v10120_v58, %v11886_v54  ;;  %v10437_v22 = vmax.f32 %v10104_v51, %v11884_v8  ;;  %v10710_v63 = vrot.slane %v10435_v52, 7 }
 0x662   : > { %v10440_v47 = vmax.f32 %v10119_v16, %v11887_v57  ;;  %v10693_v54 = vsel %vm10517_vm6, %v17565_v32, %v10692_v18  ;;  %v10707_v26 = vsel %vm10517_vm6, %v10703_v46, %v10706_v1  ;;  %v10865_v57 = vrot.slane %v10858_v53, %v17220_v41 }
 0x663   : > { %v10441_v27 = vmax.f32 %v10121_v44, %v11888_v50  ;;  %v10724_v59 = vrot.slane %v10439_v19, 7  ;;  %v10711_v49 = vsel %vm10511_vm10, %v10710_v63, %v10434_v6  ;;  %v10717_v56 = vrot.slane %v10437_v22, 7 }
 0x664   : > { %v10712_v5 = vsel %vm10513_vm15, %v10710_v63, %v10711_v49  ;;  %v11018_v32 = vrot.slane %v11010_v28, %v17082_v12  ;;  %v10829_v46 = vrot.slane %v10822_v31, %v17220_v41  ;;  %v10901_v53 = vrot.slane %v10894_v39, %v17220_v41 }
 0x665   : > { %v10725_v23 = vsel %vm10511_vm10, %v10724_v59, %v10438_v0  ;;  %v10731_v9 = vrot.slane %v10441_v27, 7  ;;  %v10713_v43 = vsel %vm10515_vm4, %v10710_v63, %v10712_v5  ;;  %v10718_v48 = vsel %vm10511_vm10, %v10717_v56, %v10436_v62 }
 0x666   : > { %v10726_v40 = vsel %vm10513_vm15, %v10724_v59, %v10725_v23  ;;  %v10714_v37 = vsel %vm10517_vm6, %v10710_v63, %v10713_v43  ;;  %v10719_v60 = vsel %vm10513_vm15, %v10717_v56, %v10718_v48 }
 0x667   : > { %v10727_v58 = vsel %vm10515_vm4, %v10724_v59, %v10726_v40  ;;  %v10732_v16 = vsel %vm10511_vm10, %v10731_v9, %v10440_v47  ;;  %v10795_v51 = vcombine.low %v10686_v25, %v10714_v37  ;;  %v10720_v34 = vsel %vm10515_vm4, %v10717_v56, %v10719_v60 }
 0x668   : > { %v10728_v21 = vsel %vm10517_vm6, %v10724_v59, %v10727_v58  ;;  %v10733_v44 = vsel %vm10513_vm15, %v10731_v9, %v10732_v16  ;;  %v10721_v36 = vsel %vm10517_vm6, %v10717_v56, %v10720_v34 }
 0x669   : > { %v10867_v35 = vcombine.low %v10700_v15, %v10728_v21  ;;  %v10734_v17 = vsel %vm10515_vm4, %v10731_v9, %v10733_v44  ;;  %v10802_v8 = vrot.slane %v10795_v51, %v17220_v41  ;;  %v10831_v52 = vcombine.low %v10693_v54, %v10721_v36 }
 0x66a   : > { %v10735_v25 = vsel %vm10517_vm6, %v10731_v9, %v10734_v17 }
 0x66b   : > { %v10874_v50 = vrot.slane %v10867_v35, %v17220_v41  ;;  %v10903_v19 = vcombine.low %v10707_v26, %v10735_v25  ;;  %v11890_v10 = vcombine.high %v17572_v30, %v10802_v8  ;;  %v10838_v6 = vrot.slane %v10831_v52, %v17220_v41 }
 0x66c   : > { %v10917_v42 = vcombine.low %v17572_v30, %v10802_v8 }
 0x66d   : > { %v11894_v4 = vcombine.high %v10865_v57, %v10874_v50  ;;  %v10910_v61 = vrot.slane %v10903_v19, %v17220_v41  ;;  %v11011_v29 = vcombine.low %v10865_v57, %v10874_v50  ;;  %v10953_v28 = vrot.slane %v11890_v10, %v17082_v12 }
 0x66e   : > { %v10963_v22 = vcombine.low %v10829_v46, %v10838_v6  ;;  %v11892_v63 = vcombine.high %v10829_v46, %v10838_v6  ;;  %v10931_v45 = vrot.slane %v10917_v42, %v17082_v12 }
 0x66f   : > { %v11047_v33 = vrot.slane %v11894_v4, %v17082_v12  ;;  %v11057_v31 = vcombine.low %v10901_v53, %v10910_v61  ;;  %v11896_v15 = vcombine.high %v10901_v53, %v10910_v61  ;;  %v11025_v30 = vrot.slane %v11011_v29, %v17082_v12 }
 0x670   : > { %v10954_v0 = vcombine.low %v17518_v13, %v10953_v28  ;;  %v10977_v20 = vrot.slane %v10963_v22, %v17082_v12  ;;  %v11001_v24 = vrot.slane %v11892_v63, %v17082_v12  ;;  %v10932_v41 = vcombine.low %v17543_v11, %v10931_v45 }
 0x671   : > { %v11048_v39 = vcombine.low %v17530_v3, %v11047_v33  ;;  %v11071_v27 = vrot.slane %v11057_v31, %v17082_v12  ;;  %v11095_v59 = vrot.slane %v11896_v15, %v17082_v12  ;;  %v11026_v38 = vcombine.low %v11018_v32, %v11025_v30 }
 0x672   : > { %10955 = vrot.lane.b32.xlu0 %v10954_v0, %s13157_s11  ;;  %v10978_v62 = vcombine.low %v17537_v2, %v10977_v20  ;;  %v11002_v13 = vcombine.low %v17550_v14, %v11001_v24 }
 0x673   : > { %11049 = vrot.lane.b32.xlu1 %v11048_v39, %s13157_s11  ;;  %v11072_v49 = vcombine.low %v17560_v7, %v11071_v27  ;;  %v11096_v11 = vcombine.low %v17578_v55, %v11095_v59  ;;  %s352_s11 = scalar_lea.vmem [#allocation3], %s11186_s25  ;;  %s13097_s25 = scalar_lea.vmem %s13096_s21, 512 }
 0x674   : > { %s11123_s27 = sshll.u32 %s352_s11, 4  ;;  %s17673_s27 = int_to_ptr.vmem [resolvable:$true] %s11123_s27 }
 0x675   : > { %s13091_s18 = scalar_lea.vmem %s17673_s27, 256  ;;  %p13098_p0 = scmp.lt.s32.totalorder %s17673_s27, %s13096_s21 }
 0x676   : > { %10979 = vrot.lane.b32.xlu0 %v10978_v62, %s13156_s30  ;;  %p13092_p11 = scmp.ne.s32.totalorder %s17673_s27, %s13091_s18  ;;  %p13099_p1 = scmp.lt.s32.totalorder %s13097_s25, %s13091_s18 }
 0x677   : > { %11073 = vrot.lane.b32.xlu1 %v11072_v49, %s13156_s30 }
 0x678   : > { %p13093_p12 = pnand %p13092_p11, %p13255_p5  ;;  %p13100_p2 = por %p13099_p1, %p13098_p0 }
 0x67a   : > { %11003 = vrot.lane.b32.xlu0 %v11002_v13, %s13158_s12  ;;  %p13094_p13 = pneg %p13093_p12 }
 0x67b   : > { %11097 = vrot.lane.b32.xlu1 %v11096_v11, %s13158_s12 }
 0x67c   : > { %p13101_p3 = pnand %p13100_p2, %p13094_p13 }
 0x6e4   : > { %v10956_v12 = vpop.permute.xlu0 %10955 }
 0x6e5   : > { %v11050_v3 = vpop.permute.xlu1 %11049  ;;  %v11100_v7 = vsel %vm2681_vm11, %v10932_v41, %v10956_v12 }
 0x6e6   : > { %v11103_v55 = vsel %vm2681_vm11, %v11026_v38, %v11050_v3 }
 0x6e8   : > { %v10980_v2 = vpop.permute.xlu0 %10979 }
 0x6e9   : > { %v11074_v14 = vpop.permute.xlu1 %11073  ;;  %v11101_v18 = vsel %vm2714_vm12, %v11100_v7, %v10980_v2 }
 0x6ea   : > { %v11104_v47 = vsel %vm2714_vm12, %v11103_v55, %v11074_v14 }
 0x6ec   : > { %v11004_v56 = vpop.permute.xlu0 %11003 }
 0x6ed   : > { %v11102_v5 = vsel %vm2747_vm13, %v11101_v18, %v11004_v56  ;;  %v11098_v23 = vpop.permute.xlu1 %11097 }
 0x6ee   : > { %11106 = vst [vmem:[%s352_s11] sm:$0xff] %v11102_v5  ;;  %v11105_v9 = vsel %vm2747_vm13, %v11104_v47, %v11098_v23 }
 0x6ef   : > { %11107 = vst [vmem:[%s352_s11 + $0x8] sm:$0xff] %v11105_v9 }
 0x6f0   : > { %13104 = shalt.err (!%p13101_p3)
}
 0x6f1   : > { %s13105_s29 = scalar_lea.hbm %s17671_s28, 256  ;;  %s13109_s30 = scalar_lea.hbm %s17724_s10, 512 }
 0x6f2   : > { %p13106_p4 = scmp.ne.s32.totalorder %s17671_s28, %s13105_s29  ;;  %p13110_p9 = scmp.lt.u32.totalorder %s17671_s28, %s17724_s10 }
 0x6f3   : > { %p13111_p10 = scmp.lt.u32.totalorder %s13109_s30, %s13105_s29  ;;  %p13113_p12 = scmp.lt.u32.totalorder %s13105_s29, %s17671_s28 }
 0x6f4   : > { %p13107_p7 = pnand %p13106_p4, %p13255_p5 }
 0x6f5   : > { %p13112_p11 = por %p13111_p10, %p13110_p9 }
 0x6f6   : > { %p13108_p8 = pneg %p13107_p7 }
 0x6f7   : > { %p13114_p13 = por %p13113_p12, %p13112_p11 }
 0x6f9   : > { %p13115_p0 = pnand %p13114_p13, %p13108_p8 }
 0x6fb   : > { %13118 = shalt.err (!%p13115_p0)
}
 0x6fc   : > { %12502 = dma.vmem_to_hbm [thread:$0]  (%p13255_p5), %s17673_s27, 256, %s17671_s28, %s11109_s17  }
 0x6fd PF: > { %p12508_p1 = scmp.ge.s32.totalorder %s13153_s16, 2  ;;  %s11135_s18 = sand.u32 1, %s13141_s13  }
 0x6fe   : > { %s11136_s21 = scalar_lea.sflag [#allocation4], %s11135_s18 }
 0x6ff   : > { %p12505_p2 = pnand %p12508_p1, %p13259_p6 }
 0x701   : > { %13136 = dma.done.wait (!%p12505_p2), %s11136_s21, 256  }
 0x702   : > { %13138 = vsyncadd (!%p12505_p2), %s11136_s21, 4294967040  ;;  %p20_p3 = scmp.ge.s32.totalorder %s13242_s19, 4   ;;  %s17895_s13 = smov %s13145_s14 }
 0x703   : > { %s17896_s14 = smov %s13149_s15  ;;  %s17897_s15 = smov %s13253_s22 }
 0x704   : > { %s17898_s16 = smov %s13242_s19  ;;  %22 = sbr.rel (!%p20_p3) target bundleno = 3 (0x3), region = 98 }
 0x70b   :  { %11141 = vsyncpa [#allocation4], 1 }
 0x70c   :  { %11143 = vsyncpa [#allocation4 + $0x1], 1 }

</bundles_post_ra>
